<compile_context>
chip_gen: v7x
topology: tpu7x:2x2x1
jax: 0.10.0
libtpu: 0.0.40
codegen_flags: <defaults>
</compile_context>

<pallas_src>
import jax
import jax.numpy as jnp
from jax.experimental import pallas as pl
from jax.experimental.pallas import tpu as pltpu


# ------------------------------ fused kernel -------------------------------- #

def _ma_fused_kernel(x_ref, wt_ref, bt_ref, w0b_ref, b0_ref, sel_ref, selt_ref,
                     w1b_ref, b1_ref, wp_ref, bp_ref, o_ref):
    # One batch element per grid step; everything stays in VMEM, all 2-D.
    x = x_ref[0]                                                       # (N, C)

    # trans_dims: (N, C) @ (C, 4C) + b
    h = jnp.dot(x, wt_ref[...], preferred_element_type=jnp.float32) + bt_ref[...]

    # per-head linear_0 as a single lane-dense block-diagonal matmul:
    # (N, H*d) @ (H*d, H*k) -> (N, H*k); column j*k+t is head j, channel t.
    logits = (jnp.dot(h, w0b_ref[...], preferred_element_type=jnp.float32)
              + b0_ref[...])                                           # (N, H*k)

    # softmax over the sequence axis (torch dim=-2) == axis 0 here.
    m = jnp.max(logits, axis=0, keepdims=True)
    e = jnp.exp(logits - m)
    attn = e / jnp.sum(e, axis=0, keepdims=True)
    # NOTE: exact divides keep the 1e-5 check tight; pl.reciprocal(approx=True)
    # would push them to the EUP at ~bf16 accuracy.

    # second normalization: divide by the per-(token, head) sum over k.
    # 0/1 selection matmuls keep the reduction 2-D / lane-dense (no reshapes).
    head_sum = jnp.dot(attn, sel_ref[...],
                       preferred_element_type=jnp.float32)             # (N, H)
    bcast = jnp.dot(head_sum, selt_ref[...],
                    preferred_element_type=jnp.float32)                # (N, H*k)
    attn = attn / (1e-9 + bcast)

    # per-head linear_1 (block diagonal) -> heads already merged along lanes.
    y = (jnp.dot(attn, w1b_ref[...], preferred_element_type=jnp.float32)
         + b1_ref[...])                                                # (N, H*d)

    # output projection
    out = jnp.dot(y, wp_ref[...], preferred_element_type=jnp.float32) + bp_ref[...]
    o_ref[0] = out.astype(o_ref.dtype)


# --------------------------- parameter packing ------------------------------ #

def prepare_params(params, num_heads=8, coef=4):
    """One-time packing (outside the hot path) of the shared per-head weights
    into lane-dense block-diagonal form plus head-selection matrices."""
    d, k = params["w0_t"].shape
    H = num_heads * coef
    dt = params["w0_t"].dtype
    eye = jnp.eye(H, dtype=dt)
    w0_blk = jnp.kron(eye, params["w0_t"])                 # (H*d, H*k)
    w1_blk = jnp.kron(eye, params["w1_t"])                 # (H*k, H*d)
    b0_rep = jnp.tile(params["b0"], (1, H))                # (1, H*k)
    b1_rep = jnp.tile(params["b1"], (1, H))                # (1, H*d)
    sel = jnp.kron(eye, jnp.ones((k, 1), dt))              # (H*k, H)
    return dict(params, w0_blk=w0_blk, w1_blk=w1_blk, b0_rep=b0_rep,
                b1_rep=b1_rep, sel=sel, sel_t=sel.T)


# ------------------------------ module forward ------------------------------ #

def ma_forward(x, prep):
    B, N, C = x.shape

    kernel = pl.pallas_call(
        _ma_fused_kernel,
        out_shape=jax.ShapeDtypeStruct((B, N, C), x.dtype),
        grid=(B,),
        in_specs=[
            pl.BlockSpec((1, N, C), lambda b: (b, 0, 0)),
            pl.BlockSpec(prep["wt_t"].shape, lambda b: (0, 0)),
            pl.BlockSpec(prep["bt"].shape, lambda b: (0, 0)),
            pl.BlockSpec(prep["w0_blk"].shape, lambda b: (0, 0)),
            pl.BlockSpec(prep["b0_rep"].shape, lambda b: (0, 0)),
            pl.BlockSpec(prep["sel"].shape, lambda b: (0, 0)),
            pl.BlockSpec(prep["sel_t"].shape, lambda b: (0, 0)),
            pl.BlockSpec(prep["w1_blk"].shape, lambda b: (0, 0)),
            pl.BlockSpec(prep["b1_rep"].shape, lambda b: (0, 0)),
            pl.BlockSpec(prep["wp_t"].shape, lambda b: (0, 0)),
            pl.BlockSpec(prep["bp"].shape, lambda b: (0, 0)),
        ],
        out_specs=pl.BlockSpec((1, N, C), lambda b: (b, 0, 0)),
        compiler_params=pltpu.CompilerParams(
            dimension_semantics=("parallel",),
            vmem_limit_bytes=32 * 1024 * 1024,
        ),
    )
    return kernel(x, prep["wt_t"], prep["bt"], prep["w0_blk"], prep["b0_rep"],
                  prep["sel"], prep["sel_t"], prep["w1_blk"], prep["b1_rep"],
                  prep["wp_t"], prep["bp"])


# -------------------------------- reference --------------------------------- #

def ma_reference(x, params, num_heads=8, coef=4):
    B, N, C = x.shape
    H = num_heads * coef
    d = (C * coef) // H
    h = x @ params["wt_t"] + params["bt"]
    h = h.reshape(B, N, H, d).transpose(0, 2, 1, 3)          # (B,H,N,d)
    attn = h @ params["w0_t"] + params["b0"]                 # (B,H,N,k)
    attn = jax.nn.softmax(attn, axis=-2)
    attn = attn / (1e-9 + attn.sum(axis=-1, keepdims=True))
    y = attn @ params["w1_t"] + params["b1"]                 # (B,H,N,d)
    y = y.transpose(0, 2, 1, 3).reshape(B, N, C * coef)
    return y @ params["wp_t"] + params["bp"]


# ---------------------------------- main ------------------------------------ #

if __name__ == "__main__":
    B, N, dim = 2, 16, 64
    num_heads, coef = 8, 4
    H = num_heads * coef           # 32
    d = dim * coef // H            # 8
    k = 256 // coef                # 64

    key = jax.random.PRNGKey(0)
    keys = jax.random.split(key, 9)
    s = 0.05
    params = {
        # nn.Linear weights are (out,in) in torch; stored here pre-transposed.
        "wt_t": s * jax.random.normal(keys[0], (dim, dim * coef), jnp.float32),
        "bt":   s * jax.random.normal(keys[1], (1, dim * coef), jnp.float32),
        "w0_t": s * jax.random.normal(keys[2], (d, k), jnp.float32),
        "b0":   s * jax.random.normal(keys[3], (1, k), jnp.float32),
        "w1_t": s * jax.random.normal(keys[4], (k, d), jnp.float32),
        "b1":   s * jax.random.normal(keys[5], (1, d), jnp.float32),
        "wp_t": s * jax.random.normal(keys[6], (dim * coef, dim), jnp.float32),
        "bp":   s * jax.random.normal(keys[7], (1, dim), jnp.float32),
    }
    x = jax.random.normal(keys[8], (B, N, dim), jnp.float32)

    prep = prepare_params(params, num_heads=num_heads, coef=coef)

    fwd = jax.jit(ma_forward)
    out = jax.block_until_ready(fwd(x, prep))

    ref = ma_reference(x, params, num_heads=num_heads, coef=coef)
    assert out.shape == (B, N, dim)
    assert jnp.allclose(out, ref, atol=1e-5, rtol=1e-5), \
        float(jnp.max(jnp.abs(out - ref)))

    print("KERNEL_OK")
</pallas_src>

<mosaic_0001>
module attributes {stable_mosaic.version = 11 : i64} {
  func.func @_ma_fused_kernel(%arg0: i32, %arg1: memref<1x16x64xf32, #tpu.memory_space<vmem>>, %arg2: memref<64x256xf32, #tpu.memory_space<vmem>>, %arg3: memref<1x256xf32, #tpu.memory_space<vmem>>, %arg4: memref<256x2048xf32, #tpu.memory_space<vmem>>, %arg5: memref<1x2048xf32, #tpu.memory_space<vmem>>, %arg6: memref<2048x32xf32, #tpu.memory_space<vmem>>, %arg7: memref<32x2048xf32, #tpu.memory_space<vmem>>, %arg8: memref<2048x256xf32, #tpu.memory_space<vmem>>, %arg9: memref<1x256xf32, #tpu.memory_space<vmem>>, %arg10: memref<256x64xf32, #tpu.memory_space<vmem>>, %arg11: memref<1x64xf32, #tpu.memory_space<vmem>>, %arg12: memref<1x16x64xf32, #tpu.memory_space<vmem>>) attributes {dimension_semantics = [#tpu.dimension_semantics<parallel>], iteration_bounds = array<i64: 2>, scalar_prefetch = 0 : i64, scratch_operands = 0 : i64, tpu.core_type = #tpu.core_type<tc>, window_params = [{transform_indices = @transform_0, window_bounds = array<i64: 1, 16, 64>}, {pipeline_mode = #tpu.pipeline_mode<synchronous>, transform_indices = @transform_1, window_bounds = array<i64: 64, 256>}, {pipeline_mode = #tpu.pipeline_mode<synchronous>, transform_indices = @transform_2, window_bounds = array<i64: 1, 256>}, {pipeline_mode = #tpu.pipeline_mode<synchronous>, transform_indices = @transform_3, window_bounds = array<i64: 256, 2048>}, {pipeline_mode = #tpu.pipeline_mode<synchronous>, transform_indices = @transform_4, window_bounds = array<i64: 1, 2048>}, {pipeline_mode = #tpu.pipeline_mode<synchronous>, transform_indices = @transform_5, window_bounds = array<i64: 2048, 32>}, {pipeline_mode = #tpu.pipeline_mode<synchronous>, transform_indices = @transform_6, window_bounds = array<i64: 32, 2048>}, {pipeline_mode = #tpu.pipeline_mode<synchronous>, transform_indices = @transform_7, window_bounds = array<i64: 2048, 256>}, {pipeline_mode = #tpu.pipeline_mode<synchronous>, transform_indices = @transform_8, window_bounds = array<i64: 1, 256>}, {pipeline_mode = #tpu.pipeline_mode<synchronous>, transform_indices = @transform_9, window_bounds = array<i64: 256, 64>}, {pipeline_mode = #tpu.pipeline_mode<synchronous>, transform_indices = @transform_10, window_bounds = array<i64: 1, 64>}, {transform_indices = @transform_11, window_bounds = array<i64: 1, 16, 64>}]} {
    %c0 = arith.constant 0 : index
    %c0_0 = arith.constant 0 : index
    %c0_1 = arith.constant 0 : index
    %0 = vector.load %arg1[%c0, %c0_0, %c0_1] : memref<1x16x64xf32, #tpu.memory_space<vmem>>, vector<1x16x64xf32>
    %1 = vector.shape_cast %0 : vector<1x16x64xf32> to vector<16x64xf32>
    %c0_2 = arith.constant 0 : index
    %c0_3 = arith.constant 0 : index
    %2 = vector.load %arg2[%c0_2, %c0_3] : memref<64x256xf32, #tpu.memory_space<vmem>>, vector<64x256xf32>
    %cst = arith.constant dense<0.000000e+00> : vector<16x256xf32>
    %3 = tpu.matmul %1, %2, %cst {dimension_numbers = #tpu.dot_dimension_numbers<[1], [0], [0], [1], [0, 0, 1, 1], [], []>} : vector<16x64xf32>, vector<64x256xf32>, vector<16x256xf32> -> vector<16x256xf32>
    %c0_4 = arith.constant 0 : index
    %c0_5 = arith.constant 0 : index
    %4 = vector.load %arg3[%c0_4, %c0_5] : memref<1x256xf32, #tpu.memory_space<vmem>>, vector<1x256xf32>
    %5 = vector.broadcast %4 : vector<1x256xf32> to vector<16x256xf32>
    %6 = arith.addf %3, %5 : vector<16x256xf32>
    %c0_6 = arith.constant 0 : index
    %c0_7 = arith.constant 0 : index
    %7 = vector.load %arg4[%c0_6, %c0_7] : memref<256x2048xf32, #tpu.memory_space<vmem>>, vector<256x2048xf32>
    %cst_8 = arith.constant dense<0.000000e+00> : vector<16x2048xf32>
    %8 = tpu.matmul %6, %7, %cst_8 {dimension_numbers = #tpu.dot_dimension_numbers<[1], [0], [0], [1], [0, 0, 1, 1], [], []>} : vector<16x256xf32>, vector<256x2048xf32>, vector<16x2048xf32> -> vector<16x2048xf32>
    %c0_9 = arith.constant 0 : index
    %c0_10 = arith.constant 0 : index
    %9 = vector.load %arg5[%c0_9, %c0_10] : memref<1x2048xf32, #tpu.memory_space<vmem>>, vector<1x2048xf32>
    %10 = vector.broadcast %9 : vector<1x2048xf32> to vector<16x2048xf32>
    %11 = arith.addf %8, %10 : vector<16x2048xf32>
    %cst_11 = arith.constant dense<0xFF800000> : vector<2048xf32>
    %12 = vector.multi_reduction <maximumf>, %11, %cst_11 [0] : vector<16x2048xf32> to vector<2048xf32>
    %13 = vector.shape_cast %12 : vector<2048xf32> to vector<1x2048xf32>
    %14 = vector.broadcast %13 : vector<1x2048xf32> to vector<16x2048xf32>
    %15 = arith.subf %11, %14 : vector<16x2048xf32>
    %16 = math.exp %15 : vector<16x2048xf32>
    %cst_12 = arith.constant dense<0.000000e+00> : vector<2048xf32>
    %17 = vector.multi_reduction <add>, %16, %cst_12 [0] : vector<16x2048xf32> to vector<2048xf32>
    %18 = vector.shape_cast %17 : vector<2048xf32> to vector<1x2048xf32>
    %19 = vector.broadcast %18 : vector<1x2048xf32> to vector<16x2048xf32>
    %20 = arith.divf %16, %19 : vector<16x2048xf32>
    %c0_13 = arith.constant 0 : index
    %c0_14 = arith.constant 0 : index
    %21 = vector.load %arg6[%c0_13, %c0_14] : memref<2048x32xf32, #tpu.memory_space<vmem>>, vector<2048x32xf32>
    %cst_15 = arith.constant dense<0.000000e+00> : vector<16x32xf32>
    %22 = tpu.matmul %20, %21, %cst_15 {dimension_numbers = #tpu.dot_dimension_numbers<[1], [0], [0], [1], [0, 0, 1, 1], [], []>} : vector<16x2048xf32>, vector<2048x32xf32>, vector<16x32xf32> -> vector<16x32xf32>
    %c0_16 = arith.constant 0 : index
    %c0_17 = arith.constant 0 : index
    %23 = vector.load %arg7[%c0_16, %c0_17] : memref<32x2048xf32, #tpu.memory_space<vmem>>, vector<32x2048xf32>
    %cst_18 = arith.constant dense<0.000000e+00> : vector<16x2048xf32>
    %24 = tpu.matmul %22, %23, %cst_18 {dimension_numbers = #tpu.dot_dimension_numbers<[1], [0], [0], [1], [0, 0, 1, 1], [], []>} : vector<16x32xf32>, vector<32x2048xf32>, vector<16x2048xf32> -> vector<16x2048xf32>
    %cst_19 = arith.constant 9.99999971E-10 : f32
    %25 = vector.broadcast %cst_19 : f32 to vector<16x2048xf32>
    %26 = arith.addf %25, %24 : vector<16x2048xf32>
    %27 = arith.divf %20, %26 : vector<16x2048xf32>
    %c0_20 = arith.constant 0 : index
    %c0_21 = arith.constant 0 : index
    %28 = vector.load %arg8[%c0_20, %c0_21] : memref<2048x256xf32, #tpu.memory_space<vmem>>, vector<2048x256xf32>
    %cst_22 = arith.constant dense<0.000000e+00> : vector<16x256xf32>
    %29 = tpu.matmul %27, %28, %cst_22 {dimension_numbers = #tpu.dot_dimension_numbers<[1], [0], [0], [1], [0, 0, 1, 1], [], []>} : vector<16x2048xf32>, vector<2048x256xf32>, vector<16x256xf32> -> vector<16x256xf32>
    %c0_23 = arith.constant 0 : index
    %c0_24 = arith.constant 0 : index
    %30 = vector.load %arg9[%c0_23, %c0_24] : memref<1x256xf32, #tpu.memory_space<vmem>>, vector<1x256xf32>
    %31 = vector.broadcast %30 : vector<1x256xf32> to vector<16x256xf32>
    %32 = arith.addf %29, %31 : vector<16x256xf32>
    %c0_25 = arith.constant 0 : index
    %c0_26 = arith.constant 0 : index
    %33 = vector.load %arg10[%c0_25, %c0_26] : memref<256x64xf32, #tpu.memory_space<vmem>>, vector<256x64xf32>
    %cst_27 = arith.constant dense<0.000000e+00> : vector<16x64xf32>
    %34 = tpu.matmul %32, %33, %cst_27 {dimension_numbers = #tpu.dot_dimension_numbers<[1], [0], [0], [1], [0, 0, 1, 1], [], []>} : vector<16x256xf32>, vector<256x64xf32>, vector<16x64xf32> -> vector<16x64xf32>
    %c0_28 = arith.constant 0 : index
    %c0_29 = arith.constant 0 : index
    %35 = vector.load %arg11[%c0_28, %c0_29] : memref<1x64xf32, #tpu.memory_space<vmem>>, vector<1x64xf32>
    %36 = vector.broadcast %35 : vector<1x64xf32> to vector<16x64xf32>
    %37 = arith.addf %34, %36 : vector<16x64xf32>
    %c0_30 = arith.constant 0 : index
    %c0_31 = arith.constant 0 : index
    %c0_32 = arith.constant 0 : index
    %38 = vector.load %arg12[%c0_30, %c0_31, %c0_32] : memref<1x16x64xf32, #tpu.memory_space<vmem>>, vector<1x16x64xf32>
    %39 = vector.shape_cast %38 : vector<1x16x64xf32> to vector<16x64xf32>
    %40 = vector.shape_cast %37 : vector<16x64xf32> to vector<1x16x64xf32>
    tpu.vector_store %arg12[%c0_30, %c0_31, %c0_32], %40 {strides = array<i32>} : memref<1x16x64xf32, #tpu.memory_space<vmem>>, vector<1x16x64xf32>,
    return
  }
  func.func @transform_0(%arg0: i32) -> (i32, i32, i32) {
    %c0_i32 = arith.constant 0 : i32
    %c0_i32_0 = arith.constant 0 : i32
    %c0_i32_1 = arith.constant 0 : i32
    return %arg0, %c0_i32, %c0_i32_0 : i32, i32, i32
  }
  func.func @transform_1(%arg0: i32) -> (i32, i32) {
    %c0_i32 = arith.constant 0 : i32
    %c0_i32_0 = arith.constant 0 : i32
    %c0_i32_1 = arith.constant 0 : i32
    return %c0_i32, %c0_i32_0 : i32, i32
  }
  func.func @transform_2(%arg0: i32) -> (i32, i32) {
    %c0_i32 = arith.constant 0 : i32
    %c0_i32_0 = arith.constant 0 : i32
    %c0_i32_1 = arith.constant 0 : i32
    return %c0_i32, %c0_i32_0 : i32, i32
  }
  func.func @transform_3(%arg0: i32) -> (i32, i32) {
    %c0_i32 = arith.constant 0 : i32
    %c0_i32_0 = arith.constant 0 : i32
    %c0_i32_1 = arith.constant 0 : i32
    return %c0_i32, %c0_i32_0 : i32, i32
  }
  func.func @transform_4(%arg0: i32) -> (i32, i32) {
    %c0_i32 = arith.constant 0 : i32
    %c0_i32_0 = arith.constant 0 : i32
    %c0_i32_1 = arith.constant 0 : i32
    return %c0_i32, %c0_i32_0 : i32, i32
  }
  func.func @transform_5(%arg0: i32) -> (i32, i32) {
    %c0_i32 = arith.constant 0 : i32
    %c0_i32_0 = arith.constant 0 : i32
    %c0_i32_1 = arith.constant 0 : i32
    return %c0_i32, %c0_i32_0 : i32, i32
  }
  func.func @transform_6(%arg0: i32) -> (i32, i32) {
    %c0_i32 = arith.constant 0 : i32
    %c0_i32_0 = arith.constant 0 : i32
    %c0_i32_1 = arith.constant 0 : i32
    return %c0_i32, %c0_i32_0 : i32, i32
  }
  func.func @transform_7(%arg0: i32) -> (i32, i32) {
    %c0_i32 = arith.constant 0 : i32
    %c0_i32_0 = arith.constant 0 : i32
    %c0_i32_1 = arith.constant 0 : i32
    return %c0_i32, %c0_i32_0 : i32, i32
  }
  func.func @transform_8(%arg0: i32) -> (i32, i32) {
    %c0_i32 = arith.constant 0 : i32
    %c0_i32_0 = arith.constant 0 : i32
    %c0_i32_1 = arith.constant 0 : i32
    return %c0_i32, %c0_i32_0 : i32, i32
  }
  func.func @transform_9(%arg0: i32) -> (i32, i32) {
    %c0_i32 = arith.constant 0 : i32
    %c0_i32_0 = arith.constant 0 : i32
    %c0_i32_1 = arith.constant 0 : i32
    return %c0_i32, %c0_i32_0 : i32, i32
  }
  func.func @transform_10(%arg0: i32) -> (i32, i32) {
    %c0_i32 = arith.constant 0 : i32
    %c0_i32_0 = arith.constant 0 : i32
    %c0_i32_1 = arith.constant 0 : i32
    return %c0_i32, %c0_i32_0 : i32, i32
  }
  func.func @transform_11(%arg0: i32) -> (i32, i32, i32) {
    %c0_i32 = arith.constant 0 : i32
    %c0_i32_0 = arith.constant 0 : i32
    %c0_i32_1 = arith.constant 0 : i32
    return %arg0, %c0_i32, %c0_i32_0 : i32, i32, i32
  }
}

</mosaic_0001>

<bundles_post_ra>
// kernel: ma_forward.1
= control target key start
LH: loop header
LB: loop body
LE: loop exit
PB: predicated region body
PF: predicated region fallthrough
CT: control target
= control target key end

     0   :  { %s9501_s0 = inlined_call_operand.hbm [shape: f32[2,16,64], index: 0, kind: input, shape index: {}]   ;;  %s9502_s1 = inlined_call_operand.hbm [shape: f32[64,256], index: 1, kind: input, shape index: {}]   ;;  %s9503_s2 = inlined_call_operand.hbm [shape: f32[1,256], index: 2, kind: input, shape index: {}]   ;;  %s9504_s3 = inlined_call_operand.hbm [shape: f32[256,2048], index: 3, kind: input, shape index: {}]   ;;  %s9505_s4 = inlined_call_operand.hbm [shape: f32[1,2048], index: 4, kind: input, shape index: {}]   ;;  %s9506_s5 = inlined_call_operand.vmem [shape: f32[2048,32], index: 5, kind: input, shape index: {}]   ;;  %s9507_s6 = inlined_call_operand.hbm [shape: f32[32,2048], index: 6, kind: input, shape index: {}]   ;;  %s9508_s7 = inlined_call_operand.hbm [shape: f32[2048,256], index: 7, kind: input, shape index: {}]   ;;  %s9509_s8 = inlined_call_operand.hbm [shape: f32[1,256], index: 8, kind: input, shape index: {}]   ;;  %s9510_s9 = inlined_call_operand.vmem [shape: f32[256,64], index: 9, kind: input, shape index: {}]   ;;  %s9511_s10 = inlined_call_operand.hbm [shape: f32[1,64], index: 10, kind: input, shape index: {}]   ;;  %s9512_s11 = inlined_call_operand.hbm [shape: f32[2,16,64], index: 11, kind: output, shape index: {}]  }
   0x1   :  { %9531 = sst [smem:[#allocation36_spill]] %s9502_s1 }
   0x2   :  { %9532 = sst [smem:[#allocation37_spill]] %s9506_s5 }
   0x3   :  { %9533 = sst [smem:[#allocation38_spill]] %s9510_s9 }
   0x4   :  { %9534 = sst [smem:[#allocation39_spill]] %s9512_s11 }
   0x5   :  { %16 = vsyncpa [#allocation3], 0 }
   0x6   :  { %18 = vsyncpa [#allocation3 + $0x1], 0 }
   0x7   :  { %19 = vsyncpa [#allocation6], 0 }
   0x8   :  { %20 = vsyncpa [#allocation9], 0 }
   0x9   :  { %21 = vsyncpa [#allocation12], 0 }
   0xa   :  { %22 = vsyncpa [#allocation15], 0 }
   0xb   :  { %23 = vsyncpa [#allocation4], 0 }
   0xc   :  { %25 = vsyncpa [#allocation4 + $0x1], 0  ;;  %s7763_s17 = smov 0   ;;  %s7765_s18 = smov 0  }
   0xd   :  { %s7767_s19 = smov 0   ;;  %s7769_s20 = smov 0  }
   0xe LB: > { %s7685_s21 = smov [#allocation5]   ;;  %s7784_s23 = sadd.s32 4294967295, %s7683_s20   ;;  %s7683_s20 = sphi %s7769_s20, %s9590_s20   ;;  %s7679_s19 = sphi %s7767_s19, %s9589_s19   ;;  %s7675_s18 = sphi %s7765_s18, %s9588_s18   ;;  %s7671_s17 = sphi %s7763_s17, %s9587_s17  }
   0xf   : > { %s310_s22 = sshll.u32 %s7685_s21, 4  ;;  %p5234_p0 = scmp.ge.s32.totalorder %s7683_s20, 1  ;;  %s7789_s22 = int_to_ptr.vmem [resolvable:$true] %s310_s22 }
  0x10   : > { %p9517_p1 = scmp.eq.s32.totalorder %s7784_s23, 0  ;;  %p298_p2 = scmp.lt.s32.totalorder %s7683_s20, 3 }
  0x11   : > { %s7686_s25 = smov [#allocation8]   ;;  %s7687_s28 = smov [#allocation11]  }
  0x12   : > { %p7791_p3 = pnand %p5234_p0, %p298_p2  ;;  %s334_s26 = sshll.u32 %s7686_s25, 4  ;;  %s7804_s26 = int_to_ptr.vmem [resolvable:$true] %s334_s26 }
  0x13   : > { %s7806_s29 = sshll.u32 %s7687_s28, 4  ;;  %s9537_s1 = sld [smem:[#allocation36_spill]]  ;;  %s362_s29 = int_to_ptr.vmem [resolvable:$true] %s7806_s29 }
  0x14   : > { %s9535_s24 = scalar_select %p7791_p3, 1, 0 }
  0x15   : > { %p7086_p5 = pneg %p7791_p3 }
  0x17   : > { %p7800_p6 = pnand %p7086_p5, %p9517_p1 }
  0x19   : > { %s7347_s13 = scalar_lea.hbm %s9537_s1, 2048  ;;  %p7816_p8 = pneg %p7800_p6 }
  0x1a   : > { %p7348_p7 = scmp.ne.s32.totalorder %s9537_s1, %s7347_s13  ;;  %p7354_p11 = scmp.lt.u32.totalorder %s7347_s13, %s9537_s1 }
  0x1c   : > { %p7350_p9 = pnand %p7816_p8, %p7348_p7 }
  0x1e   : > { %p7351_p10 = pneg %p7350_p9 }
  0x20   : > { %p7356_p12 = pnand %p7354_p11, %p7351_p10 }
  0x22   : > { %7359 = shalt.err (!%p7356_p12)
}
  0x23   : > { %s7360_s28 = scalar_lea.vmem %s7789_s22, 2048  ;;  %p7368_p5 = scmp.lt.s32.totalorder %s7789_s22, %s7789_s22 }
  0x24   : > { %p7361_p13 = scmp.ne.s32.totalorder %s7789_s22, %s7360_s28  ;;  %p7369_p4 = scmp.lt.s32.totalorder %s7360_s28, %s7360_s28 }
  0x26   : > { %p7363_p0 = pnand %p7361_p13, %p7816_p8  ;;  %p7370_p7 = por %p7369_p4, %p7368_p5 }
  0x28   : > { %p7364_p2 = pneg %p7363_p0 }
  0x2a   : > { %p7371_p9 = pnand %p7370_p7, %p7364_p2 }
  0x2c   : > { %7374 = shalt.err (!%p7371_p9)
}
  0x2d   : > { %s9516_s30 = smov 256   ;;  %s9519_s12 = smov 16  }
  0x2e   : > { %7089 = dma.hbm_to_vmem [thread:$0]  (!%p7800_p6), %s9537_s1, 2048, %s7789_s22, [#allocation6], %s9516_s30, %s9516_s30, %s9519_s12  }
  0x2f   : > { %s7375_s25 = scalar_lea.hbm %s9504_s3, 65536 }
  0x30   : > { %p7376_p4 = scmp.ne.s32.totalorder %s9504_s3, %s7375_s25  ;;  %p7382_p12 = scmp.lt.u32.totalorder %s7375_s25, %s9504_s3 }
  0x32   : > { %p7378_p10 = pnand %p7376_p4, %p7816_p8 }
  0x34   : > { %p7379_p11 = pneg %p7378_p10 }
  0x36   : > { %p7384_p13 = pnand %p7382_p12, %p7379_p11 }
  0x38   : > { %7387 = shalt.err (!%p7384_p13)
}
  0x39   : > { %s7388_s22 = scalar_lea.vmem %s7804_s26, 65536  ;;  %p7396_p7 = scmp.lt.s32.totalorder %s7804_s26, %s7804_s26 }
  0x3a   : > { %p7389_p0 = scmp.ne.s32.totalorder %s7804_s26, %s7388_s22  ;;  %p7397_p9 = scmp.lt.s32.totalorder %s7388_s22, %s7388_s22 }
  0x3c   : > { %p7391_p2 = pnand %p7389_p0, %p7816_p8  ;;  %p7398_p4 = por %p7397_p9, %p7396_p7 }
  0x3e   : > { %p7392_p5 = pneg %p7391_p2 }
  0x40   : > { %p7399_p10 = pnand %p7398_p4, %p7392_p5 }
  0x42   : > { %7402 = shalt.err (!%p7399_p10)
}
  0x43   : > { %s7690_s11 = smov 2048   ;;  %s7691_s5 = smov 128  }
  0x44   : > { %7095 = dma.hbm_to_vmem [thread:$0]  (!%p7800_p6), %s9504_s3, 65536, %s7804_s26, [#allocation9], %s7690_s11, %s7690_s11, %s7691_s5  }
  0x45   : > { %s7403_s21 = scalar_lea.hbm %s9507_s6, 8192 }
  0x46   : > { %p7404_p11 = scmp.ne.s32.totalorder %s9507_s6, %s7403_s21  ;;  %p7410_p0 = scmp.lt.u32.totalorder %s7403_s21, %s9507_s6 }
  0x48   : > { %p7406_p12 = pnand %p7404_p11, %p7816_p8 }
  0x4a   : > { %p7407_p13 = pneg %p7406_p12 }
  0x4c   : > { %p7412_p2 = pnand %p7410_p0, %p7407_p13 }
  0x4e   : > { %7415 = shalt.err (!%p7412_p2)
}
  0x4f   : > { %s7416_s9 = scalar_lea.vmem %s362_s29, 8192  ;;  %p7424_p4 = scmp.lt.s32.totalorder %s362_s29, %s362_s29 }
  0x50   : > { %p7417_p5 = scmp.ne.s32.totalorder %s362_s29, %s7416_s9  ;;  %p7425_p10 = scmp.lt.s32.totalorder %s7416_s9, %s7416_s9 }
  0x52   : > { %p7419_p7 = pnand %p7417_p5, %p7816_p8  ;;  %p7426_p1 = por %p7425_p10, %p7424_p4 }
  0x54   : > { %p7420_p9 = pneg %p7419_p7 }
  0x56   : > { %p7427_p3 = pnand %p7426_p1, %p7420_p9 }
  0x58   : > { %7430 = shalt.err (!%p7427_p3)
}
  0x59   : > { %7101 = dma.hbm_to_vmem [thread:$0]  (!%p7800_p6), %s9507_s6, 8192, %s362_s29, [#allocation12], %s7690_s11, %s7690_s11, %s7691_s5  }
  0x5a   : > { %s7692_s30 = smov [#allocation14]   ;;  %s7693_s15 = smov [#allocation7]  }
  0x5b   : > { %s388_s14 = sshll.u32 %s7692_s30, 4  ;;  %s324_s21 = sshll.u32 %s7693_s15, 4  ;;  %s389_s14 = int_to_ptr.vmem [resolvable:$true] %s388_s14  ;;  %s325_s21 = int_to_ptr.vmem [resolvable:$true] %s324_s21 }
  0x5c   : > { %s7431_s22 = scalar_lea.hbm %s9509_s8, 32 }
  0x5d   : > { %p7432_p1 = scmp.ne.s32.totalorder %s9509_s8, %s7431_s22  ;;  %p7438_p12 = scmp.lt.u32.totalorder %s7431_s22, %s9509_s8 }
  0x5f   : > { %p7434_p3 = pnand %p7432_p1, %p7816_p8 }
  0x61   : > { %p7435_p11 = pneg %p7434_p3 }
  0x63   : > { %p7440_p13 = pnand %p7438_p12, %p7435_p11 }
  0x65   : > { %7443 = shalt.err (!%p7440_p13)
}
  0x66   : > { %s7444_s29 = scalar_lea.vmem %s389_s14, 32  ;;  %p7452_p7 = scmp.lt.s32.totalorder %s389_s14, %s389_s14 }
  0x67   : > { %p7445_p0 = scmp.ne.s32.totalorder %s389_s14, %s7444_s29  ;;  %p7453_p9 = scmp.lt.s32.totalorder %s7444_s29, %s7444_s29 }
  0x69   : > { %p7447_p2 = pnand %p7445_p0, %p7816_p8  ;;  %p7454_p4 = por %p7453_p9, %p7452_p7 }
  0x6b   : > { %p7448_p5 = pneg %p7447_p2 }
  0x6d   : > { %p7455_p10 = pnand %p7454_p4, %p7448_p5 }
  0x6f   : > { %7458 = shalt.err (!%p7455_p10)
}
  0x70   : > { %7107 = dma.hbm_to_vmem [thread:$0]  (!%p7800_p6), %s9509_s8, 32, %s389_s14, [#allocation15]  }
  0x71   : > { %s7459_s30 = scalar_lea.hbm %s9503_s2, 32 }
  0x72   : > { %p7460_p1 = scmp.ne.s32.totalorder %s9503_s2, %s7459_s30  ;;  %p7466_p12 = scmp.lt.u32.totalorder %s7459_s30, %s9503_s2 }
  0x74   : > { %p7462_p3 = pnand %p7460_p1, %p7816_p8 }
  0x76   : > { %p7463_p11 = pneg %p7462_p3 }
  0x78   : > { %p7468_p13 = pnand %p7466_p12, %p7463_p11 }
  0x7a   : > { %7471 = shalt.err (!%p7468_p13)
}
  0x7b   : > { %s7472_s9 = scalar_lea.vmem %s325_s21, 32  ;;  %p7480_p7 = scmp.lt.s32.totalorder %s325_s21, %s325_s21 }
  0x7c   : > { %p7473_p0 = scmp.ne.s32.totalorder %s325_s21, %s7472_s9  ;;  %p7481_p9 = scmp.lt.s32.totalorder %s7472_s9, %s7472_s9 }
  0x7e   : > { %p7475_p2 = pnand %p7473_p0, %p7816_p8  ;;  %p7482_p4 = por %p7481_p9, %p7480_p7 }
  0x80   : > { %p7476_p5 = pneg %p7475_p2 }
  0x82   : > { %p7483_p10 = pnand %p7482_p4, %p7476_p5 }
  0x84   : > { %7486 = shalt.err (!%p7483_p10)
}
  0x85   : > { %7092 = dma.hbm_to_vmem [thread:$0]  (!%p7800_p6), %s9503_s2, 32, %s325_s21, [#allocation6]  }
  0x86   : > { %s7694_s29 = smov [#allocation10]   ;;  %s7695_s11 = smov [#allocation13]  }
  0x87   : > { %s348_s12 = sshll.u32 %s7694_s29, 4  ;;  %s374_s1 = sshll.u32 %s7695_s11, 4  ;;  %s349_s12 = int_to_ptr.vmem [resolvable:$true] %s348_s12  ;;  %s375_s1 = int_to_ptr.vmem [resolvable:$true] %s374_s1 }
  0x88   : > { %s7487_s15 = scalar_lea.hbm %s9505_s4, 256 }
  0x89   : > { %p7488_p1 = scmp.ne.s32.totalorder %s9505_s4, %s7487_s15  ;;  %p7494_p12 = scmp.lt.u32.totalorder %s7487_s15, %s9505_s4 }
  0x8b   : > { %p7490_p3 = pnand %p7488_p1, %p7816_p8 }
  0x8d   : > { %p7491_p11 = pneg %p7490_p3 }
  0x8f   : > { %p7496_p13 = pnand %p7494_p12, %p7491_p11 }
  0x91   : > { %7499 = shalt.err (!%p7496_p13)
}
  0x92   : > { %s7500_s21 = scalar_lea.vmem %s349_s12, 256  ;;  %p7508_p7 = scmp.lt.s32.totalorder %s349_s12, %s349_s12 }
  0x93   : > { %p7501_p0 = scmp.ne.s32.totalorder %s349_s12, %s7500_s21  ;;  %p7509_p9 = scmp.lt.s32.totalorder %s7500_s21, %s7500_s21 }
  0x95   : > { %p7503_p2 = pnand %p7501_p0, %p7816_p8  ;;  %p7510_p4 = por %p7509_p9, %p7508_p7 }
  0x97   : > { %p7504_p5 = pneg %p7503_p2 }
  0x99   : > { %p7511_p10 = pnand %p7510_p4, %p7504_p5 }
  0x9b   : > { %7514 = shalt.err (!%p7511_p10)
}
  0x9c   : > { %7098 = dma.hbm_to_vmem [thread:$0]  (!%p7800_p6), %s9505_s4, 256, %s349_s12, [#allocation9]  }
  0x9d   : > { %s7515_s13 = scalar_lea.hbm %s9508_s7, 65536 }
  0x9e   : > { %p7516_p1 = scmp.ne.s32.totalorder %s9508_s7, %s7515_s13  ;;  %p7522_p12 = scmp.lt.u32.totalorder %s7515_s13, %s9508_s7 }
  0xa0   : > { %p7518_p3 = pnand %p7516_p1, %p7816_p8 }
  0xa2   : > { %p7519_p11 = pneg %p7518_p3 }
  0xa4   : > { %p7524_p13 = pnand %p7522_p12, %p7519_p11 }
  0xa6   : > { %7527 = shalt.err (!%p7524_p13)
}
  0xa7   : > { %s7528_s22 = scalar_lea.vmem %s375_s1, 65536  ;;  %p7536_p7 = scmp.lt.s32.totalorder %s375_s1, %s375_s1 }
  0xa8   : > { %p7529_p0 = scmp.ne.s32.totalorder %s375_s1, %s7528_s22  ;;  %p7537_p9 = scmp.lt.s32.totalorder %s7528_s22, %s7528_s22 }
  0xaa   : > { %p7531_p2 = pnand %p7529_p0, %p7816_p8  ;;  %p7538_p4 = por %p7537_p9, %p7536_p7 }
  0xac   : > { %p7532_p5 = pneg %p7531_p2 }
  0xae   : > { %p7539_p10 = pnand %p7538_p4, %p7532_p5 }
  0xb0   : > { %7542 = shalt.err (!%p7539_p10)
}
  0xb1   : > { %s9539_s12 = smov 16   ;;  %s9540_s9 = smov 256  }
  0xb2   : > { %7104 = dma.hbm_to_vmem [thread:$0]  (!%p7800_p6), %s9508_s7, 65536, %s375_s1, [#allocation12], %s9540_s9, %s9540_s9, %s9539_s12  }
  0xb3   : > { %s7696_s26 = smov [#allocation16]   ;;  %s7543_s30 = scalar_lea.hbm %s9511_s10, 16 }
  0xb4   : > { %s402_s29 = sshll.u32 %s7696_s26, 4  ;;  %p7544_p1 = scmp.ne.s32.totalorder %s9511_s10, %s7543_s30  ;;  %s403_s29 = int_to_ptr.vmem [resolvable:$true] %s402_s29 }
  0xb5   : > { %p7550_p12 = scmp.lt.u32.totalorder %s7543_s30, %s9511_s10 }
  0xb6   : > { %p7546_p3 = pnand %p7544_p1, %p7816_p8 }
  0xb8   : > { %p7547_p11 = pneg %p7546_p3 }
  0xba   : > { %p7552_p13 = pnand %p7550_p12, %p7547_p11 }
  0xbc   : > { %7555 = shalt.err (!%p7552_p13)
}
  0xbd   : > { %s7556_s1 = scalar_lea.vmem %s403_s29, 16  ;;  %s7563_s12 = scalar_lea.vmem %s403_s29, 32 }
  0xbe   : > { %p7557_p0 = scmp.ne.s32.totalorder %s403_s29, %s7556_s1  ;;  %p7564_p7 = scmp.lt.s32.totalorder %s403_s29, %s403_s29 }
  0xbf   : > { %p7565_p9 = scmp.lt.s32.totalorder %s7563_s12, %s7556_s1 }
  0xc0   : > { %p7559_p2 = pnand %p7557_p0, %p7816_p8 }
  0xc1   : > { %p7566_p4 = por %p7565_p9, %p7564_p7 }
  0xc2   : > { %p7560_p5 = pneg %p7559_p2 }
  0xc4   : > { %p7567_p10 = pnand %p7566_p4, %p7560_p5 }
  0xc6   : > { %7570 = shalt.err (!%p7567_p10)
}
  0xc7   : > { %7110 = dma.hbm_to_vmem [thread:$0]  (!%p7800_p6), %s9511_s10, 16, %s403_s29, [#allocation15]  }
  0xc8   : > { %s5233_s16 = sadd.s32 4294967294, %s7683_s20   ;;  %s7979_s27 = sadd.s32 1, %s7683_s20  }
  0xc9   : > { %s35_s14 = ssub.s32 %s7683_s20, %s7979_s27  ;;  %s38_s26 = sadd.s32 1, %s7679_s19 }
  0xca   : > { %p36_p8 = scmp.eq.s32.totalorder %s35_s14, 0  ;;  %p45_p1 = scmp.ne.s32.totalorder %s7679_s19, %s7675_s18 }
  0xcb   : > { %p46_p3 = scmp.eq.s32.totalorder %s7683_s20, 0  ;;  %p51_p11 = scmp.ne.s32.totalorder %s7675_s18, %s7671_s17 }
  0xcc   : > { %s7990_s11 = scalar_select %p36_p8, %s7679_s19, %s38_s26  }
  0xcd   : > { %p7992_p12 = por %p46_p3, %p45_p1  ;;  %p9542_p13 = scmp.eq.s32.totalorder %s7784_s23, 0 }
  0xce   : > { %p285_p0 = scmp.eq.s32.totalorder %s7784_s23, 1  ;;  %p291_p2 = scmp.eq.s32.totalorder %s5233_s16, 1 }
  0xcf   : > { %p7998_p6 = por %p9542_p13, %p51_p11  ;;  %p7127_p5 = scmp.lt.s32.totalorder %s7683_s20, 2 }
  0xd0   : > { %s413_s30 = sand.u32 1, %s7679_s19   ;;  %p8005_p7 = por %p285_p0, %p45_p1 }
  0xd1   : > { %p8009_p9 = por %p291_p2, %p51_p11  ;;  %s5244_s28 = sshll.u32 %s413_s30, 4 }
  0xd2   : > { %s9544_s15 = scalar_select %p8005_p7, 1, 0 }
  0xd3   : > { %s9545_s25 = scalar_select %p8009_p9, 1, 0 }
  0xd4   : > { %s5282_s22 = sshll.u32 %s7683_s20, 8  ;;  %s417_s21 = scalar_lea.vmem [#allocation2], %s5244_s28 }
  0xd5   : > { %s8017_s9 = scalar_lea.hbm %s9501_s0, %s5282_s22  ;;  %s424_s16 = sshll.u32 %s417_s21, 4  ;;  %s8019_s16 = int_to_ptr.vmem [resolvable:$true] %s424_s16 }
  0xd6   : > { %p8023_p4 = pnand %p7127_p5, %p7992_p12  ;;  %s8027_s26 = scalar_lea.sflag [#allocation3], %s413_s30 }
  0xd7   : > { %s7571_s1 = scalar_lea.hbm %s8017_s9, 256  ;;  %s7576_s13 = scalar_lea.hbm %s9501_s0, 512 }
  0xd8   : > { %p7572_p10 = scmp.ne.s32.totalorder %s8017_s9, %s7571_s1  ;;  %p7573_p8 = pneg %p8023_p4 }
  0xd9   : > { %p7577_p11 = scmp.lt.u32.totalorder %s8017_s9, %s9501_s0  ;;  %p7578_p12 = scmp.lt.u32.totalorder %s7576_s13, %s7571_s1 }
  0xda   : > { %p7574_p1 = pnand %p7573_p8, %p7572_p10  ;;  %p7580_p0 = scmp.lt.u32.totalorder %s7571_s1, %s8017_s9 }
  0xdb   : > { %p7579_p13 = por %p7578_p12, %p7577_p11 }
  0xdc   : > { %p7575_p3 = pneg %p7574_p1 }
  0xdd   : > { %p7581_p2 = por %p7580_p0, %p7579_p13 }
  0xdf   : > { %p7582_p5 = pnand %p7581_p2, %p7575_p3 }
  0xe1   : > { %7585 = shalt.err (!%p7582_p5)
}
  0xe2   : > { %s7586_s30 = scalar_lea.vmem %s8019_s16, 256  ;;  %s7697_s28 = smov [#allocation2]  }
  0xe3   : > { %p7587_p10 = scmp.ne.s32.totalorder %s8019_s16, %s7586_s30  ;;  %s7591_s22 = sshll.u32 %s7697_s28, 4  ;;  %s7592_s22 = int_to_ptr.vmem [resolvable:$false] %s7591_s22 }
  0xe4   : > { %s7593_s12 = scalar_lea.vmem %s7592_s22, 512  ;;  %p7594_p7 = scmp.lt.s32.totalorder %s8019_s16, %s7592_s22 }
  0xe5   : > { %p7589_p1 = pnand %p7587_p10, %p7573_p8  ;;  %p7595_p11 = scmp.lt.s32.totalorder %s7593_s12, %s7586_s30 }
  0xe7   : > { %p7590_p9 = pneg %p7589_p1  ;;  %p7596_p12 = por %p7595_p11, %p7594_p7 }
  0xe9   : > { %p7597_p13 = pnand %p7596_p12, %p7590_p9 }
  0xeb   : > { %7600 = shalt.err (!%p7597_p13)
}
  0xec   : > { %s7698_s1 = smov 8   ;;  %p9547_p8 = scmp.ne.s32.totalorder %s9535_s24, 0 }
  0xed   : > { %7114 = dma.hbm_to_vmem [thread:$0]  (!%p8023_p4), %s8017_s9, 256, %s8019_s16, %s8027_s26, %s7691_s5, %s7691_s5, %s7698_s1  }
  0xee   : > { %436 = sbr.rel (%p9547_p8) target bundleno = 2570 (0xa0a), region = 64 }
  0xf5   : > { %s8060_s13 = sand.u32 1, %s7675_s18  }
  0xf6   : > { %s9521_s21 = sshll.u32 %s8060_s13, 4  ;;  %s439_s30 = scalar_lea.sflag [#allocation3], %s8060_s13 }
  0xf7   : > { %s8066_s14 = scalar_lea.vmem [#allocation2], %s9521_s21 }
  0xf8   : > { %7646 = dma.done.wait (%p7998_p6), %s439_s30, 256  }
  0xf9   : > { %7648 = vsyncadd (%p7998_p6), %s439_s30, 4294967040  ;;  %p9548_p7 = scmp.eq.s32.totalorder %s7784_s23, 0 }
  0xfb   : > { %7650 = dma.done.wait (%p9548_p7), [#allocation6], 2080   ;;  %p9549_p9 = pmov %p9548_p7 }
  0xfc   : > { %p9550_p4 = pmov %p9548_p7 }
  0xfd   : > { %7652 = vsyncadd (%p9549_p9), [#allocation6], 4294965216 }
  0xfe   : > { %7654 = dma.done.wait (%p9550_p4), [#allocation9], 65792   ;;  %p9551_p3 = pmov %p9550_p4 }
 0x100   : > { %7656 = vsyncadd (%p9551_p3), [#allocation9], 4294901504  ;;  %p9552_p0 = pmov %p9551_p3 }
 0x102   : > { %7658 = dma.done.wait (%p9552_p0), [#allocation12], 73728   ;;  %p9553_p2 = pmov %p9552_p0 }
 0x103   : > { %p9554_p6 = pmov %p9552_p0 }
 0x104   : > { %7660 = vsyncadd (%p9553_p2), [#allocation12], 4294893568 }
 0x105   : > { %7662 = dma.done.wait (%p9554_p6), [#allocation15], 48   ;;  %p9555_p5 = pmov %p9552_p0 }
 0x106   : > { %v7699_v0 = vmov 0.0   ;;  %v516_v1 = vld [vmem:[#allocation5 + $0x8] sm:$0xff]  ;;  %v518_v2 = vld [vmem:[#allocation5 + $0x18] sm:$0xff]  ;;  %v515_v3 = vld [vmem:[#allocation5] sm:$0xff]  ;;  %vm543_vm0 = vcmask 523264   ;;  %s9558_s29 = sld [smem:[#allocation37_spill]] }
 0x107   : > { %7664 = vsyncadd (%p9555_p5), [#allocation15], 4294967248  ;;  %614 = vmatprep.mubr.f32.mxu0 %v7699_v0  ;;  %v5626_v4 = vpack.c.bf16 %v518_v2, %v516_v1  ;;  %v517_v5 = vld [vmem:[#allocation5 + $0x10] sm:$0xff]  ;;  %v520_v6 = vld [vmem:[#allocation5 + $0x28] sm:$0xff]  ;;  %vm3127_vm1 = vcmask 261120   ;;  %s9569_s5 = sld [smem:[#allocation38_spill]] }
 0x108   : > { %v522_v7 = vld [vmem:[#allocation5 + $0x38] sm:$0xff]  ;;  %v5628_v8 = vpack.c.bf16 %v517_v5, %v515_v3  ;;  %v519_v10 = vld [vmem:[#allocation5 + $0x20] sm:$0xff]  ;;  %v521_v11 = vld [vmem:[#allocation5 + $0x30] sm:$0xff]  ;;  %s5283_s30 = sshll.u32 %s7784_s23, 8  ;;  %s9583_s26 = sld [smem:[#allocation39_spill]] }
 0x109   : > { %v5630_v9 = vpack.c.bf16 %v522_v7, %v520_v6  ;;  %v524_v12 = vld [vmem:[#allocation5 + $0x48] sm:$0xff]  ;;  %5627 = vmatprep.subr.bf16.mxu0 %v5626_v4  ;;  %v526_v13 = vld [vmem:[#allocation5 + $0x58] sm:$0xff]  ;;  %v5632_v14 = vpack.c.bf16 %v521_v11, %v519_v10  ;;  %v523_v15 = vld [vmem:[#allocation5 + $0x40] sm:$0xff]  ;;  %s5071_s23 = scalar_lea.sflag [#allocation4], %s8060_s13  ;;  %p9584_p1 = scmp.ne.s32.totalorder %s9544_s15, 0 }
 0x10a   : > { %5629 = vmatpush1.bf16.msra.mxu0 %v5628_v8  ;;  %v5634_v16 = vpack.c.bf16 %v526_v13, %v524_v12  ;;  %v525_v17 = vld [vmem:[#allocation5 + $0x50] sm:$0xff]  ;;  %v528_v18 = vld [vmem:[#allocation5 + $0x68] sm:$0xff]  ;;  %v530_v19 = vld [vmem:[#allocation5 + $0x78] sm:$0xff]  ;;  %s7700_s12 = smov [#allocation17]  }
 0x10b   : > { %5631 = vmatprep.subr.bf16.mxu0 %v5630_v9  ;;  %v628_v20 = vld [vmem:[#allocation8 + $0x8] sm:$0xff]  ;;  %v627_v22 = vld [vmem:[#allocation8] sm:$0xff]  ;;  %v5636_v27 = vpack.c.bf16 %v525_v17, %v523_v15  ;;  %v5638_v33 = vpack.c.bf16 %v530_v19, %v528_v18  ;;  %s7605_s1 = sshll.u32 %s7700_s12, 4  ;;  %s7606_s1 = int_to_ptr.vmem [resolvable:$false] %s7605_s1 }
 0x10c   : > { %v644_v21 = vld [vmem:[#allocation8 + $0x88] sm:$0xff]  ;;  %v643_v24 = vld [vmem:[#allocation8 + $0x80] sm:$0xff] }
 0x10d   : > { %v5642_v23 = vpack.c.bf16 %v644_v21, %v628_v20  ;;  %v660_v25 = vld [vmem:[#allocation8 + $0x108] sm:$0xff]  ;;  %v5644_v28 = vpack.c.bf16 %v643_v24, %v627_v22  ;;  %v659_v30 = vld [vmem:[#allocation8 + $0x100] sm:$0xff] }
 0x10e   : > { %v676_v26 = vld [vmem:[#allocation8 + $0x188] sm:$0xff]  ;;  %5633 = vmatpush1.bf16.msra.mxu0 %v5632_v14  ;;  %v675_v31 = vld [vmem:[#allocation8 + $0x180] sm:$0xff]  ;;  %s9454_s28 = scalar_lea.hbm %s9583_s26, %s5283_s30 }
 0x10f   : > { %v5646_v29 = vpack.c.bf16 %v676_v26, %v660_v25  ;;  %v692_v32 = vld [vmem:[#allocation8 + $0x208] sm:$0xff]  ;;  %5635 = vmatprep.subr.bf16.mxu0 %v5634_v16  ;;  %v527_v34 = vld [vmem:[#allocation5 + $0x60] sm:$0xff]  ;;  %5643 = vmatprep.subr.bf16.mxu1 %v5642_v23  ;;  %v5648_v37 = vpack.c.bf16 %v675_v31, %v659_v30 }
 0x110   : > { %v529_v35 = vld [vmem:[#allocation5 + $0x70] sm:$0xff]  ;;  %5645 = vmatpush1.bf16.msra.mxu1 %v5644_v28  ;;  %v691_v39 = vld [vmem:[#allocation8 + $0x200] sm:$0xff] }
 0x111   : > { %v708_v36 = vld [vmem:[#allocation8 + $0x288] sm:$0xff]  ;;  %5647 = vmatprep.subr.bf16.mxu1 %v5646_v29  ;;  %v707_v40 = vld [vmem:[#allocation8 + $0x280] sm:$0xff]  ;;  %v5640_v41 = vpack.c.bf16 %v529_v35, %v527_v34 }
 0x112   : > { %v5650_v38 = vpack.c.bf16 %v708_v36, %v692_v32  ;;  %5637 = vmatpush1.bf16.msra.mxu0 %v5636_v27  ;;  %v724_v42 = vld [vmem:[#allocation8 + $0x308] sm:$0xff]  ;;  %v5652_v44 = vpack.c.bf16 %v707_v40, %v691_v39  ;;  %v723_v46 = vld [vmem:[#allocation8 + $0x300] sm:$0xff] }
 0x113   : > { %v740_v43 = vld [vmem:[#allocation8 + $0x388] sm:$0xff]  ;;  %5639 = vmatprep.subr.bf16.mxu0 %v5638_v33  ;;  %v739_v47 = vld [vmem:[#allocation8 + $0x380] sm:$0xff] }
 0x114   : > { %5649 = vmatpush1.bf16.msra.mxu1 %v5648_v37  ;;  %v5654_v45 = vpack.c.bf16 %v740_v43, %v724_v42  ;;  %v513_v48 = vld [vmem:[%s8066_s14] sm:$0xff]  ;;  %v5656_v51 = vpack.c.bf16 %v739_v47, %v723_v46  ;;  %v514_v55 = vld [vmem:[%s8066_s14 + $0x8] sm:$0xff]  ;;  %s9582_s14 = sshll.u32 %s8060_s13, 4 }
 0x115   : > { %5651 = vmatprep.subr.bf16.mxu1 %v5650_v38  ;;  %v756_v49 = vld [vmem:[#allocation8 + $0x408] sm:$0xff]  ;;  %v755_v53 = vld [vmem:[#allocation8 + $0x400] sm:$0xff]  ;;  %s512_s21 = scalar_lea.vmem [#allocation17], %s9582_s14  ;;  %s7607_s14 = scalar_lea.vmem %s7606_s1, 512 }
 0x116   : > { %5641 = vmatpush1.bf16.msra.mxu0 %v5640_v41  ;;  %v772_v50 = vld [vmem:[#allocation8 + $0x488] sm:$0xff]  ;;  %v771_v54 = vld [vmem:[#allocation8 + $0x480] sm:$0xff]  ;;  %s5084_s24 = sshll.u32 %s512_s21, 4  ;;  %s9456_s24 = int_to_ptr.vmem [resolvable:$true] %s5084_s24 }
 0x117   : > { %v5658_v52 = vpack.c.bf16 %v772_v50, %v756_v49  ;;  %v788_v56 = vld [vmem:[#allocation8 + $0x508] sm:$0xff]  ;;  %v5660_v58 = vpack.c.bf16 %v771_v54, %v755_v53  ;;  %v787_v60 = vld [vmem:[#allocation8 + $0x500] sm:$0xff]  ;;  %s7601_s22 = scalar_lea.vmem %s9456_s24, 256  ;;  %p7608_p13 = scmp.lt.s32.totalorder %s9456_s24, %s7606_s1 }
 0x118   : > { %5653 = vmatpush1.bf16.msra.mxu1 %v5652_v44  ;;  %v804_v57 = vld [vmem:[#allocation8 + $0x588] sm:$0xff]  ;;  %v803_v61 = vld [vmem:[#allocation8 + $0x580] sm:$0xff]  ;;  %p7602_p10 = scmp.ne.s32.totalorder %s9456_s24, %s7601_s22  ;;  %p7609_p8 = scmp.lt.s32.totalorder %s7607_s14, %s7601_s22 }
 0x119   : > { %5258 = vmatmul.mubr.msk.f32.vlgmr.msra.gmra.mrb[0].mxu0 %vm543_vm0, %v513_v48  ;;  %5655 = vmatprep.subr.bf16.mxu1 %v5654_v45  ;;  %v5662_v59 = vpack.c.bf16 %v804_v57, %v788_v56  ;;  %v820_v62 = vld [vmem:[#allocation8 + $0x608] sm:$0xff]  ;;  %v5664_v1 = vpack.c.bf16 %v803_v61, %v787_v60  ;;  %v819_v3 = vld [vmem:[#allocation8 + $0x600] sm:$0xff]  ;;  %v630_v60 = vld [vmem:[#allocation8 + $0x18] sm:$0xff] }
 0x11a   : > { %620 = vmatprep.mubr.f32.mxu0 %v7699_v0  ;;  %v836_v63 = vld [vmem:[#allocation8 + $0x688] sm:$0xff]  ;;  %v835_v4 = vld [vmem:[#allocation8 + $0x680] sm:$0xff]  ;;  %v646_v61 = vld [vmem:[#allocation8 + $0x98] sm:$0xff]  ;;  %p7603_p11 = pnand %p7602_p10, %p9584_p1  ;;  %p7610_p7 = por %p7609_p8, %p7608_p13 }
 0x11b   : > { %v5666_v2 = vpack.c.bf16 %v836_v63, %v820_v62  ;;  %v852_v5 = vld [vmem:[#allocation8 + $0x708] sm:$0xff]  ;;  %v5668_v7 = vpack.c.bf16 %v835_v4, %v819_v3  ;;  %v851_v9 = vld [vmem:[#allocation8 + $0x700] sm:$0xff]  ;;  %v5706_v62 = vpack.c.bf16 %v646_v61, %v630_v60  ;;  %v533_v63 = vlaneseq  ;;  %v531_v3 = vld [vmem:[#allocation7] sm:$0x3] }
 0x11c   : > { %5657 = vmatpush1.bf16.msra.mxu1 %v5656_v51  ;;  %v868_v6 = vld [vmem:[#allocation8 + $0x788] sm:$0xff]  ;;  %v867_v10 = vld [vmem:[#allocation8 + $0x780] sm:$0xff]  ;;  %v902_v60 = vld [vmem:[#allocation8 + $0x898] sm:$0xff]  ;;  %p7604_p12 = pneg %p7603_p11 }
 0x11d   : > { %5259 = vmatmul.mubr.msk.f32.gmra.mrb[2].mxu0 %vm543_vm0, %v514_v55  ;;  %5659 = vmatprep.subr.bf16.mxu1 %v5658_v52  ;;  %v5670_v8 = vpack.c.bf16 %v868_v6, %v852_v5  ;;  %v884_v11 = vld [vmem:[#allocation8 + $0x808] sm:$0xff]  ;;  %v5672_v13 = vpack.c.bf16 %v867_v10, %v851_v9  ;;  %v883_v15 = vld [vmem:[#allocation8 + $0x800] sm:$0xff]  ;;  %v662_v10 = vld [vmem:[#allocation8 + $0x118] sm:$0xff] }
 0x11e   : > { %v900_v12 = vld [vmem:[#allocation8 + $0x888] sm:$0xff]  ;;  %v899_v16 = vld [vmem:[#allocation8 + $0x880] sm:$0xff]  ;;  %p7611_p9 = pnand %p7610_p7, %p7604_p12 }
 0x11f   : > { %v5674_v14 = vpack.c.bf16 %v900_v12, %v884_v11  ;;  %v916_v17 = vld [vmem:[#allocation8 + $0x908] sm:$0xff]  ;;  %v5676_v19 = vpack.c.bf16 %v899_v16, %v883_v15  ;;  %v915_v21 = vld [vmem:[#allocation8 + $0x900] sm:$0xff]  ;;  %v678_v11 = vld [vmem:[#allocation8 + $0x198] sm:$0xff] }
 0x120   : > { %5661 = vmatpush1.bf16.msra.mxu1 %v5660_v58  ;;  %v932_v18 = vld [vmem:[#allocation8 + $0x988] sm:$0xff]  ;;  %v931_v22 = vld [vmem:[#allocation8 + $0x980] sm:$0xff]  ;;  %v5710_v16 = vpack.c.bf16 %v678_v11, %v662_v10  ;;  %v933_v10 = vld [vmem:[#allocation8 + $0x990] sm:$0xff] }
 0x121   : > { %5663 = vmatprep.subr.bf16.mxu1 %v5662_v59  ;;  %v5678_v20 = vpack.c.bf16 %v932_v18, %v916_v17  ;;  %v948_v23 = vld [vmem:[#allocation8 + $0xa08] sm:$0xff]  ;;  %v5680_v25 = vpack.c.bf16 %v931_v22, %v915_v21  ;;  %v947_v27 = vld [vmem:[#allocation8 + $0xa00] sm:$0xff]  ;;  %v661_v17 = vld [vmem:[#allocation8 + $0x110] sm:$0xff] }
 0x122   : > { %v964_v24 = vld [vmem:[#allocation8 + $0xa88] sm:$0xff]  ;;  %v963_v28 = vld [vmem:[#allocation8 + $0xa80] sm:$0xff]  ;;  %v677_v18 = vld [vmem:[#allocation8 + $0x190] sm:$0xff] }
 0x123   : > { %v5682_v26 = vpack.c.bf16 %v964_v24, %v948_v23  ;;  %v980_v29 = vld [vmem:[#allocation8 + $0xb08] sm:$0xff]  ;;  %v5684_v31 = vpack.c.bf16 %v963_v28, %v947_v27  ;;  %v979_v33 = vld [vmem:[#allocation8 + $0xb00] sm:$0xff]  ;;  %v710_v21 = vld [vmem:[#allocation8 + $0x298] sm:$0xff] }
 0x124   : > { %5665 = vmatpush1.bf16.msra.mxu1 %v5664_v1  ;;  %v996_v30 = vld [vmem:[#allocation8 + $0xb88] sm:$0xff]  ;;  %v995_v34 = vld [vmem:[#allocation8 + $0xb80] sm:$0xff]  ;;  %v8094_v1 = vshrl.u32 %v533_v63, 7  ;;  %v693_v27 = vld [vmem:[#allocation8 + $0x210] sm:$0xff] }
 0x125   : > { %5667 = vmatprep.subr.bf16.mxu1 %v5666_v2  ;;  %v5686_v32 = vpack.c.bf16 %v996_v30, %v980_v29  ;;  %v1012_v35 = vld [vmem:[#allocation8 + $0xc08] sm:$0xff]  ;;  %v5688_v37 = vpack.c.bf16 %v995_v34, %v979_v33  ;;  %v1011_v39 = vld [vmem:[#allocation8 + $0xc00] sm:$0xff]  ;;  %v709_v28 = vld [vmem:[#allocation8 + $0x290] sm:$0xff] }
 0x126   : > { %v1028_v36 = vld [vmem:[#allocation8 + $0xc88] sm:$0xff]  ;;  %v1027_v40 = vld [vmem:[#allocation8 + $0xc80] sm:$0xff]  ;;  %v8097_v2 = vsub.s32 1, %v8094_v1  ;;  %v8100_v4 = vsub.s32 0, %v8094_v1  ;;  %v726_v29 = vld [vmem:[#allocation8 + $0x318] sm:$0xff] }
 0x127   : > { %v5690_v38 = vpack.c.bf16 %v1028_v36, %v1012_v35  ;;  %v1044_v41 = vld [vmem:[#allocation8 + $0xd08] sm:$0xff]  ;;  %v5692_v43 = vpack.c.bf16 %v1027_v40, %v1011_v39  ;;  %v1043_v45 = vld [vmem:[#allocation8 + $0xd00] sm:$0xff]  ;;  %v742_v30 = vld [vmem:[#allocation8 + $0x398] sm:$0xff] }
 0x128   : > { %5669 = vmatpush1.bf16.msra.mxu1 %v5668_v7  ;;  %v1060_v42 = vld [vmem:[#allocation8 + $0xd88] sm:$0xff]  ;;  %v1059_v46 = vld [vmem:[#allocation8 + $0xd80] sm:$0xff]  ;;  %9556 = vst [vmem:[#allocation24_spill] sm:$0xff] %v8097_v2  ;;  %9557 = vst [vmem:[#allocation25_spill] sm:$0xff] %v8100_v4  ;;  %v540_v5 = vrot.slane %v531_v3, %v8097_v2  ;;  %v536_v6 = vrot.slane %v531_v3, %v8100_v4 }
 0x129   : > { %5671 = vmatprep.subr.bf16.mxu1 %v5670_v8  ;;  %v5694_v44 = vpack.c.bf16 %v1060_v42, %v1044_v41  ;;  %v1076_v47 = vld [vmem:[#allocation8 + $0xe08] sm:$0xff]  ;;  %v5696_v49 = vpack.c.bf16 %v1059_v46, %v1043_v45  ;;  %v1075_v51 = vld [vmem:[#allocation8 + $0xe00] sm:$0xff]  ;;  %v629_v7 = vld [vmem:[#allocation8 + $0x10] sm:$0xff] }
 0x12a   : > { %v1092_v48 = vld [vmem:[#allocation8 + $0xe88] sm:$0xff]  ;;  %v1091_v52 = vld [vmem:[#allocation8 + $0xe80] sm:$0xff]  ;;  %v645_v8 = vld [vmem:[#allocation8 + $0x90] sm:$0xff] }
 0x12b   : > { %v5698_v50 = vpack.c.bf16 %v1092_v48, %v1076_v47  ;;  %v5700_v53 = vpack.c.bf16 %v1091_v52, %v1075_v51  ;;  %v1108_v54 = vld [vmem:[#allocation8 + $0xf08] sm:$0xff]  ;;  %v1107_v57 = vld [vmem:[#allocation8 + $0xf00] sm:$0xff]  ;;  %v725_v33 = vld [vmem:[#allocation8 + $0x310] sm:$0xff] }
 0x12c   : > { %5673 = vmatpush1.bf16.msra.mxu1 %v5672_v13  ;;  %v1124_v55 = vld [vmem:[#allocation8 + $0xf88] sm:$0xff]  ;;  %v1123_v58 = vld [vmem:[#allocation8 + $0xf80] sm:$0xff]  ;;  %v741_v34 = vld [vmem:[#allocation8 + $0x390] sm:$0xff] }
 0x12d   : > { %5675 = vmatprep.subr.bf16.mxu1 %v5674_v14  ;;  %v5702_v56 = vpack.c.bf16 %v1124_v55, %v1108_v54  ;;  %v5704_v59 = vpack.c.bf16 %v1123_v58, %v1107_v57  ;;  %v5708_v14 = vpack.c.bf16 %v645_v8, %v629_v7  ;;  %v758_v35 = vld [vmem:[#allocation8 + $0x418] sm:$0xff]  ;;  %v757_v39 = vld [vmem:[#allocation8 + $0x410] sm:$0xff] }
 0x12e   : > { %v774_v36 = vld [vmem:[#allocation8 + $0x498] sm:$0xff]  ;;  %v773_v40 = vld [vmem:[#allocation8 + $0x490] sm:$0xff] }
 0x12f   : > { %v790_v41 = vld [vmem:[#allocation8 + $0x518] sm:$0xff]  ;;  %v789_v45 = vld [vmem:[#allocation8 + $0x510] sm:$0xff] }
 0x130   : > { %5677 = vmatpush1.bf16.msra.mxu1 %v5676_v19  ;;  %v806_v42 = vld [vmem:[#allocation8 + $0x598] sm:$0xff]  ;;  %v805_v46 = vld [vmem:[#allocation8 + $0x590] sm:$0xff] }
 0x131   : > { %5679 = vmatprep.subr.bf16.mxu1 %v5678_v20  ;;  %v694_v20 = vld [vmem:[#allocation8 + $0x218] sm:$0xff]  ;;  %v821_v51 = vld [vmem:[#allocation8 + $0x610] sm:$0xff] }
 0x132   : > { %v822_v47 = vld [vmem:[#allocation8 + $0x618] sm:$0xff]  ;;  %v837_v52 = vld [vmem:[#allocation8 + $0x690] sm:$0xff] }
 0x133   : > { %v838_v48 = vld [vmem:[#allocation8 + $0x698] sm:$0xff]  ;;  %v5732_v55 = vpack.c.bf16 %v837_v52, %v821_v51  ;;  %v853_v57 = vld [vmem:[#allocation8 + $0x710] sm:$0xff]  ;;  %v632_v51 = vld [vmem:[#allocation8 + $0x28] sm:$0xff] }
 0x134   : > { %5681 = vmatpush1.bf16.msra.mxu1 %v5680_v25  ;;  %v5712_v25 = vpack.c.bf16 %v677_v18, %v661_v17  ;;  %v870_v54 = vld [vmem:[#allocation8 + $0x798] sm:$0xff]  ;;  %v869_v58 = vld [vmem:[#allocation8 + $0x790] sm:$0xff]  ;;  %v648_v52 = vld [vmem:[#allocation8 + $0xa8] sm:$0xff] }
 0x135   : > { %5683 = vmatprep.subr.bf16.mxu1 %v5682_v26  ;;  %v5714_v26 = vpack.c.bf16 %v710_v21, %v694_v20  ;;  %v5736_v61 = vpack.c.bf16 %v869_v58, %v853_v57  ;;  %v885_v63 = vld [vmem:[#allocation8 + $0x810] sm:$0xff]  ;;  %v950_v11 = vld [vmem:[#allocation8 + $0xa18] sm:$0xff]  ;;  %v664_v57 = vld [vmem:[#allocation8 + $0x128] sm:$0xff] }
 0x136   : > { %v901_v3 = vld [vmem:[#allocation8 + $0x890] sm:$0xff]  ;;  %v998_v20 = vld [vmem:[#allocation8 + $0xb98] sm:$0xff]  ;;  %v680_v58 = vld [vmem:[#allocation8 + $0x1a8] sm:$0xff] }
 0x137   : > { %v5740_v7 = vpack.c.bf16 %v901_v3, %v885_v63  ;;  %v949_v17 = vld [vmem:[#allocation8 + $0xa10] sm:$0xff]  ;;  %v696_v63 = vld [vmem:[#allocation8 + $0x228] sm:$0xff] }
 0x138   : > { %5685 = vmatpush1.bf16.msra.mxu1 %v5684_v31  ;;  %v5716_v31 = vpack.c.bf16 %v709_v28, %v693_v27  ;;  %v965_v18 = vld [vmem:[#allocation8 + $0xa90] sm:$0xff]  ;;  %v1014_v27 = vld [vmem:[#allocation8 + $0xc18] sm:$0xff]  ;;  %v712_v3 = vld [vmem:[#allocation8 + $0x2a8] sm:$0xff] }
 0x139   : > { %5687 = vmatprep.subr.bf16.mxu1 %v5686_v32  ;;  %v5718_v32 = vpack.c.bf16 %v742_v30, %v726_v29  ;;  %v5748_v21 = vpack.c.bf16 %v965_v18, %v949_v17  ;;  %v1030_v28 = vld [vmem:[#allocation8 + $0xc98] sm:$0xff]  ;;  %v760_v17 = vld [vmem:[#allocation8 + $0x428] sm:$0xff] }
 0x13a   : > { %v5754_v30 = vpack.c.bf16 %v1030_v28, %v1014_v27  ;;  %v776_v18 = vld [vmem:[#allocation8 + $0x4a8] sm:$0xff] }
 0x13c   : > { %5689 = vmatpush1.bf16.msra.mxu1 %v5688_v37  ;;  %v5720_v37 = vpack.c.bf16 %v741_v34, %v725_v33  ;;  %v1046_v33 = vld [vmem:[#allocation8 + $0xd18] sm:$0xff] }
 0x13d   : > { %5691 = vmatprep.subr.bf16.mxu1 %v5690_v38  ;;  %v5722_v38 = vpack.c.bf16 %v774_v36, %v758_v35  ;;  %v1062_v34 = vld [vmem:[#allocation8 + $0xd98] sm:$0xff] }
 0x13e   : > { %v5758_v36 = vpack.c.bf16 %v1062_v34, %v1046_v33 }
 0x140   : > { %5693 = vmatpush1.bf16.msra.mxu1 %v5692_v43  ;;  %v5724_v43 = vpack.c.bf16 %v773_v40, %v757_v39  ;;  %v1078_v39 = vld [vmem:[#allocation8 + $0xe18] sm:$0xff] }
 0x141   : > { %5695 = vmatprep.subr.bf16.mxu1 %v5694_v44  ;;  %v5726_v44 = vpack.c.bf16 %v806_v42, %v790_v41  ;;  %v1094_v40 = vld [vmem:[#allocation8 + $0xe98] sm:$0xff] }
 0x142   : > { %v5762_v42 = vpack.c.bf16 %v1094_v40, %v1078_v39 }
 0x144   : > { %5697 = vmatpush1.bf16.msra.mxu1 %v5696_v49  ;;  %v5728_v49 = vpack.c.bf16 %v805_v46, %v789_v45  ;;  %v1110_v45 = vld [vmem:[#allocation8 + $0xf18] sm:$0xff] }
 0x145   : > { %5699 = vmatprep.subr.bf16.mxu1 %v5698_v50  ;;  %v5730_v50 = vpack.c.bf16 %v838_v48, %v822_v47  ;;  %v1126_v46 = vld [vmem:[#allocation8 + $0xf98] sm:$0xff] }
 0x146   : > { %v5766_v48 = vpack.c.bf16 %v1126_v46, %v1110_v45 }
 0x148   : > { %5701 = vmatpush1.bf16.msra.mxu1 %v5700_v53  ;;  %v854_v53 = vld [vmem:[#allocation8 + $0x718] sm:$0xff] }
 0x149   : > { %5703 = vmatprep.subr.bf16.mxu1 %v5702_v56  ;;  %v5734_v56 = vpack.c.bf16 %v870_v54, %v854_v53  ;;  %v5770_v54 = vpack.c.bf16 %v648_v52, %v632_v51 }
 0x14c   : > { %5705 = vmatpush1.bf16.msra.mxu1 %v5704_v59  ;;  %v886_v59 = vld [vmem:[#allocation8 + $0x818] sm:$0xff] }
 0x14d   : > { %5707 = vmatprep.subr.bf16.mxu1 %v5706_v62  ;;  %v5738_v62 = vpack.c.bf16 %v902_v60, %v886_v59  ;;  %v5774_v60 = vpack.c.bf16 %v680_v58, %v664_v57 }
 0x1ec   : > { %v616_v9 = vpop.f32.mrb[0].mxu0 }
 0x1ed   : > { %v618_v12 = vpop.f32.mrb[1].mxu0  ;;  %v8106_v15 = vadd.f32 %v616_v9, %v536_v6  ;;  %v917_v9 = vld [vmem:[#allocation8 + $0x910] sm:$0xff] }
 0x1ee   : > { %v8104_v13 = vadd.f32 %v618_v12, %v540_v5  ;;  %v966_v12 = vld [vmem:[#allocation8 + $0xa98] sm:$0xff] }
 0x1f0   : > { %v622_v19 = vpop.f32.mrb[2].mxu0  ;;  %1287 = vmatprep.mubr.f32.mxu1 %v8104_v13 }
 0x1f1   : > { %v8109_v22 = vadd.f32 %v622_v19, %v536_v6  ;;  %v624_v23 = vpop.f32.mrb[3].mxu0  ;;  %1288 = vmatmul.mubr.f32.vlgmr.msra.gmra.mrb[0].mxu1 %v8106_v15  ;;  %v934_v6 = vld [vmem:[#allocation8 + $0x998] sm:$0xff] }
 0x1f2   : > { %v8112_v24 = vadd.f32 %v624_v23, %v540_v5  ;;  %5709 = vmatpush1.bf16.msra.mxu1 %v5708_v14  ;;  %v918_v5 = vld [vmem:[#allocation8 + $0x918] sm:$0xff]  ;;  %v5744_v14 = vpack.c.bf16 %v933_v10, %v917_v9  ;;  %v728_v9 = vld [vmem:[#allocation8 + $0x328] sm:$0xff] }
 0x1f3   : > { %5711 = vmatprep.subr.bf16.mxu1 %v5710_v16  ;;  %v5742_v8 = vpack.c.bf16 %v934_v6, %v918_v5  ;;  %v5746_v16 = vpack.c.bf16 %v966_v12, %v950_v11  ;;  %v982_v19 = vld [vmem:[#allocation8 + $0xb18] sm:$0xff]  ;;  %v5778_v6 = vpack.c.bf16 %v712_v3, %v696_v63  ;;  %v744_v10 = vld [vmem:[#allocation8 + $0x3a8] sm:$0xff] }
 0x1f4   : > { %1293 = vmatprep.mubr.f32.mxu1 %v8112_v24  ;;  %v5750_v23 = vpack.c.bf16 %v998_v20, %v982_v19  ;;  %v5782_v12 = vpack.c.bf16 %v744_v10, %v728_v9  ;;  %v5786_v20 = vpack.c.bf16 %v776_v18, %v760_v17 }
 0x1f5   : > { %1294 = vmatmul.mubr.f32.gmra.mrb[2].mxu1 %v8109_v22 }
 0x1f6   : > { %5713 = vmatpush1.bf16.msra.mxu1 %v5712_v25  ;;  %1364 = vmatprep.mubr.f32.mxu1 %v8104_v13  ;;  %v981_v25 = vld [vmem:[#allocation8 + $0xb10] sm:$0xff] }
 0x1f7   : > { %5715 = vmatprep.subr.bf16.mxu1 %v5714_v26  ;;  %v997_v26 = vld [vmem:[#allocation8 + $0xb90] sm:$0xff] }
 0x1f8   : > { %v5752_v29 = vpack.c.bf16 %v997_v26, %v981_v25  ;;  %v792_v25 = vld [vmem:[#allocation8 + $0x528] sm:$0xff] }
 0x1f9   : > { %v808_v26 = vld [vmem:[#allocation8 + $0x5a8] sm:$0xff] }
 0x1fa   : > { %5717 = vmatpush1.bf16.msra.mxu1 %v5716_v31  ;;  %v1013_v31 = vld [vmem:[#allocation8 + $0xc10] sm:$0xff]  ;;  %v5790_v28 = vpack.c.bf16 %v808_v26, %v792_v25 }
 0x1fb   : > { %5719 = vmatprep.subr.bf16.mxu1 %v5718_v32  ;;  %v1029_v32 = vld [vmem:[#allocation8 + $0xc90] sm:$0xff] }
 0x1fc   : > { %v5756_v35 = vpack.c.bf16 %v1029_v32, %v1013_v31  ;;  %v824_v31 = vld [vmem:[#allocation8 + $0x628] sm:$0xff] }
 0x1fd   : > { %v840_v32 = vld [vmem:[#allocation8 + $0x6a8] sm:$0xff] }
 0x1fe   : > { %5721 = vmatpush1.bf16.msra.mxu1 %v5720_v37  ;;  %v1045_v37 = vld [vmem:[#allocation8 + $0xd10] sm:$0xff]  ;;  %v5794_v34 = vpack.c.bf16 %v840_v32, %v824_v31 }
 0x1ff   : > { %5723 = vmatprep.subr.bf16.mxu1 %v5722_v38  ;;  %v1061_v38 = vld [vmem:[#allocation8 + $0xd90] sm:$0xff] }
 0x200   : > { %v5760_v41 = vpack.c.bf16 %v1061_v38, %v1045_v37  ;;  %v856_v37 = vld [vmem:[#allocation8 + $0x728] sm:$0xff] }
 0x201   : > { %v872_v38 = vld [vmem:[#allocation8 + $0x7a8] sm:$0xff] }
 0x202   : > { %5725 = vmatpush1.bf16.msra.mxu1 %v5724_v43  ;;  %v1077_v43 = vld [vmem:[#allocation8 + $0xe10] sm:$0xff]  ;;  %v5798_v40 = vpack.c.bf16 %v872_v38, %v856_v37 }
 0x203   : > { %5727 = vmatprep.subr.bf16.mxu1 %v5726_v44  ;;  %v1093_v44 = vld [vmem:[#allocation8 + $0xe90] sm:$0xff] }
 0x204   : > { %v5764_v47 = vpack.c.bf16 %v1093_v44, %v1077_v43  ;;  %v888_v43 = vld [vmem:[#allocation8 + $0x828] sm:$0xff] }
 0x205   : > { %v904_v44 = vld [vmem:[#allocation8 + $0x8a8] sm:$0xff] }
 0x206   : > { %5729 = vmatpush1.bf16.msra.mxu1 %v5728_v49  ;;  %v1109_v49 = vld [vmem:[#allocation8 + $0xf10] sm:$0xff]  ;;  %v5802_v46 = vpack.c.bf16 %v904_v44, %v888_v43 }
 0x207   : > { %5731 = vmatprep.subr.bf16.mxu1 %v5730_v50  ;;  %v1125_v50 = vld [vmem:[#allocation8 + $0xf90] sm:$0xff] }
 0x208   : > { %v5768_v53 = vpack.c.bf16 %v1125_v50, %v1109_v49  ;;  %v920_v49 = vld [vmem:[#allocation8 + $0x928] sm:$0xff] }
 0x209   : > { %v936_v50 = vld [vmem:[#allocation8 + $0x9a8] sm:$0xff] }
 0x20a   : > { %5733 = vmatpush1.bf16.msra.mxu1 %v5732_v55  ;;  %v631_v55 = vld [vmem:[#allocation8 + $0x20] sm:$0xff]  ;;  %v5806_v52 = vpack.c.bf16 %v936_v50, %v920_v49 }
 0x20b   : > { %5735 = vmatprep.subr.bf16.mxu1 %v5734_v56  ;;  %v647_v56 = vld [vmem:[#allocation8 + $0xa0] sm:$0xff] }
 0x20c   : > { %v5772_v59 = vpack.c.bf16 %v647_v56, %v631_v55  ;;  %v952_v55 = vld [vmem:[#allocation8 + $0xa28] sm:$0xff] }
 0x20d   : > { %v968_v56 = vld [vmem:[#allocation8 + $0xaa8] sm:$0xff] }
 0x20e   : > { %5737 = vmatpush1.bf16.msra.mxu1 %v5736_v61  ;;  %v663_v61 = vld [vmem:[#allocation8 + $0x120] sm:$0xff]  ;;  %v5810_v58 = vpack.c.bf16 %v968_v56, %v952_v55 }
 0x20f   : > { %5739 = vmatprep.subr.bf16.mxu1 %v5738_v62  ;;  %v679_v62 = vld [vmem:[#allocation8 + $0x1a0] sm:$0xff] }
 0x210   : > { %v5776_v5 = vpack.c.bf16 %v679_v62, %v663_v61  ;;  %v984_v61 = vld [vmem:[#allocation8 + $0xb28] sm:$0xff] }
 0x211   : > { %v1000_v62 = vld [vmem:[#allocation8 + $0xba8] sm:$0xff] }
 0x212   : > { %5741 = vmatpush1.bf16.msra.mxu1 %v5740_v7  ;;  %v695_v7 = vld [vmem:[#allocation8 + $0x220] sm:$0xff]  ;;  %v5814_v3 = vpack.c.bf16 %v1000_v62, %v984_v61 }
 0x213   : > { %5743 = vmatprep.subr.bf16.mxu1 %v5742_v8  ;;  %v711_v8 = vld [vmem:[#allocation8 + $0x2a0] sm:$0xff] }
 0x214   : > { %v5780_v11 = vpack.c.bf16 %v711_v8, %v695_v7  ;;  %v1016_v7 = vld [vmem:[#allocation8 + $0xc28] sm:$0xff] }
 0x215   : > { %v1032_v8 = vld [vmem:[#allocation8 + $0xca8] sm:$0xff] }
 0x216   : > { %5745 = vmatpush1.bf16.msra.mxu1 %v5744_v14  ;;  %v727_v14 = vld [vmem:[#allocation8 + $0x320] sm:$0xff]  ;;  %v5818_v10 = vpack.c.bf16 %v1032_v8, %v1016_v7 }
 0x217   : > { %5747 = vmatprep.subr.bf16.mxu1 %v5746_v16  ;;  %v743_v16 = vld [vmem:[#allocation8 + $0x3a0] sm:$0xff] }
 0x218   : > { %v5784_v19 = vpack.c.bf16 %v743_v16, %v727_v14  ;;  %v1048_v14 = vld [vmem:[#allocation8 + $0xd28] sm:$0xff] }
 0x219   : > { %v1064_v16 = vld [vmem:[#allocation8 + $0xda8] sm:$0xff] }
 0x21a   : > { %5749 = vmatpush1.bf16.msra.mxu1 %v5748_v21  ;;  %v759_v21 = vld [vmem:[#allocation8 + $0x420] sm:$0xff]  ;;  %v5822_v18 = vpack.c.bf16 %v1064_v16, %v1048_v14 }
 0x21b   : > { %5751 = vmatprep.subr.bf16.mxu1 %v5750_v23  ;;  %v775_v23 = vld [vmem:[#allocation8 + $0x4a0] sm:$0xff] }
 0x21c   : > { %v5788_v27 = vpack.c.bf16 %v775_v23, %v759_v21  ;;  %v1080_v21 = vld [vmem:[#allocation8 + $0xe28] sm:$0xff] }
 0x21d   : > { %v1096_v23 = vld [vmem:[#allocation8 + $0xea8] sm:$0xff] }
 0x21e   : > { %5753 = vmatpush1.bf16.msra.mxu1 %v5752_v29  ;;  %v791_v29 = vld [vmem:[#allocation8 + $0x520] sm:$0xff]  ;;  %v5826_v26 = vpack.c.bf16 %v1096_v23, %v1080_v21 }
 0x21f   : > { %5755 = vmatprep.subr.bf16.mxu1 %v5754_v30  ;;  %v807_v30 = vld [vmem:[#allocation8 + $0x5a0] sm:$0xff] }
 0x220   : > { %v5792_v33 = vpack.c.bf16 %v807_v30, %v791_v29  ;;  %v1112_v29 = vld [vmem:[#allocation8 + $0xf28] sm:$0xff] }
 0x221   : > { %v1128_v30 = vld [vmem:[#allocation8 + $0xfa8] sm:$0xff] }
 0x222   : > { %5757 = vmatpush1.bf16.msra.mxu1 %v5756_v35  ;;  %v823_v35 = vld [vmem:[#allocation8 + $0x620] sm:$0xff]  ;;  %v5830_v32 = vpack.c.bf16 %v1128_v30, %v1112_v29 }
 0x223   : > { %5759 = vmatprep.subr.bf16.mxu1 %v5758_v36  ;;  %v839_v36 = vld [vmem:[#allocation8 + $0x6a0] sm:$0xff] }
 0x224   : > { %v5796_v39 = vpack.c.bf16 %v839_v36, %v823_v35  ;;  %v634_v35 = vld [vmem:[#allocation8 + $0x38] sm:$0xff] }
 0x225   : > { %v650_v36 = vld [vmem:[#allocation8 + $0xb8] sm:$0xff] }
 0x226   : > { %5761 = vmatpush1.bf16.msra.mxu1 %v5760_v41  ;;  %v855_v41 = vld [vmem:[#allocation8 + $0x720] sm:$0xff]  ;;  %v5834_v38 = vpack.c.bf16 %v650_v36, %v634_v35 }
 0x227   : > { %5763 = vmatprep.subr.bf16.mxu1 %v5762_v42  ;;  %v871_v42 = vld [vmem:[#allocation8 + $0x7a0] sm:$0xff] }
 0x228   : > { %v5800_v45 = vpack.c.bf16 %v871_v42, %v855_v41  ;;  %v666_v41 = vld [vmem:[#allocation8 + $0x138] sm:$0xff] }
 0x229   : > { %v682_v42 = vld [vmem:[#allocation8 + $0x1b8] sm:$0xff] }
 0x22a   : > { %5765 = vmatpush1.bf16.msra.mxu1 %v5764_v47  ;;  %v887_v47 = vld [vmem:[#allocation8 + $0x820] sm:$0xff]  ;;  %v5838_v44 = vpack.c.bf16 %v682_v42, %v666_v41 }
 0x22b   : > { %5767 = vmatprep.subr.bf16.mxu1 %v5766_v48  ;;  %v903_v48 = vld [vmem:[#allocation8 + $0x8a0] sm:$0xff] }
 0x22c   : > { %v5804_v51 = vpack.c.bf16 %v903_v48, %v887_v47  ;;  %v698_v47 = vld [vmem:[#allocation8 + $0x238] sm:$0xff] }
 0x22d   : > { %v714_v48 = vld [vmem:[#allocation8 + $0x2b8] sm:$0xff] }
 0x22e   : > { %5769 = vmatpush1.bf16.msra.mxu1 %v5768_v53  ;;  %v919_v53 = vld [vmem:[#allocation8 + $0x920] sm:$0xff]  ;;  %v5842_v50 = vpack.c.bf16 %v714_v48, %v698_v47 }
 0x22f   : > { %5771 = vmatprep.subr.bf16.mxu1 %v5770_v54  ;;  %v935_v54 = vld [vmem:[#allocation8 + $0x9a0] sm:$0xff] }
 0x230   : > { %v5808_v57 = vpack.c.bf16 %v935_v54, %v919_v53  ;;  %v730_v53 = vld [vmem:[#allocation8 + $0x338] sm:$0xff] }
 0x231   : > { %1365 = vmatmul.mubr.f32.vlgmr.msra.gmra.mrb[4].mxu1 %v8106_v15  ;;  %v746_v54 = vld [vmem:[#allocation8 + $0x3b8] sm:$0xff] }
 0x232   : > { %1370 = vmatprep.mubr.f32.mxu1 %v8112_v24  ;;  %5773 = vmatpush1.bf16.msra.mxu1 %v5772_v59  ;;  %v951_v59 = vld [vmem:[#allocation8 + $0xa20] sm:$0xff]  ;;  %v5846_v56 = vpack.c.bf16 %v746_v54, %v730_v53 }
 0x233   : > { %5775 = vmatprep.subr.bf16.mxu1 %v5774_v60  ;;  %v967_v60 = vld [vmem:[#allocation8 + $0xaa0] sm:$0xff] }
 0x234   : > { %v5812_v63 = vpack.c.bf16 %v967_v60, %v951_v59  ;;  %v762_v59 = vld [vmem:[#allocation8 + $0x438] sm:$0xff] }
 0x235   : > { %1371 = vmatmul.mubr.f32.gmra.mrb[6].mxu1 %v8109_v22  ;;  %v778_v60 = vld [vmem:[#allocation8 + $0x4b8] sm:$0xff] }
 0x236   : > { %5777 = vmatpush1.bf16.msra.mxu1 %v5776_v5  ;;  %1441 = vmatprep.mubr.f32.mxu1 %v8104_v13  ;;  %v983_v5 = vld [vmem:[#allocation8 + $0xb20] sm:$0xff]  ;;  %v5850_v62 = vpack.c.bf16 %v778_v60, %v762_v59 }
 0x237   : > { %5779 = vmatprep.subr.bf16.mxu1 %v5778_v6  ;;  %v999_v6 = vld [vmem:[#allocation8 + $0xba0] sm:$0xff] }
 0x238   : > { %v5816_v9 = vpack.c.bf16 %v999_v6, %v983_v5  ;;  %v794_v5 = vld [vmem:[#allocation8 + $0x538] sm:$0xff] }
 0x239   : > { %v810_v6 = vld [vmem:[#allocation8 + $0x5b8] sm:$0xff] }
 0x23a   : > { %5781 = vmatpush1.bf16.msra.mxu1 %v5780_v11  ;;  %v1015_v11 = vld [vmem:[#allocation8 + $0xc20] sm:$0xff]  ;;  %v5854_v8 = vpack.c.bf16 %v810_v6, %v794_v5 }
 0x23b   : > { %5783 = vmatprep.subr.bf16.mxu1 %v5782_v12  ;;  %v1031_v12 = vld [vmem:[#allocation8 + $0xca0] sm:$0xff] }
 0x23c   : > { %v5820_v17 = vpack.c.bf16 %v1031_v12, %v1015_v11  ;;  %v826_v11 = vld [vmem:[#allocation8 + $0x638] sm:$0xff] }
 0x23d   : > { %v842_v12 = vld [vmem:[#allocation8 + $0x6b8] sm:$0xff] }
 0x23e   : > { %5785 = vmatpush1.bf16.msra.mxu1 %v5784_v19  ;;  %v1047_v19 = vld [vmem:[#allocation8 + $0xd20] sm:$0xff]  ;;  %v5858_v16 = vpack.c.bf16 %v842_v12, %v826_v11 }
 0x23f   : > { %5787 = vmatprep.subr.bf16.mxu1 %v5786_v20  ;;  %v1063_v20 = vld [vmem:[#allocation8 + $0xda0] sm:$0xff] }
 0x240   : > { %v5824_v25 = vpack.c.bf16 %v1063_v20, %v1047_v19  ;;  %v858_v19 = vld [vmem:[#allocation8 + $0x738] sm:$0xff]  ;;  %v2256_v12 = vld [vmem:[%s9558_s29 + $0x188] sm:$0xff] }
 0x241   : > { %v874_v20 = vld [vmem:[#allocation8 + $0x7b8] sm:$0xff] }
 0x242   : > { %5789 = vmatpush1.bf16.msra.mxu1 %v5788_v27  ;;  %v1079_v27 = vld [vmem:[#allocation8 + $0xe20] sm:$0xff]  ;;  %v5862_v23 = vpack.c.bf16 %v874_v20, %v858_v19  ;;  %v1113_v20 = vld [vmem:[#allocation8 + $0xf30] sm:$0xff] }
 0x243   : > { %5791 = vmatprep.subr.bf16.mxu1 %v5790_v28  ;;  %v1095_v28 = vld [vmem:[#allocation8 + $0xea0] sm:$0xff] }
 0x244   : > { %v5828_v31 = vpack.c.bf16 %v1095_v28, %v1079_v27  ;;  %v890_v27 = vld [vmem:[#allocation8 + $0x838] sm:$0xff] }
 0x245   : > { %v906_v28 = vld [vmem:[#allocation8 + $0x8b8] sm:$0xff] }
 0x246   : > { %5793 = vmatpush1.bf16.msra.mxu1 %v5792_v33  ;;  %v1111_v33 = vld [vmem:[#allocation8 + $0xf20] sm:$0xff]  ;;  %v5866_v30 = vpack.c.bf16 %v906_v28, %v890_v27  ;;  %v2257_v27 = vld [vmem:[%s9558_s29 + $0x190] sm:$0xff]  ;;  %v2258_v28 = vld [vmem:[%s9558_s29 + $0x198] sm:$0xff] }
 0x247   : > { %5795 = vmatprep.subr.bf16.mxu1 %v5794_v34  ;;  %v1127_v34 = vld [vmem:[#allocation8 + $0xfa0] sm:$0xff] }
 0x248   : > { %v5832_v37 = vpack.c.bf16 %v1127_v34, %v1111_v33  ;;  %v922_v33 = vld [vmem:[#allocation8 + $0x938] sm:$0xff] }
 0x249   : > { %v938_v34 = vld [vmem:[#allocation8 + $0x9b8] sm:$0xff] }
 0x24a   : > { %5797 = vmatpush1.bf16.msra.mxu1 %v5796_v39  ;;  %v633_v39 = vld [vmem:[#allocation8 + $0x30] sm:$0xff]  ;;  %v5870_v36 = vpack.c.bf16 %v938_v34, %v922_v33  ;;  %v2255_v11 = vld [vmem:[%s9558_s29 + $0x180] sm:$0xff] }
 0x24b   : > { %5799 = vmatprep.subr.bf16.mxu1 %v5798_v40  ;;  %v649_v40 = vld [vmem:[#allocation8 + $0xb0] sm:$0xff]  ;;  %v635_v34 = vld [vmem:[#allocation8 + $0x40] sm:$0xff] }
 0x24c   : > { %v5836_v43 = vpack.c.bf16 %v649_v40, %v633_v39  ;;  %v954_v39 = vld [vmem:[#allocation8 + $0xa38] sm:$0xff] }
 0x24d   : > { %v970_v40 = vld [vmem:[#allocation8 + $0xab8] sm:$0xff] }
 0x24e   : > { %5801 = vmatpush1.bf16.msra.mxu1 %v5800_v45  ;;  %v665_v45 = vld [vmem:[#allocation8 + $0x130] sm:$0xff]  ;;  %v5874_v42 = vpack.c.bf16 %v970_v40, %v954_v39  ;;  %v2259_v39 = vld [vmem:[%s9558_s29 + $0x1a0] sm:$0xff]  ;;  %v2260_v40 = vld [vmem:[%s9558_s29 + $0x1a8] sm:$0xff] }
 0x24f   : > { %5803 = vmatprep.subr.bf16.mxu1 %v5802_v46  ;;  %v681_v46 = vld [vmem:[#allocation8 + $0x1b0] sm:$0xff] }
 0x250   : > { %v5840_v49 = vpack.c.bf16 %v681_v46, %v665_v45  ;;  %v986_v45 = vld [vmem:[#allocation8 + $0xb38] sm:$0xff] }
 0x251   : > { %v1002_v46 = vld [vmem:[#allocation8 + $0xbb8] sm:$0xff] }
 0x252   : > { %5805 = vmatpush1.bf16.msra.mxu1 %v5804_v51  ;;  %v697_v51 = vld [vmem:[#allocation8 + $0x230] sm:$0xff]  ;;  %v5878_v48 = vpack.c.bf16 %v1002_v46, %v986_v45  ;;  %v667_v46 = vld [vmem:[#allocation8 + $0x140] sm:$0xff] }
 0x253   : > { %5807 = vmatprep.subr.bf16.mxu1 %v5806_v52  ;;  %v713_v52 = vld [vmem:[#allocation8 + $0x2b0] sm:$0xff] }
 0x254   : > { %v5844_v55 = vpack.c.bf16 %v713_v52, %v697_v51  ;;  %v1018_v51 = vld [vmem:[#allocation8 + $0xc38] sm:$0xff] }
 0x255   : > { %v1034_v52 = vld [vmem:[#allocation8 + $0xcb8] sm:$0xff] }
 0x256   : > { %5809 = vmatpush1.bf16.msra.mxu1 %v5808_v57  ;;  %v729_v57 = vld [vmem:[#allocation8 + $0x330] sm:$0xff]  ;;  %v5882_v54 = vpack.c.bf16 %v1034_v52, %v1018_v51 }
 0x257   : > { %5811 = vmatprep.subr.bf16.mxu1 %v5810_v58  ;;  %v745_v58 = vld [vmem:[#allocation8 + $0x3b0] sm:$0xff] }
 0x258   : > { %v5848_v61 = vpack.c.bf16 %v745_v58, %v729_v57  ;;  %v1050_v57 = vld [vmem:[#allocation8 + $0xd38] sm:$0xff]  ;;  %v2261_v51 = vld [vmem:[%s9558_s29 + $0x1b0] sm:$0xff] }
 0x259   : > { %v1066_v58 = vld [vmem:[#allocation8 + $0xdb8] sm:$0xff] }
 0x25a   : > { %5813 = vmatpush1.bf16.msra.mxu1 %v5812_v63  ;;  %v761_v63 = vld [vmem:[#allocation8 + $0x430] sm:$0xff]  ;;  %v5886_v60 = vpack.c.bf16 %v1066_v58, %v1050_v57  ;;  %v699_v58 = vld [vmem:[#allocation8 + $0x240] sm:$0xff] }
 0x25b   : > { %5815 = vmatprep.subr.bf16.mxu1 %v5814_v3  ;;  %v777_v3 = vld [vmem:[#allocation8 + $0x4b0] sm:$0xff] }
 0x25c   : > { %v5852_v7 = vpack.c.bf16 %v777_v3, %v761_v63  ;;  %v1082_v63 = vld [vmem:[#allocation8 + $0xe38] sm:$0xff] }
 0x25d   : > { %v1098_v3 = vld [vmem:[#allocation8 + $0xeb8] sm:$0xff] }
 0x25e   : > { %5817 = vmatpush1.bf16.msra.mxu1 %v5816_v9  ;;  %v793_v9 = vld [vmem:[#allocation8 + $0x530] sm:$0xff]  ;;  %v5890_v6 = vpack.c.bf16 %v1098_v3, %v1082_v63  ;;  %v2263_v63 = vld [vmem:[%s9558_s29 + $0x1c0] sm:$0xff]  ;;  %v2264_v3 = vld [vmem:[%s9558_s29 + $0x1c8] sm:$0xff] }
 0x25f   : > { %5819 = vmatprep.subr.bf16.mxu1 %v5818_v10  ;;  %v809_v10 = vld [vmem:[#allocation8 + $0x5b0] sm:$0xff] }
 0x260   : > { %v5856_v14 = vpack.c.bf16 %v809_v10, %v793_v9  ;;  %v1114_v9 = vld [vmem:[#allocation8 + $0xf38] sm:$0xff] }
 0x261   : > { %v1130_v10 = vld [vmem:[#allocation8 + $0xfb8] sm:$0xff] }
 0x262   : > { %5821 = vmatpush1.bf16.msra.mxu1 %v5820_v17  ;;  %v825_v17 = vld [vmem:[#allocation8 + $0x630] sm:$0xff]  ;;  %v5894_v19 = vpack.c.bf16 %v1130_v10, %v1114_v9  ;;  %v731_v10 = vld [vmem:[#allocation8 + $0x340] sm:$0xff] }
 0x263   : > { %5823 = vmatprep.subr.bf16.mxu1 %v5822_v18  ;;  %v841_v18 = vld [vmem:[#allocation8 + $0x6b0] sm:$0xff] }
 0x264   : > { %v5860_v21 = vpack.c.bf16 %v841_v18, %v825_v17  ;;  %v2239_v17 = vld [vmem:[%s9558_s29 + $0x100] sm:$0xff]  ;;  %v2240_v18 = vld [vmem:[%s9558_s29 + $0x108] sm:$0xff]  ;;  %v2262_v52 = vld [vmem:[%s9558_s29 + $0x1b8] sm:$0xff] }
 0x266   : > { %5825 = vmatpush1.bf16.msra.mxu1 %v5824_v25  ;;  %v857_v25 = vld [vmem:[#allocation8 + $0x730] sm:$0xff] }
 0x267   : > { %5827 = vmatprep.subr.bf16.mxu1 %v5826_v26  ;;  %v873_v26 = vld [vmem:[#allocation8 + $0x7b0] sm:$0xff] }
 0x268   : > { %v5864_v29 = vpack.c.bf16 %v873_v26, %v857_v25  ;;  %v636_v25 = vld [vmem:[#allocation8 + $0x48] sm:$0xff] }
 0x269   : > { %v652_v26 = vld [vmem:[#allocation8 + $0xc8] sm:$0xff] }
 0x26a   : > { %5829 = vmatpush1.bf16.msra.mxu1 %v5828_v31  ;;  %v889_v31 = vld [vmem:[#allocation8 + $0x830] sm:$0xff]  ;;  %v5898_v33 = vpack.c.bf16 %v652_v26, %v636_v25  ;;  %v763_v25 = vld [vmem:[#allocation8 + $0x440] sm:$0xff] }
 0x26b   : > { %5831 = vmatprep.subr.bf16.mxu1 %v5830_v32  ;;  %v905_v32 = vld [vmem:[#allocation8 + $0x8b0] sm:$0xff] }
 0x26c   : > { %v5868_v35 = vpack.c.bf16 %v905_v32, %v889_v31  ;;  %v2241_v31 = vld [vmem:[%s9558_s29 + $0x110] sm:$0xff]  ;;  %v2242_v32 = vld [vmem:[%s9558_s29 + $0x118] sm:$0xff] }
 0x26e   : > { %5833 = vmatpush1.bf16.msra.mxu1 %v5832_v37  ;;  %v921_v37 = vld [vmem:[#allocation8 + $0x930] sm:$0xff] }
 0x26f   : > { %5835 = vmatprep.subr.bf16.mxu1 %v5834_v38  ;;  %v937_v38 = vld [vmem:[#allocation8 + $0x9b0] sm:$0xff] }
 0x270   : > { %v5872_v41 = vpack.c.bf16 %v937_v38, %v921_v37  ;;  %v668_v37 = vld [vmem:[#allocation8 + $0x148] sm:$0xff] }
 0x271   : > { %1442 = vmatmul.mubr.f32.vlgmr.msra.gmra.mrb[8].mxu1 %v8106_v15  ;;  %v684_v38 = vld [vmem:[#allocation8 + $0x1c8] sm:$0xff] }
 0x272   : > { %1447 = vmatprep.mubr.f32.mxu1 %v8112_v24  ;;  %5837 = vmatpush1.bf16.msra.mxu1 %v5836_v43  ;;  %v953_v43 = vld [vmem:[#allocation8 + $0xa30] sm:$0xff]  ;;  %v5902_v45 = vpack.c.bf16 %v684_v38, %v668_v37  ;;  %v795_v37 = vld [vmem:[#allocation8 + $0x540] sm:$0xff] }
 0x273   : > { %5839 = vmatprep.subr.bf16.mxu1 %v5838_v44  ;;  %v969_v44 = vld [vmem:[#allocation8 + $0xab0] sm:$0xff] }
 0x274   : > { %v5876_v47 = vpack.c.bf16 %v969_v44, %v953_v43  ;;  %v2243_v43 = vld [vmem:[%s9558_s29 + $0x120] sm:$0xff]  ;;  %v2244_v44 = vld [vmem:[%s9558_s29 + $0x128] sm:$0xff] }
 0x275   : > { %1448 = vmatmul.mubr.f32.gmra.mrb[10].mxu1 %v8109_v22 }
 0x276   : > { %5841 = vmatpush1.bf16.msra.mxu1 %v5840_v49  ;;  %1518 = vmatprep.mubr.f32.mxu1 %v8104_v13  ;;  %v985_v49 = vld [vmem:[#allocation8 + $0xb30] sm:$0xff] }
 0x277   : > { %5843 = vmatprep.subr.bf16.mxu1 %v5842_v50  ;;  %v1001_v50 = vld [vmem:[#allocation8 + $0xbb0] sm:$0xff] }
 0x278   : > { %v5880_v53 = vpack.c.bf16 %v1001_v50, %v985_v49  ;;  %v700_v49 = vld [vmem:[#allocation8 + $0x248] sm:$0xff] }
 0x279   : > { %v716_v50 = vld [vmem:[#allocation8 + $0x2c8] sm:$0xff] }
 0x27a   : > { %5845 = vmatpush1.bf16.msra.mxu1 %v5844_v55  ;;  %v1017_v55 = vld [vmem:[#allocation8 + $0xc30] sm:$0xff]  ;;  %v5906_v57 = vpack.c.bf16 %v716_v50, %v700_v49 }
 0x27b   : > { %5847 = vmatprep.subr.bf16.mxu1 %v5846_v56  ;;  %v1033_v56 = vld [vmem:[#allocation8 + $0xcb0] sm:$0xff] }
 0x27c   : > { %v5884_v59 = vpack.c.bf16 %v1033_v56, %v1017_v55  ;;  %v2245_v55 = vld [vmem:[%s9558_s29 + $0x130] sm:$0xff]  ;;  %v2246_v56 = vld [vmem:[%s9558_s29 + $0x138] sm:$0xff] }
 0x27e   : > { %5849 = vmatpush1.bf16.msra.mxu1 %v5848_v61  ;;  %v1049_v61 = vld [vmem:[#allocation8 + $0xd30] sm:$0xff] }
 0x27f   : > { %5851 = vmatprep.subr.bf16.mxu1 %v5850_v62  ;;  %v1065_v62 = vld [vmem:[#allocation8 + $0xdb0] sm:$0xff] }
 0x280   : > { %v5888_v5 = vpack.c.bf16 %v1065_v62, %v1049_v61  ;;  %v732_v61 = vld [vmem:[#allocation8 + $0x348] sm:$0xff] }
 0x281   : > { %v748_v62 = vld [vmem:[#allocation8 + $0x3c8] sm:$0xff] }
 0x282   : > { %5853 = vmatpush1.bf16.msra.mxu1 %v5852_v7  ;;  %v1081_v7 = vld [vmem:[#allocation8 + $0xe30] sm:$0xff]  ;;  %v5910_v9 = vpack.c.bf16 %v748_v62, %v732_v61  ;;  %v859_v62 = vld [vmem:[#allocation8 + $0x740] sm:$0xff] }
 0x283   : > { %5855 = vmatprep.subr.bf16.mxu1 %v5854_v8  ;;  %v1097_v8 = vld [vmem:[#allocation8 + $0xeb0] sm:$0xff] }
 0x286   : > { %5857 = vmatpush1.bf16.msra.mxu1 %v5856_v14  ;;  %v5892_v14 = vpack.c.bf16 %v1097_v8, %v1081_v7  ;;  %v2247_v7 = vld [vmem:[%s9558_s29 + $0x140] sm:$0xff]  ;;  %v2248_v8 = vld [vmem:[%s9558_s29 + $0x148] sm:$0xff] }
 0x287   : > { %5859 = vmatprep.subr.bf16.mxu1 %v5858_v16  ;;  %v6186_v16 = vpack.c.bf16 %v2256_v12, %v2255_v11  ;;  %v747_v11 = vld [vmem:[#allocation8 + $0x3c0] sm:$0xff]  ;;  %v6204_v12 = vpack.c.bf16 %v2248_v8, %v2247_v7 }
 0x289   : > { %6187 = vmatprep.subr.bf16.mxu0 %v6186_v16  ;;  %v764_v16 = vld [vmem:[#allocation8 + $0x448] sm:$0xff] }
 0x28a   : > { %5861 = vmatpush1.bf16.msra.mxu1 %v5860_v21  ;;  %v1129_v21 = vld [vmem:[#allocation8 + $0xfb0] sm:$0xff] }
 0x28b   : > { %5863 = vmatprep.subr.bf16.mxu1 %v5862_v23  ;;  %v6188_v23 = vpack.c.bf16 %v2240_v18, %v2239_v17  ;;  %v780_v17 = vld [vmem:[#allocation8 + $0x4c8] sm:$0xff]  ;;  %v2266_v18 = vld [vmem:[%s9558_s29 + $0x1d8] sm:$0xff] }
 0x28d   : > { %6189 = vmatpush3.bf16.msra.mxu0 %v6188_v23  ;;  %v5912_v23 = vpack.c.bf16 %v747_v11, %v731_v10 }
 0x28e   : > { %5865 = vmatpush1.bf16.msra.mxu1 %v5864_v29  ;;  %v5896_v29 = vpack.c.bf16 %v1129_v21, %v1113_v20  ;;  %v2249_v20 = vld [vmem:[%s9558_s29 + $0x150] sm:$0xff]  ;;  %v2250_v21 = vld [vmem:[%s9558_s29 + $0x158] sm:$0xff] }
 0x28f   : > { %5867 = vmatprep.subr.bf16.mxu1 %v5866_v30  ;;  %v6190_v30 = vpack.c.bf16 %v2258_v28, %v2257_v27  ;;  %v6208_v26 = vpack.c.bf16 %v2250_v21, %v2249_v20  ;;  %v5914_v27 = vpack.c.bf16 %v780_v17, %v764_v16  ;;  %v779_v28 = vld [vmem:[#allocation8 + $0x4c0] sm:$0xff]  ;;  %v924_v20 = vld [vmem:[#allocation8 + $0x948] sm:$0xff] }
 0x290   : > { %v891_v17 = vld [vmem:[#allocation8 + $0x840] sm:$0xff]  ;;  %v940_v21 = vld [vmem:[#allocation8 + $0x9c8] sm:$0xff] }
 0x291   : > { %6191 = vmatprep.subr.bf16.mxu0 %v6190_v30  ;;  %v2268_v30 = vld [vmem:[%s9558_s29 + $0x1e8] sm:$0xff] }
 0x292   : > { %5869 = vmatpush1.bf16.msra.mxu1 %v5868_v35  ;;  %v651_v35 = vld [vmem:[#allocation8 + $0xc0] sm:$0xff] }
 0x293   : > { %5871 = vmatprep.subr.bf16.mxu1 %v5870_v36  ;;  %v6192_v36 = vpack.c.bf16 %v2242_v32, %v2241_v31  ;;  %v796_v31 = vld [vmem:[#allocation8 + $0x548] sm:$0xff] }
 0x294   : > { %v812_v32 = vld [vmem:[#allocation8 + $0x5c8] sm:$0xff] }
 0x295   : > { %6193 = vmatpush3.bf16.msra.mxu0 %v6192_v36  ;;  %v5916_v36 = vpack.c.bf16 %v779_v28, %v763_v25  ;;  %v5934_v28 = vpack.c.bf16 %v940_v21, %v924_v20  ;;  %v1099_v20 = vld [vmem:[#allocation8 + $0xec0] sm:$0xff]  ;;  %v1116_v21 = vld [vmem:[#allocation8 + $0xf48] sm:$0xff] }
 0x296   : > { %5873 = vmatpush1.bf16.msra.mxu1 %v5872_v41  ;;  %v5900_v41 = vpack.c.bf16 %v651_v35, %v635_v34  ;;  %v2251_v34 = vld [vmem:[%s9558_s29 + $0x160] sm:$0xff]  ;;  %v2252_v35 = vld [vmem:[%s9558_s29 + $0x168] sm:$0xff] }
 0x297   : > { %5875 = vmatprep.subr.bf16.mxu1 %v5874_v42  ;;  %v6194_v42 = vpack.c.bf16 %v2260_v40, %v2259_v39  ;;  %v6212_v38 = vpack.c.bf16 %v2252_v35, %v2251_v34  ;;  %v5918_v39 = vpack.c.bf16 %v812_v32, %v796_v31  ;;  %v811_v40 = vld [vmem:[#allocation8 + $0x5c0] sm:$0xff]  ;;  %v956_v32 = vld [vmem:[#allocation8 + $0xa48] sm:$0xff] }
 0x298   : > { %v5920_v49 = vpack.c.bf16 %v811_v40, %v795_v37  ;;  %v971_v40 = vld [vmem:[#allocation8 + $0xac0] sm:$0xff] }
 0x299   : > { %6195 = vmatprep.subr.bf16.mxu0 %v6194_v42  ;;  %v2270_v42 = vld [vmem:[%s9558_s29 + $0x1f8] sm:$0xff] }
 0x29a   : > { %5877 = vmatpush1.bf16.msra.mxu1 %v5876_v47  ;;  %v683_v47 = vld [vmem:[#allocation8 + $0x1c0] sm:$0xff] }
 0x29b   : > { %5879 = vmatprep.subr.bf16.mxu1 %v5878_v48  ;;  %v6196_v48 = vpack.c.bf16 %v2244_v44, %v2243_v43  ;;  %v828_v43 = vld [vmem:[#allocation8 + $0x648] sm:$0xff] }
 0x29c   : > { %v844_v44 = vld [vmem:[#allocation8 + $0x6c8] sm:$0xff] }
 0x29d   : > { %6197 = vmatpush3.bf16.msra.mxu0 %v6196_v48  ;;  %v8225_v48 = vld [vmem:[#allocation10] sm:$0xff] }
 0x29e   : > { %5881 = vmatpush1.bf16.msra.mxu1 %v5880_v53  ;;  %v5904_v53 = vpack.c.bf16 %v683_v47, %v667_v46  ;;  %v2253_v46 = vld [vmem:[%s9558_s29 + $0x170] sm:$0xff]  ;;  %v2254_v47 = vld [vmem:[%s9558_s29 + $0x178] sm:$0xff] }
 0x29f   : > { %5883 = vmatprep.subr.bf16.mxu1 %v5882_v54  ;;  %v6198_v54 = vpack.c.bf16 %v2262_v52, %v2261_v51  ;;  %v6216_v50 = vpack.c.bf16 %v2254_v47, %v2253_v46  ;;  %v5922_v51 = vpack.c.bf16 %v844_v44, %v828_v43  ;;  %v827_v52 = vld [vmem:[#allocation8 + $0x640] sm:$0xff]  ;;  %v1004_v43 = vld [vmem:[#allocation8 + $0xbc8] sm:$0xff] }
 0x2a1   : > { %6199 = vmatprep.subr.bf16.mxu0 %v6198_v54 }
 0x2a2   : > { %5885 = vmatpush1.bf16.msra.mxu1 %v5884_v59  ;;  %v715_v59 = vld [vmem:[#allocation8 + $0x2c0] sm:$0xff] }
 0x2a3   : > { %5887 = vmatprep.subr.bf16.mxu1 %v5886_v60  ;;  %v6200_v60 = vpack.c.bf16 %v2246_v56, %v2245_v55  ;;  %v860_v55 = vld [vmem:[#allocation8 + $0x748] sm:$0xff] }
 0x2a4   : > { %v876_v56 = vld [vmem:[#allocation8 + $0x7c8] sm:$0xff] }
 0x2a5   : > { %6201 = vmatpush3.bf16.msra.mxu0 %v6200_v60  ;;  %v5926_v61 = vpack.c.bf16 %v876_v56, %v860_v55 }
 0x2a6   : > { %5889 = vmatpush1.bf16.msra.mxu1 %v5888_v5  ;;  %v5908_v5 = vpack.c.bf16 %v715_v59, %v699_v58  ;;  %v1150_v59 = vrot.slane %v8225_v48, %v8097_v2 }
 0x2a7   : > { %5891 = vmatprep.subr.bf16.mxu1 %v5890_v6  ;;  %v6202_v6 = vpack.c.bf16 %v2264_v3, %v2263_v63  ;;  %v875_v63 = vld [vmem:[#allocation8 + $0x7c0] sm:$0xff] }
 0x2a9   : > { %6203 = vmatprep.subr.bf16.mxu0 %v6202_v6  ;;  %v908_v6 = vld [vmem:[#allocation8 + $0x8c8] sm:$0xff] }
 0x2aa   : > { %5893 = vmatpush1.bf16.msra.mxu1 %v5892_v14  ;;  %v2265_v14 = vld [vmem:[%s9558_s29 + $0x1d0] sm:$0xff]  ;;  %6205 = vmatpush3.bf16.msra.mxu0 %v6204_v12  ;;  %v5928_v12 = vpack.c.bf16 %v875_v63, %v859_v62  ;;  %v1019_v63 = vld [vmem:[#allocation8 + $0xc40] sm:$0xff] }
 0x2ab   : > { %5895 = vmatprep.subr.bf16.mxu1 %v5894_v19  ;;  %v6206_v19 = vpack.c.bf16 %v2266_v18, %v2265_v14  ;;  %v907_v18 = vld [vmem:[#allocation8 + $0x8c0] sm:$0xff] }
 0x2ad   : > { %6207 = vmatprep.subr.bf16.mxu0 %v6206_v19 }
 0x2ae   : > { %5897 = vmatpush1.bf16.msra.mxu1 %v5896_v29  ;;  %v2267_v29 = vld [vmem:[%s9558_s29 + $0x1e0] sm:$0xff]  ;;  %6209 = vmatpush3.bf16.msra.mxu0 %v6208_v26  ;;  %v5932_v26 = vpack.c.bf16 %v907_v18, %v891_v17 }
 0x2af   : > { %5899 = vmatprep.subr.bf16.mxu1 %v5898_v33  ;;  %v6210_v33 = vpack.c.bf16 %v2268_v30, %v2267_v29  ;;  %v923_v29 = vld [vmem:[#allocation8 + $0x940] sm:$0xff] }
 0x2b0   : > { %v939_v30 = vld [vmem:[#allocation8 + $0x9c0] sm:$0xff] }
 0x2b1   : > { %1519 = vmatmul.mubr.f32.vlgmr.msra.gmra.mrb[12].mxu1 %v8106_v15  ;;  %6211 = vmatprep.subr.bf16.mxu0 %v6210_v33  ;;  %v972_v33 = vld [vmem:[#allocation8 + $0xac8] sm:$0xff] }
 0x2b2   : > { %1524 = vmatprep.mubr.f32.mxu1 %v8112_v24  ;;  %5901 = vmatpush1.bf16.msra.mxu1 %v5900_v41  ;;  %v2269_v41 = vld [vmem:[%s9558_s29 + $0x1f0] sm:$0xff] }
 0x2b3   : > { %5903 = vmatprep.subr.bf16.mxu1 %v5902_v45  ;;  %v6214_v45 = vpack.c.bf16 %v2270_v42, %v2269_v41  ;;  %6213 = vmatpush3.bf16.msra.mxu0 %v6212_v38  ;;  %v5938_v38 = vpack.c.bf16 %v972_v33, %v956_v32  ;;  %v988_v42 = vld [vmem:[#allocation8 + $0xb48] sm:$0xff]  ;;  %v654_v32 = vld [vmem:[#allocation8 + $0xd8] sm:$0xff] }
 0x2b5   : > { %1525 = vmatmul.mubr.f32.gmra.mrb[14].mxu1 %v8109_v22  ;;  %6215 = vmatprep.subr.bf16.mxu0 %v6214_v45 }
 0x2b6   : > { %5905 = vmatpush1.bf16.msra.mxu1 %v5904_v53  ;;  %1595 = vmatprep.mubr.f32.mxu1 %v8104_v13  ;;  %v843_v53 = vld [vmem:[#allocation8 + $0x6c0] sm:$0xff] }
 0x2b7   : > { %5907 = vmatprep.subr.bf16.mxu1 %v5906_v57  ;;  %v1146_v57 = vrot.slane %v8225_v48, %v8100_v4  ;;  %6217 = vmatpush3.bf16.msra.mxu0 %v6216_v50  ;;  %v5924_v60 = vpack.c.bf16 %v843_v53, %v827_v52  ;;  %v987_v50 = vld [vmem:[#allocation8 + $0xb40] sm:$0xff]  ;;  %v1020_v53 = vld [vmem:[#allocation8 + $0xc48] sm:$0xff] }
 0x2ba   : > { %5909 = vmatpush1.bf16.msra.mxu1 %v5908_v5  ;;  %v892_v5 = vld [vmem:[#allocation8 + $0x848] sm:$0xff] }
 0x2bb   : > { %5911 = vmatprep.subr.bf16.mxu1 %v5910_v9  ;;  %v5930_v16 = vpack.c.bf16 %v908_v6, %v892_v5 }
 0x2be   : > { %5913 = vmatpush1.bf16.msra.mxu1 %v5912_v23 }
 0x2bf   : > { %5915 = vmatprep.subr.bf16.mxu1 %v5914_v27 }
 0x2c2   : > { %5917 = vmatpush1.bf16.msra.mxu1 %v5916_v36  ;;  %v5936_v36 = vpack.c.bf16 %v939_v30, %v923_v29  ;;  %v1131_v29 = vld [vmem:[#allocation8 + $0xfc0] sm:$0xff] }
 0x2c3   : > { %5919 = vmatprep.subr.bf16.mxu1 %v5918_v39  ;;  %v955_v39 = vld [vmem:[#allocation8 + $0xa40] sm:$0xff] }
 0x2c4   : > { %v1289_v54 = vpop.f32.mrb[0].mxu1  ;;  %v5940_v46 = vpack.c.bf16 %v971_v40, %v955_v39  ;;  %v637_v40 = vld [vmem:[#allocation8 + $0x50] sm:$0xff] }
 0x2c5   : > { %v1291_v58 = vpop.f32.mrb[1].mxu1  ;;  %v1290_v7 = vadd.f32 %v1289_v54, %v1146_v57  ;;  %v1036_v54 = vld [vmem:[#allocation8 + $0xcc8] sm:$0xff] }
 0x2c6   : > { %5921 = vmatpush1.bf16.msra.mxu1 %v5920_v49  ;;  %v1292_v10 = vadd.f32 %v1291_v58, %v1150_v59  ;;  %v5942_v49 = vpack.c.bf16 %v1004_v43, %v988_v42  ;;  %v5946_v62 = vpack.c.bf16 %v1036_v54, %v1020_v53  ;;  %v670_v42 = vld [vmem:[#allocation8 + $0x158] sm:$0xff] }
 0x2c7   : > { %5923 = vmatprep.subr.bf16.mxu1 %v5922_v51  ;;  %v1003_v51 = vld [vmem:[#allocation8 + $0xbc0] sm:$0xff]  ;;  %v686_v43 = vld [vmem:[#allocation8 + $0x1d8] sm:$0xff] }
 0x2c8   : > { %v1295_v3 = vpop.f32.mrb[2].mxu1  ;;  %v702_v53 = vld [vmem:[#allocation8 + $0x258] sm:$0xff] }
 0x2c9   : > { %v1296_v8 = vadd.f32 %v1295_v3, %v1146_v57  ;;  %v1297_v9 = vpop.f32.mrb[3].mxu1  ;;  %v1035_v3 = vld [vmem:[#allocation8 + $0xcc0] sm:$0xff]  ;;  %v718_v54 = vld [vmem:[#allocation8 + $0x2d8] sm:$0xff] }
 0x2ca   : > { %v1298_v11 = vadd.f32 %v1297_v9, %v1150_v59  ;;  %5925 = vmatpush1.bf16.msra.mxu1 %v5924_v60  ;;  %v5944_v59 = vpack.c.bf16 %v1003_v51, %v987_v50  ;;  %v1052_v9 = vld [vmem:[#allocation8 + $0xd48] sm:$0xff]  ;;  %v5966_v50 = vpack.c.bf16 %v686_v43, %v670_v42  ;;  %v669_v51 = vld [vmem:[#allocation8 + $0x150] sm:$0xff] }
 0x2cb   : > { %v1839_v14 = vmax.f32 %v1290_v7, %v1296_v8  ;;  %5927 = vmatprep.subr.bf16.mxu1 %v5926_v61  ;;  %v829_v42 = vld [vmem:[#allocation8 + $0x650] sm:$0xff] }
 0x2cc   : > { %v1846_v19 = vmax.f32 %v1292_v10, %v1298_v11  ;;  %v845_v43 = vld [vmem:[#allocation8 + $0x6d0] sm:$0xff] }
 0x2cd   : > { %v1840_v23 = vrot.slane %v1839_v14, 4 }
 0x2ce   : > { %v1847_v25 = vrot.slane %v1846_v19, 4  ;;  %5929 = vmatpush1.bf16.msra.mxu1 %v5928_v12  ;;  %v1068_v12 = vld [vmem:[#allocation8 + $0xdc8] sm:$0xff] }
 0x2cf   : > { %v1841_v27 = vmax.f32 %v1839_v14, %v1840_v23  ;;  %5931 = vmatprep.subr.bf16.mxu1 %v5930_v16  ;;  %v5948_v14 = vpack.c.bf16 %v1035_v3, %v1019_v63  ;;  %v1100_v16 = vld [vmem:[#allocation8 + $0xec8] sm:$0xff]  ;;  %v734_v63 = vld [vmem:[#allocation8 + $0x358] sm:$0xff] }
 0x2d0   : > { %v1848_v31 = vmax.f32 %v1846_v19, %v1847_v25  ;;  %v1083_v19 = vld [vmem:[#allocation8 + $0xe40] sm:$0xff]  ;;  %v1132_v23 = vld [vmem:[#allocation8 + $0xfc8] sm:$0xff]  ;;  %v750_v3 = vld [vmem:[#allocation8 + $0x3d8] sm:$0xff] }
 0x2d1   : > { %v1842_v34 = vrot.slane %v1841_v27, 2  ;;  %v5956_v25 = vpack.c.bf16 %v1099_v20, %v1083_v19  ;;  %v781_v19 = vld [vmem:[#allocation8 + $0x4d0] sm:$0xff]  ;;  %v798_v20 = vld [vmem:[#allocation8 + $0x558] sm:$0xff] }
 0x2d2   : > { %v1849_v35 = vrot.slane %v1848_v31, 2  ;;  %5933 = vmatpush1.bf16.msra.mxu1 %v5932_v26 }
 0x2d3   : > { %v1843_v37 = vmax.f32 %v1841_v27, %v1842_v34  ;;  %5935 = vmatprep.subr.bf16.mxu1 %v5934_v28  ;;  %v5958_v27 = vpack.c.bf16 %v1132_v23, %v1116_v21  ;;  %v1115_v28 = vld [vmem:[#allocation8 + $0xf40] sm:$0xff]  ;;  %v814_v21 = vld [vmem:[#allocation8 + $0x5d8] sm:$0xff] }
 0x2d4   : > { %v1850_v41 = vmax.f32 %v1848_v31, %v1849_v35  ;;  %v638_v31 = vld [vmem:[#allocation8 + $0x58] sm:$0xff] }
 0x2d5   : > { %v1844_v44 = vrot.slane %v1843_v37, 1  ;;  %v5962_v39 = vpack.c.bf16 %v654_v32, %v638_v31  ;;  %v846_v31 = vld [vmem:[#allocation8 + $0x6d8] sm:$0xff] }
 0x2d6   : > { %v1851_v45 = vrot.slane %v1850_v41, 1  ;;  %5937 = vmatpush1.bf16.msra.mxu1 %v5936_v36  ;;  %v5960_v36 = vpack.c.bf16 %v1131_v29, %v1115_v28  ;;  %v813_v28 = vld [vmem:[#allocation8 + $0x5d0] sm:$0xff]  ;;  %v830_v29 = vld [vmem:[#allocation8 + $0x658] sm:$0xff] }
 0x2d7   : > { %v1845_v47 = vmax.f32 %v1843_v37, %v1844_v44  ;;  %5939 = vmatprep.subr.bf16.mxu1 %v5938_v38 }
 0x2d8   : > { %v1852_v52 = vmax.f32 %v1850_v41, %v1851_v45  ;;  %v653_v41 = vld [vmem:[#allocation8 + $0xd0] sm:$0xff] }
 0x2d9   : > { %v1951_v55 = vsub.f32 %v1290_v7, %v1845_v47  ;;  %v1967_v56 = vsub.f32 %v1296_v8, %v1845_v47  ;;  %v5950_v7 = vpack.c.bf16 %v1068_v12, %v1052_v9  ;;  %v1051_v8 = vld [vmem:[#allocation8 + $0xd40] sm:$0xff]  ;;  %v5974_v12 = vpack.c.bf16 %v750_v3, %v734_v63  ;;  %v893_v3 = vld [vmem:[#allocation8 + $0x850] sm:$0xff] }
 0x2da   : > { %v1952_v57 = vsub.f32 %v1292_v10, %v1852_v52  ;;  %v1968_v58 = vsub.f32 %v1298_v11, %v1852_v52  ;;  %5941 = vmatpush1.bf16.msra.mxu1 %v5940_v46  ;;  %v1067_v10 = vld [vmem:[#allocation8 + $0xdc0] sm:$0xff]  ;;  %v1084_v11 = vld [vmem:[#allocation8 + $0xe48] sm:$0xff]  ;;  %v5964_v46 = vpack.c.bf16 %v653_v41, %v637_v40  ;;  %v685_v52 = vld [vmem:[#allocation8 + $0x1d0] sm:$0xff]  ;;  %v5986_v41 = vpack.c.bf16 %v846_v31, %v830_v29 }
 0x2db   : > { %v1983_v60 = vmul.f32 1.442695, %v1951_v55  ;;  %v2015_v61 = vmul.f32 1.442695, %v1967_v56  ;;  %5943 = vmatprep.subr.bf16.mxu1 %v5942_v49  ;;  %v5952_v17 = vpack.c.bf16 %v1067_v10, %v1051_v8  ;;  %v5954_v18 = vpack.c.bf16 %v1100_v16, %v1084_v11  ;;  %v766_v10 = vld [vmem:[#allocation8 + $0x458] sm:$0xff]  ;;  %v957_v29 = vld [vmem:[#allocation8 + $0xa50] sm:$0xff] }
 0x2dc   : > { %v1985_v5 = vmul.f32 1.442695, %v1952_v57  ;;  %v2017_v6 = vmul.f32 1.442695, %v1968_v58  ;;  %v5968_v57 = vpack.c.bf16 %v685_v52, %v669_v51  ;;  %v782_v11 = vld [vmem:[#allocation8 + $0x4d8] sm:$0xff]  ;;  %v5988_v51 = vpack.c.bf16 %v845_v43, %v829_v42  ;;  %v973_v31 = vld [vmem:[#allocation8 + $0xad0] sm:$0xff] }
 0x2dd   : > { %7185 = vpow2.f32 %v1983_v60  ;;  %v701_v60 = vld [vmem:[#allocation8 + $0x250] sm:$0xff]  ;;  %v6004_v43 = vpack.c.bf16 %v973_v31, %v957_v29  ;;  %v640_v31 = vld [vmem:[#allocation8 + $0x68] sm:$0xff] }
 0x2de   : > { %7187 = vpow2.f32 %v2015_v61  ;;  %5945 = vmatpush1.bf16.msra.mxu1 %v5944_v59  ;;  %v5970_v59 = vpack.c.bf16 %v718_v54, %v702_v53  ;;  %v717_v61 = vld [vmem:[#allocation8 + $0x2d0] sm:$0xff] }
 0x2df   : > { %7189 = vpow2.f32 %v1985_v5  ;;  %5947 = vmatprep.subr.bf16.mxu1 %v5946_v62  ;;  %v5972_v9 = vpack.c.bf16 %v717_v61, %v701_v60  ;;  %v861_v53 = vld [vmem:[#allocation8 + $0x750] sm:$0xff] }
 0x2e0   : > { %7191 = vpow2.f32 %v2017_v6  ;;  %v877_v54 = vld [vmem:[#allocation8 + $0x7d0] sm:$0xff] }
 0x2e1   : > { %v5992_v61 = vpack.c.bf16 %v877_v54, %v861_v53 }
 0x2e2   : > { %5949 = vmatpush1.bf16.msra.mxu1 %v5948_v14  ;;  %v733_v14 = vld [vmem:[#allocation8 + $0x350] sm:$0xff] }
 0x2e3   : > { %5951 = vmatprep.subr.bf16.mxu1 %v5950_v7  ;;  %v749_v7 = vld [vmem:[#allocation8 + $0x3d0] sm:$0xff] }
 0x2e4   : > { %v5976_v16 = vpack.c.bf16 %v749_v7, %v733_v14 }
 0x2e6   : > { %5953 = vmatpush1.bf16.msra.mxu1 %v5952_v17  ;;  %v5978_v17 = vpack.c.bf16 %v782_v11, %v766_v10 }
 0x2e7   : > { %v8231_v26 = vpop.eup %7185  ;;  %5955 = vmatprep.subr.bf16.mxu1 %v5954_v18  ;;  %v765_v18 = vld [vmem:[#allocation8 + $0x450] sm:$0xff] }
 0x2e8   : > { %v8233_v30 = vpop.eup %7187  ;;  %v5980_v23 = vpack.c.bf16 %v781_v19, %v765_v18  ;;  %v958_v19 = vld [vmem:[#allocation8 + $0xa58] sm:$0xff] }
 0x2e9   : > { %v8235_v33 = vpop.eup %7189  ;;  %v2047_v34 = vadd.f32 %v8233_v30, %v8231_v26 }
 0x2ea   : > { %v8239_v35 = vpop.eup %7191  ;;  %5957 = vmatpush1.bf16.msra.mxu1 %v5956_v25  ;;  %v5982_v25 = vpack.c.bf16 %v814_v21, %v798_v20  ;;  %v974_v20 = vld [vmem:[#allocation8 + $0xad8] sm:$0xff] }
 0x2eb   : > { %v2048_v37 = vrot.slane %v2047_v34, 4  ;;  %v2054_v38 = vadd.f32 %v8239_v35, %v8235_v33  ;;  %5959 = vmatprep.subr.bf16.mxu1 %v5958_v27  ;;  %v797_v27 = vld [vmem:[#allocation8 + $0x550] sm:$0xff] }
 0x2ed   : > { %v2049_v44 = vadd.f32 %v2048_v37, %v2047_v34  ;;  %v2055_v45 = vrot.slane %v2054_v38, 4  ;;  %v1153_v34 = vsub.s32 2, %v8094_v1  ;;  %v5984_v37 = vpack.c.bf16 %v813_v28, %v797_v27 }
 0x2ee   : > { %5961 = vmatpush1.bf16.msra.mxu1 %v5960_v36  ;;  %v1157_v36 = vsub.s32 3, %v8094_v1  ;;  %v6002_v28 = vpack.c.bf16 %v974_v20, %v958_v19  ;;  %v2320_v19 = vld [vmem:[%s9558_s29 + $0x388] sm:$0xff] }
 0x2ef   : > { %v2050_v47 = vrot.slane %v2049_v44, 2  ;;  %v2056_v49 = vadd.f32 %v2055_v45, %v2054_v38  ;;  %5963 = vmatprep.subr.bf16.mxu1 %v5962_v39  ;;  %v862_v45 = vld [vmem:[#allocation8 + $0x758] sm:$0xff] }
 0x2f1   : > { %v2051_v55 = vadd.f32 %v2050_v47, %v2049_v44  ;;  %v2057_v56 = vrot.slane %v2056_v49, 2  ;;  %1596 = vmatmul.mubr.f32.vlgmr.msra.gmra.mrb[16].mxu1 %v8106_v15 }
 0x2f2   : > { %1601 = vmatprep.mubr.f32.mxu1 %v8112_v24  ;;  %5965 = vmatpush1.bf16.msra.mxu1 %v5964_v46  ;;  %v878_v46 = vld [vmem:[#allocation8 + $0x7d8] sm:$0xff] }
 0x2f3   : > { %v2052_v58 = vrot.slane %v2051_v55, 1  ;;  %5967 = vmatprep.subr.bf16.mxu1 %v5966_v50  ;;  %v2058_v62 = vadd.f32 %v2057_v56, %v2056_v49  ;;  %v1158_v50 = vrot.slane %v8225_v48, %v1157_v36  ;;  %v5990_v52 = vpack.c.bf16 %v878_v46, %v862_v45  ;;  %v910_v56 = vld [vmem:[#allocation8 + $0x8d8] sm:$0xff]  ;;  %v989_v46 = vld [vmem:[#allocation8 + $0xb50] sm:$0xff] }
 0x2f5   : > { %v2053_v5 = vadd.f32 %v2052_v58, %v2051_v55  ;;  %1602 = vmatmul.mubr.f32.gmra.mrb[18].mxu1 %v8109_v22  ;;  %v2059_v6 = vrot.slane %v2058_v62, 1  ;;  %v894_v55 = vld [vmem:[#allocation8 + $0x858] sm:$0xff] }
 0x2f6   : > { %5969 = vmatpush1.bf16.msra.mxu1 %v5968_v57  ;;  %1672 = vmatprep.mubr.f32.mxu1 %v8104_v13  ;;  %v5994_v63 = vpack.c.bf16 %v910_v56, %v894_v55 }
 0x2f7   : > { %7193 = vrcp.f32 %v2053_v5  ;;  %5971 = vmatprep.subr.bf16.mxu1 %v5970_v59  ;;  %v2060_v8 = vadd.f32 %v2059_v6, %v2058_v62  ;;  %v909_v5 = vld [vmem:[#allocation8 + $0x8d0] sm:$0xff] }
 0x2f9   : > { %7195 = vrcp.f32 %v2060_v8  ;;  %v5996_v8 = vpack.c.bf16 %v909_v5, %v893_v3 }
 0x2fa   : > { %5973 = vmatpush1.bf16.msra.mxu1 %v5972_v9  ;;  %v926_v9 = vld [vmem:[#allocation8 + $0x958] sm:$0xff] }
 0x2fb   : > { %5975 = vmatprep.subr.bf16.mxu1 %v5974_v12  ;;  %v942_v12 = vld [vmem:[#allocation8 + $0x9d8] sm:$0xff] }
 0x2fc   : > { %v5998_v11 = vpack.c.bf16 %v942_v12, %v926_v9  ;;  %v1070_v9 = vld [vmem:[#allocation8 + $0xdd8] sm:$0xff] }
 0x2fe   : > { %5977 = vmatpush1.bf16.msra.mxu1 %v5976_v16  ;;  %v925_v16 = vld [vmem:[#allocation8 + $0x950] sm:$0xff] }
 0x2ff   : > { %5979 = vmatprep.subr.bf16.mxu1 %v5978_v17  ;;  %v941_v17 = vld [vmem:[#allocation8 + $0x9d0] sm:$0xff] }
 0x301   : > { %v7194_v32 = vpop.eup %7193 }
 0x302   : > { %5981 = vmatpush1.bf16.msra.mxu1 %v5980_v23  ;;  %v8250_v38 = vmul.f32 %v7194_v32, %v8231_v26  ;;  %v8253_v39 = vmul.f32 %v7194_v32, %v8233_v30  ;;  %v1154_v26 = vrot.slane %v8225_v48, %v1153_v34 }
 0x303   : > { %v7196_v40 = vpop.eup %7195  ;;  %5983 = vmatprep.subr.bf16.mxu1 %v5982_v25  ;;  %v6000_v25 = vpack.c.bf16 %v941_v17, %v925_v16  ;;  %v1118_v16 = vld [vmem:[#allocation8 + $0xf58] sm:$0xff] }
 0x304   : > { %v1366_v44 = vpop.f32.mrb[4].mxu1  ;;  %v8256_v47 = vmul.f32 %v7196_v40, %v8235_v33  ;;  %v8259_v49 = vmul.f32 %v7196_v40, %v8239_v35  ;;  %v1006_v40 = vld [vmem:[#allocation8 + $0xbd8] sm:$0xff] }
 0x305   : > { %v1368_v30 = vpop.f32.mrb[5].mxu1  ;;  %v1367_v35 = vadd.f32 %v1366_v44, %v1154_v26  ;;  %v1134_v17 = vld [vmem:[#allocation8 + $0xfd8] sm:$0xff] }
 0x306   : > { %5985 = vmatpush1.bf16.msra.mxu1 %v5984_v37  ;;  %v1369_v59 = vadd.f32 %v1368_v30, %v1158_v50  ;;  %v990_v37 = vld [vmem:[#allocation8 + $0xb58] sm:$0xff] }
 0x307   : > { %5987 = vmatprep.subr.bf16.mxu1 %v5986_v41  ;;  %v6006_v45 = vpack.c.bf16 %v1006_v40, %v990_v37 }
 0x308   : > { %v1372_v33 = vpop.f32.mrb[6].mxu1 }
 0x309   : > { %v1373_v57 = vadd.f32 %v1372_v33, %v1154_v26  ;;  %v1374_v58 = vpop.f32.mrb[7].mxu1  ;;  %v1005_v26 = vld [vmem:[#allocation8 + $0xbd0] sm:$0xff] }
 0x30a   : > { %v1375_v60 = vadd.f32 %v1374_v58, %v1158_v50  ;;  %5989 = vmatpush1.bf16.msra.mxu1 %v5988_v51  ;;  %v1022_v50 = vld [vmem:[#allocation8 + $0xc58] sm:$0xff]  ;;  %v6008_v55 = vpack.c.bf16 %v1005_v26, %v989_v46  ;;  %v639_v46 = vld [vmem:[#allocation8 + $0x60] sm:$0xff] }
 0x30b   : > { %v1853_v62 = vmax.f32 %v1367_v35, %v1373_v57  ;;  %5991 = vmatprep.subr.bf16.mxu1 %v5990_v52  ;;  %v1038_v51 = vld [vmem:[#allocation8 + $0xcd8] sm:$0xff]  ;;  %v655_v26 = vld [vmem:[#allocation8 + $0xe0] sm:$0xff] }
 0x30c   : > { %v1860_v6 = vmax.f32 %v1369_v59, %v1375_v60 }
 0x30d   : > { %v1854_v14 = vrot.slane %v1853_v62, 4 }
 0x30e   : > { %v1861_v7 = vrot.slane %v1860_v6, 4  ;;  %5993 = vmatpush1.bf16.msra.mxu1 %v5992_v61  ;;  %v6010_v61 = vpack.c.bf16 %v1038_v51, %v1022_v50  ;;  %v688_v50 = vld [vmem:[#allocation8 + $0x1e8] sm:$0xff] }
 0x30f   : > { %v1855_v10 = vmax.f32 %v1853_v62, %v1854_v14  ;;  %5995 = vmatprep.subr.bf16.mxu1 %v5994_v63  ;;  %v1021_v62 = vld [vmem:[#allocation8 + $0xc50] sm:$0xff]  ;;  %v1102_v14 = vld [vmem:[#allocation8 + $0xed8] sm:$0xff] }
 0x310   : > { %v1862_v18 = vmax.f32 %v1860_v6, %v1861_v7  ;;  %v1037_v63 = vld [vmem:[#allocation8 + $0xcd0] sm:$0xff]  ;;  %v1054_v6 = vld [vmem:[#allocation8 + $0xd58] sm:$0xff] }
 0x311   : > { %v1856_v21 = vrot.slane %v1855_v10, 2  ;;  %v6012_v12 = vpack.c.bf16 %v1037_v63, %v1021_v62  ;;  %v720_v62 = vld [vmem:[#allocation8 + $0x2e8] sm:$0xff] }
 0x312   : > { %v1863_v23 = vrot.slane %v1862_v18, 2  ;;  %5997 = vmatpush1.bf16.msra.mxu1 %v5996_v8 }
 0x313   : > { %v1857_v27 = vmax.f32 %v1855_v10, %v1856_v21  ;;  %5999 = vmatprep.subr.bf16.mxu1 %v5998_v11  ;;  %v1085_v10 = vld [vmem:[#allocation8 + $0xe50] sm:$0xff] }
 0x314   : > { %v1864_v32 = vmax.f32 %v1862_v18, %v1863_v23  ;;  %v1101_v11 = vld [vmem:[#allocation8 + $0xed0] sm:$0xff]  ;;  %v2319_v18 = vld [vmem:[%s9558_s29 + $0x380] sm:$0xff] }
 0x315   : > { %v1858_v41 = vrot.slane %v1857_v27, 1  ;;  %v6020_v20 = vpack.c.bf16 %v1101_v11, %v1085_v10  ;;  %v6250_v21 = vpack.c.bf16 %v2320_v19, %v2319_v18  ;;  %v735_v11 = vld [vmem:[#allocation8 + $0x360] sm:$0xff]  ;;  %v768_v18 = vld [vmem:[#allocation8 + $0x468] sm:$0xff] }
 0x316   : > { %v1865_v42 = vrot.slane %v1864_v32, 1  ;;  %6001 = vmatpush1.bf16.msra.mxu1 %v6000_v25  ;;  %v6022_v25 = vpack.c.bf16 %v1134_v17, %v1118_v16  ;;  %v751_v16 = vld [vmem:[#allocation8 + $0x3e0] sm:$0xff]  ;;  %v784_v19 = vld [vmem:[#allocation8 + $0x4e8] sm:$0xff] }
 0x317   : > { %v1859_v44 = vmax.f32 %v1857_v27, %v1858_v41  ;;  %6003 = vmatprep.subr.bf16.mxu1 %v6002_v28  ;;  %v1117_v27 = vld [vmem:[#allocation8 + $0xf50] sm:$0xff]  ;;  %6251 = vmatprep.subr.bf16.mxu0 %v6250_v21  ;;  %v6042_v21 = vpack.c.bf16 %v784_v19, %v768_v18 }
 0x318   : > { %v1866_v30 = vmax.f32 %v1864_v32, %v1865_v42  ;;  %v1133_v28 = vld [vmem:[#allocation8 + $0xfd0] sm:$0xff]  ;;  %v656_v32 = vld [vmem:[#allocation8 + $0xe8] sm:$0xff] }
 0x319   : > { %v1953_v52 = vsub.f32 %v1367_v35, %v1859_v44  ;;  %v1969_v53 = vsub.f32 %v1373_v57, %v1859_v44  ;;  %v6014_v35 = vpack.c.bf16 %v1070_v9, %v1054_v6  ;;  %v1053_v57 = vld [vmem:[#allocation8 + $0xd50] sm:$0xff]  ;;  %v6024_v42 = vpack.c.bf16 %v1133_v28, %v1117_v27  ;;  %v783_v27 = vld [vmem:[#allocation8 + $0x4e0] sm:$0xff]  ;;  %v800_v28 = vld [vmem:[#allocation8 + $0x568] sm:$0xff] }
 0x31a   : > { %v1954_v54 = vsub.f32 %v1369_v59, %v1866_v30  ;;  %v1970_v33 = vsub.f32 %v1375_v60, %v1866_v30  ;;  %6005 = vmatpush1.bf16.msra.mxu1 %v6004_v43  ;;  %v1069_v59 = vld [vmem:[#allocation8 + $0xdd0] sm:$0xff]  ;;  %v1086_v60 = vld [vmem:[#allocation8 + $0xe58] sm:$0xff]  ;;  %v672_v30 = vld [vmem:[#allocation8 + $0x168] sm:$0xff] }
 0x31b   : > { %v1987_v56 = vmul.f32 1.442695, %v1953_v52  ;;  %v2019_v58 = vmul.f32 1.442695, %v1969_v53  ;;  %6007 = vmatprep.subr.bf16.mxu1 %v6006_v45  ;;  %v6016_v7 = vpack.c.bf16 %v1069_v59, %v1053_v57  ;;  %v6018_v8 = vpack.c.bf16 %v1102_v14, %v1086_v60  ;;  %v736_v59 = vld [vmem:[#allocation8 + $0x368] sm:$0xff] }
 0x31c   : > { %v1989_v3 = vmul.f32 1.442695, %v1954_v54  ;;  %v2021_v5 = vmul.f32 1.442695, %v1970_v33  ;;  %v6026_v45 = vpack.c.bf16 %v656_v32, %v640_v31  ;;  %v6028_v53 = vpack.c.bf16 %v655_v26, %v639_v46  ;;  %v752_v60 = vld [vmem:[#allocation8 + $0x3e8] sm:$0xff] }
 0x31d   : > { %7197 = vpow2.f32 %v1987_v56  ;;  %v671_v56 = vld [vmem:[#allocation8 + $0x160] sm:$0xff]  ;;  %v6038_v10 = vpack.c.bf16 %v752_v60, %v736_v59  ;;  %v816_v31 = vld [vmem:[#allocation8 + $0x5e8] sm:$0xff]  ;;  %v1161_v26 = vsub.s32 4, %v8094_v1 }
 0x31e   : > { %7199 = vpow2.f32 %v2019_v58  ;;  %6009 = vmatpush1.bf16.msra.mxu1 %v6008_v55  ;;  %v6030_v55 = vpack.c.bf16 %v688_v50, %v672_v30  ;;  %v687_v58 = vld [vmem:[#allocation8 + $0x1e0] sm:$0xff] }
 0x31f   : > { %7201 = vpow2.f32 %v1989_v3  ;;  %6011 = vmatprep.subr.bf16.mxu1 %v6010_v61  ;;  %v704_v61 = vld [vmem:[#allocation8 + $0x268] sm:$0xff]  ;;  %v2303_v30 = vld [vmem:[%s9558_s29 + $0x300] sm:$0xff] }
 0x320   : > { %7203 = vpow2.f32 %v2021_v5  ;;  %v6032_v5 = vpack.c.bf16 %v687_v58, %v671_v56  ;;  %v6034_v9 = vpack.c.bf16 %v720_v62, %v704_v61  ;;  %v2304_v50 = vld [vmem:[%s9558_s29 + $0x308] sm:$0xff]  ;;  %v2323_v60 = vld [vmem:[%s9558_s29 + $0x3a0] sm:$0xff] }
 0x321   : > { %v831_v61 = vld [vmem:[#allocation8 + $0x660] sm:$0xff] }
 0x322   : > { %6013 = vmatpush1.bf16.msra.mxu1 %v6012_v12  ;;  %v703_v12 = vld [vmem:[#allocation8 + $0x260] sm:$0xff] }
 0x323   : > { %6015 = vmatprep.subr.bf16.mxu1 %v6014_v35  ;;  %v719_v35 = vld [vmem:[#allocation8 + $0x2e0] sm:$0xff] }
 0x324   : > { %v847_v62 = vld [vmem:[#allocation8 + $0x6e0] sm:$0xff] }
 0x325   : > { %v6052_v59 = vpack.c.bf16 %v847_v62, %v831_v61  ;;  %v2310_v61 = vld [vmem:[%s9558_s29 + $0x338] sm:$0xff] }
 0x326   : > { %6017 = vmatpush1.bf16.msra.mxu1 %v6016_v7 }
 0x327   : > { %v8273_v23 = vpop.eup %7197  ;;  %6019 = vmatprep.subr.bf16.mxu1 %v6018_v8  ;;  %v6036_v8 = vpack.c.bf16 %v719_v35, %v703_v12 }
 0x328   : > { %v8275_v29 = vpop.eup %7199 }
 0x329   : > { %v8277_v37 = vpop.eup %7201  ;;  %v2061_v40 = vadd.f32 %v8275_v29, %v8273_v23 }
 0x32a   : > { %v8281_v41 = vpop.eup %7203  ;;  %6021 = vmatpush1.bf16.msra.mxu1 %v6020_v20  ;;  %v6040_v20 = vpack.c.bf16 %v751_v16, %v735_v11  ;;  %v912_v16 = vld [vmem:[#allocation8 + $0x8e8] sm:$0xff] }
 0x32b   : > { %v2062_v43 = vrot.slane %v2061_v40, 4  ;;  %v2068_v44 = vadd.f32 %v8281_v41, %v8277_v37  ;;  %6023 = vmatprep.subr.bf16.mxu1 %v6022_v25  ;;  %v767_v25 = vld [vmem:[#allocation8 + $0x460] sm:$0xff] }
 0x32c   : > { %v6044_v32 = vpack.c.bf16 %v783_v27, %v767_v25  ;;  %v2307_v25 = vld [vmem:[%s9558_s29 + $0x320] sm:$0xff]  ;;  %v2308_v27 = vld [vmem:[%s9558_s29 + $0x328] sm:$0xff] }
 0x32d   : > { %v2063_v51 = vadd.f32 %v2062_v43, %v2061_v40  ;;  %v2069_v52 = vrot.slane %v2068_v44, 4  ;;  %v6046_v40 = vpack.c.bf16 %v816_v31, %v800_v28  ;;  %v815_v43 = vld [vmem:[#allocation8 + $0x5e0] sm:$0xff] }
 0x32e   : > { %6025 = vmatpush1.bf16.msra.mxu1 %v6024_v42  ;;  %v799_v42 = vld [vmem:[#allocation8 + $0x560] sm:$0xff] }
 0x32f   : > { %v2064_v54 = vrot.slane %v2063_v51, 2  ;;  %v2070_v33 = vadd.f32 %v2069_v52, %v2068_v44  ;;  %6027 = vmatprep.subr.bf16.mxu1 %v6026_v45  ;;  %v832_v44 = vld [vmem:[#allocation8 + $0x668] sm:$0xff] }
 0x330   : > { %v848_v45 = vld [vmem:[#allocation8 + $0x6e8] sm:$0xff] }
 0x331   : > { %v2065_v63 = vadd.f32 %v2064_v54, %v2063_v51  ;;  %v2071_v3 = vrot.slane %v2070_v33, 2  ;;  %1673 = vmatmul.mubr.f32.vlgmr.msra.gmra.mrb[20].mxu1 %v8106_v15  ;;  %v1165_v51 = vsub.s32 5, %v8094_v1  ;;  %v6050_v58 = vpack.c.bf16 %v848_v45, %v832_v44  ;;  %v895_v45 = vld [vmem:[#allocation8 + $0x860] sm:$0xff] }
 0x332   : > { %1678 = vmatprep.mubr.f32.mxu1 %v8112_v24  ;;  %6029 = vmatpush1.bf16.msra.mxu1 %v6028_v53  ;;  %v6048_v53 = vpack.c.bf16 %v815_v43, %v799_v42  ;;  %v2326_v42 = vld [vmem:[%s9558_s29 + $0x3b8] sm:$0xff] }
 0x333   : > { %v2066_v6 = vrot.slane %v2065_v63, 1  ;;  %6031 = vmatprep.subr.bf16.mxu1 %v6030_v55  ;;  %v2072_v57 = vadd.f32 %v2071_v3, %v2070_v33  ;;  %v2321_v33 = vld [vmem:[%s9558_s29 + $0x390] sm:$0xff]  ;;  %v2322_v55 = vld [vmem:[%s9558_s29 + $0x398] sm:$0xff] }
 0x334   : > { %v864_v3 = vld [vmem:[#allocation8 + $0x768] sm:$0xff]  ;;  %v6254_v35 = vpack.c.bf16 %v2322_v55, %v2321_v33  ;;  %v6260_v33 = vpack.c.bf16 %v2308_v27, %v2307_v25  ;;  %v975_v25 = vld [vmem:[#allocation8 + $0xae0] sm:$0xff] }
 0x335   : > { %v2067_v14 = vadd.f32 %v2066_v6, %v2065_v63  ;;  %1679 = vmatmul.mubr.f32.gmra.mrb[22].mxu1 %v8109_v22  ;;  %v2073_v7 = vrot.slane %v2072_v57, 1  ;;  %v6252_v6 = vpack.c.bf16 %v2304_v50, %v2303_v30  ;;  %v928_v50 = vld [vmem:[#allocation8 + $0x968] sm:$0xff] }
 0x336   : > { %6033 = vmatpush1.bf16.msra.mxu1 %v6032_v5  ;;  %1749 = vmatprep.mubr.f32.mxu1 %v8104_v13  ;;  %v880_v5 = vld [vmem:[#allocation8 + $0x7e8] sm:$0xff] }
 0x337   : > { %7205 = vrcp.f32 %v2067_v14  ;;  %6035 = vmatprep.subr.bf16.mxu1 %v6034_v9  ;;  %v2074_v17 = vadd.f32 %v2073_v7, %v2072_v57  ;;  %v1162_v9 = vrot.slane %v8225_v48, %v1161_v26  ;;  %v2305_v57 = vld [vmem:[%s9558_s29 + $0x310] sm:$0xff]  ;;  %v2324_v14 = vld [vmem:[%s9558_s29 + $0x3a8] sm:$0xff]  ;;  %v6054_v7 = vpack.c.bf16 %v880_v5, %v864_v3  ;;  %v2327_v3 = vld [vmem:[%s9558_s29 + $0x3c0] sm:$0xff] }
 0x338   : > { %v2328_v5 = vld [vmem:[%s9558_s29 + $0x3c8] sm:$0xff] }
 0x339   : > { %7207 = vrcp.f32 %v2074_v17 }
 0x33a   : > { %6037 = vmatpush1.bf16.msra.mxu1 %v6036_v8  ;;  %v863_v8 = vld [vmem:[#allocation8 + $0x760] sm:$0xff] }
 0x33b   : > { %6039 = vmatprep.subr.bf16.mxu1 %v6038_v10  ;;  %v879_v10 = vld [vmem:[#allocation8 + $0x7e0] sm:$0xff] }
 0x33e   : > { %6041 = vmatpush1.bf16.msra.mxu1 %v6040_v20 }
 0x33f   : > { %6043 = vmatprep.subr.bf16.mxu1 %v6042_v21  ;;  %v6258_v21 = vpack.c.bf16 %v2324_v14, %v2323_v60  ;;  %v6266_v14 = vpack.c.bf16 %v2328_v5, %v2327_v3  ;;  %v1040_v3 = vld [vmem:[#allocation8 + $0xce8] sm:$0xff] }
 0x341   : > { %v7206_v46 = vpop.eup %7205 }
 0x342   : > { %6045 = vmatpush1.bf16.msra.mxu1 %v6044_v32  ;;  %v8298_v52 = vmul.f32 %v7206_v46, %v8273_v23  ;;  %v8301_v54 = vmul.f32 %v7206_v46, %v8275_v29  ;;  %v6056_v32 = vpack.c.bf16 %v879_v10, %v863_v8  ;;  %v911_v46 = vld [vmem:[#allocation8 + $0x8e0] sm:$0xff] }
 0x343   : > { %v7208_v56 = vpop.eup %7207  ;;  %6047 = vmatprep.subr.bf16.mxu1 %v6046_v40  ;;  %v2325_v40 = vld [vmem:[%s9558_s29 + $0x3b0] sm:$0xff]  ;;  %v2312_v8 = vld [vmem:[%s9558_s29 + $0x348] sm:$0xff] }
 0x344   : > { %v1443_v63 = vpop.f32.mrb[8].mxu1  ;;  %v8310_v23 = vmul.f32 %v7208_v56, %v8277_v37  ;;  %v8313_v29 = vmul.f32 %v7208_v56, %v8281_v41  ;;  %v2306_v37 = vld [vmem:[%s9558_s29 + $0x318] sm:$0xff]  ;;  %v1166_v41 = vrot.slane %v8225_v48, %v1165_v51  ;;  %v896_v48 = vld [vmem:[#allocation8 + $0x868] sm:$0xff]  ;;  %v6262_v56 = vpack.c.bf16 %v2326_v42, %v2325_v40 }
 0x345   : > { %v1445_v12 = vpop.f32.mrb[9].mxu1  ;;  %v6256_v17 = vpack.c.bf16 %v2306_v37, %v2305_v57  ;;  %v8336_v18 = vadd.f32 %v1443_v63, %v1162_v9  ;;  %v6058_v44 = vpack.c.bf16 %v912_v16, %v896_v48  ;;  %v6060_v63 = vpack.c.bf16 %v911_v46, %v895_v45  ;;  %v960_v37 = vld [vmem:[#allocation8 + $0xa68] sm:$0xff]  ;;  %v2330_v16 = vld [vmem:[%s9558_s29 + $0x3d8] sm:$0xff] }
 0x346   : > { %2602 = vmatprep.mubr.f32.mxu0 %v8310_v23  ;;  %6049 = vmatpush1.bf16.msra.mxu1 %v6048_v53  ;;  %v8346_v28 = vadd.f32 %v1445_v12, %v1166_v41  ;;  %v944_v53 = vld [vmem:[#allocation8 + $0x9e8] sm:$0xff]  ;;  %v927_v12 = vld [vmem:[#allocation8 + $0x960] sm:$0xff]  ;;  %v2314_v46 = vld [vmem:[%s9558_s29 + $0x358] sm:$0xff] }
 0x347   : > { %2603 = vmatmul.mubr.f32.vlgmr.msra.gmra.mrb[4].mxu0 %v8298_v52  ;;  %6051 = vmatprep.subr.bf16.mxu1 %v6050_v58  ;;  %v2309_v58 = vld [vmem:[%s9558_s29 + $0x330] sm:$0xff] }
 0x348   : > { %2607 = vmatprep.mubr.f32.mxu0 %v8313_v29  ;;  %v1449_v11 = vpop.f32.mrb[10].mxu1  ;;  %6253 = vmatpush3.bf16.msra.mxu0 %v6252_v6  ;;  %v2329_v48 = vld [vmem:[%s9558_s29 + $0x3d0] sm:$0xff] }
 0x349   : > { %v8338_v19 = vadd.f32 %v1449_v11, %v1162_v9  ;;  %v1451_v20 = vpop.f32.mrb[11].mxu1  ;;  %6255 = vmatprep.subr.bf16.mxu0 %v6254_v35  ;;  %v6062_v9 = vpack.c.bf16 %v944_v53, %v928_v50  ;;  %v943_v35 = vld [vmem:[#allocation8 + $0x9e0] sm:$0xff]  ;;  %v1008_v40 = vld [vmem:[#allocation8 + $0xbe8] sm:$0xff] }
 0x34a   : > { %v8348_v31 = vadd.f32 %v1451_v20, %v1166_v41  ;;  %6053 = vmatpush1.bf16.msra.mxu1 %v6052_v59  ;;  %v976_v41 = vld [vmem:[#allocation8 + $0xae8] sm:$0xff]  ;;  %v6264_v59 = vpack.c.bf16 %v2310_v61, %v2309_v58  ;;  %v6064_v11 = vpack.c.bf16 %v943_v35, %v927_v12  ;;  %v2331_v53 = vld [vmem:[%s9558_s29 + $0x3e0] sm:$0xff] }
 0x34b   : > { %v1867_v43 = vmax.f32 %v8336_v18, %v8338_v19  ;;  %2608 = vmatmul.mubr.f32.gmra.mrb[6].mxu0 %v8301_v54  ;;  %6055 = vmatprep.subr.bf16.mxu1 %v6054_v7  ;;  %v2311_v7 = vld [vmem:[%s9558_s29 + $0x340] sm:$0xff]  ;;  %v6066_v20 = vpack.c.bf16 %v976_v41, %v960_v37  ;;  %v2313_v45 = vld [vmem:[%s9558_s29 + $0x350] sm:$0xff] }
 0x34c   : > { %v1874_v30 = vmax.f32 %v8346_v28, %v8348_v31  ;;  %6257 = vmatpush3.bf16.msra.mxu0 %v6256_v17  ;;  %v6268_v42 = vpack.c.bf16 %v2312_v8, %v2311_v7  ;;  %v991_v58 = vld [vmem:[#allocation8 + $0xb60] sm:$0xff]  ;;  %v6272_v5 = vpack.c.bf16 %v2314_v46, %v2313_v45 }
 0x34d   : > { %v1868_v55 = vrot.slane %v1867_v43, 4  ;;  %6259 = vmatprep.subr.bf16.mxu0 %v6258_v21  ;;  %v959_v21 = vld [vmem:[#allocation8 + $0xa60] sm:$0xff] }
 0x34e   : > { %v1875_v62 = vrot.slane %v1874_v30, 4  ;;  %6057 = vmatpush1.bf16.msra.mxu1 %v6056_v32  ;;  %v992_v32 = vld [vmem:[#allocation8 + $0xb68] sm:$0xff]  ;;  %v6068_v50 = vpack.c.bf16 %v975_v25, %v959_v21  ;;  %v1007_v61 = vld [vmem:[#allocation8 + $0xbe0] sm:$0xff]  ;;  %v2318_v21 = vld [vmem:[%s9558_s29 + $0x378] sm:$0xff] }
 0x34f   : > { %v1869_v6 = vmax.f32 %v1867_v43, %v1868_v55  ;;  %6059 = vmatprep.subr.bf16.mxu1 %v6058_v44  ;;  %v6270_v44 = vpack.c.bf16 %v2330_v16, %v2329_v48  ;;  %v2315_v35 = vld [vmem:[%s9558_s29 + $0x360] sm:$0xff]  ;;  %v1056_v48 = vld [vmem:[#allocation8 + $0xd68] sm:$0xff] }
 0x350   : > { %v1876_v57 = vmax.f32 %v1874_v30, %v1875_v62  ;;  %6261 = vmatpush3.bf16.msra.mxu0 %v6260_v33  ;;  %v2332_v33 = vld [vmem:[%s9558_s29 + $0x3e8] sm:$0xff] }
 0x351   : > { %v1870_v60 = vrot.slane %v1869_v6, 2  ;;  %6263 = vmatprep.subr.bf16.mxu0 %v6262_v56  ;;  %v6070_v56 = vpack.c.bf16 %v1008_v40, %v992_v32  ;;  %v6274_v12 = vpack.c.bf16 %v2332_v33, %v2331_v53  ;;  %v1023_v8 = vld [vmem:[#allocation8 + $0xc60] sm:$0xff]  ;;  %v1120_v53 = vld [vmem:[#allocation8 + $0xf68] sm:$0xff] }
 0x352   : > { %v1877_v10 = vrot.slane %v1876_v57, 2  ;;  %6061 = vmatpush1.bf16.msra.mxu1 %v6060_v63  ;;  %v1024_v63 = vld [vmem:[#allocation8 + $0xc68] sm:$0xff]  ;;  %v1055_v32 = vld [vmem:[#allocation8 + $0xd60] sm:$0xff] }
 0x353   : > { %v1871_v17 = vmax.f32 %v1869_v6, %v1870_v60  ;;  %6063 = vmatprep.subr.bf16.mxu1 %v6062_v9  ;;  %v6074_v7 = vpack.c.bf16 %v1040_v3, %v1024_v63  ;;  %v1071_v40 = vld [vmem:[#allocation8 + $0xde0] sm:$0xff]  ;;  %v1136_v33 = vld [vmem:[#allocation8 + $0xfe8] sm:$0xff]  ;;  %v642_v3 = vld [vmem:[#allocation8 + $0x78] sm:$0xff] }
 0x354   : > { %v1878_v27 = vmax.f32 %v1876_v57, %v1877_v10  ;;  %6265 = vmatpush3.bf16.msra.mxu0 %v6264_v59  ;;  %v2316_v57 = vld [vmem:[%s9558_s29 + $0x368] sm:$0xff]  ;;  %v6072_v59 = vpack.c.bf16 %v1007_v61, %v991_v58  ;;  %v6080_v45 = vpack.c.bf16 %v1071_v40, %v1055_v32  ;;  %v6086_v58 = vpack.c.bf16 %v1136_v33, %v1120_v53  ;;  %v705_v40 = vld [vmem:[#allocation8 + $0x270] sm:$0xff] }
 0x355   : > { %v1872_v43 = vrot.slane %v1871_v17, 1  ;;  %6267 = vmatprep.subr.bf16.mxu0 %v6266_v14  ;;  %v1039_v10 = vld [vmem:[#allocation8 + $0xce0] sm:$0xff]  ;;  %v6276_v16 = vpack.c.bf16 %v2316_v57, %v2315_v35  ;;  %v737_v33 = vld [vmem:[#allocation8 + $0x370] sm:$0xff] }
 0x356   : > { %v1879_v30 = vrot.slane %v1878_v27, 1  ;;  %6065 = vmatpush1.bf16.msra.mxu1 %v6064_v11  ;;  %v6076_v25 = vpack.c.bf16 %v1039_v10, %v1023_v8  ;;  %v1119_v61 = vld [vmem:[#allocation8 + $0xf60] sm:$0xff] }
 0x357   : > { %v1873_v55 = vmax.f32 %v1871_v17, %v1872_v43  ;;  %6067 = vmatprep.subr.bf16.mxu1 %v6066_v20  ;;  %v2317_v20 = vld [vmem:[%s9558_s29 + $0x370] sm:$0xff] }
 0x358   : > { %v1880_v62 = vmax.f32 %v1878_v27, %v1879_v30  ;;  %6269 = vmatpush3.bf16.msra.mxu0 %v6268_v42  ;;  %v1088_v42 = vld [vmem:[#allocation8 + $0xe68] sm:$0xff]  ;;  %v1087_v30 = vld [vmem:[#allocation8 + $0xe60] sm:$0xff] }
 0x359   : > { %v1955_v6 = vsub.f32 %v8336_v18, %v1873_v55  ;;  %v1971_v9 = vsub.f32 %v8338_v19, %v1873_v55  ;;  %6271 = vmatprep.subr.bf16.mxu0 %v6270_v44  ;;  %v2333_v18 = vld [vmem:[%s9558_s29 + $0x3f0] sm:$0xff]  ;;  %v2334_v19 = vld [vmem:[%s9558_s29 + $0x3f8] sm:$0xff]  ;;  %v6280_v44 = vpack.c.bf16 %v2318_v21, %v2317_v20 }
 0x35a   : > { %v1956_v37 = vsub.f32 %v8346_v28, %v1880_v62  ;;  %v1972_v41 = vsub.f32 %v8348_v31, %v1880_v62  ;;  %6069 = vmatpush1.bf16.msra.mxu1 %v6068_v50  ;;  %v1072_v31 = vld [vmem:[#allocation8 + $0xde8] sm:$0xff]  ;;  %v6278_v17 = vpack.c.bf16 %v2334_v19, %v2333_v18  ;;  %v1103_v50 = vld [vmem:[#allocation8 + $0xee0] sm:$0xff]  ;;  %v657_v18 = vld [vmem:[#allocation8 + $0xf0] sm:$0xff] }
 0x35b   : > { %v1991_v60 = vmul.f32 1.442695, %v1955_v6  ;;  %v2023_v14 = vmul.f32 1.442695, %v1971_v9  ;;  %6071 = vmatprep.subr.bf16.mxu1 %v6070_v56  ;;  %v6078_v27 = vpack.c.bf16 %v1072_v31, %v1056_v48  ;;  %v1104_v43 = vld [vmem:[#allocation8 + $0xee8] sm:$0xff]  ;;  %v6084_v55 = vpack.c.bf16 %v1103_v50, %v1087_v30  ;;  %v1135_v62 = vld [vmem:[#allocation8 + $0xfe0] sm:$0xff] }
 0x35c   : > { %v1993_v11 = vmul.f32 1.442695, %v1956_v37  ;;  %v2025_v28 = vmul.f32 1.442695, %v1972_v41  ;;  %6273 = vmatpush3.bf16.msra.mxu0 %v6272_v5  ;;  %v6082_v46 = vpack.c.bf16 %v1104_v43, %v1088_v42  ;;  %v658_v5 = vld [vmem:[#allocation8 + $0xf8] sm:$0xff]  ;;  %v6088_v35 = vpack.c.bf16 %v1135_v62, %v1119_v61  ;;  %v673_v48 = vld [vmem:[#allocation8 + $0x170] sm:$0xff] }
 0x35d   : > { %7209 = vpow2.f32 %v1991_v60  ;;  %6275 = vmatprep.subr.bf16.mxu0 %v6274_v12  ;;  %v6090_v41 = vpack.c.bf16 %v658_v5, %v642_v3  ;;  %v674_v19 = vld [vmem:[#allocation8 + $0x178] sm:$0xff]  ;;  %v689_v31 = vld [vmem:[#allocation8 + $0x1f0] sm:$0xff] }
 0x35e   : > { %7211 = vpow2.f32 %v2023_v14  ;;  %6073 = vmatpush1.bf16.msra.mxu1 %v6072_v59  ;;  %v641_v59 = vld [vmem:[#allocation8 + $0x70] sm:$0xff]  ;;  %v690_v60 = vld [vmem:[#allocation8 + $0x1f8] sm:$0xff] }
 0x35f   : > { %7213 = vpow2.f32 %v1993_v11  ;;  %6075 = vmatprep.subr.bf16.mxu1 %v6074_v7  ;;  %v6092_v8 = vpack.c.bf16 %v657_v18, %v641_v59  ;;  %v721_v42 = vld [vmem:[#allocation8 + $0x2f0] sm:$0xff]  ;;  %v770_v61 = vld [vmem:[#allocation8 + $0x478] sm:$0xff] }
 0x360   : > { %7215 = vpow2.f32 %v2025_v28  ;;  %6277 = vmatpush3.bf16.msra.mxu0 %v6276_v16  ;;  %v6094_v28 = vpack.c.bf16 %v690_v60, %v674_v19  ;;  %v706_v16 = vld [vmem:[#allocation8 + $0x278] sm:$0xff]  ;;  %v6100_v50 = vpack.c.bf16 %v721_v42, %v705_v40  ;;  %v801_v59 = vld [vmem:[#allocation8 + $0x570] sm:$0xff]  ;;  %v7345_v40 = vld [vmem:[#allocation10] sm:$0xff] }
 0x361   : > { %6279 = vmatprep.subr.bf16.mxu0 %v6278_v17  ;;  %v722_v17 = vld [vmem:[#allocation8 + $0x2f8] sm:$0xff]  ;;  %v817_v18 = vld [vmem:[#allocation8 + $0x5f0] sm:$0xff] }
 0x362   : > { %6077 = vmatpush1.bf16.msra.mxu1 %v6076_v25  ;;  %v6096_v25 = vpack.c.bf16 %v689_v31, %v673_v48  ;;  %v6098_v32 = vpack.c.bf16 %v722_v17, %v706_v16  ;;  %v786_v62 = vld [vmem:[#allocation8 + $0x4f8] sm:$0xff]  ;;  %v833_v16 = vld [vmem:[#allocation8 + $0x670] sm:$0xff] }
 0x363   : > { %6079 = vmatprep.subr.bf16.mxu1 %v6078_v27  ;;  %v6106_v5 = vpack.c.bf16 %v786_v62, %v770_v61  ;;  %v834_v19 = vld [vmem:[#allocation8 + $0x678] sm:$0xff]  ;;  %v849_v17 = vld [vmem:[#allocation8 + $0x6f0] sm:$0xff] }
 0x364   : > { %6281 = vmatpush3.bf16.msra.mxu0 %v6280_v44  ;;  %v738_v44 = vld [vmem:[#allocation8 + $0x378] sm:$0xff] }
 0x365   : > { %v850_v60 = vld [vmem:[#allocation8 + $0x6f8] sm:$0xff] }
 0x366   : > { %6081 = vmatpush1.bf16.msra.mxu1 %v6080_v45  ;;  %v754_v45 = vld [vmem:[#allocation8 + $0x3f8] sm:$0xff]  ;;  %v6114_v31 = vpack.c.bf16 %v850_v60, %v834_v19  ;;  %v929_v60 = vld [vmem:[#allocation8 + $0x970] sm:$0xff] }
 0x367   : > { %v8419_v56 = vpop.eup %7209  ;;  %6083 = vmatprep.subr.bf16.mxu1 %v6082_v46  ;;  %v6102_v53 = vpack.c.bf16 %v754_v45, %v738_v44  ;;  %v865_v45 = vld [vmem:[#allocation8 + $0x770] sm:$0xff] }
 0x368   : > { %v8421_v63 = vpop.eup %7211 }
 0x369   : > { %v8423_v6 = vpop.eup %7213  ;;  %v2075_v9 = vadd.f32 %v8421_v63, %v8419_v56 }
 0x36a   : > { %v8427_v12 = vpop.eup %7215  ;;  %6085 = vmatpush1.bf16.msra.mxu1 %v6084_v55  ;;  %v753_v55 = vld [vmem:[#allocation8 + $0x3f0] sm:$0xff] }
 0x36b   : > { %v2076_v57 = vrot.slane %v2075_v9, 4  ;;  %v2082_v37 = vadd.f32 %v8427_v12, %v8423_v6  ;;  %6087 = vmatprep.subr.bf16.mxu1 %v6086_v58  ;;  %v6104_v3 = vpack.c.bf16 %v753_v55, %v737_v33 }
 0x36d   : > { %v2077_v14 = vadd.f32 %v2076_v57, %v2075_v9  ;;  %v2083_v7 = vrot.slane %v2082_v37, 4  ;;  %v769_v9 = vld [vmem:[#allocation8 + $0x470] sm:$0xff]  ;;  %v802_v57 = vld [vmem:[#allocation8 + $0x578] sm:$0xff] }
 0x36e   : > { %6089 = vmatpush1.bf16.msra.mxu1 %v6088_v35  ;;  %v785_v35 = vld [vmem:[#allocation8 + $0x4f0] sm:$0xff] }
 0x36f   : > { %v2078_v10 = vrot.slane %v2077_v14, 2  ;;  %v2084_v11 = vadd.f32 %v2083_v7, %v2082_v37  ;;  %6091 = vmatprep.subr.bf16.mxu1 %v6090_v41  ;;  %v818_v37 = vld [vmem:[#allocation8 + $0x5f8] sm:$0xff]  ;;  %v1169_v7 = vsub.s32 6, %v8094_v1 }
 0x370   : > { %v6110_v41 = vpack.c.bf16 %v818_v37, %v802_v57  ;;  %v930_v57 = vld [vmem:[#allocation8 + $0x978] sm:$0xff] }
 0x371   : > { %v2079_v20 = vadd.f32 %v2078_v10, %v2077_v14  ;;  %v2085_v21 = vrot.slane %v2084_v11, 2  ;;  %1750 = vmatmul.mubr.f32.vlgmr.msra.gmra.mrb[24].mxu1 %v8106_v15  ;;  %v6112_v10 = vpack.c.bf16 %v817_v18, %v801_v59  ;;  %v946_v37 = vld [vmem:[#allocation8 + $0x9f8] sm:$0xff] }
 0x372   : > { %1755 = vmatprep.mubr.f32.mxu1 %v8112_v24  ;;  %6093 = vmatpush1.bf16.msra.mxu1 %v6092_v8  ;;  %v1173_v8 = vsub.s32 7, %v8094_v1  ;;  %v6126_v19 = vpack.c.bf16 %v946_v37, %v930_v57 }
 0x373   : > { %v2080_v27 = vrot.slane %v2079_v20, 1  ;;  %6095 = vmatprep.subr.bf16.mxu1 %v6094_v28  ;;  %v2086_v43 = vadd.f32 %v2085_v21, %v2084_v11  ;;  %v866_v21 = vld [vmem:[#allocation8 + $0x778] sm:$0xff] }
 0x374   : > { %v1174_v42 = vrot.slane %v7345_v40, %v1173_v8 }
 0x375   : > { %v2081_v46 = vadd.f32 %v2080_v27, %v2079_v20  ;;  %1756 = vmatmul.mubr.f32.gmra.mrb[26].mxu1 %v8109_v22  ;;  %v2087_v30 = vrot.slane %v2086_v43, 1 }
 0x376   : > { %6097 = vmatpush1.bf16.msra.mxu1 %v6096_v25  ;;  %1826 = vmatprep.mubr.f32.mxu1 %v8104_v13  ;;  %v6108_v13 = vpack.c.bf16 %v785_v35, %v769_v9  ;;  %v882_v25 = vld [vmem:[#allocation8 + $0x7f8] sm:$0xff]  ;;  %v913_v9 = vld [vmem:[#allocation8 + $0x8f0] sm:$0xff] }
 0x377   : > { %7217 = vrcp.f32 %v2081_v46  ;;  %6099 = vmatprep.subr.bf16.mxu1 %v6098_v32  ;;  %v2088_v58 = vadd.f32 %v2087_v30, %v2086_v43  ;;  %v6116_v43 = vpack.c.bf16 %v849_v17, %v833_v16  ;;  %v6118_v44 = vpack.c.bf16 %v882_v25, %v866_v21  ;;  %v881_v46 = vld [vmem:[#allocation8 + $0x7f0] sm:$0xff] }
 0x378   : > { %v6120_v61 = vpack.c.bf16 %v881_v46, %v865_v45 }
 0x379   : > { %7219 = vrcp.f32 %v2088_v58 }
 0x37a   : > { %6101 = vmatpush1.bf16.msra.mxu1 %v6100_v50  ;;  %v914_v50 = vld [vmem:[#allocation8 + $0x8f8] sm:$0xff] }
 0x37b   : > { %6103 = vmatprep.subr.bf16.mxu1 %v6102_v53 }
 0x37e   : > { %6105 = vmatpush1.bf16.msra.mxu1 %v6104_v3 }
 0x37f   : > { %6107 = vmatprep.subr.bf16.mxu1 %v6106_v5  ;;  %v897_v5 = vld [vmem:[#allocation8 + $0x870] sm:$0xff] }
 0x380   : > { %v6124_v59 = vpack.c.bf16 %v913_v9, %v897_v5 }
 0x381   : > { %v7218_v14 = vpop.eup %7217 }
 0x382   : > { %6109 = vmatpush1.bf16.msra.mxu1 %v6108_v13  ;;  %v8438_v11 = vmul.f32 %v7218_v14, %v8419_v56  ;;  %v8441_v28 = vmul.f32 %v7218_v14, %v8421_v63  ;;  %v1170_v56 = vrot.slane %v7345_v40, %v1169_v7  ;;  %v945_v14 = vld [vmem:[#allocation8 + $0x9f0] sm:$0xff] }
 0x383   : > { %v7220_v48 = vpop.eup %7219  ;;  %6111 = vmatprep.subr.bf16.mxu1 %v6110_v41  ;;  %v961_v40 = vld [vmem:[#allocation8 + $0xa70] sm:$0xff] }
 0x384   : > { %v1520_v20 = vpop.f32.mrb[12].mxu1  ;;  %v8444_v27 = vmul.f32 %v7220_v48, %v8423_v6  ;;  %v8447_v32 = vmul.f32 %v7220_v48, %v8427_v12  ;;  %v898_v6 = vld [vmem:[#allocation8 + $0x878] sm:$0xff] }
 0x385   : > { %v1522_v63 = vpop.f32.mrb[13].mxu1  ;;  %v1521_v53 = vadd.f32 %v1520_v20, %v1170_v56  ;;  %v6122_v3 = vpack.c.bf16 %v914_v50, %v898_v6  ;;  %v962_v48 = vld [vmem:[#allocation8 + $0xa78] sm:$0xff]  ;;  %v6128_v20 = vpack.c.bf16 %v945_v14, %v929_v60  ;;  %v993_v50 = vld [vmem:[#allocation8 + $0xb70] sm:$0xff] }
 0x386   : > { %6113 = vmatpush1.bf16.msra.mxu1 %v6112_v10  ;;  %v1523_v55 = vadd.f32 %v1522_v63, %v1174_v42 }
 0x387   : > { %6115 = vmatprep.subr.bf16.mxu1 %v6114_v31  ;;  %v978_v31 = vld [vmem:[#allocation8 + $0xaf8] sm:$0xff] }
 0x388   : > { %v1526_v30 = vpop.f32.mrb[14].mxu1  ;;  %v6130_v25 = vpack.c.bf16 %v978_v31, %v962_v48  ;;  %v1074_v48 = vld [vmem:[#allocation8 + $0xdf8] sm:$0xff] }
 0x389   : > { %v1527_v12 = vadd.f32 %v1526_v30, %v1170_v56  ;;  %v1528_v33 = vpop.f32.mrb[15].mxu1  ;;  %v977_v56 = vld [vmem:[#allocation8 + $0xaf0] sm:$0xff] }
 0x38a   : > { %v1529_v58 = vadd.f32 %v1528_v33, %v1174_v42  ;;  %6117 = vmatpush1.bf16.msra.mxu1 %v6116_v43  ;;  %v994_v42 = vld [vmem:[#allocation8 + $0xb78] sm:$0xff]  ;;  %v6132_v46 = vpack.c.bf16 %v977_v56, %v961_v40  ;;  %v1009_v33 = vld [vmem:[#allocation8 + $0xbf0] sm:$0xff] }
 0x38b   : > { %v1881_v62 = vmax.f32 %v1521_v53, %v1527_v12  ;;  %6119 = vmatprep.subr.bf16.mxu1 %v6118_v44  ;;  %v1010_v43 = vld [vmem:[#allocation8 + $0xbf8] sm:$0xff]  ;;  %v6136_v37 = vpack.c.bf16 %v1009_v33, %v993_v50 }
 0x38c   : > { %v1888_v35 = vmax.f32 %v1523_v55, %v1529_v58  ;;  %v6134_v6 = vpack.c.bf16 %v1010_v43, %v994_v42  ;;  %v1122_v40 = vld [vmem:[#allocation8 + $0xf78] sm:$0xff]  ;;  %v2384_v42 = vld [vmem:[%s9558_s29 + $0x588] sm:$0xff] }
 0x38d   : > { %v1882_v13 = vrot.slane %v1881_v62, 4  ;;  %v1138_v56 = vld [vmem:[#allocation8 + $0xff8] sm:$0xff] }
 0x38e   : > { %v1889_v41 = vrot.slane %v1888_v35, 4  ;;  %6121 = vmatpush1.bf16.msra.mxu1 %v6120_v61  ;;  %v2223_v33 = vld [vmem:[%s9558_s29 + $0x80] sm:$0xff] }
 0x38f   : > { %v1883_v18 = vmax.f32 %v1881_v62, %v1882_v13  ;;  %6123 = vmatprep.subr.bf16.mxu1 %v6122_v3  ;;  %v1026_v62 = vld [vmem:[#allocation8 + $0xc78] sm:$0xff] }
 0x390   : > { %v1890_v10 = vmax.f32 %v1888_v35, %v1889_v41  ;;  %v1042_v3 = vld [vmem:[#allocation8 + $0xcf8] sm:$0xff] }
 0x391   : > { %v1884_v16 = vrot.slane %v1883_v18, 2 }
 0x392   : > { %v1891_v17 = vrot.slane %v1890_v10, 2  ;;  %6125 = vmatpush1.bf16.msra.mxu1 %v6124_v59  ;;  %v6138_v59 = vpack.c.bf16 %v1042_v3, %v1026_v62 }
 0x393   : > { %v1885_v21 = vmax.f32 %v1883_v18, %v1884_v16  ;;  %6127 = vmatprep.subr.bf16.mxu1 %v6126_v19  ;;  %v1025_v18 = vld [vmem:[#allocation8 + $0xc70] sm:$0xff]  ;;  %v1106_v16 = vld [vmem:[#allocation8 + $0xef8] sm:$0xff] }
 0x394   : > { %v1892_v63 = vmax.f32 %v1890_v10, %v1891_v17  ;;  %v1041_v19 = vld [vmem:[#allocation8 + $0xcf0] sm:$0xff]  ;;  %v1058_v10 = vld [vmem:[#allocation8 + $0xd78] sm:$0xff] }
 0x395   : > { %v1886_v44 = vrot.slane %v1885_v21, 1  ;;  %v6140_v31 = vpack.c.bf16 %v1041_v19, %v1025_v18  ;;  %v2226_v18 = vld [vmem:[%s9558_s29 + $0x98] sm:$0xff] }
 0x396   : > { %v1893_v45 = vrot.slane %v1892_v63, 1  ;;  %6129 = vmatpush1.bf16.msra.mxu1 %v6128_v20 }
 0x397   : > { %v1887_v30 = vmax.f32 %v1885_v21, %v1886_v44  ;;  %6131 = vmatprep.subr.bf16.mxu1 %v6130_v25  ;;  %v1089_v21 = vld [vmem:[#allocation8 + $0xe70] sm:$0xff] }
 0x398   : > { %v1894_v61 = vmax.f32 %v1892_v63, %v1893_v45  ;;  %v1105_v25 = vld [vmem:[#allocation8 + $0xef0] sm:$0xff]  ;;  %v2383_v63 = vld [vmem:[%s9558_s29 + $0x580] sm:$0xff] }
 0x399   : > { %v1957_v5 = vsub.f32 %v1521_v53, %v1887_v30  ;;  %v1973_v9 = vsub.f32 %v1527_v12, %v1887_v30  ;;  %v6142_v53 = vpack.c.bf16 %v1074_v48, %v1058_v10  ;;  %v1057_v12 = vld [vmem:[#allocation8 + $0xd70] sm:$0xff]  ;;  %v6314_v43 = vpack.c.bf16 %v2384_v42, %v2383_v63 }
 0x39a   : > { %v1958_v35 = vsub.f32 %v1523_v55, %v1894_v61  ;;  %v1974_v57 = vsub.f32 %v1529_v58, %v1894_v61  ;;  %6133 = vmatpush1.bf16.msra.mxu1 %v6132_v46  ;;  %v1073_v55 = vld [vmem:[#allocation8 + $0xdf0] sm:$0xff]  ;;  %v1090_v58 = vld [vmem:[#allocation8 + $0xe78] sm:$0xff]  ;;  %v6148_v44 = vpack.c.bf16 %v1105_v25, %v1089_v21  ;;  %v6150_v46 = vpack.c.bf16 %v1138_v56, %v1122_v40  ;;  %v2224_v61 = vld [vmem:[%s9558_s29 + $0x88] sm:$0xff] }
 0x39b   : > { %v1995_v13 = vmul.f32 1.442695, %v1957_v5  ;;  %v2027_v41 = vmul.f32 1.442695, %v1973_v9  ;;  %6135 = vmatprep.subr.bf16.mxu1 %v6134_v6  ;;  %v6144_v17 = vpack.c.bf16 %v1073_v55, %v1057_v12  ;;  %v6146_v20 = vpack.c.bf16 %v1106_v16, %v1090_v58  ;;  %v1121_v30 = vld [vmem:[#allocation8 + $0xf70] sm:$0xff]  ;;  %6315 = vmatprep.subr.bf16.mxu0 %v6314_v43  ;;  %v2227_v55 = vld [vmem:[%s9558_s29 + $0xa0] sm:$0xff] }
 0x39c   : > { %v1997_v60 = vmul.f32 1.442695, %v1958_v35  ;;  %v2029_v14 = vmul.f32 1.442695, %v1974_v57  ;;  %v1137_v6 = vld [vmem:[#allocation8 + $0xff0] sm:$0xff]  ;;  %v2228_v58 = vld [vmem:[%s9558_s29 + $0xa8] sm:$0xff] }
 0x39d   : > { %7221 = vpow2.f32 %v1995_v13  ;;  %v6152_v9 = vpack.c.bf16 %v1137_v6, %v1121_v30  ;;  %v2207_v13 = vld [vmem:[%s9558_s29] sm:$0xff]  ;;  %v2210_v12 = vld [vmem:[%s9558_s29 + $0x18] sm:$0xff]  ;;  %v6162_v25 = vpack.c.bf16 %v2228_v58, %v2227_v55  ;;  %v2212_v56 = vld [vmem:[%s9558_s29 + $0x28] sm:$0xff] }
 0x39e   : > { %7223 = vpow2.f32 %v2027_v41  ;;  %6137 = vmatpush1.bf16.msra.mxu1 %v6136_v37  ;;  %v6154_v37 = vpack.c.bf16 %v2224_v61, %v2223_v33  ;;  %v2208_v41 = vld [vmem:[%s9558_s29 + $0x8] sm:$0xff]  ;;  %v2211_v40 = vld [vmem:[%s9558_s29 + $0x20] sm:$0xff]  ;;  %v2213_v30 = vld [vmem:[%s9558_s29 + $0x30] sm:$0xff] }
 0x39f   : > { %7225 = vpow2.f32 %v1997_v60  ;;  %6139 = vmatprep.subr.bf16.mxu1 %v6138_v59  ;;  %v2225_v59 = vld [vmem:[%s9558_s29 + $0x90] sm:$0xff]  ;;  %v2214_v6 = vld [vmem:[%s9558_s29 + $0x38] sm:$0xff]  ;;  %v2232_v61 = vld [vmem:[%s9558_s29 + $0xc8] sm:$0xff] }
 0x3a0   : > { %7227 = vpow2.f32 %v2029_v14  ;;  %v6156_v14 = vpack.c.bf16 %v2208_v41, %v2207_v13  ;;  %v2234_v13 = vld [vmem:[%s9558_s29 + $0xd8] sm:$0xff] }
 0x3a2   : > { %6141 = vmatpush1.bf16.msra.mxu1 %v6140_v31  ;;  %v6158_v31 = vpack.c.bf16 %v2226_v18, %v2225_v59  ;;  %v2217_v18 = vld [vmem:[%s9558_s29 + $0x50] sm:$0xff] }
 0x3a3   : > { %6143 = vmatprep.subr.bf16.mxu1 %v6142_v53  ;;  %v2209_v53 = vld [vmem:[%s9558_s29 + $0x10] sm:$0xff] }
 0x3a6   : > { %6145 = vmatpush1.bf16.msra.mxu1 %v6144_v17 }
 0x3a7   : > { %v8459_v45 = vpop.eup %7221  ;;  %6147 = vmatprep.subr.bf16.mxu1 %v6146_v20  ;;  %v6160_v20 = vpack.c.bf16 %v2210_v12, %v2209_v53  ;;  %v8559_v53 = vld [vmem:[#allocation10 + $0x8] sm:$0xff] }
 0x3a8   : > { %v8461_v50 = vpop.eup %7223 }
 0x3a9   : > { %v8469_v62 = vpop.eup %7225  ;;  %v2089_v3 = vadd.f32 %v8461_v50, %v8459_v45 }
 0x3aa   : > { %v8473_v5 = vpop.eup %7227  ;;  %6149 = vmatpush1.bf16.msra.mxu1 %v6148_v44  ;;  %v6164_v44 = vpack.c.bf16 %v2212_v56, %v2211_v40 }
 0x3ab   : > { %v2090_v35 = vrot.slane %v2089_v3, 4  ;;  %v2096_v57 = vadd.f32 %v8473_v5, %v8469_v62  ;;  %6151 = vmatprep.subr.bf16.mxu1 %v6150_v46 }
 0x3ad   : > { %v2091_v19 = vadd.f32 %v2090_v35, %v2089_v3  ;;  %v2097_v60 = vrot.slane %v2096_v57, 4  ;;  %v6168_v3 = vpack.c.bf16 %v2214_v6, %v2213_v30  ;;  %v2215_v35 = vld [vmem:[%s9558_s29 + $0x40] sm:$0xff] }
 0x3ae   : > { %6153 = vmatpush1.bf16.msra.mxu1 %v6152_v9  ;;  %v2387_v6 = vld [vmem:[%s9558_s29 + $0x5a0] sm:$0xff] }
 0x3af   : > { %v2092_v10 = vrot.slane %v2091_v19, 2  ;;  %v2098_v48 = vadd.f32 %v2097_v60, %v2096_v57  ;;  %6155 = vmatprep.subr.bf16.mxu1 %v6154_v37  ;;  %v2216_v57 = vld [vmem:[%s9558_s29 + $0x48] sm:$0xff]  ;;  %v2233_v37 = vld [vmem:[%s9558_s29 + $0xd0] sm:$0xff]  ;;  %v2235_v60 = vld [vmem:[%s9558_s29 + $0xe0] sm:$0xff] }
 0x3b0   : > { %v6172_v41 = vpack.c.bf16 %v2216_v57, %v2215_v35  ;;  %v6174_v59 = vpack.c.bf16 %v2234_v13, %v2233_v37  ;;  %v2287_v35 = vld [vmem:[%s9558_s29 + $0x280] sm:$0xff]  ;;  %v2288_v57 = vld [vmem:[%s9558_s29 + $0x288] sm:$0xff] }
 0x3b1   : > { %v2093_v16 = vadd.f32 %v2092_v10, %v2091_v19  ;;  %v2099_v17 = vrot.slane %v2098_v48, 2  ;;  %1827 = vmatmul.mubr.f32.vlgmr.msra.gmra.mrb[28].mxu1 %v8106_v15  ;;  %v2229_v15 = vld [vmem:[%s9558_s29 + $0xb0] sm:$0xff]  ;;  %v2218_v19 = vld [vmem:[%s9558_s29 + $0x58] sm:$0xff] }
 0x3b2   : > { %1832 = vmatprep.mubr.f32.mxu1 %v8112_v24  ;;  %6157 = vmatpush3.bf16.msra.mxu1 %v6156_v14  ;;  %v2230_v24 = vld [vmem:[%s9558_s29 + $0xb8] sm:$0xff]  ;;  %v2236_v14 = vld [vmem:[%s9558_s29 + $0xe8] sm:$0xff]  ;;  %v6176_v55 = vpack.c.bf16 %v2218_v19, %v2217_v18  ;;  %v2371_v19 = vld [vmem:[%s9558_s29 + $0x520] sm:$0xff] }
 0x3b3   : > { %v2094_v21 = vrot.slane %v2093_v16, 1  ;;  %6159 = vmatprep.subr.bf16.mxu1 %v6158_v31  ;;  %v2100_v63 = vadd.f32 %v2099_v17, %v2098_v48  ;;  %v6166_v46 = vpack.c.bf16 %v2230_v24, %v2229_v15  ;;  %v2367_v48 = vld [vmem:[%s9558_s29 + $0x500] sm:$0xff]  ;;  %v2368_v31 = vld [vmem:[%s9558_s29 + $0x508] sm:$0xff]  ;;  %v2386_v17 = vld [vmem:[%s9558_s29 + $0x598] sm:$0xff] }
 0x3b4   : > { %v2238_v15 = vld [vmem:[%s9558_s29 + $0xf8] sm:$0xff]  ;;  %v6316_v24 = vpack.c.bf16 %v2368_v31, %v2367_v48  ;;  %v2389_v31 = vld [vmem:[%s9558_s29 + $0x5b0] sm:$0xff] }
 0x3b5   : > { %v2095_v42 = vadd.f32 %v2094_v21, %v2093_v16  ;;  %1833 = vmatmul.mubr.f32.gmra.mrb[30].mxu1 %v8109_v22  ;;  %v2101_v43 = vrot.slane %v2100_v63, 1  ;;  %v2231_v22 = vld [vmem:[%s9558_s29 + $0xc0] sm:$0xff]  ;;  %v2385_v16 = vld [vmem:[%s9558_s29 + $0x590] sm:$0xff]  ;;  %v6178_v21 = vpack.c.bf16 %v2236_v14, %v2235_v60  ;;  %v2372_v60 = vld [vmem:[%s9558_s29 + $0x528] sm:$0xff] }
 0x3b6   : > { %6161 = vmatpush3.bf16.msra.mxu1 %v6160_v20  ;;  %2527 = vmatprep.mubr.f32.mxu1 %v8256_v47  ;;  %v6170_v9 = vpack.c.bf16 %v2232_v61, %v2231_v22  ;;  %v2221_v61 = vld [vmem:[%s9558_s29 + $0x70] sm:$0xff] }
 0x3b7   : > { %7229 = vrcp.f32 %v2095_v42  ;;  %6163 = vmatprep.subr.bf16.mxu1 %v6162_v25  ;;  %v2102_v33 = vadd.f32 %v2101_v43, %v2100_v63  ;;  %v2237_v63 = vld [vmem:[%s9558_s29 + $0xf0] sm:$0xff]  ;;  %v1178_v42 = vrot.slane %v8559_v53, %v8100_v4 }
 0x3b8   : > { %v6182_v22 = vpack.c.bf16 %v2238_v15, %v2237_v63  ;;  %v6324_v63 = vpack.c.bf16 %v2372_v60, %v2371_v19 }
 0x3b9   : > { %7231 = vrcp.f32 %v2102_v33  ;;  %v2388_v33 = vld [vmem:[%s9558_s29 + $0x5a8] sm:$0xff] }
 0x3ba   : > { %6165 = vmatpush3.bf16.msra.mxu1 %v6164_v44  ;;  %v6318_v44 = vpack.c.bf16 %v2386_v17, %v2385_v16  ;;  %v6322_v18 = vpack.c.bf16 %v2388_v33, %v2387_v6  ;;  %v6218_v17 = vpack.c.bf16 %v2288_v57, %v2287_v35  ;;  %v2273_v33 = vld [vmem:[%s9558_s29 + $0x210] sm:$0xff] }
 0x3bb   : > { %6167 = vmatprep.subr.bf16.mxu1 %v6166_v46  ;;  %v1182_v46 = vrot.slane %v8559_v53, %v8097_v2 }
 0x3be   : > { %6169 = vmatpush3.bf16.msra.mxu1 %v6168_v3  ;;  %v2222_v3 = vld [vmem:[%s9558_s29 + $0x78] sm:$0xff] }
 0x3bf   : > { %6171 = vmatprep.subr.bf16.mxu1 %v6170_v9  ;;  %v6184_v48 = vpack.c.bf16 %v2222_v3, %v2221_v61  ;;  %v2291_v3 = vld [vmem:[%s9558_s29 + $0x2a0] sm:$0xff] }
 0x3c1   : > { %v7230_v10 = vpop.eup %7229 }
 0x3c2   : > { %6173 = vmatpush3.bf16.msra.mxu1 %v6172_v41  ;;  %v8562_v12 = vmul.f32 %v7230_v10, %v8459_v45  ;;  %v8565_v58 = vmul.f32 %v7230_v10, %v8461_v50  ;;  %v2219_v45 = vld [vmem:[%s9558_s29 + $0x60] sm:$0xff]  ;;  %v2220_v50 = vld [vmem:[%s9558_s29 + $0x68] sm:$0xff] }
 0x3c3   : > { %v7232_v20 = vpop.eup %7231  ;;  %6175 = vmatprep.subr.bf16.mxu1 %v6174_v59  ;;  %v6180_v30 = vpack.c.bf16 %v2220_v50, %v2219_v45  ;;  %v2289_v50 = vld [vmem:[%s9558_s29 + $0x290] sm:$0xff] }
 0x3c4   : > { %v1597_v25 = vpop.f32.mrb[16].mxu1  ;;  %v8580_v40 = vmul.f32 %v7232_v20, %v8469_v62  ;;  %v8583_v56 = vmul.f32 %v7232_v20, %v8473_v5  ;;  %v2369_v62 = vld [vmem:[%s9558_s29 + $0x510] sm:$0xff]  ;;  %v2370_v5 = vld [vmem:[%s9558_s29 + $0x518] sm:$0xff]  ;;  %v2271_v20 = vld [vmem:[%s9558_s29 + $0x200] sm:$0xff] }
 0x3c5   : > { %v1599_v43 = vpop.f32.mrb[17].mxu1  ;;  %v6320_v37 = vpack.c.bf16 %v2370_v5, %v2369_v62  ;;  %v8622_v13 = vadd.f32 %v1597_v25, %v1178_v42  ;;  %v2290_v25 = vld [vmem:[%s9558_s29 + $0x298] sm:$0xff]  ;;  %v2391_v5 = vld [vmem:[%s9558_s29 + $0x5c0] sm:$0xff] }
 0x3c6   : > { %2752 = vmatprep.mubr.f32.mxu0 %v8580_v40  ;;  %6177 = vmatpush3.bf16.msra.mxu1 %v6176_v55  ;;  %v8632_v14 = vadd.f32 %v1599_v43, %v1182_v46  ;;  %v2390_v55 = vld [vmem:[%s9558_s29 + $0x5b8] sm:$0xff]  ;;  %v6222_v6 = vpack.c.bf16 %v2290_v25, %v2289_v50 }
 0x3c7   : > { %2753 = vmatmul.mubr.f32.vlgmr.msra.gmra.mrb[8].mxu0 %v8562_v12  ;;  %6179 = vmatprep.subr.bf16.mxu1 %v6178_v21  ;;  %v2272_v21 = vld [vmem:[%s9558_s29 + $0x208] sm:$0xff]  ;;  %v2374_v43 = vld [vmem:[%s9558_s29 + $0x538] sm:$0xff] }
 0x3c8   : > { %2757 = vmatprep.mubr.f32.mxu0 %v8583_v56  ;;  %v1603_v9 = vpop.f32.mrb[18].mxu1  ;;  %6317 = vmatpush3.bf16.msra.mxu0 %v6316_v24  ;;  %v6326_v24 = vpack.c.bf16 %v2390_v55, %v2389_v31  ;;  %v6220_v62 = vpack.c.bf16 %v2272_v21, %v2271_v20  ;;  %v2394_v31 = vld [vmem:[%s9558_s29 + $0x5d8] sm:$0xff]  ;;  %v2276_v20 = vld [vmem:[%s9558_s29 + $0x228] sm:$0xff] }
 0x3c9   : > { %v8624_v41 = vadd.f32 %v1603_v9, %v1178_v42  ;;  %v1605_v59 = vpop.f32.mrb[19].mxu1  ;;  %6319 = vmatprep.subr.bf16.mxu0 %v6318_v44  ;;  %v2373_v42 = vld [vmem:[%s9558_s29 + $0x530] sm:$0xff]  ;;  %v2292_v9 = vld [vmem:[%s9558_s29 + $0x2a8] sm:$0xff]  ;;  %v2294_v50 = vld [vmem:[%s9558_s29 + $0x2b8] sm:$0xff] }
 0x3ca   : > { %v8634_v10 = vadd.f32 %v1605_v59, %v1182_v46  ;;  %6181 = vmatpush3.bf16.msra.mxu1 %v6180_v30  ;;  %v2392_v46 = vld [vmem:[%s9558_s29 + $0x5c8] sm:$0xff]  ;;  %v6328_v35 = vpack.c.bf16 %v2374_v43, %v2373_v42  ;;  %v2375_v59 = vld [vmem:[%s9558_s29 + $0x540] sm:$0xff]  ;;  %v2378_v42 = vld [vmem:[%s9558_s29 + $0x558] sm:$0xff] }
 0x3cb   : > { %v1895_v16 = vmax.f32 %v8622_v13, %v8624_v41  ;;  %2758 = vmatmul.mubr.f32.gmra.mrb[10].mxu0 %v8565_v58  ;;  %6183 = vmatprep.subr.bf16.mxu1 %v6182_v22  ;;  %v2274_v22 = vld [vmem:[%s9558_s29 + $0x218] sm:$0xff] }
 0x3cc   : > { %v1902_v45 = vmax.f32 %v8632_v14, %v8634_v10  ;;  %6321 = vmatpush3.bf16.msra.mxu0 %v6320_v37  ;;  %v6330_v37 = vpack.c.bf16 %v2392_v46, %v2391_v5  ;;  %v6224_v60 = vpack.c.bf16 %v2274_v22, %v2273_v33  ;;  %v2396_v5 = vld [vmem:[%s9558_s29 + $0x5e8] sm:$0xff]  ;;  %v2278_v33 = vld [vmem:[%s9558_s29 + $0x238] sm:$0xff] }
 0x3cd   : > { %v1896_v15 = vrot.slane %v1895_v16, 4  ;;  %6323 = vmatprep.subr.bf16.mxu0 %v6322_v18  ;;  %v2376_v18 = vld [vmem:[%s9558_s29 + $0x548] sm:$0xff] }
 0x3ce   : > { %v1903_v44 = vrot.slane %v1902_v45, 4  ;;  %6185 = vmatpush3.bf16.msra.mxu1 %v6184_v48  ;;  %v2393_v48 = vld [vmem:[%s9558_s29 + $0x5d0] sm:$0xff]  ;;  %v6332_v25 = vpack.c.bf16 %v2376_v18, %v2375_v59  ;;  %v2379_v59 = vld [vmem:[%s9558_s29 + $0x560] sm:$0xff]  ;;  %v2380_v18 = vld [vmem:[%s9558_s29 + $0x568] sm:$0xff] }
 0x3cf   : > { %v1897_v30 = vmax.f32 %v1895_v16, %v1896_v15  ;;  %6219 = vmatprep.subr.bf16.mxu1 %v6218_v17  ;;  %v6226_v16 = vpack.c.bf16 %v2292_v9, %v2291_v3  ;;  %v2275_v17 = vld [vmem:[%s9558_s29 + $0x220] sm:$0xff]  ;;  %v6334_v15 = vpack.c.bf16 %v2394_v31, %v2393_v48  ;;  %v2296_v3 = vld [vmem:[%s9558_s29 + $0x2c8] sm:$0xff] }
 0x3d0   : > { %v1904_v61 = vmax.f32 %v1902_v45, %v1903_v44  ;;  %6325 = vmatpush3.bf16.msra.mxu0 %v6324_v63  ;;  %v2293_v45 = vld [vmem:[%s9558_s29 + $0x2b0] sm:$0xff]  ;;  %v6228_v44 = vpack.c.bf16 %v2276_v20, %v2275_v17 }
 0x3d1   : > { %v1898_v57 = vrot.slane %v1897_v30, 2  ;;  %2528 = vmatmul.mubr.f32.vlgmr.msra.gmra.mrb[32].mxu1 %v8250_v38  ;;  %6327 = vmatprep.subr.bf16.mxu0 %v6326_v24  ;;  %v2377_v24 = vld [vmem:[%s9558_s29 + $0x550] sm:$0xff] }
 0x3d2   : > { %v1905_v19 = vrot.slane %v1904_v61, 2  ;;  %2532 = vmatprep.mubr.f32.mxu1 %v8259_v49  ;;  %6221 = vmatpush3.bf16.msra.mxu1 %v6220_v62  ;;  %v2395_v62 = vld [vmem:[%s9558_s29 + $0x5e0] sm:$0xff]  ;;  %v6336_v9 = vpack.c.bf16 %v2378_v42, %v2377_v24 }
 0x3d3   : > { %v1899_v55 = vmax.f32 %v1897_v30, %v1898_v57  ;;  %6223 = vmatprep.subr.bf16.mxu1 %v6222_v6  ;;  %v6230_v30 = vpack.c.bf16 %v2294_v50, %v2293_v45  ;;  %v2277_v6 = vld [vmem:[%s9558_s29 + $0x230] sm:$0xff]  ;;  %v2298_v45 = vld [vmem:[%s9558_s29 + $0x2d8] sm:$0xff]  ;;  %v6340_v50 = vpack.c.bf16 %v2380_v18, %v2379_v59 }
 0x3d4   : > { %v1906_v21 = vmax.f32 %v1904_v61, %v1905_v19  ;;  %6329 = vmatpush3.bf16.msra.mxu0 %v6328_v35  ;;  %v2295_v61 = vld [vmem:[%s9558_s29 + $0x2c0] sm:$0xff]  ;;  %v6232_v48 = vpack.c.bf16 %v2278_v33, %v2277_v6  ;;  %v2286_v59 = vld [vmem:[%s9558_s29 + $0x278] sm:$0xff] }
 0x3d5   : > { %v1900_v63 = vrot.slane %v1899_v55, 1  ;;  %2533 = vmatmul.mubr.f32.gmra.mrb[34].mxu1 %v8253_v39  ;;  %6331 = vmatprep.subr.bf16.mxu0 %v6330_v37  ;;  %v6338_v37 = vpack.c.bf16 %v2396_v5, %v2395_v62  ;;  %v2299_v62 = vld [vmem:[%s9558_s29 + $0x2e0] sm:$0xff]  ;;  %v2300_v5 = vld [vmem:[%s9558_s29 + $0x2e8] sm:$0xff] }
 0x3d6   : > { %v1907_v43 = vrot.slane %v1906_v21, 1  ;;  %6225 = vmatpush3.bf16.msra.mxu1 %v6224_v60  ;;  %2677 = vmatprep.mubr.f32.mxu1 %v8444_v27  ;;  %v6242_v6 = vpack.c.bf16 %v2300_v5, %v2299_v62  ;;  %v2283_v33 = vld [vmem:[%s9558_s29 + $0x260] sm:$0xff]  ;;  %v2356_v62 = vld [vmem:[%s9558_s29 + $0x4a8] sm:$0xff] }
 0x3d7   : > { %v1901_v46 = vmax.f32 %v1899_v55, %v1900_v63  ;;  %6227 = vmatprep.subr.bf16.mxu1 %v6226_v16  ;;  %v6234_v16 = vpack.c.bf16 %v2296_v3, %v2295_v61  ;;  %v2381_v63 = vld [vmem:[%s9558_s29 + $0x570] sm:$0xff]  ;;  %v2302_v3 = vld [vmem:[%s9558_s29 + $0x2f8] sm:$0xff] }
 0x3d8   : > { %v1908_v22 = vmax.f32 %v1906_v21, %v1907_v43  ;;  %6333 = vmatpush3.bf16.msra.mxu0 %v6332_v25  ;;  %v2297_v21 = vld [vmem:[%s9558_s29 + $0x2d0] sm:$0xff] }
 0x3d9   : > { %v1959_v35 = vsub.f32 %v8622_v13, %v1901_v46  ;;  %v1975_v57 = vsub.f32 %v8624_v41, %v1901_v46  ;;  %6335 = vmatprep.subr.bf16.mxu0 %v6334_v15  ;;  %v2397_v13 = vld [vmem:[%s9558_s29 + $0x5f0] sm:$0xff]  ;;  %v2398_v41 = vld [vmem:[%s9558_s29 + $0x5f8] sm:$0xff]  ;;  %v6238_v42 = vpack.c.bf16 %v2298_v45, %v2297_v21 }
 0x3da   : > { %v1960_v19 = vsub.f32 %v8632_v14, %v1908_v22  ;;  %v1976_v60 = vsub.f32 %v8634_v10, %v1908_v22  ;;  %6229 = vmatpush3.bf16.msra.mxu1 %v6228_v44  ;;  %v2279_v14 = vld [vmem:[%s9558_s29 + $0x240] sm:$0xff]  ;;  %v2280_v10 = vld [vmem:[%s9558_s29 + $0x248] sm:$0xff]  ;;  %v6342_v25 = vpack.c.bf16 %v2398_v41, %v2397_v13  ;;  %v2382_v15 = vld [vmem:[%s9558_s29 + $0x578] sm:$0xff] }
 0x3db   : > { %v1999_v31 = vmul.f32 1.442695, %v1959_v35  ;;  %v2031_v55 = vmul.f32 1.442695, %v1975_v57  ;;  %6231 = vmatprep.subr.bf16.mxu1 %v6230_v30  ;;  %v6236_v24 = vpack.c.bf16 %v2280_v10, %v2279_v14  ;;  %v2281_v43 = vld [vmem:[%s9558_s29 + $0x250] sm:$0xff]  ;;  %v2282_v44 = vld [vmem:[%s9558_s29 + $0x258] sm:$0xff]  ;;  %v6344_v46 = vpack.c.bf16 %v2382_v15, %v2381_v63 }
 0x3dc   : > { %v2001_v17 = vmul.f32 1.442695, %v1960_v19  ;;  %v2033_v20 = vmul.f32 1.442695, %v1976_v60  ;;  %6337 = vmatpush3.bf16.msra.mxu0 %v6336_v9  ;;  %v6240_v30 = vpack.c.bf16 %v2282_v44, %v2281_v43  ;;  %v2284_v22 = vld [vmem:[%s9558_s29 + $0x268] sm:$0xff]  ;;  %v2301_v61 = vld [vmem:[%s9558_s29 + $0x2f0] sm:$0xff] }
 0x3dd   : > { %7233 = vpow2.f32 %v1999_v31  ;;  %6339 = vmatprep.subr.bf16.mxu0 %v6338_v37  ;;  %v6244_v9 = vpack.c.bf16 %v2284_v22, %v2283_v33  ;;  %v6246_v57 = vpack.c.bf16 %v2302_v3, %v2301_v61  ;;  %v2285_v37 = vld [vmem:[%s9558_s29 + $0x270] sm:$0xff]  ;;  %v2351_v19 = vld [vmem:[%s9558_s29 + $0x480] sm:$0xff]  ;;  %v2352_v60 = vld [vmem:[%s9558_s29 + $0x488] sm:$0xff] }
 0x3de   : > { %7235 = vpow2.f32 %v2031_v55  ;;  %6233 = vmatpush3.bf16.msra.mxu1 %v6232_v48  ;;  %v6248_v31 = vpack.c.bf16 %v2286_v59, %v2285_v37  ;;  %v6282_v14 = vpack.c.bf16 %v2352_v60, %v2351_v19  ;;  %v2335_v10 = vld [vmem:[%s9558_s29 + $0x400] sm:$0xff]  ;;  %v2354_v21 = vld [vmem:[%s9558_s29 + $0x498] sm:$0xff]  ;;  %v2340_v61 = vld [vmem:[%s9558_s29 + $0x428] sm:$0xff] }
 0x3df   : > { %7237 = vpow2.f32 %v2001_v17  ;;  %6235 = vmatprep.subr.bf16.mxu1 %v6234_v16  ;;  %v2336_v17 = vld [vmem:[%s9558_s29 + $0x408] sm:$0xff]  ;;  %v2338_v43 = vld [vmem:[%s9558_s29 + $0x418] sm:$0xff]  ;;  %v2355_v44 = vld [vmem:[%s9558_s29 + $0x4a0] sm:$0xff] }
 0x3e0   : > { %7239 = vpow2.f32 %v2033_v20  ;;  %6341 = vmatpush3.bf16.msra.mxu0 %v6340_v50  ;;  %v2353_v20 = vld [vmem:[%s9558_s29 + $0x490] sm:$0xff]  ;;  %v6290_v33 = vpack.c.bf16 %v2356_v62, %v2355_v44  ;;  %v2339_v22 = vld [vmem:[%s9558_s29 + $0x420] sm:$0xff] }
 0x3e1   : > { %6343 = vmatprep.subr.bf16.mxu0 %v6342_v25  ;;  %v6284_v25 = vpack.c.bf16 %v2336_v17, %v2335_v10  ;;  %v6292_v19 = vpack.c.bf16 %v2340_v61, %v2339_v22  ;;  %v2348_v22 = vld [vmem:[%s9558_s29 + $0x468] sm:$0xff] }
 0x3e2   : > { %6237 = vmatpush3.bf16.msra.mxu1 %v6236_v24  ;;  %v6286_v24 = vpack.c.bf16 %v2354_v21, %v2353_v20  ;;  %v2343_v20 = vld [vmem:[%s9558_s29 + $0x440] sm:$0xff]  ;;  %v2344_v21 = vld [vmem:[%s9558_s29 + $0x448] sm:$0xff] }
 0x3e3   : > { %6239 = vmatprep.subr.bf16.mxu1 %v6238_v42  ;;  %v2337_v42 = vld [vmem:[%s9558_s29 + $0x410] sm:$0xff] }
 0x3e4   : > { %6345 = vmatpush3.bf16.msra.mxu0 %v6344_v46 }
 0x3e6   : > { %6241 = vmatpush3.bf16.msra.mxu1 %v6240_v30  ;;  %v6288_v30 = vpack.c.bf16 %v2338_v43, %v2337_v42  ;;  %v2363_v42 = vld [vmem:[%s9558_s29 + $0x4e0] sm:$0xff]  ;;  %v2364_v43 = vld [vmem:[%s9558_s29 + $0x4e8] sm:$0xff] }
 0x3e7   : > { %v8793_v35 = vpop.eup %7233  ;;  %6243 = vmatprep.subr.bf16.mxu1 %v6242_v6 }
 0x3e8   : > { %v8801_v18 = vpop.eup %7235 }
 0x3e9   : > { %v8809_v48 = vpop.eup %7237  ;;  %v2103_v13 = vadd.f32 %v8801_v18, %v8793_v35 }
 0x3ea   : > { %v8813_v41 = vpop.eup %7239  ;;  %6245 = vmatpush3.bf16.msra.mxu1 %v6244_v9  ;;  %v2357_v9 = vld [vmem:[%s9558_s29 + $0x4b0] sm:$0xff] }
 0x3eb   : > { %v2104_v55 = vrot.slane %v2103_v13, 4  ;;  %v2110_v16 = vadd.f32 %v8813_v41, %v8809_v48  ;;  %6247 = vmatprep.subr.bf16.mxu1 %v6246_v57  ;;  %v2358_v57 = vld [vmem:[%s9558_s29 + $0x4b8] sm:$0xff] }
 0x3ec   : > { %v6294_v60 = vpack.c.bf16 %v2358_v57, %v2357_v9  ;;  %v1186_v57 = vrot.slane %v8559_v53, %v1153_v34 }
 0x3ed   : > { %v2105_v45 = vadd.f32 %v2104_v55, %v2103_v13  ;;  %v2111_v50 = vrot.slane %v2110_v16, 4  ;;  %v2341_v13 = vld [vmem:[%s9558_s29 + $0x430] sm:$0xff] }
 0x3ee   : > { %6249 = vmatpush3.bf16.msra.mxu1 %v6248_v31  ;;  %v2342_v31 = vld [vmem:[%s9558_s29 + $0x438] sm:$0xff] }
 0x3ef   : > { %v2106_v63 = vrot.slane %v2105_v45, 2  ;;  %v2112_v15 = vadd.f32 %v2111_v50, %v2110_v16  ;;  %6283 = vmatprep.subr.bf16.mxu1 %v6282_v14  ;;  %v2359_v16 = vld [vmem:[%s9558_s29 + $0x4c0] sm:$0xff]  ;;  %v2360_v14 = vld [vmem:[%s9558_s29 + $0x4c8] sm:$0xff]  ;;  %v6296_v10 = vpack.c.bf16 %v2342_v31, %v2341_v13  ;;  %v2362_v50 = vld [vmem:[%s9558_s29 + $0x4d8] sm:$0xff] }
 0x3f0   : > { %v6298_v17 = vpack.c.bf16 %v2360_v14, %v2359_v16  ;;  %v2415_v13 = vld [vmem:[%s9558_s29 + $0x680] sm:$0xff] }
 0x3f1   : > { %v2107_v5 = vadd.f32 %v2106_v63, %v2105_v45  ;;  %v2113_v46 = vrot.slane %v2112_v15, 2  ;;  %2678 = vmatmul.mubr.f32.vlgmr.msra.gmra.mrb[36].mxu1 %v8438_v11  ;;  %v2361_v45 = vld [vmem:[%s9558_s29 + $0x4d0] sm:$0xff] }
 0x3f2   : > { %2682 = vmatprep.mubr.f32.mxu1 %v8447_v32  ;;  %6285 = vmatpush3.bf16.msra.mxu1 %v6284_v25  ;;  %v6300_v25 = vpack.c.bf16 %v2344_v21, %v2343_v20  ;;  %v6302_v63 = vpack.c.bf16 %v2362_v50, %v2361_v45  ;;  %v2399_v45 = vld [vmem:[%s9558_s29 + $0x600] sm:$0xff]  ;;  %v2400_v50 = vld [vmem:[%s9558_s29 + $0x608] sm:$0xff] }
 0x3f3   : > { %v2108_v6 = vrot.slane %v2107_v5, 1  ;;  %6287 = vmatprep.subr.bf16.mxu1 %v6286_v24  ;;  %v2114_v3 = vadd.f32 %v2113_v46, %v2112_v15  ;;  %v2345_v15 = vld [vmem:[%s9558_s29 + $0x450] sm:$0xff]  ;;  %v2346_v24 = vld [vmem:[%s9558_s29 + $0x458] sm:$0xff] }
 0x3f4   : > { %v6304_v62 = vpack.c.bf16 %v2346_v24, %v2345_v15  ;;  %v2418_v15 = vld [vmem:[%s9558_s29 + $0x698] sm:$0xff] }
 0x3f5   : > { %v2109_v37 = vadd.f32 %v2108_v6, %v2107_v5  ;;  %2683 = vmatmul.mubr.f32.gmra.mrb[38].mxu1 %v8441_v28  ;;  %v2115_v59 = vrot.slane %v2114_v3, 1  ;;  %v6306_v6 = vpack.c.bf16 %v2364_v43, %v2363_v42  ;;  %v6348_v43 = vpack.c.bf16 %v2400_v50, %v2399_v45  ;;  %v2406_v45 = vld [vmem:[%s9558_s29 + $0x638] sm:$0xff] }
 0x3f6   : > { %6289 = vmatpush3.bf16.msra.mxu1 %v6288_v30 }
 0x3f7   : > { %7241 = vrcp.f32 %v2109_v37  ;;  %6291 = vmatprep.subr.bf16.mxu1 %v6290_v33  ;;  %v2116_v55 = vadd.f32 %v2115_v59, %v2114_v3  ;;  %v2347_v33 = vld [vmem:[%s9558_s29 + $0x460] sm:$0xff] }
 0x3f8   : > { %v6308_v59 = vpack.c.bf16 %v2348_v22, %v2347_v33  ;;  %v2419_v22 = vld [vmem:[%s9558_s29 + $0x6a0] sm:$0xff] }
 0x3f9   : > { %7243 = vrcp.f32 %v2116_v55 }
 0x3fa   : > { %6293 = vmatpush3.bf16.msra.mxu1 %v6292_v19 }
 0x3fb   : > { %6295 = vmatprep.subr.bf16.mxu1 %v6294_v60  ;;  %v2350_v60 = vld [vmem:[%s9558_s29 + $0x478] sm:$0xff] }
 0x3fe   : > { %6297 = vmatpush3.bf16.msra.mxu1 %v6296_v10 }
 0x3ff   : > { %6299 = vmatprep.subr.bf16.mxu1 %v6298_v17 }
 0x401   : > { %v7242_v44 = vpop.eup %7241 }
 0x402   : > { %6301 = vmatpush3.bf16.msra.mxu1 %v6300_v25  ;;  %v8893_v5 = vmul.f32 %v7242_v44, %v8793_v35  ;;  %v8896_v46 = vmul.f32 %v7242_v44, %v8801_v18  ;;  %v2365_v35 = vld [vmem:[%s9558_s29 + $0x4f0] sm:$0xff]  ;;  %v2366_v18 = vld [vmem:[%s9558_s29 + $0x4f8] sm:$0xff] }
 0x403   : > { %v7244_v30 = vpop.eup %7243  ;;  %6303 = vmatprep.subr.bf16.mxu1 %v6302_v63  ;;  %v6310_v19 = vpack.c.bf16 %v2366_v18, %v2365_v35  ;;  %v2417_v63 = vld [vmem:[%s9558_s29 + $0x690] sm:$0xff] }
 0x404   : > { %v1674_v61 = vpop.f32.mrb[20].mxu1  ;;  %v8905_v3 = vmul.f32 %v7244_v30, %v8809_v48  ;;  %v8914_v9 = vmul.f32 %v7244_v30, %v8813_v41  ;;  %v1190_v48 = vrot.slane %v8559_v53, %v1157_v36  ;;  %v2349_v41 = vld [vmem:[%s9558_s29 + $0x470] sm:$0xff]  ;;  %v2416_v36 = vld [vmem:[%s9558_s29 + $0x688] sm:$0xff] }
 0x405   : > { %v1676_v37 = vpop.f32.mrb[21].mxu1  ;;  %v1675_v31 = vadd.f32 %v1674_v61, %v1186_v57  ;;  %v6312_v17 = vpack.c.bf16 %v2350_v60, %v2349_v41  ;;  %v6346_v21 = vpack.c.bf16 %v2416_v36, %v2415_v13  ;;  %v2401_v30 = vld [vmem:[%s9558_s29 + $0x610] sm:$0xff]  ;;  %v2420_v61 = vld [vmem:[%s9558_s29 + $0x6a8] sm:$0xff] }
 0x406   : > { %2827 = vmatprep.mubr.f32.mxu1 %v8905_v3  ;;  %6305 = vmatpush3.bf16.msra.mxu1 %v6304_v62  ;;  %v8935_v14 = vadd.f32 %v1676_v37, %v1190_v48  ;;  %v6350_v62 = vpack.c.bf16 %v2418_v15, %v2417_v63  ;;  %v2421_v60 = vld [vmem:[%s9558_s29 + $0x6b0] sm:$0xff]  ;;  %v2424_v63 = vld [vmem:[%s9558_s29 + $0x6c8] sm:$0xff] }
 0x407   : > { %6307 = vmatprep.subr.bf16.mxu1 %v6306_v6  ;;  %v2402_v6 = vld [vmem:[%s9558_s29 + $0x618] sm:$0xff] }
 0x408   : > { %v1680_v34 = vpop.f32.mrb[22].mxu1 }
 0x409   : > { %v1681_v55 = vadd.f32 %v1680_v34, %v1186_v57  ;;  %v1682_v16 = vpop.f32.mrb[23].mxu1  ;;  %v6352_v57 = vpack.c.bf16 %v2402_v6, %v2401_v30  ;;  %v2422_v34 = vld [vmem:[%s9558_s29 + $0x6b8] sm:$0xff]  ;;  %v2407_v30 = vld [vmem:[%s9558_s29 + $0x640] sm:$0xff] }
 0x40a   : > { %v8937_v10 = vadd.f32 %v1682_v16, %v1190_v48  ;;  %6309 = vmatpush3.bf16.msra.mxu1 %v6308_v59  ;;  %v6354_v48 = vpack.c.bf16 %v2420_v61, %v2419_v22  ;;  %v2403_v59 = vld [vmem:[%s9558_s29 + $0x620] sm:$0xff] }
 0x40b   : > { %v1909_v20 = vmax.f32 %v1675_v31, %v1681_v55  ;;  %6311 = vmatprep.subr.bf16.mxu1 %v6310_v19  ;;  %v2404_v19 = vld [vmem:[%s9558_s29 + $0x628] sm:$0xff] }
 0x40c   : > { %v1916_v25 = vmax.f32 %v8935_v14, %v8937_v10  ;;  %v6356_v16 = vpack.c.bf16 %v2404_v19, %v2403_v59  ;;  %v2409_v19 = vld [vmem:[%s9558_s29 + $0x650] sm:$0xff] }
 0x40d   : > { %v1910_v24 = vrot.slane %v1909_v20, 4 }
 0x40e   : > { %v1917_v42 = vrot.slane %v1916_v25, 4  ;;  %6313 = vmatpush3.bf16.msra.mxu1 %v6312_v17 }
 0x40f   : > { %v1911_v44 = vmax.f32 %v1909_v20, %v1910_v24  ;;  %6347 = vmatprep.subr.bf16.mxu1 %v6346_v21  ;;  %v6358_v20 = vpack.c.bf16 %v2422_v34, %v2421_v60  ;;  %v2405_v21 = vld [vmem:[%s9558_s29 + $0x630] sm:$0xff]  ;;  %v2427_v34 = vld [vmem:[%s9558_s29 + $0x6e0] sm:$0xff] }
 0x410   : > { %v1918_v33 = vmax.f32 %v1916_v25, %v1917_v42  ;;  %v2423_v25 = vld [vmem:[%s9558_s29 + $0x6c0] sm:$0xff] }
 0x411   : > { %v1912_v35 = vrot.slane %v1911_v44, 2  ;;  %2828 = vmatmul.mubr.f32.vlgmr.msra.gmra.mrb[40].mxu1 %v8893_v5  ;;  %v6362_v61 = vpack.c.bf16 %v2424_v63, %v2423_v25  ;;  %v2448_v25 = vld [vmem:[%s9558_s29 + $0x788] sm:$0xff] }
 0x412   : > { %v1919_v18 = vrot.slane %v1918_v33, 2  ;;  %2832 = vmatprep.mubr.f32.mxu1 %v8914_v9  ;;  %6349 = vmatpush3.bf16.msra.mxu1 %v6348_v43 }
 0x413   : > { %v1913_v37 = vmax.f32 %v1911_v44, %v1912_v35  ;;  %6351 = vmatprep.subr.bf16.mxu1 %v6350_v62  ;;  %v6360_v62 = vpack.c.bf16 %v2406_v45, %v2405_v21  ;;  %v2429_v21 = vld [vmem:[%s9558_s29 + $0x6f0] sm:$0xff]  ;;  %v2430_v45 = vld [vmem:[%s9558_s29 + $0x6f8] sm:$0xff] }
 0x414   : > { %v1920_v41 = vmax.f32 %v1918_v33, %v1919_v18  ;;  %v2426_v18 = vld [vmem:[%s9558_s29 + $0x6d8] sm:$0xff] }
 0x415   : > { %v1914_v13 = vrot.slane %v1913_v37, 1  ;;  %2833 = vmatmul.mubr.f32.gmra.mrb[42].mxu1 %v8896_v46 }
 0x416   : > { %v1921_v36 = vrot.slane %v1920_v41, 1  ;;  %6353 = vmatpush3.bf16.msra.mxu1 %v6352_v57 }
 0x417   : > { %v1915_v17 = vmax.f32 %v1913_v37, %v1914_v13  ;;  %6355 = vmatprep.subr.bf16.mxu1 %v6354_v48  ;;  %v2428_v13 = vld [vmem:[%s9558_s29 + $0x6e8] sm:$0xff] }
 0x418   : > { %v1922_v50 = vmax.f32 %v1920_v41, %v1921_v36  ;;  %v2410_v41 = vld [vmem:[%s9558_s29 + $0x658] sm:$0xff] }
 0x419   : > { %v1961_v15 = vsub.f32 %v1675_v31, %v1915_v17  ;;  %v1977_v24 = vsub.f32 %v1681_v55, %v1915_v17  ;;  %v2408_v31 = vld [vmem:[%s9558_s29 + $0x648] sm:$0xff]  ;;  %v6368_v36 = vpack.c.bf16 %v2410_v41, %v2409_v19  ;;  %v2411_v17 = vld [vmem:[%s9558_s29 + $0x660] sm:$0xff] }
 0x41a   : > { %v1962_v42 = vsub.f32 %v8935_v14, %v1922_v50  ;;  %v1978_v43 = vsub.f32 %v8937_v10, %v1922_v50  ;;  %v5354_v44 = vpop.f32.mrb[4].mxu0  ;;  %6357 = vmatpush3.bf16.msra.mxu1 %v6356_v16  ;;  %v2425_v10 = vld [vmem:[%s9558_s29 + $0x6d0] sm:$0xff]  ;;  %v6364_v37 = vpack.c.bf16 %v2408_v31, %v2407_v30  ;;  %v6370_v16 = vpack.c.bf16 %v2428_v13, %v2427_v34  ;;  %v2447_v50 = vld [vmem:[%s9558_s29 + $0x780] sm:$0xff] }
 0x41b   : > { %v2003_v6 = vmul.f32 1.442695, %v1961_v15  ;;  %v2035_v33 = vmul.f32 1.442695, %v1977_v24  ;;  %v5355_v22 = vpop.f32.mrb[5].mxu0  ;;  %6359 = vmatprep.subr.bf16.mxu1 %v6358_v20  ;;  %v6366_v59 = vpack.c.bf16 %v2426_v18, %v2425_v10  ;;  %v2412_v20 = vld [vmem:[%s9558_s29 + $0x668] sm:$0xff]  ;;  %v6378_v63 = vpack.c.bf16 %v2448_v25, %v2447_v50 }
 0x41c   : > { %v2005_v55 = vmul.f32 1.442695, %v1962_v42  ;;  %v2037_v14 = vmul.f32 1.442695, %v1978_v43  ;;  %v9000_v35 = vadd.f32 %v5355_v22, %v5354_v44  ;;  %v6372_v15 = vpack.c.bf16 %v2412_v20, %v2411_v17  ;;  %v2413_v43 = vld [vmem:[%s9558_s29 + $0x670] sm:$0xff]  ;;  %v2414_v44 = vld [vmem:[%s9558_s29 + $0x678] sm:$0xff] }
 0x41d   : > { %7245 = vpow2.f32 %v2003_v6  ;;  %v6374_v42 = vpack.c.bf16 %v2430_v45, %v2429_v21  ;;  %6379 = vmatprep.subr.bf16.mxu0 %v6378_v63  ;;  %v6376_v22 = vpack.c.bf16 %v2414_v44, %v2413_v43  ;;  %v2449_v21 = vld [vmem:[%s9558_s29 + $0x790] sm:$0xff]  ;;  %v2450_v45 = vld [vmem:[%s9558_s29 + $0x798] sm:$0xff] }
 0x41e   : > { %7247 = vpow2.f32 %v2035_v33  ;;  %v5357_v57 = vpop.f32.mrb[6].mxu0  ;;  %6361 = vmatpush3.bf16.msra.mxu1 %v6360_v62  ;;  %v6382_v44 = vpack.c.bf16 %v2450_v45, %v2449_v21  ;;  %v2455_v45 = vld [vmem:[%s9558_s29 + $0x7c0] sm:$0xff] }
 0x41f   : > { %7249 = vpow2.f32 %v2005_v55  ;;  %v5358_v48 = vpop.f32.mrb[7].mxu0  ;;  %6363 = vmatprep.subr.bf16.mxu1 %v6362_v61 }
 0x420   : > { %7251 = vpow2.f32 %v2037_v14  ;;  %v9014_v60 = vadd.f32 %v5358_v48, %v5357_v57 }
 0x422   : > { %6365 = vmatpush3.bf16.msra.mxu1 %v6364_v37 }
 0x423   : > { %6367 = vmatprep.subr.bf16.mxu1 %v6366_v59 }
 0x426   : > { %6369 = vmatpush3.bf16.msra.mxu1 %v6368_v36  ;;  %v2431_v36 = vld [vmem:[%s9558_s29 + $0x700] sm:$0xff] }
 0x427   : > { %v7246_v24 = vpop.eup %7245  ;;  %6371 = vmatprep.subr.bf16.mxu1 %v6370_v16  ;;  %v2432_v16 = vld [vmem:[%s9558_s29 + $0x708] sm:$0xff] }
 0x428   : > { %v7248_v62 = vpop.eup %7247 }
 0x429   : > { %v7250_v30 = vpop.eup %7249  ;;  %v2117_v6 = vadd.f32 %v7248_v62, %v7246_v24 }
 0x42a   : > { %v7252_v33 = vpop.eup %7251  ;;  %6373 = vmatpush3.bf16.msra.mxu1 %v6372_v15 }
 0x42b   : > { %v2118_v61 = vrot.slane %v2117_v6, 4  ;;  %v2124_v31 = vadd.f32 %v7252_v33, %v7250_v30  ;;  %6375 = vmatprep.subr.bf16.mxu1 %v6374_v42  ;;  %v6380_v42 = vpack.c.bf16 %v2432_v16, %v2431_v36  ;;  %v2437_v36 = vld [vmem:[%s9558_s29 + $0x730] sm:$0xff]  ;;  %v2438_v16 = vld [vmem:[%s9558_s29 + $0x738] sm:$0xff] }
 0x42d   : > { %v2119_v55 = vadd.f32 %v2118_v61, %v2117_v6  ;;  %v2125_v14 = vrot.slane %v2124_v31, 4  ;;  %v2434_v6 = vld [vmem:[%s9558_s29 + $0x718] sm:$0xff] }
 0x42e   : > { %6377 = vmatpush3.bf16.msra.mxu1 %v6376_v22 }
 0x42f   : > { %v2120_v10 = vrot.slane %v2119_v55, 2  ;;  %v2126_v18 = vadd.f32 %v2125_v14, %v2124_v31 }
 0x431   : > { %v2121_v57 = vadd.f32 %v2120_v10, %v2119_v55  ;;  %v2127_v37 = vrot.slane %v2126_v18, 2  ;;  %v2436_v10 = vld [vmem:[%s9558_s29 + $0x728] sm:$0xff] }
 0x433   : > { %v2122_v48 = vrot.slane %v2121_v57, 1  ;;  %v2128_v59 = vadd.f32 %v2127_v37, %v2126_v18  ;;  %v2453_v37 = vld [vmem:[%s9558_s29 + $0x7b0] sm:$0xff] }
 0x435   : > { %v2123_v19 = vadd.f32 %v2122_v48, %v2121_v57  ;;  %v2129_v41 = vrot.slane %v2128_v59, 1  ;;  %v2454_v48 = vld [vmem:[%s9558_s29 + $0x7b8] sm:$0xff] }
 0x437   : > { %7253 = vrcp.f32 %v2123_v19  ;;  %v2130_v34 = vadd.f32 %v2129_v41, %v2128_v59 }
 0x439   : > { %7255 = vrcp.f32 %v2130_v34 }
 0x441   : > { %v7254_v13 = vpop.eup %7253 }
 0x442   : > { %v9052_v17 = vmul.f32 %v7254_v13, %v7246_v24  ;;  %v9054_v20 = vmul.f32 %v7254_v13, %v7248_v62  ;;  %v1194_v24 = vrot.slane %v8559_v53, %v1161_v26  ;;  %v2433_v62 = vld [vmem:[%s9558_s29 + $0x710] sm:$0xff]  ;;  %v2451_v26 = vld [vmem:[%s9558_s29 + $0x7a0] sm:$0xff]  ;;  %v6390_v13 = vpack.c.bf16 %v2454_v48, %v2453_v37  ;;  %v2442_v37 = vld [vmem:[%s9558_s29 + $0x758] sm:$0xff] }
 0x443   : > { %v7256_v50 = vpop.eup %7255  ;;  %v6384_v61 = vpack.c.bf16 %v2434_v6, %v2433_v62  ;;  %v2439_v62 = vld [vmem:[%s9558_s29 + $0x740] sm:$0xff]  ;;  %v2440_v6 = vld [vmem:[%s9558_s29 + $0x748] sm:$0xff] }
 0x444   : > { %v1751_v25 = vpop.f32.mrb[24].mxu1  ;;  %v9062_v63 = vmul.f32 %v7256_v50, %v7250_v30  ;;  %v9064_v15 = vmul.f32 %v7256_v50, %v7252_v33  ;;  %v1198_v30 = vrot.slane %v8559_v53, %v1165_v51  ;;  %v2452_v33 = vld [vmem:[%s9558_s29 + $0x7a8] sm:$0xff]  ;;  %v2435_v53 = vld [vmem:[%s9558_s29 + $0x720] sm:$0xff] }
 0x445   : > { %v1753_v43 = vpop.f32.mrb[25].mxu1  ;;  %v1752_v31 = vadd.f32 %v1751_v25, %v1194_v24  ;;  %v6386_v51 = vpack.c.bf16 %v2452_v33, %v2451_v26  ;;  %v6388_v41 = vpack.c.bf16 %v2436_v10, %v2435_v53  ;;  %v2456_v50 = vld [vmem:[%s9558_s29 + $0x7c8] sm:$0xff]  ;;  %v2457_v26 = vld [vmem:[%s9558_s29 + $0x7d0] sm:$0xff]  ;;  %v2458_v33 = vld [vmem:[%s9558_s29 + $0x7d8] sm:$0xff] }
 0x446   : > { %2902 = vmatprep.mubr.f32.mxu0 %v9062_v63  ;;  %v1754_v18 = vadd.f32 %v1753_v43, %v1198_v30  ;;  %v6398_v53 = vpack.c.bf16 %v2458_v33, %v2457_v26  ;;  %v2441_v10 = vld [vmem:[%s9558_s29 + $0x750] sm:$0xff] }
 0x447   : > { %2903 = vmatmul.mubr.f32.vlgmr.msra.gmra.mrb[12].mxu0 %v9052_v17 }
 0x448   : > { %2907 = vmatprep.mubr.f32.mxu0 %v9064_v15  ;;  %v1757_v22 = vpop.f32.mrb[26].mxu1  ;;  %6381 = vmatpush3.bf16.msra.mxu0 %v6380_v42 }
 0x449   : > { %v1758_v55 = vadd.f32 %v1757_v22, %v1194_v24  ;;  %v1759_v14 = vpop.f32.mrb[27].mxu1  ;;  %6383 = vmatprep.subr.bf16.mxu0 %v6382_v44  ;;  %v6392_v24 = vpack.c.bf16 %v2438_v16, %v2437_v36  ;;  %v6394_v44 = vpack.c.bf16 %v2456_v50, %v2455_v45  ;;  %v2443_v45 = vld [vmem:[%s9558_s29 + $0x760] sm:$0xff]  ;;  %v2444_v50 = vld [vmem:[%s9558_s29 + $0x768] sm:$0xff] }
 0x44a   : > { %v1760_v57 = vadd.f32 %v1759_v14, %v1198_v30  ;;  %v6396_v14 = vpack.c.bf16 %v2440_v6, %v2439_v62  ;;  %v6404_v6 = vpack.c.bf16 %v2444_v50, %v2443_v45 }
 0x44b   : > { %v1923_v59 = vmax.f32 %v1752_v31, %v1758_v55  ;;  %2908 = vmatmul.mubr.f32.gmra.mrb[14].mxu0 %v9054_v20 }
 0x44c   : > { %v1930_v19 = vmax.f32 %v1754_v18, %v1760_v57  ;;  %6385 = vmatpush3.bf16.msra.mxu0 %v6384_v61 }
 0x44d   : > { %v1924_v34 = vrot.slane %v1923_v59, 4  ;;  %6387 = vmatprep.subr.bf16.mxu0 %v6386_v51 }
 0x44e   : > { %v1931_v21 = vrot.slane %v1930_v19, 4 }
 0x44f   : > { %v1925_v25 = vmax.f32 %v1923_v59, %v1924_v34  ;;  %v2459_v59 = vld [vmem:[%s9558_s29 + $0x7e0] sm:$0xff] }
 0x450   : > { %v1932_v42 = vmax.f32 %v1930_v19, %v1931_v21  ;;  %6389 = vmatpush3.bf16.msra.mxu0 %v6388_v41  ;;  %v2460_v19 = vld [vmem:[%s9558_s29 + $0x7e8] sm:$0xff] }
 0x451   : > { %v1926_v43 = vrot.slane %v1925_v25, 2  ;;  %6391 = vmatprep.subr.bf16.mxu0 %v6390_v13  ;;  %v6400_v13 = vpack.c.bf16 %v2442_v37, %v2441_v10  ;;  %v6402_v21 = vpack.c.bf16 %v2460_v19, %v2459_v59 }
 0x452   : > { %v1933_v30 = vrot.slane %v1932_v42, 2 }
 0x453   : > { %v1927_v22 = vmax.f32 %v1925_v25, %v1926_v43 }
 0x454   : > { %v1934_v61 = vmax.f32 %v1932_v42, %v1933_v30  ;;  %6393 = vmatpush3.bf16.msra.mxu0 %v6392_v24  ;;  %v2461_v24 = vld [vmem:[%s9558_s29 + $0x7f0] sm:$0xff] }
 0x455   : > { %v1928_v51 = vrot.slane %v1927_v22, 1  ;;  %6395 = vmatprep.subr.bf16.mxu0 %v6394_v44 }
 0x456   : > { %v1935_v48 = vrot.slane %v1934_v61, 1 }
 0x457   : > { %v1929_v41 = vmax.f32 %v1927_v22, %v1928_v51 }
 0x458   : > { %v1936_v34 = vmax.f32 %v1934_v61, %v1935_v48  ;;  %6397 = vmatpush3.bf16.msra.mxu0 %v6396_v14 }
 0x459   : > { %v1963_v36 = vsub.f32 %v1752_v31, %v1929_v41  ;;  %v1979_v16 = vsub.f32 %v1758_v55, %v1929_v41  ;;  %6399 = vmatprep.subr.bf16.mxu0 %v6398_v53  ;;  %v2462_v31 = vld [vmem:[%s9558_s29 + $0x7f8] sm:$0xff] }
 0x45a   : > { %v1964_v25 = vsub.f32 %v1754_v18, %v1936_v34  ;;  %v1980_v42 = vsub.f32 %v1760_v57, %v1936_v34  ;;  %v6406_v30 = vpack.c.bf16 %v2462_v31, %v2461_v24  ;;  %v2445_v18 = vld [vmem:[%s9558_s29 + $0x770] sm:$0xff]  ;;  %v2446_v57 = vld [vmem:[%s9558_s29 + $0x778] sm:$0xff] }
 0x45b   : > { %v2007_v55 = vmul.f32 1.442695, %v1963_v36  ;;  %v2039_v43 = vmul.f32 1.442695, %v1979_v16  ;;  %v6408_v26 = vpack.c.bf16 %v2446_v57, %v2445_v18 }
 0x45c   : > { %v2009_v44 = vmul.f32 1.442695, %v1964_v25  ;;  %v2041_v62 = vmul.f32 1.442695, %v1980_v42  ;;  %6401 = vmatpush3.bf16.msra.mxu0 %v6400_v13 }
 0x45d   : > { %7257 = vpow2.f32 %v2007_v55  ;;  %6403 = vmatprep.subr.bf16.mxu0 %v6402_v21 }
 0x45e   : > { %7259 = vpow2.f32 %v2039_v43 }
 0x45f   : > { %7261 = vpow2.f32 %v2009_v44  ;;  %v7346_v44 = vld [vmem:[#allocation10 + $0x8] sm:$0xff] }
 0x460   : > { %7263 = vpow2.f32 %v2041_v62  ;;  %6405 = vmatpush3.bf16.msra.mxu0 %v6404_v6  ;;  %v1202_v62 = vrot.slane %v7346_v44, %v1169_v7 }
 0x461   : > { %6407 = vmatprep.subr.bf16.mxu0 %v6406_v30  ;;  %v1206_v30 = vrot.slane %v7346_v44, %v1173_v8 }
 0x464   : > { %6409 = vmatpush3.bf16.msra.mxu0 %v6408_v26 }
 0x467   : > { %v7258_v33 = vpop.eup %7257 }
 0x468   : > { %v7260_v22 = vpop.eup %7259 }
 0x469   : > { %v7262_v61 = vpop.eup %7261  ;;  %v2131_v14 = vadd.f32 %v7260_v22, %v7258_v33 }
 0x46a   : > { %v7264_v51 = vpop.eup %7263 }
 0x46b   : > { %v2132_v53 = vrot.slane %v2131_v14, 4  ;;  %v2138_v10 = vadd.f32 %v7264_v51, %v7262_v61 }
 0x46d   : > { %v2133_v37 = vadd.f32 %v2132_v53, %v2131_v14  ;;  %v2139_v48 = vrot.slane %v2138_v10, 4 }
 0x46f   : > { %v2134_v59 = vrot.slane %v2133_v37, 2  ;;  %v2140_v19 = vadd.f32 %v2139_v48, %v2138_v10 }
 0x471   : > { %v2135_v41 = vadd.f32 %v2134_v59, %v2133_v37  ;;  %v2141_v34 = vrot.slane %v2140_v19, 2 }
 0x473   : > { %v2136_v13 = vrot.slane %v2135_v41, 1  ;;  %v2142_v36 = vadd.f32 %v2141_v34, %v2140_v19 }
 0x475   : > { %v2137_v16 = vadd.f32 %v2136_v13, %v2135_v41  ;;  %v2143_v21 = vrot.slane %v2142_v36, 1 }
 0x477   : > { %7265 = vrcp.f32 %v2137_v16  ;;  %v2144_v45 = vadd.f32 %v2143_v21, %v2142_v36 }
 0x479   : > { %7267 = vrcp.f32 %v2144_v45 }
 0x481   : > { %v7266_v50 = vpop.eup %7265 }
 0x482   : > { %v9154_v25 = vmul.f32 %v7266_v50, %v7258_v33  ;;  %v9156_v42 = vmul.f32 %v7266_v50, %v7260_v22 }
 0x483   : > { %v7268_v24 = vpop.eup %7267 }
 0x484   : > { %9559 = vst [vmem:[#allocation26_spill] sm:$0xff] %v9154_v25  ;;  %9560 = vst [vmem:[#allocation27_spill] sm:$0xff] %v9156_v42  ;;  %v1828_v31 = vpop.f32.mrb[28].mxu1  ;;  %v9158_v55 = vmul.f32 %v7268_v24, %v7262_v61  ;;  %v9160_v43 = vmul.f32 %v7268_v24, %v7264_v51 }
 0x485   : > { %v1830_v6 = vpop.f32.mrb[29].mxu1  ;;  %v1829_v57 = vadd.f32 %v1828_v31, %v1202_v62 }
 0x486   : > { %9561 = vst [vmem:[#allocation28_spill] sm:$0xff] %v9160_v43  ;;  %2977 = vmatprep.mubr.f32.mxu1 %v9158_v55  ;;  %v1831_v22 = vadd.f32 %v1830_v6, %v1206_v30 }
 0x487   : > { %2978 = vmatmul.mubr.f32.vlgmr.msra.gmra.mrb[44].mxu1 %v9154_v25 }
 0x488   : > { %2982 = vmatprep.mubr.f32.mxu1 %v9160_v43  ;;  %v1834_v18 = vpop.f32.mrb[30].mxu1  ;;  %v3912_v43 = vld [vmem:[#allocation13 + $0x310] sm:$0xff] }
 0x489   : > { %v1835_v26 = vadd.f32 %v1834_v18, %v1202_v62  ;;  %v1836_v33 = vpop.f32.mrb[31].mxu1 }
 0x48a   : > { %v1837_v61 = vadd.f32 %v1836_v33, %v1206_v30 }
 0x48b   : > { %v1937_v14 = vmax.f32 %v1829_v57, %v1835_v26  ;;  %2983 = vmatmul.mubr.f32.gmra.mrb[46].mxu1 %v9156_v42  ;;  %v3913_v42 = vld [vmem:[#allocation13 + $0x318] sm:$0xff] }
 0x48c   : > { %v1944_v7 = vmax.f32 %v1831_v22, %v1837_v61  ;;  %3429 = vmatprep.mubr.f32.mxu1 %v7699_v0 }
 0x48d   : > { %v1938_v51 = vrot.slane %v1937_v14, 4 }
 0x48e   : > { %v1945_v53 = vrot.slane %v1944_v7, 4 }
 0x48f   : > { %v1939_v1 = vmax.f32 %v1937_v14, %v1938_v51 }
 0x490   : > { %v1946_v8 = vmax.f32 %v1944_v7, %v1945_v53 }
 0x491   : > { %v1940_v10 = vrot.slane %v1939_v1, 2 }
 0x492   : > { %v1947_v37 = vrot.slane %v1946_v8, 2 }
 0x493   : > { %v1941_v48 = vmax.f32 %v1939_v1, %v1940_v10 }
 0x494   : > { %v1948_v59 = vmax.f32 %v1946_v8, %v1947_v37 }
 0x495   : > { %v1942_v19 = vrot.slane %v1941_v48, 1 }
 0x496   : > { %v1949_v41 = vrot.slane %v1948_v59, 1 }
 0x497   : > { %v1943_v34 = vmax.f32 %v1941_v48, %v1942_v19 }
 0x498   : > { %v1950_v13 = vmax.f32 %v1948_v59, %v1949_v41 }
 0x499   : > { %v1965_v36 = vsub.f32 %v1829_v57, %v1943_v34  ;;  %v1981_v16 = vsub.f32 %v1835_v26, %v1943_v34 }
 0x49a   : > { %v1966_v21 = vsub.f32 %v1831_v22, %v1950_v13  ;;  %v1982_v45 = vsub.f32 %v1837_v61, %v1950_v13  ;;  %v5430_v50 = vpop.f32.mrb[8].mxu0 }
 0x49b   : > { %v2011_v24 = vmul.f32 1.442695, %v1965_v36  ;;  %v2043_v31 = vmul.f32 1.442695, %v1981_v16  ;;  %v5431_v44 = vpop.f32.mrb[9].mxu0 }
 0x49c   : > { %v2013_v62 = vmul.f32 1.442695, %v1966_v21  ;;  %v2045_v6 = vmul.f32 1.442695, %v1982_v45  ;;  %v5432_v30 = vadd.f32 %v5431_v44, %v5430_v50 }
 0x49d   : > { %7269 = vpow2.f32 %v2011_v24 }
 0x49e   : > { %7271 = vpow2.f32 %v2043_v31  ;;  %v5433_v18 = vpop.f32.mrb[10].mxu0 }
 0x49f   : > { %7273 = vpow2.f32 %v2013_v62  ;;  %v5434_v33 = vpop.f32.mrb[11].mxu0 }
 0x4a0   : > { %7275 = vpow2.f32 %v2045_v6  ;;  %v5435_v14 = vadd.f32 %v5434_v33, %v5433_v18 }
 0x4a4   : > { %v5316_v7 = vpop.f32.mrb[32].mxu1 }
 0x4a5   : > { %v5317_v51 = vpop.f32.mrb[33].mxu1 }
 0x4a6   : > { %v5318_v57 = vadd.f32 %v5317_v51, %v5316_v7 }
 0x4a7   : > { %v7270_v26 = vpop.eup %7269 }
 0x4a8   : > { %v7272_v22 = vpop.eup %7271  ;;  %v2605_v61 = vadd.f32 %v9000_v35, %v5318_v57  ;;  %v5319_v53 = vpop.f32.mrb[34].mxu1 }
 0x4a9   : > { %v7274_v1 = vpop.eup %7273  ;;  %v2145_v8 = vadd.f32 %v7272_v22, %v7270_v26  ;;  %v5320_v10 = vpop.f32.mrb[35].mxu1 }
 0x4aa   : > { %v7276_v37 = vpop.eup %7275  ;;  %v5321_v48 = vadd.f32 %v5320_v10, %v5319_v53 }
 0x4ab   : > { %v2146_v59 = vrot.slane %v2145_v8, 4  ;;  %v2152_v19 = vadd.f32 %v7276_v37, %v7274_v1 }
 0x4ac   : > { %v2610_v41 = vadd.f32 %v9014_v60, %v5321_v48 }
 0x4ad   : > { %v2147_v34 = vadd.f32 %v2146_v59, %v2145_v8  ;;  %v2153_v13 = vrot.slane %v2152_v19, 4 }
 0x4af   : > { %v2148_v36 = vrot.slane %v2147_v34, 2  ;;  %v2154_v16 = vadd.f32 %v2153_v13, %v2152_v19  ;;  %v3080_v19 = vld [vmem:[#allocation11 + $0x88] sm:$0xff] }
 0x4b1   : > { %v2149_v21 = vadd.f32 %v2148_v36, %v2147_v34  ;;  %v2155_v45 = vrot.slane %v2154_v16, 2  ;;  %v3063_v34 = vld [vmem:[#allocation11] sm:$0xff] }
 0x4b2   : > { %v3079_v36 = vld [vmem:[#allocation11 + $0x80] sm:$0xff] }
 0x4b3   : > { %v2150_v50 = vrot.slane %v2149_v21, 1  ;;  %v2156_v24 = vadd.f32 %v2155_v45, %v2154_v16  ;;  %v3070_v16 = vld [vmem:[#allocation11 + $0x38] sm:$0xff]  ;;  %v6412_v45 = vpack.c.bf16 %v3079_v36, %v3063_v34  ;;  %v3101_v36 = vld [vmem:[#allocation11 + $0x130] sm:$0xff] }
 0x4b5   : > { %v2151_v31 = vadd.f32 %v2150_v50, %v2149_v21  ;;  %v2157_v35 = vrot.slane %v2156_v24, 1  ;;  %v3086_v21 = vld [vmem:[#allocation11 + $0xb8] sm:$0xff] }
 0x4b6   : > { %v6434_v50 = vpack.c.bf16 %v3086_v21, %v3070_v16  ;;  %v3117_v16 = vld [vmem:[#allocation11 + $0x1b0] sm:$0xff] }
 0x4b7   : > { %7277 = vrcp.f32 %v2151_v31  ;;  %v2158_v44 = vadd.f32 %v2157_v35, %v2156_v24  ;;  %v3069_v24 = vld [vmem:[#allocation11 + $0x30] sm:$0xff] }
 0x4b8   : > { %v3085_v31 = vld [vmem:[#allocation11 + $0xb0] sm:$0xff]  ;;  %6435 = vmatprep.subr.bf16.mxu1 %v6434_v50 }
 0x4b9   : > { %7279 = vrcp.f32 %v2158_v44 }
 0x4c1   : > { %v7278_v62 = vpop.eup %7277 }
 0x4c2   : > { %v9173_v6 = vmul.f32 %v7278_v62, %v7270_v26  ;;  %v9175_v18 = vmul.f32 %v7278_v62, %v7272_v22 }
 0x4c3   : > { %v7280_v33 = vpop.eup %7279 }
 0x4c4   : > { %9562 = vst [vmem:[#allocation29_spill] sm:$0xff] %v9173_v6  ;;  %9563 = vst [vmem:[#allocation30_spill] sm:$0xff] %v9175_v18  ;;  %v5392_v60 = vpop.f32.mrb[36].mxu1  ;;  %v9177_v7 = vmul.f32 %v7280_v33, %v7274_v1  ;;  %v9179_v51 = vmul.f32 %v7280_v33, %v7276_v37  ;;  %v3064_v37 = vld [vmem:[#allocation11 + $0x8] sm:$0xff] }
 0x4c5   : > { %v5393_v57 = vpop.f32.mrb[37].mxu1  ;;  %v6410_v13 = vpack.c.bf16 %v3080_v19, %v3064_v37  ;;  %v3118_v37 = vld [vmem:[#allocation11 + $0x1b8] sm:$0xff] }
 0x4c6   : > { %9564 = vst [vmem:[#allocation31_spill] sm:$0xff] %v9177_v7  ;;  %9565 = vst [vmem:[#allocation32_spill] sm:$0xff] %v9179_v51  ;;  %3052 = vmatprep.mubr.f32.mxu0 %v9177_v7  ;;  %v5394_v53 = vadd.f32 %v5393_v57, %v5392_v60  ;;  %v3096_v57 = vld [vmem:[#allocation11 + $0x108] sm:$0xff] }
 0x4c7   : > { %3053 = vmatmul.mubr.f32.vlgmr.msra.gmra.mrb[16].mxu0 %v9173_v6  ;;  %6411 = vmatprep.subr.bf16.mxu0 %v6410_v13  ;;  %v3894_v6 = vld [vmem:[#allocation13 + $0x280] sm:$0xff]  ;;  %v3911_v7 = vld [vmem:[#allocation13 + $0x308] sm:$0xff] }
 0x4c8   : > { %v2680_v8 = vadd.f32 %v5394_v53, %v2605_v61  ;;  %3057 = vmatprep.mubr.f32.mxu0 %v9179_v51  ;;  %v5395_v10 = vpop.f32.mrb[38].mxu1  ;;  %6413 = vmatpush1.bf16.msra.mxu0 %v6412_v45  ;;  %v3112_v53 = vld [vmem:[#allocation11 + $0x188] sm:$0xff]  ;;  %v3074_v45 = vld [vmem:[#allocation11 + $0x58] sm:$0xff] }
 0x4c9   : > { %v5396_v26 = vpop.f32.mrb[39].mxu1 }
 0x4ca   : > { %v5397_v48 = vadd.f32 %v5396_v26, %v5395_v10  ;;  %v2755_v22 = vadd.f32 %v5432_v30, %v2680_v8  ;;  %v6436_v30 = vpack.c.bf16 %v3085_v31, %v3069_v24  ;;  %v3102_v8 = vld [vmem:[#allocation11 + $0x138] sm:$0xff]  ;;  %v6414_v26 = vpack.c.bf16 %v3112_v53, %v3096_v57 }
 0x4cb   : > { %3058 = vmatmul.mubr.f32.gmra.mrb[18].mxu0 %v9175_v18  ;;  %v6438_v13 = vpack.c.bf16 %v3118_v37, %v3102_v8  ;;  %v3065_v37 = vld [vmem:[#allocation11 + $0x10] sm:$0xff] }
 0x4cc   : > { %v2685_v59 = vadd.f32 %v5397_v48, %v2610_v41  ;;  %3198 = vmatprep.mubr.f32.mxu0 %v7699_v0  ;;  %6437 = vmatpush1.bf16.msra.mxu1 %v6436_v30  ;;  %v3095_v48 = vld [vmem:[#allocation11 + $0x100] sm:$0xff] }
 0x4cd   : > { %6415 = vmatprep.subr.bf16.mxu0 %v6414_v26  ;;  %6439 = vmatprep.subr.bf16.mxu1 %v6438_v13  ;;  %v3089_v13 = vld [vmem:[#allocation11 + $0xd0] sm:$0xff] }
 0x4ce   : > { %v2760_v1 = vadd.f32 %v5435_v14, %v2685_v59  ;;  %v3111_v59 = vld [vmem:[#allocation11 + $0x180] sm:$0xff] }
 0x4cf   : > { %v6416_v34 = vpack.c.bf16 %v3111_v59, %v3095_v48 }
 0x4d1   : > { %6417 = vmatpush1.bf16.msra.mxu0 %v6416_v34  ;;  %v3073_v34 = vld [vmem:[#allocation11 + $0x50] sm:$0xff] }
 0x4e4   : > { %v5468_v61 = vpop.f32.mrb[40].mxu1 }
 0x4e5   : > { %v5469_v35 = vpop.f32.mrb[41].mxu1 }
 0x4e6   : > { %v5470_v44 = vadd.f32 %v5469_v35, %v5468_v61  ;;  %v3066_v61 = vld [vmem:[#allocation11 + $0x18] sm:$0xff] }
 0x4e7   : > { %v3090_v35 = vld [vmem:[#allocation11 + $0xd8] sm:$0xff] }
 0x4e8   : > { %v2830_v14 = vadd.f32 %v5470_v44, %v2755_v22  ;;  %v5471_v41 = vpop.f32.mrb[42].mxu1  ;;  %v6440_v22 = vpack.c.bf16 %v3117_v16, %v3101_v36  ;;  %v6450_v44 = vpack.c.bf16 %v3090_v35, %v3074_v45  ;;  %v3098_v16 = vld [vmem:[#allocation11 + $0x118] sm:$0xff]  ;;  %v6452_v45 = vpack.c.bf16 %v3089_v13, %v3073_v34  ;;  %v3113_v35 = vld [vmem:[#allocation11 + $0x190] sm:$0xff]  ;;  %v3083_v34 = vld [vmem:[#allocation11 + $0xa0] sm:$0xff] }
 0x4e9   : > { %v5472_v62 = vpop.f32.mrb[43].mxu1  ;;  %v3077_v13 = vld [vmem:[#allocation11 + $0x70] sm:$0xff] }
 0x4ea   : > { %v5473_v33 = vadd.f32 %v5472_v62, %v5471_v41  ;;  %6441 = vmatpush1.bf16.msra.mxu1 %v6440_v22  ;;  %v3114_v22 = vld [vmem:[#allocation11 + $0x198] sm:$0xff] }
 0x4eb   : > { %6451 = vmatprep.subr.bf16.mxu1 %v6450_v44  ;;  %v3121_v44 = vld [vmem:[#allocation11 + $0x1d0] sm:$0xff] }
 0x4ec   : > { %v2835_v60 = vadd.f32 %v5473_v33, %v2760_v1  ;;  %v3082_v1 = vld [vmem:[#allocation11 + $0x98] sm:$0xff] }
 0x4ed   : > { %v6418_v31 = vpack.c.bf16 %v3082_v1, %v3066_v61  ;;  %v3106_v61 = vld [vmem:[#allocation11 + $0x158] sm:$0xff] }
 0x4ee   : > { %v3122_v1 = vld [vmem:[#allocation11 + $0x1d8] sm:$0xff] }
 0x4ef   : > { %6419 = vmatprep.subr.bf16.mxu0 %v6418_v31 }
 0x51a   : > { %v5506_v10 = vpop.f32.mrb[12].mxu0 }
 0x51b   : > { %v5507_v19 = vpop.f32.mrb[13].mxu0 }
 0x51c   : > { %v5508_v21 = vadd.f32 %v5507_v19, %v5506_v10  ;;  %v3081_v19 = vld [vmem:[#allocation11 + $0x90] sm:$0xff] }
 0x51e   : > { %v2905_v50 = vadd.f32 %v5508_v21, %v2830_v14  ;;  %v5509_v24 = vpop.f32.mrb[14].mxu0 }
 0x51f   : > { %v5510_v30 = vpop.f32.mrb[15].mxu0 }
 0x520   : > { %v5511_v41 = vadd.f32 %v5510_v30, %v5509_v24  ;;  %v3097_v24 = vld [vmem:[#allocation11 + $0x110] sm:$0xff] }
 0x521   : > { %v3105_v30 = vld [vmem:[#allocation11 + $0x150] sm:$0xff] }
 0x522   : > { %v2910_v62 = vadd.f32 %v5511_v41, %v2835_v60  ;;  %v6420_v60 = vpack.c.bf16 %v3081_v19, %v3065_v37  ;;  %v6456_v37 = vpack.c.bf16 %v3121_v44, %v3105_v30  ;;  %v3125_v30 = vld [vmem:[#allocation11 + $0x1f0] sm:$0xff] }
 0x55a   : > { %v5544_v33 = vpop.f32.mrb[44].mxu1 }
 0x55b   : > { %v5545_v57 = vpop.f32.mrb[45].mxu1 }
 0x55c   : > { %v5546_v53 = vadd.f32 %v5545_v57, %v5544_v33  ;;  %v6454_v33 = vpack.c.bf16 %v3122_v1, %v3106_v61  ;;  %v3068_v57 = vld [vmem:[#allocation11 + $0x28] sm:$0xff]  ;;  %v3110_v61 = vld [vmem:[#allocation11 + $0x178] sm:$0xff] }
 0x55d   : > { %v3126_v1 = vld [vmem:[#allocation11 + $0x1f8] sm:$0xff] }
 0x55e   : > { %v2980_v8 = vadd.f32 %v5546_v53, %v2905_v50  ;;  %v5547_v10 = vpop.f32.mrb[46].mxu1 }
 0x55f   : > { %v5548_v26 = vpop.f32.mrb[47].mxu1 }
 0x560   : > { %v5549_v48 = vadd.f32 %v5548_v26, %v5547_v10  ;;  %v3084_v10 = vld [vmem:[#allocation11 + $0xa8] sm:$0xff]  ;;  %v3078_v26 = vld [vmem:[#allocation11 + $0x78] sm:$0xff] }
 0x562   : > { %v2985_v59 = vadd.f32 %v5549_v48, %v2910_v62  ;;  %v6422_v62 = vpack.c.bf16 %v3114_v22, %v3098_v16  ;;  %v3094_v48 = vld [vmem:[#allocation11 + $0xf8] sm:$0xff]  ;;  %v6426_v16 = vpack.c.bf16 %v3084_v10, %v3068_v57  ;;  %v3100_v22 = vld [vmem:[#allocation11 + $0x128] sm:$0xff]  ;;  %v3071_v10 = vld [vmem:[#allocation11 + $0x40] sm:$0xff] }
 0x59a   : > { %v5582_v14 = vpop.f32.mrb[16].mxu0 }
 0x59b   : > { %v5583_v36 = vpop.f32.mrb[17].mxu0 }
 0x59c   : > { %v5584_v21 = vadd.f32 %v5583_v36, %v5582_v14  ;;  %v3067_v14 = vld [vmem:[#allocation11 + $0x20] sm:$0xff]  ;;  %v3093_v36 = vld [vmem:[#allocation11 + $0xf0] sm:$0xff] }
 0x59e   : > { %v9186_v50 = vadd.f32 %v5584_v21, %v2980_v8  ;;  %v5585_v31 = vpop.f32.mrb[18].mxu0  ;;  %v6424_v8 = vpack.c.bf16 %v3113_v35, %v3097_v24  ;;  %v6466_v21 = vpack.c.bf16 %v3094_v48, %v3078_v26  ;;  %v3099_v24 = vld [vmem:[#allocation11 + $0x120] sm:$0xff]  ;;  %v3109_v35 = vld [vmem:[#allocation11 + $0x170] sm:$0xff] }
 0x59f   : > { %v5586_v41 = vpop.f32.mrb[19].mxu0  ;;  %v3087_v26 = vld [vmem:[#allocation11 + $0xc0] sm:$0xff] }
 0x5a0   : > { %v5587_v53 = vadd.f32 %v5586_v41, %v5585_v31  ;;  %5260 = vmatmul.mubr.msk.f32.vlgmr.msra.gmra.mrb[20].mxu0 %vm3127_vm1, %v9186_v50  ;;  %5266 = vmatmul.mubr.msk.f32.vlgmr.msra.gmra.mrb[48].mxu1 %vm3127_vm1, %v9186_v50  ;;  %v3115_v31 = vld [vmem:[#allocation11 + $0x1a0] sm:$0xff]  ;;  %v6470_v41 = vpack.c.bf16 %v3126_v1, %v3110_v61 }
 0x5a1   : > { %6421 = vmatpush1.bf16.msra.mxu0 %v6420_v60  ;;  %6453 = vmatpush1.bf16.msra.mxu1 %v6452_v45  ;;  %v6428_v60 = vpack.c.bf16 %v3083_v34, %v3067_v14  ;;  %v6468_v45 = vpack.c.bf16 %v3093_v36, %v3077_v13  ;;  %v6432_v57 = vpack.c.bf16 %v3115_v31, %v3099_v24  ;;  %v3103_v13 = vld [vmem:[#allocation11 + $0x140] sm:$0xff] }
 0x5a2   : > { %v9192_v19 = vadd.f32 %v5587_v53, %v2985_v59  ;;  %3204 = vmatprep.mubr.f32.mxu0 %v7699_v0  ;;  %3435 = vmatprep.mubr.f32.mxu1 %v7699_v0  ;;  %v3116_v59 = vld [vmem:[#allocation11 + $0x1a8] sm:$0xff]  ;;  %v6472_v53 = vpack.c.bf16 %v3125_v30, %v3109_v35  ;;  %v6444_v14 = vpack.c.bf16 %v3087_v26, %v3071_v10  ;;  %v3119_v36 = vld [vmem:[#allocation11 + $0x1c0] sm:$0xff]  ;;  %v3821_v26 = vld [vmem:[#allocation13 + $0x38] sm:$0xff] }
 0x5a3   : > { %6423 = vmatprep.subr.bf16.mxu0 %v6422_v62  ;;  %6455 = vmatprep.subr.bf16.mxu1 %v6454_v33  ;;  %v6430_v44 = vpack.c.bf16 %v3116_v59, %v3100_v22  ;;  %v3072_v62 = vld [vmem:[#allocation11 + $0x48] sm:$0xff]  ;;  %v6448_v22 = vpack.c.bf16 %v3119_v36, %v3103_v13  ;;  %v3075_v61 = vld [vmem:[#allocation11 + $0x60] sm:$0xff]  ;;  %v3825_v13 = vld [vmem:[#allocation13 + $0x58] sm:$0xff] }
 0x5a4   : > { %5261 = vmatmul.mubr.msk.f32.gmra.mrb[22].mxu0 %vm3127_vm1, %v9192_v19  ;;  %5267 = vmatmul.mubr.msk.f32.gmra.mrb[50].mxu1 %vm3127_vm1, %v9192_v19  ;;  %v3088_v33 = vld [vmem:[#allocation11 + $0xc8] sm:$0xff]  ;;  %v3091_v1 = vld [vmem:[#allocation11 + $0xe0] sm:$0xff] }
 0x5a5   : > { %6425 = vmatpush1.bf16.msra.mxu0 %v6424_v8  ;;  %6457 = vmatpush1.bf16.msra.mxu1 %v6456_v37  ;;  %v6442_v48 = vpack.c.bf16 %v3088_v33, %v3072_v62  ;;  %v3104_v8 = vld [vmem:[#allocation11 + $0x148] sm:$0xff]  ;;  %v6460_v24 = vpack.c.bf16 %v3091_v1, %v3075_v61  ;;  %v3107_v35 = vld [vmem:[#allocation11 + $0x160] sm:$0xff]  ;;  %v3829_v61 = vld [vmem:[#allocation13 + $0x78] sm:$0xff] }
 0x5a6   : > { %3275 = vmatprep.mubr.f32.mxu0 %v7699_v0  ;;  %3583 = vmatprep.mubr.f32.mxu1 %v7699_v0  ;;  %v3120_v37 = vld [vmem:[#allocation11 + $0x1c8] sm:$0xff]  ;;  %v3123_v30 = vld [vmem:[#allocation11 + $0x1e0] sm:$0xff] }
 0x5a7   : > { %6427 = vmatprep.subr.bf16.mxu0 %v6426_v16  ;;  %6467 = vmatprep.subr.bf16.mxu1 %v6466_v21  ;;  %v6446_v34 = vpack.c.bf16 %v3120_v37, %v3104_v8  ;;  %v3076_v16 = vld [vmem:[#allocation11 + $0x68] sm:$0xff]  ;;  %v6464_v62 = vpack.c.bf16 %v3123_v30, %v3107_v35  ;;  %v3818_v37 = vld [vmem:[#allocation13 + $0x20] sm:$0xff] }
 0x5a8   : > { %5262 = vmatmul.mubr.msk.f32.vlgmr.msra.gmra.mrb[24].mxu0 %vm3127_vm1, %v9186_v50  ;;  %5270 = vmatmul.mubr.msk.f32.vlgmr.msra.gmra.mrb[52].mxu1 %vm3127_vm1, %v9186_v50  ;;  %v3092_v21 = vld [vmem:[#allocation11 + $0xe8] sm:$0xff]  ;;  %v3830_v30 = vld [vmem:[#allocation13 + $0x80] sm:$0xff] }
 0x5a9   : > { %6429 = vmatpush1.bf16.msra.mxu0 %v6428_v60  ;;  %6469 = vmatpush1.bf16.msra.mxu1 %v6468_v45  ;;  %v6458_v59 = vpack.c.bf16 %v3092_v21, %v3076_v16  ;;  %v3108_v60 = vld [vmem:[#allocation11 + $0x168] sm:$0xff]  ;;  %v3822_v21 = vld [vmem:[#allocation13 + $0x40] sm:$0xff] }
 0x5aa   : > { %3281 = vmatprep.mubr.f32.mxu0 %v7699_v0  ;;  %3589 = vmatprep.mubr.f32.mxu1 %v7699_v0  ;;  %v3124_v45 = vld [vmem:[#allocation11 + $0x1e8] sm:$0xff] }
 0x5ab   : > { %6431 = vmatprep.subr.bf16.mxu0 %v6430_v44  ;;  %6471 = vmatprep.subr.bf16.mxu1 %v6470_v41  ;;  %v6462_v31 = vpack.c.bf16 %v3124_v45, %v3108_v60  ;;  %v3815_v44 = vld [vmem:[#allocation13 + $0x8] sm:$0xff]  ;;  %v3817_v41 = vld [vmem:[#allocation13 + $0x18] sm:$0xff]  ;;  %v3826_v45 = vld [vmem:[#allocation13 + $0x60] sm:$0xff] }
 0x5ac   : > { %5263 = vmatmul.mubr.msk.f32.gmra.mrb[26].mxu0 %vm3127_vm1, %v9192_v19  ;;  %5271 = vmatmul.mubr.msk.f32.gmra.mrb[54].mxu1 %vm3127_vm1, %v9192_v19  ;;  %v6474_v33 = vpack.c.bf16 %v3817_v41, %v3815_v44  ;;  %v3819_v10 = vld [vmem:[#allocation13 + $0x28] sm:$0xff]  ;;  %v3832_v44 = vld [vmem:[#allocation13 + $0x90] sm:$0xff] }
 0x5ad   : > { %6433 = vmatpush1.bf16.msra.mxu0 %v6432_v57  ;;  %6473 = vmatpush1.bf16.msra.mxu1 %v6472_v53  ;;  %v3814_v57 = vld [vmem:[#allocation13] sm:$0xff]  ;;  %v3816_v53 = vld [vmem:[#allocation13 + $0x10] sm:$0xff]  ;;  %v6478_v8 = vpack.c.bf16 %v3821_v26, %v3819_v10  ;;  %v3835_v41 = vld [vmem:[#allocation13 + $0xa8] sm:$0xff] }
 0x5ae   : > { %3352 = vmatprep.mubr.f32.mxu0 %v7699_v0  ;;  %3737 = vmatprep.mubr.f32.mxu1 %v7699_v0  ;;  %v3839_v10 = vld [vmem:[#allocation13 + $0xc8] sm:$0xff]  ;;  %v3841_v26 = vld [vmem:[#allocation13 + $0xd8] sm:$0xff] }
 0x5af   : > { %6443 = vmatprep.subr.bf16.mxu0 %v6442_v48  ;;  %v6476_v48 = vpack.c.bf16 %v3816_v53, %v3814_v57  ;;  %v3834_v57 = vld [vmem:[#allocation13 + $0xa0] sm:$0xff]  ;;  %v3836_v53 = vld [vmem:[#allocation13 + $0xb0] sm:$0xff] }
 0x5b0   : > { %5264 = vmatmul.mubr.msk.f32.vlgmr.msra.gmra.mrb[28].mxu0 %vm3127_vm1, %v9186_v50  ;;  %5274 = vmatmul.mubr.msk.f32.vlgmr.msra.gmra.mrb[56].mxu1 %vm3127_vm1, %v9186_v50 }
 0x5b1   : > { %6445 = vmatpush1.bf16.msra.mxu0 %v6444_v14  ;;  %3358 = vmatprep.mubr.f32.mxu0 %v7699_v0  ;;  %v3820_v14 = vld [vmem:[#allocation13 + $0x30] sm:$0xff] }
 0x5b2   : > { %3743 = vmatprep.mubr.f32.mxu1 %v7699_v0  ;;  %6447 = vmatprep.subr.bf16.mxu0 %v6446_v34  ;;  %v3823_v34 = vld [vmem:[#allocation13 + $0x48] sm:$0xff]  ;;  %v6480_v36 = vpack.c.bf16 %v3820_v14, %v3818_v37  ;;  %v3838_v37 = vld [vmem:[#allocation13 + $0xc0] sm:$0xff]  ;;  %v3840_v14 = vld [vmem:[#allocation13 + $0xd0] sm:$0xff] }
 0x5b3   : > { %v6482_v16 = vpack.c.bf16 %v3825_v13, %v3823_v34  ;;  %v3843_v34 = vld [vmem:[#allocation13 + $0xe8] sm:$0xff]  ;;  %v3845_v13 = vld [vmem:[#allocation13 + $0xf8] sm:$0xff] }
 0x5b4   : > { %5265 = vmatmul.mubr.msk.f32.gmra.mrb[30].mxu0 %vm3127_vm1, %v9192_v19  ;;  %5275 = vmatmul.mubr.msk.f32.gmra.mrb[58].mxu1 %vm3127_vm1, %v9192_v19 }
 0x5b5   : > { %6449 = vmatpush1.bf16.msra.mxu0 %v6448_v22  ;;  %3506 = vmatprep.mubr.f32.mxu0 %v7699_v0  ;;  %v3824_v22 = vld [vmem:[#allocation13 + $0x50] sm:$0xff] }
 0x5b6   : > { %6459 = vmatprep.subr.bf16.mxu0 %v6458_v59  ;;  %v3827_v59 = vld [vmem:[#allocation13 + $0x68] sm:$0xff]  ;;  %v6484_v1 = vpack.c.bf16 %v3824_v22, %v3822_v21  ;;  %v3842_v21 = vld [vmem:[#allocation13 + $0xe0] sm:$0xff]  ;;  %v3844_v22 = vld [vmem:[#allocation13 + $0xf0] sm:$0xff] }
 0x5b7   : > { %v6486_v60 = vpack.c.bf16 %v3829_v61, %v3827_v59  ;;  %v3847_v59 = vld [vmem:[#allocation13 + $0x108] sm:$0xff]  ;;  %v3849_v61 = vld [vmem:[#allocation13 + $0x118] sm:$0xff] }
 0x5b8   : > { %5268 = vmatmul.mubr.msk.f32.vlgmr.msra.gmra.mrb[32].mxu0 %vm3127_vm1, %v9186_v50 }
 0x5b9   : > { %6461 = vmatpush1.bf16.msra.mxu0 %v6460_v24  ;;  %3512 = vmatprep.mubr.f32.mxu0 %v7699_v0  ;;  %v3828_v24 = vld [vmem:[#allocation13 + $0x70] sm:$0xff] }
 0x5ba   : > { %6463 = vmatprep.subr.bf16.mxu0 %v6462_v31  ;;  %v3833_v31 = vld [vmem:[#allocation13 + $0x98] sm:$0xff] }
 0x5bc   : > { %5269 = vmatmul.mubr.msk.f32.gmra.mrb[34].mxu0 %vm3127_vm1, %v9192_v19 }
 0x5bd   : > { %6465 = vmatpush1.bf16.msra.mxu0 %v6464_v62  ;;  %3660 = vmatprep.mubr.f32.mxu0 %v7699_v0  ;;  %v3837_v62 = vld [vmem:[#allocation13 + $0xb8] sm:$0xff] }
 0x5be   : > { %6475 = vmatprep.subr.bf16.mxu0 %v6474_v33  ;;  %v6492_v33 = vpack.c.bf16 %v3832_v44, %v3830_v30  ;;  %v3850_v30 = vld [vmem:[#allocation13 + $0x120] sm:$0xff]  ;;  %v3852_v44 = vld [vmem:[#allocation13 + $0x130] sm:$0xff] }
 0x5c0   : > { %5272 = vmatmul.mubr.msk.f32.vlgmr.msra.gmra.mrb[36].mxu0 %vm3127_vm1, %v9186_v50  ;;  %v3831_v50 = vld [vmem:[#allocation13 + $0x88] sm:$0xff] }
 0x5c1   : > { %3666 = vmatprep.mubr.f32.mxu0 %v7699_v0  ;;  %6477 = vmatpush1.bf16.msra.mxu0 %v6476_v48  ;;  %v6488_v0 = vpack.c.bf16 %v3828_v24, %v3826_v45  ;;  %v6490_v35 = vpack.c.bf16 %v3833_v31, %v3831_v50  ;;  %v6496_v48 = vpack.c.bf16 %v3836_v53, %v3834_v57  ;;  %v3846_v45 = vld [vmem:[#allocation13 + $0x100] sm:$0xff]  ;;  %v3848_v24 = vld [vmem:[#allocation13 + $0x110] sm:$0xff]  ;;  %v3851_v50 = vld [vmem:[#allocation13 + $0x128] sm:$0xff] }
 0x5c2   : > { %6479 = vmatprep.subr.bf16.mxu0 %v6478_v8  ;;  %v6498_v8 = vpack.c.bf16 %v3841_v26, %v3839_v10  ;;  %v3853_v31 = vld [vmem:[#allocation13 + $0x138] sm:$0xff]  ;;  %v3854_v57 = vld [vmem:[#allocation13 + $0x140] sm:$0xff]  ;;  %v3856_v53 = vld [vmem:[#allocation13 + $0x150] sm:$0xff] }
 0x5c3   : > { %v3859_v10 = vld [vmem:[#allocation13 + $0x168] sm:$0xff]  ;;  %v3861_v26 = vld [vmem:[#allocation13 + $0x178] sm:$0xff] }
 0x5c4   : > { %5273 = vmatmul.mubr.msk.f32.gmra.mrb[38].mxu0 %vm3127_vm1, %v9192_v19  ;;  %v6494_v19 = vpack.c.bf16 %v3837_v62, %v3835_v41  ;;  %v3855_v41 = vld [vmem:[#allocation13 + $0x148] sm:$0xff]  ;;  %v3857_v62 = vld [vmem:[#allocation13 + $0x158] sm:$0xff] }
 0x5c5   : > { %6481 = vmatpush1.bf16.msra.mxu0 %v6480_v36  ;;  %v6500_v36 = vpack.c.bf16 %v3840_v14, %v3838_v37  ;;  %v3858_v37 = vld [vmem:[#allocation13 + $0x160] sm:$0xff]  ;;  %v3860_v14 = vld [vmem:[#allocation13 + $0x170] sm:$0xff] }
 0x5c6   : > { %6483 = vmatprep.subr.bf16.mxu0 %v6482_v16  ;;  %v6502_v16 = vpack.c.bf16 %v3845_v13, %v3843_v34  ;;  %v6520_v34 = vpack.c.bf16 %v3860_v14, %v3858_v37  ;;  %v3863_v13 = vld [vmem:[#allocation13 + $0x188] sm:$0xff] }
 0x5c9   : > { %6485 = vmatpush1.bf16.msra.mxu0 %v6484_v1  ;;  %v6504_v1 = vpack.c.bf16 %v3844_v22, %v3842_v21  ;;  %v3862_v21 = vld [vmem:[#allocation13 + $0x180] sm:$0xff]  ;;  %v3864_v22 = vld [vmem:[#allocation13 + $0x190] sm:$0xff] }
 0x5ca   : > { %6487 = vmatprep.subr.bf16.mxu0 %v6486_v60  ;;  %v6506_v60 = vpack.c.bf16 %v3849_v61, %v3847_v59  ;;  %v6524_v59 = vpack.c.bf16 %v3864_v22, %v3862_v21  ;;  %v3867_v61 = vld [vmem:[#allocation13 + $0x1a8] sm:$0xff] }
 0x5cd   : > { %6489 = vmatpush1.bf16.msra.mxu0 %v6488_v0  ;;  %v6508_v0 = vpack.c.bf16 %v3848_v24, %v3846_v45  ;;  %v3866_v45 = vld [vmem:[#allocation13 + $0x1a0] sm:$0xff]  ;;  %v3868_v24 = vld [vmem:[#allocation13 + $0x1b0] sm:$0xff] }
 0x5ce   : > { %6491 = vmatprep.subr.bf16.mxu0 %v6490_v35  ;;  %v6510_v35 = vpack.c.bf16 %v3853_v31, %v3851_v50  ;;  %v6528_v50 = vpack.c.bf16 %v3868_v24, %v3866_v45  ;;  %v3871_v31 = vld [vmem:[#allocation13 + $0x1c8] sm:$0xff] }
 0x5d1   : > { %6493 = vmatpush1.bf16.msra.mxu0 %v6492_v33  ;;  %v6512_v33 = vpack.c.bf16 %v3852_v44, %v3850_v30  ;;  %v3870_v30 = vld [vmem:[#allocation13 + $0x1c0] sm:$0xff]  ;;  %v3872_v44 = vld [vmem:[#allocation13 + $0x1d0] sm:$0xff] }
 0x5d2   : > { %6495 = vmatprep.subr.bf16.mxu0 %v6494_v19  ;;  %v6514_v19 = vpack.c.bf16 %v3857_v62, %v3855_v41  ;;  %v6532_v41 = vpack.c.bf16 %v3872_v44, %v3870_v30  ;;  %v3875_v62 = vld [vmem:[#allocation13 + $0x1e8] sm:$0xff] }
 0x5d5   : > { %6497 = vmatpush1.bf16.msra.mxu0 %v6496_v48  ;;  %v6516_v48 = vpack.c.bf16 %v3856_v53, %v3854_v57  ;;  %v3874_v57 = vld [vmem:[#allocation13 + $0x1e0] sm:$0xff]  ;;  %v3876_v53 = vld [vmem:[#allocation13 + $0x1f0] sm:$0xff] }
 0x5d6   : > { %6499 = vmatprep.subr.bf16.mxu0 %v6498_v8  ;;  %v6518_v8 = vpack.c.bf16 %v3861_v26, %v3859_v10  ;;  %v6536_v10 = vpack.c.bf16 %v3876_v53, %v3874_v57  ;;  %v3879_v26 = vld [vmem:[#allocation13 + $0x208] sm:$0xff]  ;;  %v3885_v53 = vld [vmem:[#allocation13 + $0x238] sm:$0xff] }
 0x5d7   : > { %v3883_v57 = vld [vmem:[#allocation13 + $0x228] sm:$0xff] }
 0x5d9   : > { %6501 = vmatpush1.bf16.msra.mxu0 %v6500_v36  ;;  %v3865_v36 = vld [vmem:[#allocation13 + $0x198] sm:$0xff] }
 0x5da   : > { %6503 = vmatprep.subr.bf16.mxu0 %v6502_v16  ;;  %v6522_v16 = vpack.c.bf16 %v3865_v36, %v3863_v13 }
 0x5dd   : > { %6505 = vmatpush1.bf16.msra.mxu0 %v6504_v1  ;;  %v3869_v1 = vld [vmem:[#allocation13 + $0x1b8] sm:$0xff] }
 0x5de   : > { %6507 = vmatprep.subr.bf16.mxu0 %v6506_v60  ;;  %v6526_v60 = vpack.c.bf16 %v3869_v1, %v3867_v61 }
 0x5e1   : > { %6509 = vmatpush1.bf16.msra.mxu0 %v6508_v0  ;;  %v3873_v0 = vld [vmem:[#allocation13 + $0x1d8] sm:$0xff] }
 0x5e2   : > { %6511 = vmatprep.subr.bf16.mxu0 %v6510_v35  ;;  %v6530_v35 = vpack.c.bf16 %v3873_v0, %v3871_v31 }
 0x5e5   : > { %6513 = vmatpush1.bf16.msra.mxu0 %v6512_v33  ;;  %v3877_v33 = vld [vmem:[#allocation13 + $0x1f8] sm:$0xff] }
 0x5e6   : > { %6515 = vmatprep.subr.bf16.mxu0 %v6514_v19  ;;  %v6534_v19 = vpack.c.bf16 %v3877_v33, %v3875_v62  ;;  %v3878_v62 = vld [vmem:[#allocation13 + $0x200] sm:$0xff]  ;;  %v3880_v33 = vld [vmem:[#allocation13 + $0x210] sm:$0xff] }
 0x5e9   : > { %6517 = vmatpush1.bf16.msra.mxu0 %v6516_v48  ;;  %v3881_v48 = vld [vmem:[#allocation13 + $0x218] sm:$0xff] }
 0x5ea   : > { %6519 = vmatprep.subr.bf16.mxu0 %v6518_v8  ;;  %v6538_v8 = vpack.c.bf16 %v3881_v48, %v3879_v26 }
 0x5ed   : > { %6521 = vmatpush1.bf16.msra.mxu0 %v6520_v34 }
 0x5ee   : > { %6523 = vmatprep.subr.bf16.mxu0 %v6522_v16 }
 0x5f1   : > { %6525 = vmatpush1.bf16.msra.mxu0 %v6524_v59 }
 0x5f2   : > { %6527 = vmatprep.subr.bf16.mxu0 %v6526_v60 }
 0x5f5   : > { %6529 = vmatpush1.bf16.msra.mxu0 %v6528_v50 }
 0x5f6   : > { %6531 = vmatprep.subr.bf16.mxu0 %v6530_v35 }
 0x5f9   : > { %6533 = vmatpush1.bf16.msra.mxu0 %v6532_v41 }
 0x5fa   : > { %6535 = vmatprep.subr.bf16.mxu0 %v6534_v19 }
 0x5fd   : > { %6537 = vmatpush1.bf16.msra.mxu0 %v6536_v10 }
 0x5fe   : > { %6539 = vmatprep.subr.bf16.mxu0 %v6538_v8 }
 0x673   : > { %v3200_v37 = vpop.f32.mrb[20].mxu0  ;;  %v9236_v14 = vpop.f32.mrb[48].mxu1 }
 0x674   : > { %v3201_v34 = vadd.f32 1e-09, %v3200_v37  ;;  %v3202_v13 = vpop.f32.mrb[21].mxu0  ;;  %v9238_v36 = vpop.f32.mrb[49].mxu1  ;;  %v6540_v37 = vpack.c.bf16 %v3880_v33, %v3878_v62 }
 0x675   : > { %v3203_v16 = vadd.f32 1e-09, %v3202_v13 }
 0x676   : > { %7281 = vrcp.f32 %v3201_v34 }
 0x677   : > { %v3206_v21 = vpop.f32.mrb[22].mxu0  ;;  %v9240_v22 = vpop.f32.mrb[50].mxu1  ;;  %7283 = vrcp.f32 %v3203_v16 }
 0x678   : > { %v3207_v59 = vadd.f32 1e-09, %v3206_v21  ;;  %v3208_v61 = vpop.f32.mrb[23].mxu0  ;;  %v9242_v1 = vpop.f32.mrb[51].mxu1  ;;  %v6542_v21 = vpack.c.bf16 %v3885_v53, %v3883_v57  ;;  %v3886_v53 = vld [vmem:[#allocation13 + $0x240] sm:$0xff] }
 0x679   : > { %v3209_v60 = vadd.f32 1e-09, %v3208_v61  ;;  %v3884_v61 = vld [vmem:[#allocation13 + $0x230] sm:$0xff] }
 0x67a   : > { %7285 = vrcp.f32 %v3207_v59  ;;  %v3882_v59 = vld [vmem:[#allocation13 + $0x220] sm:$0xff] }
 0x67b   : > { %v9244_v45 = vpop.f32.mrb[24].mxu0  ;;  %v9246_v24 = vpop.f32.mrb[52].mxu1  ;;  %7287 = vrcp.f32 %v3209_v60  ;;  %v6544_v33 = vpack.c.bf16 %v3884_v61, %v3882_v59  ;;  %v3890_v61 = vld [vmem:[#allocation13 + $0x260] sm:$0xff] }
 0x67c   : > { %v3279_v50 = vpop.f32.mrb[25].mxu0  ;;  %v9248_v31 = vpop.f32.mrb[53].mxu1 }
 0x67d   : > { %v3280_v0 = vadd.f32 1e-09, %v3279_v50  ;;  %v3887_v50 = vld [vmem:[#allocation13 + $0x248] sm:$0xff] }
 0x67f   : > { %v9250_v35 = vpop.f32.mrb[26].mxu0  ;;  %v9252_v30 = vpop.f32.mrb[54].mxu1  ;;  %7289 = vrcp.f32 %v3280_v0  ;;  %v3889_v0 = vld [vmem:[#allocation13 + $0x258] sm:$0xff] }
 0x680   : > { %v9254_v44 = vpop.f32.mrb[27].mxu0  ;;  %v9256_v41 = vpop.f32.mrb[55].mxu1  ;;  %v6546_v57 = vpack.c.bf16 %v3889_v0, %v3887_v50  ;;  %v3897_v50 = vld [vmem:[#allocation13 + $0x298] sm:$0xff] }
 0x681   : > { %v7282_v19 = vpop.eup %7281 }
 0x682   : > { %v7284_v10 = vpop.eup %7283  ;;  %v3751_v16 = vmul.f32 %v7282_v19, %v8250_v38 }
 0x683   : > { %v9258_v26 = vpop.f32.mrb[28].mxu0  ;;  %v9260_v48 = vpop.f32.mrb[56].mxu1  ;;  %v3753_v8 = vmul.f32 %v7284_v10, %v8256_v47 }
 0x684   : > { %9566 = vst [vmem:[#allocation33_spill] sm:$0xff] %v9260_v48  ;;  %v9263_v34 = vpop.f32.mrb[29].mxu0  ;;  %v9265_v13 = vpop.f32.mrb[57].mxu1  ;;  %v3907_v48 = vld [vmem:[#allocation13 + $0x2e8] sm:$0xff] }
 0x685   : > { %v7286_v60 = vpop.eup %7285  ;;  %4402 = vmatprep.mubr.f32.mxu0 %v3753_v8  ;;  %v3888_v8 = vld [vmem:[#allocation13 + $0x250] sm:$0xff] }
 0x686   : > { %v7288_v4 = vpop.eup %7287  ;;  %4403 = vmatmul.mubr.f32.vlgmr.msra.gmra.mrb[40].mxu0 %v3751_v16  ;;  %v3783_v19 = vmul.f32 %v7286_v60, %v8253_v39  ;;  %v3891_v16 = vld [vmem:[#allocation13 + $0x268] sm:$0xff]  ;;  %v3892_v39 = vld [vmem:[#allocation13 + $0x270] sm:$0xff] }
 0x687   : > { %6541 = vmatpush1.bf16.msra.mxu0 %v6540_v37  ;;  %v9268_v2 = vpop.f32.mrb[30].mxu0  ;;  %v9270_v47 = vpop.f32.mrb[58].mxu1  ;;  %v3785_v62 = vmul.f32 %v7288_v4, %v8259_v49  ;;  %v3893_v37 = vld [vmem:[#allocation13 + $0x278] sm:$0xff]  ;;  %v6548_v49 = vpack.c.bf16 %v3888_v8, %v3886_v53  ;;  %v3895_v60 = vld [vmem:[#allocation13 + $0x288] sm:$0xff] }
 0x688   : > { %9567 = vst [vmem:[#allocation34_spill] sm:$0xff] %v9270_v47  ;;  %v9273_v10 = vpop.f32.mrb[31].mxu0  ;;  %v9275_v38 = vpop.f32.mrb[59].mxu1  ;;  %6543 = vmatprep.subr.bf16.mxu0 %v6542_v21  ;;  %v6550_v21 = vpack.c.bf16 %v3893_v37, %v3891_v16  ;;  %v3901_v53 = vld [vmem:[#allocation13 + $0x2b8] sm:$0xff]  ;;  %v3903_v47 = vld [vmem:[#allocation13 + $0x2c8] sm:$0xff] }
 0x689   : > { %9568 = vst [vmem:[#allocation35_spill] sm:$0xff] %v9275_v38  ;;  %4408 = vmatprep.mubr.f32.mxu0 %v3785_v62  ;;  %v7290_v18 = vpop.eup %7289  ;;  %v6552_v62 = vpack.c.bf16 %v3892_v39, %v3890_v61  ;;  %v3905_v61 = vld [vmem:[#allocation13 + $0x2d8] sm:$0xff]  ;;  %v3904_v38 = vld [vmem:[#allocation13 + $0x2d0] sm:$0xff] }
 0x68a   : > { %4409 = vmatmul.mubr.f32.gmra.mrb[42].mxu0 %v3783_v19  ;;  %v3757_v4 = vmul.f32 %v7290_v18, %v8310_v23  ;;  %v3896_v23 = vld [vmem:[#allocation13 + $0x290] sm:$0xff]  ;;  %v3899_v18 = vld [vmem:[#allocation13 + $0x2a8] sm:$0xff] }
 0x68b   : > { %6545 = vmatpush1.bf16.msra.mxu0 %v6544_v33  ;;  %v9278_v51 = vpop.f32.mrb[32].mxu0  ;;  %v6554_v33 = vpack.c.bf16 %v3897_v50, %v3895_v60  ;;  %v6556_v8 = vpack.c.bf16 %v3896_v23, %v3894_v6  ;;  %v6558_v37 = vpack.c.bf16 %v3901_v53, %v3899_v18  ;;  %v6562_v50 = vpack.c.bf16 %v3905_v61, %v3903_v47  ;;  %v3909_v6 = vld [vmem:[#allocation13 + $0x2f8] sm:$0xff]  ;;  %v3906_v18 = vld [vmem:[#allocation13 + $0x2e0] sm:$0xff]  ;;  %v3908_v53 = vld [vmem:[#allocation13 + $0x2f0] sm:$0xff] }
 0x68c   : > { %v9281_v59 = vpop.f32.mrb[33].mxu0  ;;  %6547 = vmatprep.subr.bf16.mxu0 %v6546_v57  ;;  %4479 = vmatprep.mubr.f32.mxu0 %v3757_v4  ;;  %v3898_v4 = vld [vmem:[#allocation13 + $0x2a0] sm:$0xff]  ;;  %v3917_v47 = vld [vmem:[#allocation13 + $0x338] sm:$0xff] }
 0x68f   : > { %6549 = vmatpush1.bf16.msra.mxu0 %v6548_v49  ;;  %v9283_v0 = vpop.f32.mrb[34].mxu0  ;;  %v3900_v49 = vld [vmem:[#allocation13 + $0x2b0] sm:$0xff] }
 0x690   : > { %v9285_v19 = vpop.f32.mrb[35].mxu0  ;;  %6551 = vmatprep.subr.bf16.mxu0 %v6550_v21  ;;  %v6560_v21 = vpack.c.bf16 %v3900_v49, %v3898_v4  ;;  %v6570_v4 = vpack.c.bf16 %v3913_v42, %v3911_v7  ;;  %v3910_v49 = vld [vmem:[#allocation13 + $0x300] sm:$0xff]  ;;  %v3925_v42 = vld [vmem:[#allocation13 + $0x378] sm:$0xff] }
 0x691   : > { %v6572_v61 = vpack.c.bf16 %v3912_v43, %v3910_v49  ;;  %v3924_v43 = vld [vmem:[#allocation13 + $0x370] sm:$0xff]  ;;  %v3929_v49 = vld [vmem:[#allocation13 + $0x398] sm:$0xff] }
 0x693   : > { %6553 = vmatpush1.bf16.msra.mxu0 %v6552_v62  ;;  %v9287_v57 = vpop.f32.mrb[36].mxu0  ;;  %v3902_v62 = vld [vmem:[#allocation13 + $0x2c0] sm:$0xff] }
 0x694   : > { %v9289_v16 = vpop.f32.mrb[37].mxu0  ;;  %6555 = vmatprep.subr.bf16.mxu0 %v6554_v33  ;;  %v6564_v23 = vpack.c.bf16 %v3904_v38, %v3902_v62  ;;  %v6566_v33 = vpack.c.bf16 %v3909_v6, %v3907_v48  ;;  %v3916_v38 = vld [vmem:[#allocation13 + $0x330] sm:$0xff]  ;;  %v3921_v48 = vld [vmem:[#allocation13 + $0x358] sm:$0xff] }
 0x697   : > { %6557 = vmatpush1.bf16.msra.mxu0 %v6556_v8  ;;  %v9291_v39 = vpop.f32.mrb[38].mxu0  ;;  %v6568_v8 = vpack.c.bf16 %v3908_v53, %v3906_v18  ;;  %v3920_v18 = vld [vmem:[#allocation13 + $0x350] sm:$0xff] }
 0x698   : > { %v9293_v60 = vpop.f32.mrb[39].mxu0  ;;  %6559 = vmatprep.subr.bf16.mxu0 %v6558_v37  ;;  %v3915_v37 = vld [vmem:[#allocation13 + $0x328] sm:$0xff] }
 0x699   : > { %v6574_v25 = vpack.c.bf16 %v3917_v47, %v3915_v37 }
 0x69b   : > { %6561 = vmatpush1.bf16.msra.mxu0 %v6560_v21  ;;  %v3914_v21 = vld [vmem:[#allocation13 + $0x320] sm:$0xff] }
 0x69c   : > { %6563 = vmatprep.subr.bf16.mxu0 %v6562_v50  ;;  %v3919_v50 = vld [vmem:[#allocation13 + $0x348] sm:$0xff]  ;;  %v6576_v62 = vpack.c.bf16 %v3916_v38, %v3914_v21  ;;  %v3928_v21 = vld [vmem:[#allocation13 + $0x390] sm:$0xff]  ;;  %v3933_v38 = vld [vmem:[#allocation13 + $0x3b8] sm:$0xff] }
 0x69d   : > { %v6578_v6 = vpack.c.bf16 %v3921_v48, %v3919_v50  ;;  %v3278_v50 = vadd.f32 1e-09, %v9244_v45 }
 0x69f   : > { %6565 = vmatpush1.bf16.msra.mxu0 %v6564_v23  ;;  %v3918_v23 = vld [vmem:[#allocation13 + $0x340] sm:$0xff]  ;;  %7291 = vrcp.f32 %v3278_v50 }
 0x6a0   : > { %6567 = vmatprep.subr.bf16.mxu0 %v6566_v33  ;;  %v3923_v33 = vld [vmem:[#allocation13 + $0x368] sm:$0xff]  ;;  %v6580_v7 = vpack.c.bf16 %v3920_v18, %v3918_v23  ;;  %v3930_v23 = vld [vmem:[#allocation13 + $0x3a0] sm:$0xff]  ;;  %v3932_v18 = vld [vmem:[#allocation13 + $0x3b0] sm:$0xff] }
 0x6a1   : > { %v6582_v53 = vpack.c.bf16 %v3925_v42, %v3923_v33  ;;  %v3935_v33 = vld [vmem:[#allocation13 + $0x3c8] sm:$0xff]  ;;  %v3937_v42 = vld [vmem:[#allocation13 + $0x3d8] sm:$0xff]  ;;  %v3942_v50 = vld [vmem:[#allocation13 + $0x400] sm:$0xff] }
 0x6a2   : > { %v6594_v45 = vpack.c.bf16 %v3937_v42, %v3935_v33 }
 0x6a3   : > { %6569 = vmatpush1.bf16.msra.mxu0 %v6568_v8  ;;  %v3922_v8 = vld [vmem:[#allocation13 + $0x360] sm:$0xff] }
 0x6a4   : > { %6571 = vmatprep.subr.bf16.mxu0 %v6570_v4  ;;  %v3927_v4 = vld [vmem:[#allocation13 + $0x388] sm:$0xff]  ;;  %v6584_v37 = vpack.c.bf16 %v3924_v43, %v3922_v8  ;;  %v3357_v8 = vadd.f32 1e-09, %v9263_v34  ;;  %v3934_v43 = vld [vmem:[#allocation13 + $0x3c0] sm:$0xff] }
 0x6a5   : > { %v6586_v47 = vpack.c.bf16 %v3929_v49, %v3927_v4  ;;  %v3936_v4 = vld [vmem:[#allocation13 + $0x3d0] sm:$0xff]  ;;  %v3939_v49 = vld [vmem:[#allocation13 + $0x3e8] sm:$0xff] }
 0x6a7   : > { %6573 = vmatpush1.bf16.msra.mxu0 %v6572_v61  ;;  %v3926_v61 = vld [vmem:[#allocation13 + $0x380] sm:$0xff] }
 0x6a8   : > { %6575 = vmatprep.subr.bf16.mxu0 %v6574_v25  ;;  %v3931_v25 = vld [vmem:[#allocation13 + $0x3a8] sm:$0xff]  ;;  %v6588_v48 = vpack.c.bf16 %v3928_v21, %v3926_v61  ;;  %v3938_v61 = vld [vmem:[#allocation13 + $0x3e0] sm:$0xff]  ;;  %v3940_v21 = vld [vmem:[#allocation13 + $0x3f0] sm:$0xff] }
 0x6ab   : > { %6577 = vmatpush1.bf16.msra.mxu0 %v6576_v62  ;;  %v3286_v62 = vadd.f32 1e-09, %v9254_v44  ;;  %v3941_v44 = vld [vmem:[#allocation13 + $0x3f8] sm:$0xff] }
 0x6ac   : > { %6579 = vmatprep.subr.bf16.mxu0 %v6578_v6  ;;  %v6590_v6 = vpack.c.bf16 %v3933_v38, %v3931_v25  ;;  %v3945_v25 = vld [vmem:[#allocation13 + $0x418] sm:$0xff]  ;;  %v6600_v38 = vpack.c.bf16 %v3940_v21, %v3938_v61  ;;  %v3950_v21 = vld [vmem:[#allocation13 + $0x440] sm:$0xff] }
 0x6ad   : > { %7293 = vrcp.f32 %v3286_v62  ;;  %v7292_v62 = vpop.eup %7291 }
 0x6ae   : > { %v3755_v42 = vmul.f32 %v7292_v62, %v8298_v52  ;;  %v3952_v52 = vld [vmem:[#allocation13 + $0x450] sm:$0xff]  ;;  %v3959_v62 = vld [vmem:[#allocation13 + $0x488] sm:$0xff] }
 0x6af   : > { %6581 = vmatpush1.bf16.msra.mxu0 %v6580_v7  ;;  %v3284_v7 = vadd.f32 1e-09, %v9250_v35  ;;  %v3943_v35 = vld [vmem:[#allocation13 + $0x408] sm:$0xff] }
 0x6b0   : > { %6583 = vmatprep.subr.bf16.mxu0 %v6582_v53  ;;  %v6592_v53 = vpack.c.bf16 %v3932_v18, %v3930_v23  ;;  %v6602_v34 = vpack.c.bf16 %v3945_v25, %v3943_v35  ;;  %v3949_v23 = vld [vmem:[#allocation13 + $0x438] sm:$0xff]  ;;  %v3955_v25 = vld [vmem:[#allocation13 + $0x468] sm:$0xff] }
 0x6b1   : > { %7295 = vrcp.f32 %v3284_v7 }
 0x6b2   : > { %7297 = vrcp.f32 %v3357_v8  ;;  %v3948_v8 = vld [vmem:[#allocation13 + $0x430] sm:$0xff] }
 0x6b3   : > { %6585 = vmatpush1.bf16.msra.mxu0 %v6584_v37  ;;  %v6596_v37 = vpack.c.bf16 %v3936_v4, %v3934_v43  ;;  %v3951_v4 = vld [vmem:[#allocation13 + $0x448] sm:$0xff] }
 0x6b4   : > { %6587 = vmatprep.subr.bf16.mxu0 %v6586_v47  ;;  %v6598_v47 = vpack.c.bf16 %v3941_v44, %v3939_v49  ;;  %v3953_v49 = vld [vmem:[#allocation13 + $0x458] sm:$0xff] }
 0x6b5   : > { %v6610_v61 = vpack.c.bf16 %v3953_v49, %v3951_v4  ;;  %v3969_v4 = vld [vmem:[#allocation13 + $0x4d8] sm:$0xff] }
 0x6b7   : > { %6589 = vmatpush1.bf16.msra.mxu0 %v6588_v48  ;;  %v3944_v48 = vld [vmem:[#allocation13 + $0x410] sm:$0xff]  ;;  %v7294_v18 = vpop.eup %7293 }
 0x6b8   : > { %6591 = vmatprep.subr.bf16.mxu0 %v6590_v6  ;;  %v3947_v6 = vld [vmem:[#allocation13 + $0x428] sm:$0xff]  ;;  %v6604_v33 = vpack.c.bf16 %v3944_v48, %v3942_v50  ;;  %v3789_v43 = vmul.f32 %v7294_v18, %v8313_v29  ;;  %v6612_v29 = vpack.c.bf16 %v3952_v52, %v3950_v21  ;;  %v3954_v50 = vld [vmem:[#allocation13 + $0x460] sm:$0xff]  ;;  %v3956_v48 = vld [vmem:[#allocation13 + $0x470] sm:$0xff] }
 0x6b9   : > { %v6606_v7 = vpack.c.bf16 %v3949_v23, %v3947_v6  ;;  %v3961_v6 = vld [vmem:[#allocation13 + $0x498] sm:$0xff]  ;;  %v3958_v18 = vld [vmem:[#allocation13 + $0x480] sm:$0xff] }
 0x6ba   : > { %v6618_v23 = vpack.c.bf16 %v3961_v6, %v3959_v62  ;;  %v3973_v21 = vld [vmem:[#allocation13 + $0x4f8] sm:$0xff]  ;;  %v3974_v62 = vld [vmem:[#allocation13 + $0x500] sm:$0xff]  ;;  %v3976_v6 = vld [vmem:[#allocation13 + $0x510] sm:$0xff] }
 0x6bb   : > { %6593 = vmatpush1.bf16.msra.mxu0 %v6592_v53  ;;  %v3946_v53 = vld [vmem:[#allocation13 + $0x420] sm:$0xff] }
 0x6bc   : > { %6595 = vmatprep.subr.bf16.mxu0 %v6594_v45  ;;  %v7296_v45 = vpop.eup %7295 }
 0x6bd   : > { %v7298_v44 = vpop.eup %7297 }
 0x6be   : > { %v3761_v35 = vmul.f32 %v7298_v44, %v8444_v27  ;;  %v3965_v27 = vld [vmem:[#allocation13 + $0x4b8] sm:$0xff] }
 0x6bf   : > { %6597 = vmatpush1.bf16.msra.mxu0 %v6596_v37  ;;  %v6608_v37 = vpack.c.bf16 %v3948_v8, %v3946_v53  ;;  %v3962_v8 = vld [vmem:[#allocation13 + $0x4a0] sm:$0xff] }
 0x6c0   : > { %6599 = vmatprep.subr.bf16.mxu0 %v6598_v47  ;;  %v3787_v47 = vmul.f32 %v7296_v45, %v8301_v54  ;;  %v6616_v54 = vpack.c.bf16 %v3956_v48, %v3954_v50  ;;  %v3964_v45 = vld [vmem:[#allocation13 + $0x4b0] sm:$0xff] }
 0x6c1   : > { %v6624_v49 = vpack.c.bf16 %v3964_v45, %v3962_v8 }
 0x6c3   : > { %6601 = vmatpush1.bf16.msra.mxu0 %v6600_v38  ;;  %v3957_v38 = vld [vmem:[#allocation13 + $0x478] sm:$0xff] }
 0x6c4   : > { %6603 = vmatprep.subr.bf16.mxu0 %v6602_v34  ;;  %v6614_v34 = vpack.c.bf16 %v3957_v38, %v3955_v25  ;;  %v3970_v25 = vld [vmem:[#allocation13 + $0x4e0] sm:$0xff]  ;;  %v3972_v38 = vld [vmem:[#allocation13 + $0x4f0] sm:$0xff] }
 0x6c5   : > { %v6632_v50 = vpack.c.bf16 %v3972_v38, %v3970_v25 }
 0x6c6   : > { %4480 = vmatmul.mubr.f32.vlgmr.msra.gmra.mrb[40].mxu0 %v3755_v42  ;;  %v3963_v42 = vld [vmem:[#allocation13 + $0x4a8] sm:$0xff] }
 0x6c7   : > { %4485 = vmatprep.mubr.f32.mxu0 %v3789_v43  ;;  %6605 = vmatpush1.bf16.msra.mxu0 %v6604_v33  ;;  %v3960_v33 = vld [vmem:[#allocation13 + $0x490] sm:$0xff]  ;;  %v6622_v53 = vpack.c.bf16 %v3965_v27, %v3963_v42  ;;  %v3967_v43 = vld [vmem:[#allocation13 + $0x4c8] sm:$0xff]  ;;  %v3978_v42 = vld [vmem:[#allocation13 + $0x520] sm:$0xff] }
 0x6c8   : > { %6607 = vmatprep.subr.bf16.mxu0 %v6606_v7  ;;  %v6620_v7 = vpack.c.bf16 %v3960_v33, %v3958_v18  ;;  %v6626_v44 = vpack.c.bf16 %v3969_v4, %v3967_v43  ;;  %v6636_v18 = vpack.c.bf16 %v3976_v6, %v3974_v62  ;;  %v3980_v27 = vld [vmem:[#allocation13 + $0x530] sm:$0xff]  ;;  %v3982_v43 = vld [vmem:[#allocation13 + $0x540] sm:$0xff]  ;;  %v3355_v62 = vadd.f32 1e-09, %v9258_v26 }
 0x6c9   : > { %v6640_v8 = vpack.c.bf16 %v3980_v27, %v3978_v42  ;;  %v3984_v4 = vld [vmem:[#allocation13 + $0x550] sm:$0xff]  ;;  %v3999_v42 = vld [vmem:[#allocation13 + $0x5c8] sm:$0xff]  ;;  %v4001_v27 = vld [vmem:[#allocation13 + $0x5d8] sm:$0xff] }
 0x6ca   : > { %4486 = vmatmul.mubr.f32.gmra.mrb[42].mxu0 %v3787_v47  ;;  %v3968_v47 = vld [vmem:[#allocation13 + $0x4d0] sm:$0xff]  ;;  %7299 = vrcp.f32 %v3355_v62  ;;  %v6658_v26 = vpack.c.bf16 %v4001_v27, %v3999_v42  ;;  %v4017_v42 = vld [vmem:[#allocation13 + $0x658] sm:$0xff] }
 0x6cb   : > { %6609 = vmatpush1.bf16.msra.mxu0 %v6608_v37  ;;  %4556 = vmatprep.mubr.f32.mxu0 %v3761_v35  ;;  %v3966_v37 = vld [vmem:[#allocation13 + $0x4c0] sm:$0xff] }
 0x6cc   : > { %6611 = vmatprep.subr.bf16.mxu0 %v6610_v61  ;;  %v3971_v61 = vld [vmem:[#allocation13 + $0x4e8] sm:$0xff]  ;;  %v6628_v52 = vpack.c.bf16 %v3968_v47, %v3966_v37  ;;  %v6644_v37 = vpack.c.bf16 %v3984_v4, %v3982_v43  ;;  %v4000_v43 = vld [vmem:[#allocation13 + $0x5d0] sm:$0xff] }
 0x6cd   : > { %v6630_v35 = vpack.c.bf16 %v3973_v21, %v3971_v61  ;;  %v3986_v61 = vld [vmem:[#allocation13 + $0x560] sm:$0xff]  ;;  %v3988_v21 = vld [vmem:[#allocation13 + $0x570] sm:$0xff]  ;;  %v4003_v4 = vld [vmem:[#allocation13 + $0x5e8] sm:$0xff] }
 0x6ce   : > { %v6648_v25 = vpack.c.bf16 %v3988_v21, %v3986_v61  ;;  %v4009_v61 = vld [vmem:[#allocation13 + $0x618] sm:$0xff] }
 0x6cf   : > { %6613 = vmatpush1.bf16.msra.mxu0 %v6612_v29  ;;  %v3975_v29 = vld [vmem:[#allocation13 + $0x508] sm:$0xff] }
 0x6d0   : > { %6615 = vmatprep.subr.bf16.mxu0 %v6614_v34  ;;  %v3977_v34 = vld [vmem:[#allocation13 + $0x518] sm:$0xff] }
 0x6d1   : > { %v6634_v48 = vpack.c.bf16 %v3977_v34, %v3975_v29  ;;  %v3990_v29 = vld [vmem:[#allocation13 + $0x580] sm:$0xff]  ;;  %v3992_v34 = vld [vmem:[#allocation13 + $0x590] sm:$0xff] }
 0x6d2   : > { %v6652_v6 = vpack.c.bf16 %v3992_v34, %v3990_v29  ;;  %v4013_v29 = vld [vmem:[#allocation13 + $0x638] sm:$0xff] }
 0x6d3   : > { %6617 = vmatpush1.bf16.msra.mxu0 %v6616_v54  ;;  %v3979_v54 = vld [vmem:[#allocation13 + $0x528] sm:$0xff] }
 0x6d4   : > { %6619 = vmatprep.subr.bf16.mxu0 %v6618_v23  ;;  %v3981_v23 = vld [vmem:[#allocation13 + $0x538] sm:$0xff] }
 0x6d5   : > { %v6638_v33 = vpack.c.bf16 %v3981_v23, %v3979_v54  ;;  %v3363_v54 = vadd.f32 1e-09, %v9273_v10  ;;  %v4005_v10 = vld [vmem:[#allocation13 + $0x5f8] sm:$0xff] }
 0x6d7   : > { %6621 = vmatpush1.bf16.msra.mxu0 %v6620_v7  ;;  %v3983_v7 = vld [vmem:[#allocation13 + $0x548] sm:$0xff]  ;;  %7301 = vrcp.f32 %v3363_v54  ;;  %v4012_v54 = vld [vmem:[#allocation13 + $0x630] sm:$0xff] }
 0x6d8   : > { %6623 = vmatprep.subr.bf16.mxu0 %v6622_v53  ;;  %v3985_v53 = vld [vmem:[#allocation13 + $0x558] sm:$0xff] }
 0x6d9   : > { %v6642_v45 = vpack.c.bf16 %v3985_v53, %v3983_v7  ;;  %v3361_v7 = vadd.f32 1e-09, %v9268_v2  ;;  %v4007_v2 = vld [vmem:[#allocation13 + $0x608] sm:$0xff] }
 0x6db   : > { %6625 = vmatpush1.bf16.msra.mxu0 %v6624_v49  ;;  %v3987_v49 = vld [vmem:[#allocation13 + $0x568] sm:$0xff]  ;;  %7303 = vrcp.f32 %v3361_v7 }
 0x6dc   : > { %6627 = vmatprep.subr.bf16.mxu0 %v6626_v44  ;;  %v3989_v44 = vld [vmem:[#allocation13 + $0x578] sm:$0xff] }
 0x6dd   : > { %v6646_v47 = vpack.c.bf16 %v3989_v44, %v3987_v49  ;;  %v6662_v44 = vpack.c.bf16 %v4005_v10, %v4003_v4  ;;  %v4021_v4 = vld [vmem:[#allocation13 + $0x678] sm:$0xff] }
 0x6df   : > { %6629 = vmatpush1.bf16.msra.mxu0 %v6628_v52  ;;  %v3991_v52 = vld [vmem:[#allocation13 + $0x588] sm:$0xff] }
 0x6e0   : > { %6631 = vmatprep.subr.bf16.mxu0 %v6630_v35  ;;  %v3993_v35 = vld [vmem:[#allocation13 + $0x598] sm:$0xff] }
 0x6e1   : > { %v6650_v38 = vpack.c.bf16 %v3993_v35, %v3991_v52  ;;  %v4006_v52 = vld [vmem:[#allocation13 + $0x600] sm:$0xff]  ;;  %v4008_v35 = vld [vmem:[#allocation13 + $0x610] sm:$0xff] }
 0x6e3   : > { %6633 = vmatpush1.bf16.msra.mxu0 %v6632_v50  ;;  %v3995_v50 = vld [vmem:[#allocation13 + $0x5a8] sm:$0xff] }
 0x6e4   : > { %6635 = vmatprep.subr.bf16.mxu0 %v6634_v48  ;;  %v3997_v48 = vld [vmem:[#allocation13 + $0x5b8] sm:$0xff] }
 0x6e5   : > { %v6654_v23 = vpack.c.bf16 %v3997_v48, %v3995_v50  ;;  %v6668_v50 = vpack.c.bf16 %v4008_v35, %v4006_v52 }
 0x6e7   : > { %6637 = vmatpush1.bf16.msra.mxu0 %v6636_v18  ;;  %v3994_v18 = vld [vmem:[#allocation13 + $0x5a0] sm:$0xff] }
 0x6e8   : > { %6639 = vmatprep.subr.bf16.mxu0 %v6638_v33  ;;  %v3996_v33 = vld [vmem:[#allocation13 + $0x5b0] sm:$0xff] }
 0x6e9   : > { %v6656_v53 = vpack.c.bf16 %v3996_v33, %v3994_v18  ;;  %v4015_v33 = vld [vmem:[#allocation13 + $0x648] sm:$0xff] }
 0x6eb   : > { %6641 = vmatpush1.bf16.msra.mxu0 %v6640_v8  ;;  %v3434_v8 = vadd.f32 1e-09, %v9238_v36  ;;  %v6666_v36 = vpack.c.bf16 %v4009_v61, %v4007_v2  ;;  %v4022_v61 = vld [vmem:[#allocation13 + $0x680] sm:$0xff] }
 0x6ec   : > { %6643 = vmatprep.subr.bf16.mxu0 %v6642_v45  ;;  %v3998_v45 = vld [vmem:[#allocation13 + $0x5c0] sm:$0xff] }
 0x6ed   : > { %v6660_v49 = vpack.c.bf16 %v4000_v43, %v3998_v45  ;;  %7305 = vrcp.f32 %v3434_v8  ;;  %v6674_v8 = vpack.c.bf16 %v4017_v42, %v4015_v33  ;;  %v4019_v43 = vld [vmem:[#allocation13 + $0x668] sm:$0xff]  ;;  %v4034_v42 = vld [vmem:[#allocation13 + $0x6e0] sm:$0xff] }
 0x6ee   : > { %v6678_v10 = vpack.c.bf16 %v4021_v4, %v4019_v43  ;;  %v4043_v43 = vld [vmem:[#allocation13 + $0x728] sm:$0xff]  ;;  %v4045_v4 = vld [vmem:[#allocation13 + $0x738] sm:$0xff] }
 0x6ef   : > { %6645 = vmatpush1.bf16.msra.mxu0 %v6644_v37  ;;  %v4002_v37 = vld [vmem:[#allocation13 + $0x5e0] sm:$0xff] }
 0x6f0   : > { %6647 = vmatprep.subr.bf16.mxu0 %v6646_v47  ;;  %v4004_v47 = vld [vmem:[#allocation13 + $0x5f0] sm:$0xff] }
 0x6f1   : > { %v6664_v21 = vpack.c.bf16 %v4004_v47, %v4002_v37  ;;  %v4023_v37 = vld [vmem:[#allocation13 + $0x688] sm:$0xff]  ;;  %v4025_v47 = vld [vmem:[#allocation13 + $0x698] sm:$0xff] }
 0x6f2   : > { %v6682_v2 = vpack.c.bf16 %v4025_v47, %v4023_v37  ;;  %v4047_v37 = vld [vmem:[#allocation13 + $0x748] sm:$0xff]  ;;  %v4049_v47 = vld [vmem:[#allocation13 + $0x758] sm:$0xff] }
 0x6f3   : > { %6649 = vmatpush1.bf16.msra.mxu0 %v6648_v25  ;;  %v7300_v25 = vpop.eup %7299 }
 0x6f4   : > { %6651 = vmatprep.subr.bf16.mxu0 %v6650_v38  ;;  %v4011_v38 = vld [vmem:[#allocation13 + $0x628] sm:$0xff]  ;;  %v7302_v34 = vpop.eup %7301  ;;  %v3759_v48 = vmul.f32 %v7300_v25, %v8438_v11  ;;  %v4016_v11 = vld [vmem:[#allocation13 + $0x650] sm:$0xff]  ;;  %v4026_v25 = vld [vmem:[#allocation13 + $0x6a0] sm:$0xff] }
 0x6f5   : > { %v6670_v62 = vpack.c.bf16 %v4013_v29, %v4011_v38  ;;  %v3793_v18 = vmul.f32 %v7302_v34, %v8447_v32  ;;  %v4028_v38 = vld [vmem:[#allocation13 + $0x6b0] sm:$0xff]  ;;  %v4031_v29 = vld [vmem:[#allocation13 + $0x6c8] sm:$0xff]  ;;  %v4033_v34 = vld [vmem:[#allocation13 + $0x6d8] sm:$0xff] }
 0x6f7   : > { %6653 = vmatpush1.bf16.msra.mxu0 %v6652_v6  ;;  %v4010_v6 = vld [vmem:[#allocation13 + $0x620] sm:$0xff] }
 0x6f8   : > { %6655 = vmatprep.subr.bf16.mxu0 %v6654_v23  ;;  %v7304_v23 = vpop.eup %7303  ;;  %v6672_v7 = vpack.c.bf16 %v4012_v54, %v4010_v6  ;;  %v4032_v6 = vld [vmem:[#allocation13 + $0x6d0] sm:$0xff]  ;;  %v4035_v54 = vld [vmem:[#allocation13 + $0x6e8] sm:$0xff] }
 0x6f9   : > { %v7306_v27 = vpop.eup %7305 }
 0x6fa   : > { %v3765_v45 = vmul.f32 %v7306_v27, %v8580_v40  ;;  %v4029_v40 = vld [vmem:[#allocation13 + $0x6b8] sm:$0xff]  ;;  %v4036_v27 = vld [vmem:[#allocation13 + $0x6f0] sm:$0xff] }
 0x6fb   : > { %6657 = vmatpush1.bf16.msra.mxu0 %v6656_v53  ;;  %v3791_v53 = vmul.f32 %v7304_v23, %v8441_v28  ;;  %v4037_v23 = vld [vmem:[#allocation13 + $0x6f8] sm:$0xff] }
 0x6fc   : > { %6659 = vmatprep.subr.bf16.mxu0 %v6658_v26  ;;  %v4014_v26 = vld [vmem:[#allocation13 + $0x640] sm:$0xff]  ;;  %v6694_v33 = vpack.c.bf16 %v4037_v23, %v4035_v54  ;;  %v4059_v54 = vld [vmem:[#allocation13 + $0x7a8] sm:$0xff]  ;;  %v4061_v23 = vld [vmem:[#allocation13 + $0x7b8] sm:$0xff] }
 0x6fd   : > { %v6676_v32 = vpack.c.bf16 %v4016_v11, %v4014_v26  ;;  %v4038_v11 = vld [vmem:[#allocation13 + $0x700] sm:$0xff] }
 0x6ff   : > { %6661 = vmatpush1.bf16.msra.mxu0 %v6660_v49  ;;  %v4018_v49 = vld [vmem:[#allocation13 + $0x660] sm:$0xff] }
 0x700   : > { %6663 = vmatprep.subr.bf16.mxu0 %v6662_v44  ;;  %v4020_v44 = vld [vmem:[#allocation13 + $0x670] sm:$0xff] }
 0x701   : > { %v6680_v28 = vpack.c.bf16 %v4020_v44, %v4018_v49  ;;  %v4042_v49 = vld [vmem:[#allocation13 + $0x720] sm:$0xff]  ;;  %v4044_v44 = vld [vmem:[#allocation13 + $0x730] sm:$0xff] }
 0x703   : > { %6665 = vmatpush1.bf16.msra.mxu0 %v6664_v21  ;;  %v4024_v21 = vld [vmem:[#allocation13 + $0x690] sm:$0xff] }
 0x704   : > { %6667 = vmatprep.subr.bf16.mxu0 %v6666_v36  ;;  %v4027_v36 = vld [vmem:[#allocation13 + $0x6a8] sm:$0xff]  ;;  %v6684_v52 = vpack.c.bf16 %v4024_v21, %v4022_v61  ;;  %v4046_v61 = vld [vmem:[#allocation13 + $0x740] sm:$0xff]  ;;  %v4048_v21 = vld [vmem:[#allocation13 + $0x750] sm:$0xff] }
 0x705   : > { %v6686_v35 = vpack.c.bf16 %v4029_v40, %v4027_v36  ;;  %v4051_v36 = vld [vmem:[#allocation13 + $0x768] sm:$0xff]  ;;  %v4053_v40 = vld [vmem:[#allocation13 + $0x778] sm:$0xff] }
 0x706   : > { %4557 = vmatmul.mubr.f32.vlgmr.msra.gmra.mrb[40].mxu0 %v3759_v48  ;;  %v6690_v48 = vpack.c.bf16 %v4033_v34, %v4031_v29  ;;  %v4055_v29 = vld [vmem:[#allocation13 + $0x788] sm:$0xff]  ;;  %v4057_v34 = vld [vmem:[#allocation13 + $0x798] sm:$0xff] }
 0x707   : > { %4562 = vmatprep.mubr.f32.mxu0 %v3793_v18  ;;  %6669 = vmatpush1.bf16.msra.mxu0 %v6668_v50  ;;  %v6688_v50 = vpack.c.bf16 %v4028_v38, %v4026_v25  ;;  %v4050_v25 = vld [vmem:[#allocation13 + $0x760] sm:$0xff]  ;;  %v4052_v38 = vld [vmem:[#allocation13 + $0x770] sm:$0xff] }
 0x708   : > { %6671 = vmatprep.subr.bf16.mxu0 %v6670_v62  ;;  %v4030_v62 = vld [vmem:[#allocation13 + $0x6c0] sm:$0xff] }
 0x709   : > { %v6692_v18 = vpack.c.bf16 %v4032_v6, %v4030_v62  ;;  %v4054_v62 = vld [vmem:[#allocation13 + $0x780] sm:$0xff]  ;;  %v4056_v6 = vld [vmem:[#allocation13 + $0x790] sm:$0xff] }
 0x70a   : > { %4563 = vmatmul.mubr.f32.gmra.mrb[42].mxu0 %v3791_v53  ;;  %v4041_v53 = vld [vmem:[#allocation13 + $0x718] sm:$0xff] }
 0x70b   : > { %6673 = vmatpush1.bf16.msra.mxu0 %v6672_v7  ;;  %4633 = vmatprep.mubr.f32.mxu0 %v3765_v45  ;;  %v4039_v7 = vld [vmem:[#allocation13 + $0x708] sm:$0xff]  ;;  %v4040_v45 = vld [vmem:[#allocation13 + $0x710] sm:$0xff] }
 0x70c   : > { %6675 = vmatprep.subr.bf16.mxu0 %v6674_v8  ;;  %v6696_v8 = vpack.c.bf16 %v4036_v27, %v4034_v42  ;;  %v6698_v26 = vpack.c.bf16 %v4041_v53, %v4039_v7  ;;  %v3440_v42 = vadd.f32 1e-09, %v9242_v1  ;;  %v6718_v27 = vpack.c.bf16 %v4061_v23, %v4059_v54  ;;  %v4058_v7 = vld [vmem:[#allocation13 + $0x7a0] sm:$0xff]  ;;  %v4060_v53 = vld [vmem:[#allocation13 + $0x7b0] sm:$0xff]  ;;  %v4069_v1 = vld [vmem:[#allocation13 + $0x7f8] sm:$0xff] }
 0x70d   : > { %v4081_v54 = vld [vmem:[#allocation13 + $0x858] sm:$0xff] }
 0x70f   : > { %6677 = vmatpush1.bf16.msra.mxu0 %v6676_v32  ;;  %v6700_v32 = vpack.c.bf16 %v4040_v45, %v4038_v11  ;;  %v3438_v11 = vadd.f32 1e-09, %v9240_v22  ;;  %v6720_v45 = vpack.c.bf16 %v4060_v53, %v4058_v7  ;;  %v4071_v22 = vld [vmem:[#allocation13 + $0x808] sm:$0xff] }
 0x710   : > { %6679 = vmatprep.subr.bf16.mxu0 %v6678_v10  ;;  %v6702_v10 = vpack.c.bf16 %v4045_v4, %v4043_v43  ;;  %v3511_v43 = vadd.f32 1e-09, %v9281_v59  ;;  %v4062_v4 = vld [vmem:[#allocation13 + $0x7c0] sm:$0xff]  ;;  %v4083_v53 = vld [vmem:[#allocation13 + $0x868] sm:$0xff] }
 0x713   : > { %6681 = vmatpush1.bf16.msra.mxu0 %v6680_v28  ;;  %v6704_v28 = vpack.c.bf16 %v4044_v44, %v4042_v49 }
 0x714   : > { %6683 = vmatprep.subr.bf16.mxu0 %v6682_v2  ;;  %v6706_v2 = vpack.c.bf16 %v4049_v47, %v4047_v37  ;;  %v4066_v37 = vld [vmem:[#allocation13 + $0x7e0] sm:$0xff]  ;;  %v4068_v47 = vld [vmem:[#allocation13 + $0x7f0] sm:$0xff] }
 0x717   : > { %6685 = vmatpush1.bf16.msra.mxu0 %v6684_v52  ;;  %v6708_v52 = vpack.c.bf16 %v4048_v21, %v4046_v61  ;;  %v4070_v61 = vld [vmem:[#allocation13 + $0x800] sm:$0xff]  ;;  %v4072_v21 = vld [vmem:[#allocation13 + $0x810] sm:$0xff] }
 0x718   : > { %6687 = vmatprep.subr.bf16.mxu0 %v6686_v35  ;;  %v6710_v35 = vpack.c.bf16 %v4053_v40, %v4051_v36  ;;  %v4075_v40 = vld [vmem:[#allocation13 + $0x828] sm:$0xff] }
 0x71b   : > { %6689 = vmatpush1.bf16.msra.mxu0 %v6688_v50  ;;  %v6712_v50 = vpack.c.bf16 %v4052_v38, %v4050_v25  ;;  %v6732_v25 = vpack.c.bf16 %v4072_v21, %v4070_v61  ;;  %v4094_v61 = vld [vmem:[#allocation13 + $0x8c0] sm:$0xff]  ;;  %v4096_v21 = vld [vmem:[#allocation13 + $0x8d0] sm:$0xff] }
 0x71c   : > { %6691 = vmatprep.subr.bf16.mxu0 %v6690_v48  ;;  %v6714_v48 = vpack.c.bf16 %v4057_v34, %v4055_v29  ;;  %v4074_v34 = vld [vmem:[#allocation13 + $0x820] sm:$0xff] }
 0x71f   : > { %6693 = vmatpush1.bf16.msra.mxu0 %v6692_v18  ;;  %v3432_v18 = vadd.f32 1e-09, %v9236_v14 }
 0x720   : > { %6695 = vmatprep.subr.bf16.mxu0 %v6694_v33  ;;  %v6716_v33 = vpack.c.bf16 %v4056_v6, %v4054_v62  ;;  %v4079_v6 = vld [vmem:[#allocation13 + $0x848] sm:$0xff] }
 0x721   : > { %7307 = vrcp.f32 %v3432_v18 }
 0x722   : > { %7309 = vrcp.f32 %v3440_v42  ;;  %v6738_v42 = vpack.c.bf16 %v4081_v54, %v4079_v6  ;;  %v4104_v6 = vld [vmem:[#allocation13 + $0x910] sm:$0xff]  ;;  %v4107_v54 = vld [vmem:[#allocation13 + $0x928] sm:$0xff] }
 0x723   : > { %6697 = vmatpush1.bf16.msra.mxu0 %v6696_v8  ;;  %v4063_v8 = vld [vmem:[#allocation13 + $0x7c8] sm:$0xff]  ;;  %7311 = vrcp.f32 %v3438_v11  ;;  %v4082_v11 = vld [vmem:[#allocation13 + $0x860] sm:$0xff] }
 0x724   : > { %6699 = vmatprep.subr.bf16.mxu0 %v6698_v26  ;;  %v4065_v26 = vld [vmem:[#allocation13 + $0x7d8] sm:$0xff]  ;;  %7313 = vrcp.f32 %v3511_v43  ;;  %v4087_v43 = vld [vmem:[#allocation13 + $0x888] sm:$0xff] }
 0x725   : > { %v6722_v14 = vpack.c.bf16 %v4065_v26, %v4063_v8  ;;  %v4085_v8 = vld [vmem:[#allocation13 + $0x878] sm:$0xff] }
 0x726   : > { %v6742_v26 = vpack.c.bf16 %v4085_v8, %v4083_v53 }
 0x727   : > { %6701 = vmatpush1.bf16.msra.mxu0 %v6700_v32  ;;  %v4064_v32 = vld [vmem:[#allocation13 + $0x7d0] sm:$0xff] }
 0x728   : > { %6703 = vmatprep.subr.bf16.mxu0 %v6702_v10  ;;  %v4067_v10 = vld [vmem:[#allocation13 + $0x7e8] sm:$0xff]  ;;  %v6724_v49 = vpack.c.bf16 %v4064_v32, %v4062_v4  ;;  %v4086_v32 = vld [vmem:[#allocation13 + $0x880] sm:$0xff] }
 0x729   : > { %v6726_v44 = vpack.c.bf16 %v4069_v1, %v4067_v10  ;;  %v4088_v10 = vld [vmem:[#allocation13 + $0x890] sm:$0xff]  ;;  %v4091_v1 = vld [vmem:[#allocation13 + $0x8a8] sm:$0xff] }
 0x72b   : > { %6705 = vmatpush1.bf16.msra.mxu0 %v6704_v28  ;;  %v4073_v28 = vld [vmem:[#allocation13 + $0x818] sm:$0xff]  ;;  %v7308_v36 = vpop.eup %7307 }
 0x72c   : > { %6707 = vmatprep.subr.bf16.mxu0 %v6706_v2  ;;  %v6728_v2 = vpack.c.bf16 %v4068_v47, %v4066_v37  ;;  %v6730_v59 = vpack.c.bf16 %v4073_v28, %v4071_v22  ;;  %v3763_v38 = vmul.f32 %v7308_v36, %v8562_v12  ;;  %v4080_v12 = vld [vmem:[#allocation13 + $0x850] sm:$0xff]  ;;  %v4090_v37 = vld [vmem:[#allocation13 + $0x8a0] sm:$0xff]  ;;  %v4095_v22 = vld [vmem:[#allocation13 + $0x8c8] sm:$0xff] }
 0x72d   : > { %v4092_v47 = vld [vmem:[#allocation13 + $0x8b0] sm:$0xff]  ;;  %v4097_v28 = vld [vmem:[#allocation13 + $0x8d8] sm:$0xff]  ;;  %v4099_v36 = vld [vmem:[#allocation13 + $0x8e8] sm:$0xff] }
 0x72f   : > { %6709 = vmatpush1.bf16.msra.mxu0 %v6708_v52  ;;  %v4077_v52 = vld [vmem:[#allocation13 + $0x838] sm:$0xff] }
 0x730   : > { %6711 = vmatprep.subr.bf16.mxu0 %v6710_v35  ;;  %v7310_v35 = vpop.eup %7309  ;;  %v6734_v29 = vpack.c.bf16 %v4077_v52, %v4075_v40  ;;  %v4101_v40 = vld [vmem:[#allocation13 + $0x8f8] sm:$0xff]  ;;  %v6756_v52 = vpack.c.bf16 %v4096_v21, %v4094_v61  ;;  %v4122_v61 = vld [vmem:[#allocation13 + $0x9a0] sm:$0xff]  ;;  %v4124_v21 = vld [vmem:[#allocation13 + $0x9b0] sm:$0xff] }
 0x731   : > { %v3797_v62 = vmul.f32 %v7310_v35, %v8583_v56  ;;  %v6758_v35 = vpack.c.bf16 %v4101_v40, %v4099_v36  ;;  %v4127_v36 = vld [vmem:[#allocation13 + $0x9c8] sm:$0xff]  ;;  %v4129_v40 = vld [vmem:[#allocation13 + $0x9d8] sm:$0xff] }
 0x733   : > { %6713 = vmatpush1.bf16.msra.mxu0 %v6712_v50  ;;  %v4076_v50 = vld [vmem:[#allocation13 + $0x830] sm:$0xff] }
 0x734   : > { %6715 = vmatprep.subr.bf16.mxu0 %v6714_v48  ;;  %v7312_v48 = vpop.eup %7311  ;;  %v6736_v18 = vpack.c.bf16 %v4076_v50, %v4074_v34  ;;  %v4105_v34 = vld [vmem:[#allocation13 + $0x918] sm:$0xff] }
 0x735   : > { %v7314_v23 = vpop.eup %7313 }
 0x736   : > { %v3769_v7 = vmul.f32 %v7314_v23, %v8905_v3  ;;  %v4093_v3 = vld [vmem:[#allocation13 + $0x8b8] sm:$0xff] }
 0x737   : > { %6717 = vmatpush1.bf16.msra.mxu0 %v6716_v33  ;;  %v3795_v33 = vmul.f32 %v7312_v48, %v8565_v58  ;;  %v4109_v23 = vld [vmem:[#allocation13 + $0x938] sm:$0xff] }
 0x738   : > { %6719 = vmatprep.subr.bf16.mxu0 %v6718_v27  ;;  %v4078_v27 = vld [vmem:[#allocation13 + $0x840] sm:$0xff] }
 0x739   : > { %v6740_v56 = vpack.c.bf16 %v4080_v12, %v4078_v27  ;;  %v4108_v27 = vld [vmem:[#allocation13 + $0x930] sm:$0xff]  ;;  %v4111_v12 = vld [vmem:[#allocation13 + $0x948] sm:$0xff] }
 0x73b   : > { %6721 = vmatpush1.bf16.msra.mxu0 %v6720_v45  ;;  %v4084_v45 = vld [vmem:[#allocation13 + $0x870] sm:$0xff] }
 0x73c   : > { %6723 = vmatprep.subr.bf16.mxu0 %v6722_v14  ;;  %v4089_v14 = vld [vmem:[#allocation13 + $0x898] sm:$0xff]  ;;  %v6744_v58 = vpack.c.bf16 %v4084_v45, %v4082_v11  ;;  %v4115_v11 = vld [vmem:[#allocation13 + $0x968] sm:$0xff] }
 0x73d   : > { %v6746_v4 = vpack.c.bf16 %v4089_v14, %v4087_v43  ;;  %v4117_v45 = vld [vmem:[#allocation13 + $0x978] sm:$0xff] }
 0x73e   : > { %v6774_v14 = vpack.c.bf16 %v4117_v45, %v4115_v11  ;;  %v4140_v11 = vld [vmem:[#allocation13 + $0xa30] sm:$0xff] }
 0x73f   : > { %6725 = vmatpush1.bf16.msra.mxu0 %v6724_v49  ;;  %v6748_v49 = vpack.c.bf16 %v4088_v10, %v4086_v32  ;;  %v4119_v32 = vld [vmem:[#allocation13 + $0x988] sm:$0xff]  ;;  %v4121_v10 = vld [vmem:[#allocation13 + $0x998] sm:$0xff] }
 0x740   : > { %6727 = vmatprep.subr.bf16.mxu0 %v6726_v44  ;;  %v6750_v44 = vpack.c.bf16 %v4093_v3, %v4091_v1  ;;  %v6778_v3 = vpack.c.bf16 %v4121_v10, %v4119_v32 }
 0x743   : > { %6729 = vmatpush1.bf16.msra.mxu0 %v6728_v2  ;;  %v6752_v2 = vpack.c.bf16 %v4092_v47, %v4090_v37  ;;  %v4123_v37 = vld [vmem:[#allocation13 + $0x9a8] sm:$0xff]  ;;  %v4125_v47 = vld [vmem:[#allocation13 + $0x9b8] sm:$0xff] }
 0x744   : > { %6731 = vmatprep.subr.bf16.mxu0 %v6730_v59  ;;  %v6754_v59 = vpack.c.bf16 %v4097_v28, %v4095_v22  ;;  %v3509_v22 = vadd.f32 1e-09, %v9278_v51  ;;  %v6786_v51 = vpack.c.bf16 %v4129_v40, %v4127_v36  ;;  %v4152_v36 = vld [vmem:[#allocation13 + $0xa90] sm:$0xff]  ;;  %v4155_v40 = vld [vmem:[#allocation13 + $0xaa8] sm:$0xff] }
 0x746   : > { %4634 = vmatmul.mubr.f32.vlgmr.msra.gmra.mrb[40].mxu0 %v3763_v38  ;;  %v4100_v38 = vld [vmem:[#allocation13 + $0x8f0] sm:$0xff]  ;;  %7315 = vrcp.f32 %v3509_v22  ;;  %v4146_v22 = vld [vmem:[#allocation13 + $0xa60] sm:$0xff] }
 0x747   : > { %4639 = vmatprep.mubr.f32.mxu0 %v3797_v62  ;;  %6733 = vmatpush1.bf16.msra.mxu0 %v6732_v25  ;;  %v4098_v25 = vld [vmem:[#allocation13 + $0x8e0] sm:$0xff] }
 0x748   : > { %6735 = vmatprep.subr.bf16.mxu0 %v6734_v29  ;;  %v4103_v29 = vld [vmem:[#allocation13 + $0x908] sm:$0xff]  ;;  %v6760_v50 = vpack.c.bf16 %v4100_v38, %v4098_v25  ;;  %v4102_v62 = vld [vmem:[#allocation13 + $0x900] sm:$0xff]  ;;  %v3588_v25 = vadd.f32 1e-09, %v9248_v31 }
 0x749   : > { %v6762_v48 = vpack.c.bf16 %v4105_v34, %v4103_v29  ;;  %v4126_v38 = vld [vmem:[#allocation13 + $0x9c0] sm:$0xff]  ;;  %v4128_v29 = vld [vmem:[#allocation13 + $0x9d0] sm:$0xff]  ;;  %v4131_v34 = vld [vmem:[#allocation13 + $0x9e8] sm:$0xff] }
 0x74a   : > { %4640 = vmatmul.mubr.f32.gmra.mrb[42].mxu0 %v3795_v33  ;;  %v6766_v33 = vpack.c.bf16 %v4109_v23, %v4107_v54  ;;  %v4137_v54 = vld [vmem:[#allocation13 + $0xa18] sm:$0xff] }
 0x74b   : > { %6737 = vmatpush1.bf16.msra.mxu0 %v6736_v18  ;;  %4710 = vmatprep.mubr.f32.mxu0 %v3769_v7  ;;  %v6764_v18 = vpack.c.bf16 %v4104_v6, %v4102_v62  ;;  %v4113_v7 = vld [vmem:[#allocation13 + $0x958] sm:$0xff]  ;;  %v4130_v62 = vld [vmem:[#allocation13 + $0x9e0] sm:$0xff]  ;;  %v4132_v6 = vld [vmem:[#allocation13 + $0x9f0] sm:$0xff] }
 0x74c   : > { %6739 = vmatprep.subr.bf16.mxu0 %v6738_v42  ;;  %v4106_v42 = vld [vmem:[#allocation13 + $0x920] sm:$0xff]  ;;  %v6770_v8 = vpack.c.bf16 %v4113_v7, %v4111_v12  ;;  %v6792_v23 = vpack.c.bf16 %v4132_v6, %v4130_v62  ;;  %v4141_v12 = vld [vmem:[#allocation13 + $0xa38] sm:$0xff]  ;;  %v4163_v62 = vld [vmem:[#allocation13 + $0xae8] sm:$0xff] }
 0x74d   : > { %v6768_v53 = vpack.c.bf16 %v4108_v27, %v4106_v42  ;;  %v4139_v27 = vld [vmem:[#allocation13 + $0xa28] sm:$0xff]  ;;  %v4165_v6 = vld [vmem:[#allocation13 + $0xaf8] sm:$0xff] }
 0x74f   : > { %6741 = vmatpush1.bf16.msra.mxu0 %v6740_v56  ;;  %v4110_v56 = vld [vmem:[#allocation13 + $0x940] sm:$0xff] }
 0x750   : > { %6743 = vmatprep.subr.bf16.mxu0 %v6742_v26  ;;  %v4112_v26 = vld [vmem:[#allocation13 + $0x950] sm:$0xff]  ;;  %v7316_v42 = vpop.eup %7315 }
 0x751   : > { %v6772_v43 = vpack.c.bf16 %v4112_v26, %v4110_v56  ;;  %v6798_v56 = vpack.c.bf16 %v4141_v12, %v4139_v27  ;;  %v4138_v26 = vld [vmem:[#allocation13 + $0xa20] sm:$0xff] }
 0x752   : > { %v6800_v32 = vpack.c.bf16 %v4140_v11, %v4138_v26  ;;  %v4166_v12 = vld [vmem:[#allocation13 + $0xb00] sm:$0xff] }
 0x753   : > { %6745 = vmatpush1.bf16.msra.mxu0 %v6744_v58  ;;  %v4114_v58 = vld [vmem:[#allocation13 + $0x960] sm:$0xff] }
 0x754   : > { %6747 = vmatprep.subr.bf16.mxu0 %v6746_v4  ;;  %v4116_v4 = vld [vmem:[#allocation13 + $0x970] sm:$0xff]  ;;  %v4170_v11 = vld [vmem:[#allocation13 + $0xb20] sm:$0xff] }
 0x755   : > { %v6776_v1 = vpack.c.bf16 %v4116_v4, %v4114_v58  ;;  %v4145_v58 = vld [vmem:[#allocation13 + $0xa58] sm:$0xff] }
 0x757   : > { %6749 = vmatpush1.bf16.msra.mxu0 %v6748_v49  ;;  %v4118_v49 = vld [vmem:[#allocation13 + $0x980] sm:$0xff] }
 0x758   : > { %6751 = vmatprep.subr.bf16.mxu0 %v6750_v44  ;;  %v4120_v44 = vld [vmem:[#allocation13 + $0x990] sm:$0xff] }
 0x759   : > { %v6780_v28 = vpack.c.bf16 %v4120_v44, %v4118_v49  ;;  %v4147_v44 = vld [vmem:[#allocation13 + $0xa68] sm:$0xff] }
 0x75b   : > { %6753 = vmatpush1.bf16.msra.mxu0 %v6752_v2  ;;  %v3517_v2 = vadd.f32 1e-09, %v9285_v19  ;;  %v4133_v19 = vld [vmem:[#allocation13 + $0x9f8] sm:$0xff] }
 0x75c   : > { %6755 = vmatprep.subr.bf16.mxu0 %v6754_v59  ;;  %v6782_v59 = vpack.c.bf16 %v4125_v47, %v4123_v37  ;;  %v4149_v37 = vld [vmem:[#allocation13 + $0xa78] sm:$0xff] }
 0x75d   : > { %7317 = vrcp.f32 %v3517_v2  ;;  %v6806_v47 = vpack.c.bf16 %v4149_v37, %v4147_v44  ;;  %v4151_v2 = vld [vmem:[#allocation13 + $0xa88] sm:$0xff]  ;;  %v4178_v44 = vld [vmem:[#allocation13 + $0xb60] sm:$0xff]  ;;  %v4180_v37 = vld [vmem:[#allocation13 + $0xb70] sm:$0xff] }
 0x75f   : > { %6757 = vmatpush1.bf16.msra.mxu0 %v6756_v52  ;;  %v3515_v52 = vadd.f32 1e-09, %v9283_v0  ;;  %v4135_v0 = vld [vmem:[#allocation13 + $0xa08] sm:$0xff] }
 0x760   : > { %6759 = vmatprep.subr.bf16.mxu0 %v6758_v35  ;;  %v6784_v35 = vpack.c.bf16 %v4124_v21, %v4122_v61  ;;  %v6794_v31 = vpack.c.bf16 %v4137_v54, %v4135_v0  ;;  %v4150_v21 = vld [vmem:[#allocation13 + $0xa80] sm:$0xff]  ;;  %v6822_v54 = vpack.c.bf16 %v4165_v6, %v4163_v62 }
 0x761   : > { %7319 = vrcp.f32 %v3515_v52  ;;  %v6812_v52 = vpack.c.bf16 %v4152_v36, %v4150_v21  ;;  %v3586_v21 = vadd.f32 1e-09, %v9246_v24 }
 0x762   : > { %7321 = vrcp.f32 %v3588_v25  ;;  %v4154_v25 = vld [vmem:[#allocation13 + $0xaa0] sm:$0xff] }
 0x763   : > { %6761 = vmatpush1.bf16.msra.mxu0 %v6760_v50  ;;  %v6788_v50 = vpack.c.bf16 %v4128_v29, %v4126_v38  ;;  %v4159_v38 = vld [vmem:[#allocation13 + $0xac8] sm:$0xff]  ;;  %v4161_v29 = vld [vmem:[#allocation13 + $0xad8] sm:$0xff]  ;;  %7323 = vrcp.f32 %v3586_v21 }
 0x764   : > { %6763 = vmatprep.subr.bf16.mxu0 %v6762_v48  ;;  %v6790_v48 = vpack.c.bf16 %v4133_v19, %v4131_v34  ;;  %v6818_v19 = vpack.c.bf16 %v4161_v29, %v4159_v38  ;;  %v3592_v38 = vadd.f32 1e-09, %v9252_v30  ;;  %v4199_v30 = vld [vmem:[#allocation13 + $0xc08] sm:$0xff] }
 0x767   : > { %6765 = vmatpush1.bf16.msra.mxu0 %v6764_v18  ;;  %v4134_v18 = vld [vmem:[#allocation13 + $0xa00] sm:$0xff]  ;;  %v7318_v7 = vpop.eup %7317 }
 0x768   : > { %6767 = vmatprep.subr.bf16.mxu0 %v6766_v33  ;;  %v4136_v33 = vld [vmem:[#allocation13 + $0xa10] sm:$0xff] }
 0x76b   : > { %6769 = vmatpush1.bf16.msra.mxu0 %v6768_v53  ;;  %v6796_v53 = vpack.c.bf16 %v4136_v33, %v4134_v18  ;;  %v7320_v45 = vpop.eup %7319  ;;  %v4167_v18 = vld [vmem:[#allocation13 + $0xb08] sm:$0xff]  ;;  %v4169_v33 = vld [vmem:[#allocation13 + $0xb18] sm:$0xff] }
 0x76c   : > { %6771 = vmatprep.subr.bf16.mxu0 %v6770_v8  ;;  %v3767_v8 = vmul.f32 %v7316_v42, %v8893_v5  ;;  %v7322_v4 = vpop.eup %7321  ;;  %v3799_v10 = vmul.f32 %v7320_v45, %v8896_v46  ;;  %v4144_v5 = vld [vmem:[#allocation13 + $0xa50] sm:$0xff]  ;;  %v6826_v27 = vpack.c.bf16 %v4169_v33, %v4167_v18  ;;  %v4198_v18 = vld [vmem:[#allocation13 + $0xc00] sm:$0xff] }
 0x76d   : > { %v3773_v49 = vmul.f32 %v7322_v4, %v9062_v63  ;;  %v4157_v63 = vld [vmem:[#allocation13 + $0xab8] sm:$0xff]  ;;  %v4172_v45 = vld [vmem:[#allocation13 + $0xb30] sm:$0xff] }
 0x76e   : > { %v4200_v33 = vld [vmem:[#allocation13 + $0xc10] sm:$0xff] }
 0x76f   : > { %6773 = vmatpush1.bf16.msra.mxu0 %v6772_v43  ;;  %v3801_v43 = vmul.f32 %v7318_v7, %v8914_v9  ;;  %v4168_v7 = vld [vmem:[#allocation13 + $0xb10] sm:$0xff] }
 0x770   : > { %6775 = vmatprep.subr.bf16.mxu0 %v6774_v14  ;;  %v4143_v14 = vld [vmem:[#allocation13 + $0xa48] sm:$0xff] }
 0x773   : > { %6777 = vmatpush1.bf16.msra.mxu0 %v6776_v1  ;;  %v6802_v1 = vpack.c.bf16 %v4145_v58, %v4143_v14  ;;  %v4177_v14 = vld [vmem:[#allocation13 + $0xb58] sm:$0xff]  ;;  %v6832_v58 = vpack.c.bf16 %v4172_v45, %v4170_v11  ;;  %v4204_v11 = vld [vmem:[#allocation13 + $0xc30] sm:$0xff] }
 0x774   : > { %6779 = vmatprep.subr.bf16.mxu0 %v6778_v3  ;;  %v4142_v3 = vld [vmem:[#allocation13 + $0xa40] sm:$0xff] }
 0x775   : > { %v6804_v9 = vpack.c.bf16 %v4144_v5, %v4142_v3  ;;  %v4181_v3 = vld [vmem:[#allocation13 + $0xb78] sm:$0xff] }
 0x777   : > { %6781 = vmatpush1.bf16.msra.mxu0 %v6780_v28  ;;  %v4148_v28 = vld [vmem:[#allocation13 + $0xa70] sm:$0xff] }
 0x778   : > { %6783 = vmatprep.subr.bf16.mxu0 %v6782_v59  ;;  %v4153_v59 = vld [vmem:[#allocation13 + $0xa98] sm:$0xff]  ;;  %v6808_v46 = vpack.c.bf16 %v4148_v28, %v4146_v22  ;;  %v6840_v22 = vpack.c.bf16 %v4180_v37, %v4178_v44  ;;  %v4210_v37 = vld [vmem:[#allocation13 + $0xc60] sm:$0xff] }
 0x779   : > { %v6810_v61 = vpack.c.bf16 %v4153_v59, %v4151_v2  ;;  %v4182_v2 = vld [vmem:[#allocation13 + $0xb80] sm:$0xff]  ;;  %v4184_v59 = vld [vmem:[#allocation13 + $0xb90] sm:$0xff]  ;;  %v4213_v44 = vld [vmem:[#allocation13 + $0xc78] sm:$0xff] }
 0x77a   : > { %v6844_v36 = vpack.c.bf16 %v4184_v59, %v4182_v2  ;;  %v4972_v2 = vld [vmem:[%s9569_s5 + $0x90] sm:$0xff]  ;;  %v4973_v59 = vld [vmem:[%s9569_s5 + $0x98] sm:$0xff] }
 0x77b   : > { %6785 = vmatpush1.bf16.msra.mxu0 %v6784_v35  ;;  %v6814_v35 = vpack.c.bf16 %v4157_v63, %v4155_v40  ;;  %v3594_v40 = vadd.f32 1e-09, %v9256_v41  ;;  %v4197_v41 = vld [vmem:[#allocation13 + $0xbf8] sm:$0xff]  ;;  %v6990_v21 = vpack.c.bf16 %v4973_v59, %v4972_v2 }
 0x77c   : > { %6787 = vmatprep.subr.bf16.mxu0 %v6786_v51  ;;  %v4156_v51 = vld [vmem:[#allocation13 + $0xab0] sm:$0xff] }
 0x77d   : > { %v6816_v34 = vpack.c.bf16 %v4156_v51, %v4154_v25  ;;  %v4191_v25 = vld [vmem:[#allocation13 + $0xbc8] sm:$0xff]  ;;  %v4193_v51 = vld [vmem:[#allocation13 + $0xbd8] sm:$0xff]  ;;  %7325 = vrcp.f32 %v3594_v40 }
 0x77e   : > { %v6850_v24 = vpack.c.bf16 %v4193_v51, %v4191_v25  ;;  %7327 = vrcp.f32 %v3592_v38  ;;  %v4957_v40 = vld [vmem:[%s9569_s5 + $0x18] sm:$0xff]  ;;  %v4975_v25 = vld [vmem:[%s9569_s5 + $0xa8] sm:$0xff] }
 0x77f   : > { %6789 = vmatpush1.bf16.msra.mxu0 %v6788_v50  ;;  %v4158_v50 = vld [vmem:[#allocation13 + $0xac0] sm:$0xff] }
 0x780   : > { %6791 = vmatprep.subr.bf16.mxu0 %v6790_v48  ;;  %v4160_v48 = vld [vmem:[#allocation13 + $0xad0] sm:$0xff] }
 0x781   : > { %v6820_v0 = vpack.c.bf16 %v4160_v48, %v4158_v50  ;;  %v4192_v50 = vld [vmem:[#allocation13 + $0xbd0] sm:$0xff]  ;;  %v4195_v48 = vld [vmem:[#allocation13 + $0xbe8] sm:$0xff] }
 0x782   : > { %v6854_v6 = vpack.c.bf16 %v4197_v41, %v4195_v48  ;;  %v4216_v48 = vld [vmem:[#allocation13 + $0xc90] sm:$0xff]  ;;  %v4976_v41 = vld [vmem:[%s9569_s5 + $0xb0] sm:$0xff] }
 0x783   : > { %6793 = vmatpush1.bf16.msra.mxu0 %v6792_v23  ;;  %v4162_v23 = vld [vmem:[#allocation13 + $0xae0] sm:$0xff] }
 0x784   : > { %6795 = vmatprep.subr.bf16.mxu0 %v6794_v31  ;;  %v4164_v31 = vld [vmem:[#allocation13 + $0xaf0] sm:$0xff] }
 0x785   : > { %v6824_v42 = vpack.c.bf16 %v4164_v31, %v4162_v23  ;;  %v4201_v23 = vld [vmem:[#allocation13 + $0xc18] sm:$0xff] }
 0x786   : > { %4711 = vmatmul.mubr.f32.vlgmr.msra.gmra.mrb[40].mxu0 %v3767_v8  ;;  %v4173_v8 = vld [vmem:[#allocation13 + $0xb38] sm:$0xff] }
 0x787   : > { %4716 = vmatprep.mubr.f32.mxu0 %v3801_v43  ;;  %6797 = vmatpush1.bf16.msra.mxu0 %v6796_v53  ;;  %v4171_v53 = vld [vmem:[#allocation13 + $0xb28] sm:$0xff] }
 0x788   : > { %6799 = vmatprep.subr.bf16.mxu0 %v6798_v56  ;;  %v6828_v56 = vpack.c.bf16 %v4168_v7, %v4166_v12  ;;  %v6830_v26 = vpack.c.bf16 %v4173_v8, %v4171_v53  ;;  %v4175_v43 = vld [vmem:[#allocation13 + $0xb48] sm:$0xff]  ;;  %v4205_v12 = vld [vmem:[#allocation13 + $0xc38] sm:$0xff]  ;;  %v6860_v53 = vpack.c.bf16 %v4200_v33, %v4198_v18 }
 0x789   : > { %v6834_v4 = vpack.c.bf16 %v4177_v14, %v4175_v43  ;;  %v4207_v14 = vld [vmem:[#allocation13 + $0xc48] sm:$0xff] }
 0x78a   : > { %4717 = vmatmul.mubr.f32.gmra.mrb[42].mxu0 %v3799_v10  ;;  %v4176_v10 = vld [vmem:[#allocation13 + $0xb50] sm:$0xff]  ;;  %v4961_v18 = vld [vmem:[%s9569_s5 + $0x38] sm:$0xff] }
 0x78b   : > { %6801 = vmatpush1.bf16.msra.mxu0 %v6800_v32  ;;  %4787 = vmatprep.mubr.f32.mxu0 %v3773_v49  ;;  %v4174_v32 = vld [vmem:[#allocation13 + $0xb40] sm:$0xff] }
 0x78c   : > { %6803 = vmatprep.subr.bf16.mxu0 %v6802_v1  ;;  %v4179_v1 = vld [vmem:[#allocation13 + $0xb68] sm:$0xff]  ;;  %v6836_v5 = vpack.c.bf16 %v4176_v10, %v4174_v32 }
 0x78d   : > { %v6838_v49 = vpack.c.bf16 %v4181_v3, %v4179_v1  ;;  %v4206_v3 = vld [vmem:[#allocation13 + $0xc40] sm:$0xff] }
 0x78f   : > { %6805 = vmatpush1.bf16.msra.mxu0 %v6804_v9  ;;  %v4183_v9 = vld [vmem:[#allocation13 + $0xb88] sm:$0xff] }
 0x790   : > { %6807 = vmatprep.subr.bf16.mxu0 %v6806_v47  ;;  %v4185_v47 = vld [vmem:[#allocation13 + $0xb98] sm:$0xff] }
 0x791   : > { %v6842_v28 = vpack.c.bf16 %v4185_v47, %v4183_v9  ;;  %v4970_v9 = vld [vmem:[%s9569_s5 + $0x80] sm:$0xff]  ;;  %v4971_v47 = vld [vmem:[%s9569_s5 + $0x88] sm:$0xff] }
 0x793   : > { %6809 = vmatpush1.bf16.msra.mxu0 %v6808_v46  ;;  %v4187_v46 = vld [vmem:[#allocation13 + $0xba8] sm:$0xff] }
 0x794   : > { %6811 = vmatprep.subr.bf16.mxu0 %v6810_v61  ;;  %v4189_v61 = vld [vmem:[#allocation13 + $0xbb8] sm:$0xff] }
 0x795   : > { %v6846_v63 = vpack.c.bf16 %v4189_v61, %v4187_v46 }
 0x797   : > { %6813 = vmatpush1.bf16.msra.mxu0 %v6812_v52  ;;  %v4186_v52 = vld [vmem:[#allocation13 + $0xba0] sm:$0xff] }
 0x798   : > { %6815 = vmatprep.subr.bf16.mxu0 %v6814_v35  ;;  %v4188_v35 = vld [vmem:[#allocation13 + $0xbb0] sm:$0xff] }
 0x799   : > { %v6848_v29 = vpack.c.bf16 %v4188_v35, %v4186_v52  ;;  %v4215_v52 = vld [vmem:[#allocation13 + $0xc88] sm:$0xff]  ;;  %v4217_v35 = vld [vmem:[#allocation13 + $0xc98] sm:$0xff] }
 0x79b   : > { %6817 = vmatpush1.bf16.msra.mxu0 %v6816_v34  ;;  %v3665_v34 = vadd.f32 1e-09, %v9289_v16  ;;  %v6858_v16 = vpack.c.bf16 %v4201_v23, %v4199_v30  ;;  %v4218_v23 = vld [vmem:[#allocation13 + $0xca0] sm:$0xff] }
 0x79c   : > { %6819 = vmatprep.subr.bf16.mxu0 %v6818_v19  ;;  %v4190_v19 = vld [vmem:[#allocation13 + $0xbc0] sm:$0xff] }
 0x79d   : > { %v6852_v62 = vpack.c.bf16 %v4192_v50, %v4190_v19  ;;  %7329 = vrcp.f32 %v3665_v34  ;;  %v4959_v19 = vld [vmem:[%s9569_s5 + $0x28] sm:$0xff]  ;;  %v6874_v50 = vpack.c.bf16 %v4217_v35, %v4215_v52 }
 0x79e   : > { %v4237_v52 = vld [vmem:[#allocation13 + $0xd38] sm:$0xff] }
 0x79f   : > { %6821 = vmatpush1.bf16.msra.mxu0 %v6820_v0  ;;  %v4194_v0 = vld [vmem:[#allocation13 + $0xbe0] sm:$0xff] }
 0x7a0   : > { %6823 = vmatprep.subr.bf16.mxu0 %v6822_v54  ;;  %v4196_v54 = vld [vmem:[#allocation13 + $0xbf0] sm:$0xff] }
 0x7a1   : > { %v6856_v31 = vpack.c.bf16 %v4196_v54, %v4194_v0  ;;  %v4221_v0 = vld [vmem:[#allocation13 + $0xcb8] sm:$0xff] }
 0x7a3   : > { %6825 = vmatpush1.bf16.msra.mxu0 %v6824_v42  ;;  %v7324_v42 = vpop.eup %7323 }
 0x7a4   : > { %6827 = vmatprep.subr.bf16.mxu0 %v6826_v27  ;;  %v4203_v27 = vld [vmem:[#allocation13 + $0xc28] sm:$0xff]  ;;  %v7326_v7 = vpop.eup %7325  ;;  %v3771_v8 = vmul.f32 %v7324_v42, %v9052_v17  ;;  %v4208_v17 = vld [vmem:[#allocation13 + $0xc50] sm:$0xff] }
 0x7a5   : > { %v7328_v45 = vpop.eup %7327  ;;  %v3805_v43 = vmul.f32 %v7326_v7, %v9064_v15  ;;  %v4212_v15 = vld [vmem:[#allocation13 + $0xc70] sm:$0xff]  ;;  %v4223_v7 = vld [vmem:[#allocation13 + $0xcc8] sm:$0xff] }
 0x7a6   : > { %v3803_v10 = vmul.f32 %v7328_v45, %v9054_v20  ;;  %v4954_v20 = vld [vmem:[%s9569_s5] sm:$0xff]  ;;  %v6872_v38 = vpack.c.bf16 %v4212_v15, %v4210_v37  ;;  %v4965_v37 = vld [vmem:[%s9569_s5 + $0x58] sm:$0xff] }
 0x7a7   : > { %6829 = vmatpush1.bf16.msra.mxu0 %v6828_v56  ;;  %v6862_v56 = vpack.c.bf16 %v4205_v12, %v4203_v27  ;;  %v4220_v42 = vld [vmem:[#allocation13 + $0xcb0] sm:$0xff] }
 0x7a8   : > { %6831 = vmatprep.subr.bf16.mxu0 %v6830_v26  ;;  %v4202_v26 = vld [vmem:[#allocation13 + $0xc20] sm:$0xff]  ;;  %v4978_v27 = vld [vmem:[%s9569_s5 + $0xc0] sm:$0xff]  ;;  %v4979_v12 = vld [vmem:[%s9569_s5 + $0xc8] sm:$0xff] }
 0x7a9   : > { %v6864_v32 = vpack.c.bf16 %v4204_v11, %v4202_v26  ;;  %v4222_v26 = vld [vmem:[#allocation13 + $0xcc0] sm:$0xff]  ;;  %v7002_v11 = vpack.c.bf16 %v4979_v12, %v4978_v27  ;;  %v4962_v45 = vld [vmem:[%s9569_s5 + $0x40] sm:$0xff] }
 0x7aa   : > { %v4248_v27 = vld [vmem:[#allocation13 + $0xd90] sm:$0xff]  ;;  %v4251_v12 = vld [vmem:[#allocation13 + $0xda8] sm:$0xff] }
 0x7ab   : > { %6833 = vmatpush1.bf16.msra.mxu0 %v6832_v58  ;;  %v4209_v58 = vld [vmem:[#allocation13 + $0xc58] sm:$0xff] }
 0x7ac   : > { %6835 = vmatprep.subr.bf16.mxu0 %v6834_v4  ;;  %v7330_v4 = vpop.eup %7329  ;;  %v6866_v1 = vpack.c.bf16 %v4209_v58, %v4207_v14  ;;  %v4224_v58 = vld [vmem:[#allocation13 + $0xcd0] sm:$0xff] }
 0x7af   : > { %6837 = vmatpush1.bf16.msra.mxu0 %v6836_v5  ;;  %v3777_v5 = vmul.f32 %v7330_v4, %v9158_v55  ;;  %v6868_v55 = vpack.c.bf16 %v4208_v17, %v4206_v3  ;;  %v4980_v4 = vld [vmem:[%s9569_s5 + $0xd0] sm:$0xff]  ;;  %v6884_v17 = vpack.c.bf16 %v4224_v58, %v4222_v26  ;;  %v3669_v58 = vadd.f32 1e-09, %v9291_v39  ;;  %v4263_v39 = vld [vmem:[#allocation13 + $0xe08] sm:$0xff] }
 0x7b0   : > { %6839 = vmatprep.subr.bf16.mxu0 %v6838_v49  ;;  %v4211_v49 = vld [vmem:[#allocation13 + $0xc68] sm:$0xff] }
 0x7b1   : > { %v6870_v46 = vpack.c.bf16 %v4213_v44, %v4211_v49  ;;  %v4964_v44 = vld [vmem:[%s9569_s5 + $0x50] sm:$0xff] }
 0x7b3   : > { %6841 = vmatpush1.bf16.msra.mxu0 %v6840_v22  ;;  %v6986_v22 = vpack.c.bf16 %v4971_v47, %v4970_v9  ;;  %v4228_v9 = vld [vmem:[#allocation13 + $0xcf0] sm:$0xff] }
 0x7b4   : > { %6843 = vmatprep.subr.bf16.mxu0 %v6842_v28  ;;  %v4955_v28 = vld [vmem:[%s9569_s5 + $0x8] sm:$0xff]  ;;  %v4982_v47 = vld [vmem:[%s9569_s5 + $0xe0] sm:$0xff] }
 0x7b5   : > { %v6988_v61 = vpack.c.bf16 %v4955_v28, %v4954_v20  ;;  %6987 = vmatprep.subr.bf16.mxu1 %v6986_v22  ;;  %v4983_v20 = vld [vmem:[%s9569_s5 + $0xe8] sm:$0xff]  ;;  %v7008_v28 = vpack.c.bf16 %v4965_v37, %v4964_v44 }
 0x7b6   : > { %v4233_v22 = vld [vmem:[#allocation13 + $0xd18] sm:$0xff]  ;;  %v7010_v59 = vpack.c.bf16 %v4983_v20, %v4982_v47  ;;  %v4260_v44 = vld [vmem:[#allocation13 + $0xdf0] sm:$0xff] }
 0x7b7   : > { %6845 = vmatpush1.bf16.msra.mxu0 %v6844_v36  ;;  %v4956_v36 = vld [vmem:[%s9569_s5 + $0x10] sm:$0xff]  ;;  %6989 = vmatpush3.bf16.msra.mxu1 %v6988_v61  ;;  %v4967_v61 = vld [vmem:[%s9569_s5 + $0x68] sm:$0xff] }
 0x7b8   : > { %6847 = vmatprep.subr.bf16.mxu0 %v6846_v63  ;;  %v4974_v63 = vld [vmem:[%s9569_s5 + $0xa0] sm:$0xff]  ;;  %v6992_v51 = vpack.c.bf16 %v4957_v40, %v4956_v36  ;;  %6991 = vmatprep.subr.bf16.mxu1 %v6990_v21  ;;  %v4230_v36 = vld [vmem:[#allocation13 + $0xd00] sm:$0xff]  ;;  %v4265_v37 = vld [vmem:[#allocation13 + $0xe18] sm:$0xff] }
 0x7b9   : > { %v6994_v34 = vpack.c.bf16 %v4975_v25, %v4974_v63  ;;  %v4232_v40 = vld [vmem:[#allocation13 + $0xd10] sm:$0xff]  ;;  %v4235_v63 = vld [vmem:[#allocation13 + $0xd28] sm:$0xff] }
 0x7ba   : > { %v6892_v25 = vpack.c.bf16 %v4232_v40, %v4230_v36  ;;  %v4264_v47 = vld [vmem:[#allocation13 + $0xe10] sm:$0xff] }
 0x7bb   : > { %6849 = vmatpush1.bf16.msra.mxu0 %v6848_v29  ;;  %v4214_v29 = vld [vmem:[#allocation13 + $0xc80] sm:$0xff]  ;;  %6993 = vmatpush3.bf16.msra.mxu1 %v6992_v51  ;;  %v6894_v51 = vpack.c.bf16 %v4237_v52, %v4235_v63  ;;  %v4268_v36 = vld [vmem:[#allocation13 + $0xe30] sm:$0xff] }
 0x7bc   : > { %6851 = vmatprep.subr.bf16.mxu0 %v6850_v24  ;;  %v4958_v24 = vld [vmem:[%s9569_s5 + $0x20] sm:$0xff]  ;;  %v6876_v30 = vpack.c.bf16 %v4216_v48, %v4214_v29  ;;  %6995 = vmatprep.subr.bf16.mxu1 %v6994_v34  ;;  %v4238_v48 = vld [vmem:[#allocation13 + $0xd40] sm:$0xff] }
 0x7bd   : > { %v6996_v54 = vpack.c.bf16 %v4959_v19, %v4958_v24  ;;  %v4236_v29 = vld [vmem:[#allocation13 + $0xd30] sm:$0xff]  ;;  %v4239_v34 = vld [vmem:[#allocation13 + $0xd48] sm:$0xff]  ;;  %v4241_v24 = vld [vmem:[#allocation13 + $0xd58] sm:$0xff] }
 0x7be   : > { %v9571_v63 = vld [vmem:[#allocation28_spill] sm:$0xff] }
 0x7bf   : > { %6853 = vmatpush1.bf16.msra.mxu0 %v6852_v62  ;;  %v4977_v62 = vld [vmem:[%s9569_s5 + $0xb8] sm:$0xff]  ;;  %6997 = vmatpush3.bf16.msra.mxu1 %v6996_v54 }
 0x7c0   : > { %6855 = vmatprep.subr.bf16.mxu0 %v6854_v6  ;;  %v4219_v6 = vld [vmem:[#allocation13 + $0xca8] sm:$0xff] }
 0x7c1   : > { %v6878_v33 = vpack.c.bf16 %v4221_v0, %v4219_v6  ;;  %v4245_v6 = vld [vmem:[#allocation13 + $0xd78] sm:$0xff] }
 0x7c3   : > { %6857 = vmatpush1.bf16.msra.mxu0 %v6856_v31  ;;  %v6998_v31 = vpack.c.bf16 %v4977_v62, %v4976_v41  ;;  %v4240_v41 = vld [vmem:[#allocation13 + $0xd50] sm:$0xff]  ;;  %v4243_v62 = vld [vmem:[#allocation13 + $0xd68] sm:$0xff] }
 0x7c4   : > { %6859 = vmatprep.subr.bf16.mxu0 %v6858_v16  ;;  %v4960_v16 = vld [vmem:[%s9569_s5 + $0x30] sm:$0xff]  ;;  %v6900_v0 = vpack.c.bf16 %v4240_v41, %v4238_v48  ;;  %v6902_v54 = vpack.c.bf16 %v4245_v6, %v4243_v62  ;;  %v4275_v62 = vld [vmem:[#allocation13 + $0xe68] sm:$0xff] }
 0x7c5   : > { %6999 = vmatprep.subr.bf16.mxu1 %v6998_v31  ;;  %v4247_v31 = vld [vmem:[#allocation13 + $0xd88] sm:$0xff]  ;;  %v9573_v48 = vld [vmem:[#allocation31_spill] sm:$0xff] }
 0x7c6   : > { %4788 = vmatmul.mubr.f32.vlgmr.msra.gmra.mrb[40].mxu0 %v3771_v8  ;;  %v7000_v8 = vpack.c.bf16 %v4961_v18, %v4960_v16  ;;  %v4249_v16 = vld [vmem:[#allocation13 + $0xd98] sm:$0xff] }
 0x7c7   : > { %4793 = vmatprep.mubr.f32.mxu0 %v3805_v43  ;;  %6861 = vmatpush1.bf16.msra.mxu0 %v6860_v53  ;;  %v4225_v53 = vld [vmem:[#allocation13 + $0xcd8] sm:$0xff] }
 0x7c8   : > { %6863 = vmatprep.subr.bf16.mxu0 %v6862_v56  ;;  %v6880_v56 = vpack.c.bf16 %v4220_v42, %v4218_v23  ;;  %v4963_v43 = vld [vmem:[%s9569_s5 + $0x48] sm:$0xff]  ;;  %v6882_v14 = vpack.c.bf16 %v4225_v53, %v4223_v7  ;;  %7001 = vmatpush3.bf16.msra.mxu1 %v7000_v8  ;;  %v4246_v42 = vld [vmem:[#allocation13 + $0xd80] sm:$0xff]  ;;  %v3663_v53 = vadd.f32 1e-09, %v9287_v57 }
 0x7c9   : > { %v7004_v3 = vpack.c.bf16 %v4963_v43, %v4962_v45  ;;  %7003 = vmatprep.subr.bf16.mxu1 %v7002_v11  ;;  %v4244_v23 = vld [vmem:[#allocation13 + $0xd70] sm:$0xff]  ;;  %v4253_v7 = vld [vmem:[#allocation13 + $0xdb8] sm:$0xff]  ;;  %v6908_v8 = vpack.c.bf16 %v4248_v27, %v4246_v42  ;;  %v4250_v11 = vld [vmem:[#allocation13 + $0xda0] sm:$0xff] }
 0x7ca   : > { %4794 = vmatmul.mubr.f32.gmra.mrb[42].mxu0 %v3803_v10  ;;  %v4227_v10 = vld [vmem:[#allocation13 + $0xce8] sm:$0xff]  ;;  %v6910_v26 = vpack.c.bf16 %v4253_v7, %v4251_v12  ;;  %v4252_v45 = vld [vmem:[#allocation13 + $0xdb0] sm:$0xff]  ;;  %7331 = vrcp.f32 %v3663_v53  ;;  %v4277_v6 = vld [vmem:[#allocation13 + $0xe78] sm:$0xff] }
 0x7cb   : > { %6865 = vmatpush1.bf16.msra.mxu0 %v6864_v32  ;;  %4864 = vmatprep.mubr.f32.mxu0 %v3777_v5  ;;  %v4981_v32 = vld [vmem:[%s9569_s5 + $0xd8] sm:$0xff]  ;;  %v4280_v27 = vld [vmem:[#allocation13 + $0xe90] sm:$0xff]  ;;  %v4285_v7 = vld [vmem:[#allocation13 + $0xeb8] sm:$0xff] }
 0x7cc   : > { %6867 = vmatprep.subr.bf16.mxu0 %v6866_v1  ;;  %v4229_v1 = vld [vmem:[#allocation13 + $0xcf8] sm:$0xff]  ;;  %v4226_v5 = vld [vmem:[#allocation13 + $0xce0] sm:$0xff]  ;;  %v7006_v49 = vpack.c.bf16 %v4981_v32, %v4980_v4  ;;  %7005 = vmatpush3.bf16.msra.mxu1 %v7004_v3  ;;  %v4255_v43 = vld [vmem:[#allocation13 + $0xdc8] sm:$0xff]  ;;  %v6912_v4 = vpack.c.bf16 %v4252_v45, %v4250_v11  ;;  %v3742_v32 = vadd.f32 1e-09, %v9265_v13  ;;  %v6922_v13 = vpack.c.bf16 %v4265_v37, %v4263_v39 }
 0x7cd   : > { %v6886_v15 = vpack.c.bf16 %v4229_v1, %v4227_v10  ;;  %v6888_v2 = vpack.c.bf16 %v4228_v9, %v4226_v5  ;;  %v4254_v10 = vld [vmem:[#allocation13 + $0xdc0] sm:$0xff]  ;;  %v4256_v1 = vld [vmem:[#allocation13 + $0xdd0] sm:$0xff]  ;;  %v4259_v3 = vld [vmem:[#allocation13 + $0xde8] sm:$0xff] }
 0x7ce   : > { %7007 = vmatprep.subr.bf16.mxu1 %v7006_v49  ;;  %v4258_v49 = vld [vmem:[#allocation13 + $0xde0] sm:$0xff]  ;;  %v4283_v12 = vld [vmem:[#allocation13 + $0xea8] sm:$0xff]  ;;  %v4289_v45 = vld [vmem:[#allocation13 + $0xed8] sm:$0xff] }
 0x7cf   : > { %6869 = vmatpush1.bf16.msra.mxu0 %v6868_v55  ;;  %v4231_v55 = vld [vmem:[#allocation13 + $0xd08] sm:$0xff]  ;;  %v4262_v9 = vld [vmem:[#allocation13 + $0xe00] sm:$0xff]  ;;  %v4296_v37 = vld [vmem:[#allocation13 + $0xf10] sm:$0xff] }
 0x7d0   : > { %6871 = vmatprep.subr.bf16.mxu0 %v6870_v46  ;;  %v4966_v46 = vld [vmem:[%s9569_s5 + $0x60] sm:$0xff]  ;;  %v6890_v21 = vpack.c.bf16 %v4233_v22, %v4231_v55  ;;  %7009 = vmatpush3.bf16.msra.mxu1 %v7008_v28  ;;  %v4269_v22 = vld [vmem:[#allocation13 + $0xe38] sm:$0xff]  ;;  %v4278_v42 = vld [vmem:[#allocation13 + $0xe80] sm:$0xff] }
 0x7d1   : > { %v7012_v35 = vpack.c.bf16 %v4967_v61, %v4966_v46  ;;  %7011 = vmatprep.subr.bf16.mxu1 %v7010_v59  ;;  %v4267_v55 = vld [vmem:[#allocation13 + $0xe28] sm:$0xff]  ;;  %v9570_v59 = vld [vmem:[#allocation26_spill] sm:$0xff]  ;;  %v6940_v53 = vpack.c.bf16 %v4280_v27, %v4278_v42  ;;  %v4294_v39 = vld [vmem:[#allocation13 + $0xf00] sm:$0xff] }
 0x7d2   : > { %v6926_v61 = vpack.c.bf16 %v4269_v22, %v4267_v55  ;;  %v4287_v11 = vld [vmem:[#allocation13 + $0xec8] sm:$0xff]  ;;  %v4300_v55 = vld [vmem:[#allocation13 + $0xf30] sm:$0xff] }
 0x7d3   : > { %6873 = vmatpush1.bf16.msra.mxu0 %v6872_v38  ;;  %v4234_v38 = vld [vmem:[#allocation13 + $0xd20] sm:$0xff]  ;;  %v4303_v22 = vld [vmem:[#allocation13 + $0xf48] sm:$0xff] }
 0x7d4   : > { %6875 = vmatprep.subr.bf16.mxu0 %v6874_v50  ;;  %7013 = vmatpush3.bf16.msra.mxu1 %v7012_v35  ;;  %v6896_v19 = vpack.c.bf16 %v4236_v29, %v4234_v38  ;;  %v6898_v50 = vpack.c.bf16 %v4241_v24, %v4239_v34  ;;  %v7332_v20 = vpop.eup %7331  ;;  %v4271_v35 = vld [vmem:[#allocation13 + $0xe48] sm:$0xff]  ;;  %v9572_v29 = vld [vmem:[#allocation27_spill] sm:$0xff] }
 0x7d5   : > { %v3775_v46 = vmul.f32 %v7332_v20, %v9570_v59  ;;  %v4298_v20 = vld [vmem:[#allocation13 + $0xf20] sm:$0xff] }
 0x7d7   : > { %6877 = vmatpush1.bf16.msra.mxu0 %v6876_v30  ;;  %v4242_v30 = vld [vmem:[#allocation13 + $0xd60] sm:$0xff] }
 0x7d8   : > { %6879 = vmatprep.subr.bf16.mxu0 %v6878_v33  ;;  %v6904_v18 = vpack.c.bf16 %v4244_v23, %v4242_v30  ;;  %v6906_v33 = vpack.c.bf16 %v4249_v16, %v4247_v31  ;;  %v4274_v30 = vld [vmem:[#allocation13 + $0xe60] sm:$0xff]  ;;  %v4276_v23 = vld [vmem:[#allocation13 + $0xe70] sm:$0xff]  ;;  %v4279_v31 = vld [vmem:[#allocation13 + $0xe88] sm:$0xff] }
 0x7d9   : > { %v4281_v16 = vld [vmem:[#allocation13 + $0xe98] sm:$0xff] }
 0x7db   : > { %6881 = vmatpush1.bf16.msra.mxu0 %v6880_v56  ;;  %v3671_v56 = vadd.f32 1e-09, %v9293_v60  ;;  %v4261_v60 = vld [vmem:[#allocation13 + $0xdf8] sm:$0xff] }
 0x7dc   : > { %6883 = vmatprep.subr.bf16.mxu0 %v6882_v14  ;;  %v4257_v14 = vld [vmem:[#allocation13 + $0xdd8] sm:$0xff]  ;;  %v6918_v5 = vpack.c.bf16 %v4261_v60, %v4259_v3  ;;  %v4290_v3 = vld [vmem:[#allocation13 + $0xee0] sm:$0xff]  ;;  %v4292_v60 = vld [vmem:[#allocation13 + $0xef0] sm:$0xff] }
 0x7dd   : > { %7333 = vrcp.f32 %v3671_v56  ;;  %v6914_v57 = vpack.c.bf16 %v4257_v14, %v4255_v43  ;;  %v4282_v56 = vld [vmem:[#allocation13 + $0xea0] sm:$0xff]  ;;  %v6946_v14 = vpack.c.bf16 %v4289_v45, %v4287_v11  ;;  %v4324_v45 = vld [vmem:[#allocation13 + $0xff0] sm:$0xff] }
 0x7de   : > { %7335 = vrcp.f32 %v3669_v58  ;;  %v4286_v58 = vld [vmem:[#allocation13 + $0xec0] sm:$0xff] }
 0x7df   : > { %6885 = vmatpush1.bf16.msra.mxu0 %v6884_v17  ;;  %v6916_v17 = vpack.c.bf16 %v4256_v1, %v4254_v10  ;;  %7337 = vrcp.f32 %v3742_v32  ;;  %v4291_v32 = vld [vmem:[#allocation13 + $0xee8] sm:$0xff]  ;;  %v4322_v11 = vld [vmem:[#allocation13 + $0xfe0] sm:$0xff] }
 0x7e0   : > { %6887 = vmatprep.subr.bf16.mxu0 %v6886_v15  ;;  %v6920_v15 = vpack.c.bf16 %v4260_v44, %v4258_v49  ;;  %v6952_v49 = vpack.c.bf16 %v4292_v60, %v4290_v3  ;;  %v9579_v3 = vld [vmem:[#allocation30_spill] sm:$0xff] }
 0x7e3   : > { %6889 = vmatpush1.bf16.msra.mxu0 %v6888_v2  ;;  %v6924_v2 = vpack.c.bf16 %v4264_v47, %v4262_v9  ;;  %v6956_v9 = vpack.c.bf16 %v4296_v37, %v4294_v39  ;;  %v4969_v39 = vld [vmem:[%s9569_s5 + $0x78] sm:$0xff] }
 0x7e4   : > { %6891 = vmatprep.subr.bf16.mxu0 %v6890_v21  ;;  %v4266_v21 = vld [vmem:[#allocation13 + $0xe20] sm:$0xff] }
 0x7e5   : > { %v6928_v38 = vpack.c.bf16 %v4268_v36, %v4266_v21  ;;  %v4307_v21 = vld [vmem:[#allocation13 + $0xf68] sm:$0xff]  ;;  %v4309_v36 = vld [vmem:[#allocation13 + $0xf78] sm:$0xff] }
 0x7e7   : > { %6893 = vmatpush1.bf16.msra.mxu0 %v6892_v25  ;;  %v7334_v28 = vpop.eup %7333  ;;  %v4273_v25 = vld [vmem:[#allocation13 + $0xe58] sm:$0xff] }
 0x7e8   : > { %6895 = vmatprep.subr.bf16.mxu0 %v6894_v51  ;;  %v7336_v40 = vpop.eup %7335  ;;  %v3809_v52 = vmul.f32 %v7334_v28, %v9571_v63  ;;  %v6930_v24 = vpack.c.bf16 %v4273_v25, %v4271_v35  ;;  %v4305_v28 = vld [vmem:[#allocation13 + $0xf58] sm:$0xff]  ;;  %v6966_v63 = vpack.c.bf16 %v4309_v36, %v4307_v21  ;;  %v4308_v35 = vld [vmem:[#allocation13 + $0xf70] sm:$0xff]  ;;  %v4311_v25 = vld [vmem:[#allocation13 + $0xf88] sm:$0xff] }
 0x7e9   : > { %v7338_v51 = vpop.eup %7337  ;;  %v3807_v34 = vmul.f32 %v7336_v40, %v9572_v29  ;;  %v6962_v59 = vpack.c.bf16 %v4305_v28, %v4303_v22 }
 0x7ea   : > { %v3781_v41 = vmul.f32 %v7338_v51, %v9573_v48  ;;  %v4313_v51 = vld [vmem:[#allocation13 + $0xf98] sm:$0xff]  ;;  %v9574_v48 = vld [vmem:[#allocation33_spill] sm:$0xff] }
 0x7eb   : > { %6897 = vmatpush1.bf16.msra.mxu0 %v6896_v19  ;;  %v4270_v19 = vld [vmem:[#allocation13 + $0xe40] sm:$0xff]  ;;  %v6970_v29 = vpack.c.bf16 %v4313_v51, %v4311_v25 }
 0x7ec   : > { %6899 = vmatprep.subr.bf16.mxu0 %v6898_v50  ;;  %v4272_v50 = vld [vmem:[#allocation13 + $0xe50] sm:$0xff] }
 0x7ef   : > { %6901 = vmatpush1.bf16.msra.mxu0 %v6900_v0  ;;  %v6932_v0 = vpack.c.bf16 %v4272_v50, %v4270_v19  ;;  %v4315_v19 = vld [vmem:[#allocation13 + $0xfa8] sm:$0xff]  ;;  %v4317_v50 = vld [vmem:[#allocation13 + $0xfb8] sm:$0xff] }
 0x7f0   : > { %6903 = vmatprep.subr.bf16.mxu0 %v6902_v54  ;;  %v6934_v54 = vpack.c.bf16 %v4277_v6, %v4275_v62  ;;  %v9575_v6 = vld [vmem:[#allocation35_spill] sm:$0xff] }
 0x7f3   : > { %6905 = vmatpush1.bf16.msra.mxu0 %v6904_v18  ;;  %v6936_v18 = vpack.c.bf16 %v4276_v23, %v4274_v30  ;;  %v4314_v30 = vld [vmem:[#allocation13 + $0xfa0] sm:$0xff]  ;;  %v4316_v23 = vld [vmem:[#allocation13 + $0xfb0] sm:$0xff] }
 0x7f4   : > { %6907 = vmatprep.subr.bf16.mxu0 %v6906_v33  ;;  %v6938_v33 = vpack.c.bf16 %v4281_v16, %v4279_v31  ;;  %v4319_v31 = vld [vmem:[#allocation13 + $0xfc8] sm:$0xff]  ;;  %v4321_v16 = vld [vmem:[#allocation13 + $0xfd8] sm:$0xff]  ;;  %v6976_v42 = vpack.c.bf16 %v4316_v23, %v4314_v30 }
 0x7f5   : > { %v6978_v27 = vpack.c.bf16 %v4321_v16, %v4319_v31 }
 0x7f7   : > { %6909 = vmatpush1.bf16.msra.mxu0 %v6908_v8  ;;  %v6942_v8 = vpack.c.bf16 %v4285_v7, %v4283_v12  ;;  %v4318_v12 = vld [vmem:[#allocation13 + $0xfc0] sm:$0xff]  ;;  %v4320_v7 = vld [vmem:[#allocation13 + $0xfd0] sm:$0xff] }
 0x7f8   : > { %6911 = vmatprep.subr.bf16.mxu0 %v6910_v26  ;;  %v4284_v26 = vld [vmem:[#allocation13 + $0xeb0] sm:$0xff] }
 0x7f9   : > { %v6944_v43 = vpack.c.bf16 %v4284_v26, %v4282_v56  ;;  %v6980_v56 = vpack.c.bf16 %v4320_v7, %v4318_v12 }
 0x7fb   : > { %6913 = vmatpush1.bf16.msra.mxu0 %v6912_v4  ;;  %v4288_v4 = vld [vmem:[#allocation13 + $0xed0] sm:$0xff] }
 0x7fc   : > { %6915 = vmatprep.subr.bf16.mxu0 %v6914_v57  ;;  %v4293_v57 = vld [vmem:[#allocation13 + $0xef8] sm:$0xff]  ;;  %v6948_v10 = vpack.c.bf16 %v4288_v4, %v4286_v58  ;;  %v9577_v4 = vld [vmem:[#allocation29_spill] sm:$0xff] }
 0x7fd   : > { %v6950_v1 = vpack.c.bf16 %v4293_v57, %v4291_v32 }
 0x7ff   : > { %6917 = vmatpush1.bf16.msra.mxu0 %v6916_v17  ;;  %v4295_v17 = vld [vmem:[#allocation13 + $0xf08] sm:$0xff] }
 0x800   : > { %6919 = vmatprep.subr.bf16.mxu0 %v6918_v5  ;;  %v4297_v5 = vld [vmem:[#allocation13 + $0xf18] sm:$0xff] }
 0x801   : > { %v6954_v44 = vpack.c.bf16 %v4297_v5, %v4295_v17  ;;  %v4984_v17 = vld [vmem:[%s9569_s5 + $0xf0] sm:$0xff]  ;;  %v4985_v5 = vld [vmem:[%s9569_s5 + $0xf8] sm:$0xff] }
 0x803   : > { %6921 = vmatpush1.bf16.msra.mxu0 %v6920_v15  ;;  %v4299_v15 = vld [vmem:[#allocation13 + $0xf28] sm:$0xff] }
 0x804   : > { %6923 = vmatprep.subr.bf16.mxu0 %v6922_v13  ;;  %v4301_v13 = vld [vmem:[#allocation13 + $0xf38] sm:$0xff] }
 0x805   : > { %v6958_v47 = vpack.c.bf16 %v4301_v13, %v4299_v15  ;;  %v4326_v15 = vld [vmem:[#allocation14] sm:$0x3]  ;;  %v9580_v13 = vld [vmem:[#allocation24_spill] sm:$0xff] }
 0x806   : > { %4865 = vmatmul.mubr.f32.vlgmr.msra.gmra.mrb[40].mxu0 %v3775_v46  ;;  %v4302_v46 = vld [vmem:[#allocation13 + $0xf40] sm:$0xff] }
 0x807   : > { %4870 = vmatprep.mubr.f32.mxu0 %v3809_v52  ;;  %6925 = vmatpush1.bf16.msra.mxu0 %v6924_v2  ;;  %v6960_v2 = vpack.c.bf16 %v4300_v55, %v4298_v20  ;;  %v4306_v52 = vld [vmem:[#allocation13 + $0xf60] sm:$0xff] }
 0x808   : > { %6927 = vmatprep.subr.bf16.mxu0 %v6926_v61  ;;  %v4304_v61 = vld [vmem:[#allocation13 + $0xf50] sm:$0xff] }
 0x809   : > { %v6964_v40 = vpack.c.bf16 %v4304_v61, %v4302_v46 }
 0x80a   : > { %4871 = vmatmul.mubr.f32.gmra.mrb[42].mxu0 %v3807_v34  ;;  %v4310_v34 = vld [vmem:[#allocation13 + $0xf80] sm:$0xff] }
 0x80b   : > { %6929 = vmatpush1.bf16.msra.mxu0 %v6928_v38  ;;  %4941 = vmatprep.mubr.f32.mxu0 %v3781_v41  ;;  %v6968_v38 = vpack.c.bf16 %v4308_v35, %v4306_v52  ;;  %v3740_v41 = vadd.f32 1e-09, %v9574_v48 }
 0x80c   : > { %6931 = vmatprep.subr.bf16.mxu0 %v6930_v24  ;;  %v4312_v24 = vld [vmem:[#allocation13 + $0xf90] sm:$0xff] }
 0x80d   : > { %v6972_v62 = vpack.c.bf16 %v4312_v24, %v4310_v34  ;;  %7339 = vrcp.f32 %v3740_v41 }
 0x80f   : > { %6933 = vmatpush1.bf16.msra.mxu0 %v6932_v0  ;;  %v3748_v0 = vadd.f32 1e-09, %v9575_v6 }
 0x810   : > { %6935 = vmatprep.subr.bf16.mxu0 %v6934_v54  ;;  %v6974_v54 = vpack.c.bf16 %v4317_v50, %v4315_v19 }
 0x811   : > { %7341 = vrcp.f32 %v3748_v0 }
 0x813   : > { %6937 = vmatpush1.bf16.msra.mxu0 %v6936_v18  ;;  %v9576_v18 = vld [vmem:[#allocation34_spill] sm:$0xff] }
 0x814   : > { %6939 = vmatprep.subr.bf16.mxu0 %v6938_v33  ;;  %v3746_v33 = vadd.f32 1e-09, %v9576_v18 }
 0x816   : > { %7343 = vrcp.f32 %v3746_v33 }
 0x817   : > { %6941 = vmatpush1.bf16.msra.mxu0 %v6940_v53  ;;  %v4323_v53 = vld [vmem:[#allocation13 + $0xfe8] sm:$0xff] }
 0x818   : > { %6943 = vmatprep.subr.bf16.mxu0 %v6942_v8  ;;  %v4325_v8 = vld [vmem:[#allocation13 + $0xff8] sm:$0xff] }
 0x819   : > { %v6982_v26 = vpack.c.bf16 %v4325_v8, %v4323_v53 }
 0x81b   : > { %6945 = vmatpush1.bf16.msra.mxu0 %v6944_v43  ;;  %v6984_v43 = vpack.c.bf16 %v4324_v45, %v4322_v11 }
 0x81c   : > { %6947 = vmatprep.subr.bf16.mxu0 %v6946_v14  ;;  %v7340_v14 = vpop.eup %7339 }
 0x81d   : > { %v7342_v58 = vpop.eup %7341  ;;  %v3779_v32 = vmul.f32 %v7340_v14, %v9577_v4 }
 0x81f   : > { %6949 = vmatpush1.bf16.msra.mxu0 %v6948_v10  ;;  %v9578_v10 = vld [vmem:[#allocation32_spill] sm:$0xff] }
 0x820   : > { %6951 = vmatprep.subr.bf16.mxu0 %v6950_v1  ;;  %v7344_v57 = vpop.eup %7343  ;;  %v3813_v1 = vmul.f32 %v7342_v58, %v9578_v10 }
 0x821   : > { %v3811_v60 = vmul.f32 %v7344_v57, %v9579_v3 }
 0x823   : > { %6953 = vmatpush1.bf16.msra.mxu0 %v6952_v49  ;;  %v7014_v49 = vpack.c.bf16 %v4985_v5, %v4984_v17 }
 0x824   : > { %6955 = vmatprep.subr.bf16.mxu0 %v6954_v44  ;;  %v4968_v44 = vld [vmem:[%s9569_s5 + $0x70] sm:$0xff] }
 0x825   : > { %v7016_v37 = vpack.c.bf16 %v4969_v39, %v4968_v44  ;;  %7015 = vmatprep.subr.bf16.mxu1 %v7014_v49 }
 0x827   : > { %6957 = vmatpush1.bf16.msra.mxu0 %v6956_v9  ;;  %7017 = vmatpush3.bf16.msra.mxu1 %v7016_v37  ;;  %v4335_v9 = vrot.slane %v4326_v15, %v9580_v13 }
 0x828   : > { %6959 = vmatprep.subr.bf16.mxu0 %v6958_v47  ;;  %v9581_v47 = vld [vmem:[#allocation25_spill] sm:$0xff] }
 0x829   : > { %v4331_v20 = vrot.slane %v4326_v15, %v9581_v47 }
 0x82b   : > { %6961 = vmatpush1.bf16.msra.mxu0 %v6960_v2 }
 0x82c   : > { %6963 = vmatprep.subr.bf16.mxu0 %v6962_v59 }
 0x82f   : > { %6965 = vmatpush1.bf16.msra.mxu0 %v6964_v40  ;;  %v5276_v40 = vld [vmem:[#allocation16] ss:$0 sm:$0xff] }
 0x830   : > { %6967 = vmatprep.subr.bf16.mxu0 %v6966_v63 }
 0x833   : > { %6969 = vmatpush1.bf16.msra.mxu0 %v6968_v38 }
 0x834   : > { %6971 = vmatprep.subr.bf16.mxu0 %v6970_v29 }
 0x837   : > { %6973 = vmatpush1.bf16.msra.mxu0 %v6972_v62 }
 0x838   : > { %6975 = vmatprep.subr.bf16.mxu0 %v6974_v54 }
 0x83b   : > { %6977 = vmatpush1.bf16.msra.mxu0 %v6976_v42 }
 0x83c   : > { %6979 = vmatprep.subr.bf16.mxu0 %v6978_v27 }
 0x83f   : > { %6981 = vmatpush1.bf16.msra.mxu0 %v6980_v56 }
 0x840   : > { %6983 = vmatprep.subr.bf16.mxu0 %v6982_v26 }
 0x843   : > { %6985 = vmatpush1.bf16.msra.mxu0 %v6984_v43 }
 0x846   : > { %4942 = vmatmul.mubr.f32.vlgmr.msra.gmra.mrb[40].mxu0 %v3779_v32 }
 0x847   : > { %4947 = vmatprep.mubr.f32.mxu0 %v3813_v1 }
 0x84a   : > { %4948 = vmatmul.mubr.f32.gmra.mrb[42].mxu0 %v3811_v60 }
 0x919   : > { %v4943_v55 = vpop.f32.mrb[40].mxu0 }
 0x91a   : > { %v4945_v22 = vpop.f32.mrb[41].mxu0  ;;  %v7018_v2 = vadd.f32 %v4943_v55, %v4331_v20 }
 0x91b   : > { %v7019_v28 = vadd.f32 %v4945_v22, %v4335_v9 }
 0x91d   : > { %v4949_v59 = vpop.f32.mrb[42].mxu0  ;;  %5057 = vmatprep.mubr.f32.mxu1 %v7019_v28 }
 0x91e   : > { %v4951_v46 = vpop.f32.mrb[43].mxu0  ;;  %5058 = vmatmul.mubr.f32.vlgmr.msra.gmra.mrb[60].mxu1 %v7018_v2  ;;  %v7020_v21 = vadd.f32 %v4949_v59, %v4331_v20 }
 0x91f   : > { %v7021_v61 = vadd.f32 %v4951_v46, %v4335_v9 }
 0x921   : > { %5062 = vmatprep.mubr.f32.mxu1 %v7021_v61 }
 0x922   : > { %5063 = vmatmul.mubr.f32.gmra.mrb[62].mxu1 %v7020_v21 }
 0x9f1   : > { %v5620_v36 = vpop.f32.mrb[60].mxu1 }
 0x9f2   : > { %v5621_v63 = vpop.f32.mrb[61].mxu1 }
 0x9f3   : > { %v5622_v52 = vadd.f32 %v5621_v63, %v5620_v36 }
 0x9f5   : > { %v5060_v35 = vadd.f32 %v5622_v52, %v5276_v40  ;;  %v5623_v25 = vpop.f32.mrb[62].mxu1 }
 0x9f6   : > { %v5624_v51 = vpop.f32.mrb[63].mxu1 }
 0x9f7   : > { %5068 = vst.msk [vmem:[%s512_s21] sm:$0xff] %vm543_vm0, %v5060_v35  ;;  %v5625_v38 = vadd.f32 %v5624_v51, %v5623_v25 }
 0x9f9   : > { %v5065_v29 = vadd.f32 %v5625_v38, %v5276_v40 }
 0x9fb   : > { %5069 = vst.msk [vmem:[%s512_s21 + $0x8] sm:$0xff] %vm543_vm0, %v5065_v29 }
 0x9fc   : > { %7614 = shalt.err (!%p7611_p9)
}
 0x9fd   : > { %s7615_s30 = scalar_lea.hbm %s9454_s28, 256  ;;  %s7619_s16 = scalar_lea.hbm %s9583_s26, 512 }
 0x9fe   : > { %p7616_p4 = scmp.ne.s32.totalorder %s9454_s28, %s7615_s30  ;;  %p7620_p2 = scmp.lt.u32.totalorder %s9454_s28, %s9583_s26 }
 0x9ff   : > { %p7621_p6 = scmp.lt.u32.totalorder %s7619_s16, %s7615_s30  ;;  %p7623_p10 = scmp.lt.u32.totalorder %s7615_s30, %s9454_s28 }
 0xa00   : > { %p7617_p3 = pnand %p7616_p4, %p9584_p1 }
 0xa01   : > { %p7622_p5 = por %p7621_p6, %p7620_p2 }
 0xa02   : > { %p7618_p0 = pneg %p7617_p3 }
 0xa03   : > { %p7624_p11 = por %p7623_p10, %p7622_p5 }
 0xa05   : > { %p7625_p12 = pnand %p7624_p11, %p7618_p0 }
 0xa07   : > { %7628 = shalt.err (!%p7625_p12)
}
 0xa08   : > { %s7701_s22 = smov 128   ;;  %s7702_s14 = smov 8  }
 0xa09   : > { %7084 = dma.vmem_to_hbm [thread:$0]  (%p9584_p1), %s9456_s24, 256, %s9454_s28, %s5071_s23, %s7701_s22, %s7701_s22, %s7702_s14  }
 0xa0a PF: > { %s5099_s21 = sand.u32 1, %s7671_s17   ;;  %p9585_p13 = scmp.ne.s32.totalorder %s9545_s25, 0 }
 0xa0b   : > { %p9586_p8 = scmp.ge.s32.totalorder %s7683_s20, 2  ;;  %s5100_s30 = scalar_lea.sflag [#allocation4], %s5099_s21 }
 0xa0d   : > { %p7116_p7 = pnand %p9586_p8, %p9585_p13 }
 0xa0f   : > { %7666 = dma.done.wait (!%p7116_p7), %s5100_s30, 256  }
 0xa10   : > { %7668 = vsyncadd (!%p7116_p7), %s5100_s30, 4294967040  ;;  %p28_p9 = scmp.ge.s32.totalorder %s7979_s27, 4   ;;  %s9587_s17 = smov %s7675_s18 }
 0xa11   : > { %s9588_s18 = smov %s7679_s19  ;;  %s9589_s19 = smov %s7990_s11 }
 0xa12   : > { %s9590_s20 = smov %s7979_s27  ;;  %30 = sbr.rel (!%p28_p9) target bundleno = 14 (0xe), region = 141 }
 0xa19   :  { %5105 = vsyncpa [#allocation3], 1 }
 0xa1a   :  { %5107 = vsyncpa [#allocation3 + $0x1], 1 }
 0xa1b   :  { %5108 = vsyncpa [#allocation6], 1 }
 0xa1c   :  { %5109 = vsyncpa [#allocation9], 1 }
 0xa1d   :  { %5110 = vsyncpa [#allocation12], 1 }
 0xa1e   :  { %5111 = vsyncpa [#allocation15], 1 }
 0xa1f   :  { %5112 = vsyncpa [#allocation4], 1 }
 0xa20   :  { %5114 = vsyncpa [#allocation4 + $0x1], 1 }

</bundles_post_ra>
